<compile_context>
chip_gen: v6e
topology: v6e:2x2x1
jax: 0.10.0
libtpu: 0.0.40
codegen_flags: <defaults>
</compile_context>

<pallas_src>
import jax
import jax.numpy as jnp
import numpy as np
from jax.experimental import pallas as pl
from jax.experimental.pallas import tpu as pltpu

EPS = 1e-5
VMEM_LIMIT = 32 * 1024 * 1024   # explicit scoped-VMEM limit, safe on v5e/v6e/v7x


def _cparams():
    return pltpu.CompilerParams(dimension_semantics=("parallel",),
                                vmem_limit_bytes=VMEM_LIMIT)


def encoder_block_forward(x_nchw, w1, b1, w2, b2, gamma, beta,
                          matmul_dtype=jnp.float32):
    """Forward of the PyTorch encoder_block. Returns (out, pooled) in NCHW.

    b1/b2 are accepted for parameter parity but not computed: a conv bias
    right before training-mode BatchNorm is cancelled exactly by the mean
    subtraction.  Set matmul_dtype=jnp.bfloat16 on v6e/v7x to halve the MXU
    input traffic (elementwise BN/ReLU math stays f32).
    """
    del b1, b2
    N, Ci, H, W = x_nchw.shape
    Co = w1.shape[-1]
    assert H % 2 == 0 and W % 2 == 0
    Hp, Wp = H + 2, W + 2
    HpWp = Hp * Wp
    Rc = HpWp - 2 * (Wp + 1)        # rows computed per image by each conv
    Ro = Wp * H                     # rows of the padded-width output slab
    Ho, Wo = H // 2, W // 2
    count = float(N * H * W)        # BN reduction count (interior pixels)
    f32 = jnp.float32

    # ---- glue: NCHW -> NHWC, zero pad, flatten rows; weight reshape ---------
    x = jnp.transpose(x_nchw, (0, 2, 3, 1)).astype(f32)
    xp = jnp.pad(x, ((0, 0), (1, 1), (1, 1), (0, 0))).reshape(N, HpWp, Ci)
    xp = xp.astype(matmul_dtype)
    w1r = w1.reshape(9 * Ci, Co).astype(matmul_dtype)
    w2r = w2.reshape(9 * Co, Co).astype(matmul_dtype)

    # interior-row mask: row r of the computed range is a real pixel iff
    # (r % Wp) < W (otherwise it is on the zero-padding ring).
    mask = (jnp.arange(Rc, dtype=jnp.int32) % Wp < W).astype(f32).reshape(Rc, 1)

    def im2col_rows(src_ref):
        # src_ref: (HpWp, C) flattened padded map -> (Rc, 9*C) im2col patches
        taps = [src_ref[ky * Wp + kx: ky * Wp + kx + Rc, :]
                for ky in range(3) for kx in range(3)]
        return jnp.concatenate(taps, axis=1)

    def masked_stats(y, m):
        ym = y * m
        return jnp.concatenate([jnp.sum(ym, axis=0, keepdims=True),
                                jnp.sum(ym * y, axis=0, keepdims=True)], axis=0)

    # ---- pass A: conv1 + per-image partial BN stats --------------------------
    def conv1_kernel(xp_ref, w_ref, m_ref, y_ref, st_ref):
        patches = im2col_rows(xp_ref)                               # (Rc, 9*Ci)
        y = jnp.dot(patches, w_ref[...],
                    preferred_element_type=jnp.float32)             # (Rc, Co)
        y_ref[...] = y
        st_ref[...] = masked_stats(y, m_ref[...])                   # (2, Co)

    y1, st1 = pl.pallas_call(
        conv1_kernel,
        out_shape=(jax.ShapeDtypeStruct((N, Rc, Co), f32),
                   jax.ShapeDtypeStruct((N, 2, Co), f32)),
        grid=(N,),
        in_specs=[pl.BlockSpec((None, HpWp, Ci), lambda i: (i, 0, 0)),
                  pl.BlockSpec((9 * Ci, Co), lambda i: (0, 0)),
                  pl.BlockSpec((Rc, 1), lambda i: (0, 0))],
        out_specs=(pl.BlockSpec((None, Rc, Co), lambda i: (i, 0, 0)),
                   pl.BlockSpec((None, 2, Co), lambda i: (i, 0, 0))),
        compiler_params=_cparams(),
        cost_estimate=pl.CostEstimate(
            flops=2 * N * Rc * 9 * Ci * Co, transcendentals=0,
            bytes_accessed=4 * (N * HpWp * Ci + 9 * Ci * Co + Rc
                                + N * Rc * Co + N * 2 * Co)),
    )(xp, w1r, mask)

    # tiny per-channel glue: reduce partial stats, build BN scale/shift
    def bn_scale_shift(stats):
        s = jnp.sum(stats[:, 0, :], axis=0)
        ss = jnp.sum(stats[:, 1, :], axis=0)
        mean = s / count
        var = ss / count - mean * mean          # biased batch variance
        scale = gamma * jax.lax.rsqrt(var + EPS)
        shift = beta - mean * scale
        return (scale.reshape(1, Co).astype(f32),
                shift.reshape(1, Co).astype(f32))

    scale1, shift1 = bn_scale_shift(st1)

    # ---- pass B: BN1 apply + ReLU + conv2 + partial BN stats ------------------
    def conv2_kernel(y1_ref, sc_ref, sh_ref, w_ref, m_ref,
                     y2_ref, st_ref, h1p_ref):
        m = m_ref[...]
        h1 = jnp.maximum(y1_ref[...] * sc_ref[...] + sh_ref[...], 0.0) * m
        # rebuild the zero-padded h1 map; zero only the padding-ring slabs
        h1p_ref[0:Wp + 1, :] = jnp.zeros((Wp + 1, Co), h1p_ref.dtype)
        h1p_ref[Wp + 1:Wp + 1 + Rc, :] = h1.astype(h1p_ref.dtype)
        h1p_ref[Wp + 1 + Rc:HpWp, :] = jnp.zeros((Wp + 1, Co), h1p_ref.dtype)
        patches = im2col_rows(h1p_ref)                              # (Rc, 9*Co)
        y2 = jnp.dot(patches, w_ref[...],
                     preferred_element_type=jnp.float32)
        y2_ref[...] = y2
        st_ref[...] = masked_stats(y2, m)

    y2, st2 = pl.pallas_call(
        conv2_kernel,
        out_shape=(jax.ShapeDtypeStruct((N, Rc, Co), f32),
                   jax.ShapeDtypeStruct((N, 2, Co), f32)),
        grid=(N,),
        in_specs=[pl.BlockSpec((None, Rc, Co), lambda i: (i, 0, 0)),
                  pl.BlockSpec((1, Co), lambda i: (0, 0)),
                  pl.BlockSpec((1, Co), lambda i: (0, 0)),
                  pl.BlockSpec((9 * Co, Co), lambda i: (0, 0)),
                  pl.BlockSpec((Rc, 1), lambda i: (0, 0))],
        out_specs=(pl.BlockSpec((None, Rc, Co), lambda i: (i, 0, 0)),
                   pl.BlockSpec((None, 2, Co), lambda i: (i, 0, 0))),
        scratch_shapes=[pltpu.VMEM((HpWp, Co), matmul_dtype)],
        compiler_params=_cparams(),
        cost_estimate=pl.CostEstimate(
            flops=2 * N * Rc * 9 * Co * Co, transcendentals=0,
            bytes_accessed=4 * (2 * N * Rc * Co + 9 * Co * Co + Rc
                                + N * 2 * Co)),
    )(y1, scale1, shift1, w2r, mask)

    scale2, shift2 = bn_scale_shift(st2)

    # ---- pass C: BN2 apply + ReLU + fused 2x2 max-pool ------------------------
    def bn_pool_kernel(y2_ref, sc_ref, sh_ref, m_ref, out_ref, pool_ref):
        h2 = jnp.maximum(y2_ref[...] * sc_ref[...] + sh_ref[...], 0.0) * m_ref[...]
        out_ref[0:Rc, :] = h2
        out_ref[Rc:Ro, :] = jnp.zeros((Ro - Rc, Co), f32)   # padded tail rows
        # fused 2x2 max pool: strided reads of the output tile still in VMEM
        # (out_ref row Wp*yy + xx == interior pixel (yy, xx))
        for y in range(Ho):
            r0 = 2 * y * Wp
            a = out_ref[pl.ds(r0, Wo, stride=2), :]
            b = out_ref[pl.ds(r0 + 1, Wo, stride=2), :]
            c = out_ref[pl.ds(r0 + Wp, Wo, stride=2), :]
            d = out_ref[pl.ds(r0 + Wp + 1, Wo, stride=2), :]
            pool_ref[y * Wo:(y + 1) * Wo, :] = jnp.maximum(
                jnp.maximum(a, b), jnp.maximum(c, d))

    out_flat, pooled_flat = pl.pallas_call(
        bn_pool_kernel,
        out_shape=(jax.ShapeDtypeStruct((N, Ro, Co), f32),
                   jax.ShapeDtypeStruct((N, Ho * Wo, Co), f32)),
        grid=(N,),
        in_specs=[pl.BlockSpec((None, Rc, Co), lambda i: (i, 0, 0)),
                  pl.BlockSpec((1, Co), lambda i: (0, 0)),
                  pl.BlockSpec((1, Co), lambda i: (0, 0)),
                  pl.BlockSpec((Rc, 1), lambda i: (0, 0))],
        out_specs=(pl.BlockSpec((None, Ro, Co), lambda i: (i, 0, 0)),
                   pl.BlockSpec((None, Ho * Wo, Co), lambda i: (i, 0, 0))),
        compiler_params=_cparams(),
        cost_estimate=pl.CostEstimate(
            flops=8 * N * Rc * Co, transcendentals=0,
            bytes_accessed=4 * (N * Rc * Co + Rc + N * Ro * Co
                                + N * Ho * Wo * Co)),
    )(y2, scale2, shift2, mask)

    # ---- glue: drop padded columns, back to NCHW ------------------------------
    out_nhwc = out_flat.reshape(N, H, Wp, Co)[:, :, :W, :]
    out = jnp.transpose(out_nhwc, (0, 3, 1, 2))
    pooled = jnp.transpose(pooled_flat.reshape(N, Ho, Wo, Co), (0, 3, 1, 2))
    return out, pooled


# -------------------------- pure-JAX reference --------------------------------
def reference_forward(x_nchw, w1, b1, w2, b2, gamma, beta):
    def conv(x, w, b):
        w_oihw = jnp.transpose(w, (3, 2, 0, 1))
        y = jax.lax.conv_general_dilated(
            x, w_oihw, window_strides=(1, 1), padding=((1, 1), (1, 1)),
            dimension_numbers=("NCHW", "OIHW", "NCHW"))
        return y + b.reshape(1, -1, 1, 1)

    def bn_relu(y):
        mean = jnp.mean(y, axis=(0, 2, 3), keepdims=True)
        var = jnp.mean((y - mean) ** 2, axis=(0, 2, 3), keepdims=True)
        yn = (y - mean) / jnp.sqrt(var + EPS)
        yn = yn * gamma.reshape(1, -1, 1, 1) + beta.reshape(1, -1, 1, 1)
        return jnp.maximum(yn, 0.0)

    h1 = bn_relu(conv(x_nchw, w1, b1))
    h2 = bn_relu(conv(h1, w2, b2))
    pooled = jax.lax.reduce_window(h2, -jnp.inf, jax.lax.max,
                                   (1, 1, 2, 2), (1, 1, 2, 2), "VALID")
    return h2, pooled


if __name__ == "__main__":
    # small shapes consistent with the module: batch=2, Cin=4, Cout=8, 16x16
    N, Ci, Co, H, W = 2, 4, 8, 16, 16

    key = jax.random.PRNGKey(0)
    kx, k1, k2, k3, k4, k5, k6 = jax.random.split(key, 7)
    x = jax.random.normal(kx, (N, Ci, H, W), jnp.float32)
    w1 = 0.2 * jax.random.normal(k1, (3, 3, Ci, Co), jnp.float32)
    b1 = 0.1 * jax.random.normal(k2, (Co,), jnp.float32)
    w2 = 0.2 * jax.random.normal(k3, (3, 3, Co, Co), jnp.float32)
    b2 = 0.1 * jax.random.normal(k4, (Co,), jnp.float32)
    gamma = 1.0 + 0.1 * jax.random.normal(k5, (Co,), jnp.float32)
    beta = 0.1 * jax.random.normal(k6, (Co,), jnp.float32)

    fwd = jax.jit(encoder_block_forward)
    out, pooled = fwd(x, w1, b1, w2, b2, gamma, beta)
    jax.block_until_ready((out, pooled))

    out_ref, pooled_ref = reference_forward(x, w1, b1, w2, b2, gamma, beta)
    np.testing.assert_allclose(np.asarray(out), np.asarray(out_ref),
                               rtol=1e-3, atol=1e-3)
    np.testing.assert_allclose(np.asarray(pooled), np.asarray(pooled_ref),
                               rtol=1e-3, atol=1e-3)

    assert out.shape == (N, Co, H, W) and pooled.shape == (N, Co, H // 2, W // 2)
    print("KERNEL_OK")
</pallas_src>

<mosaic_0001>
module attributes {stable_mosaic.version = 11 : i64} {
  func.func @conv1_kernel(%arg0: i32, %arg1: memref<1x324x4xf32, #tpu.memory_space<vmem>>, %arg2: memref<36x8xf32, #tpu.memory_space<vmem>>, %arg3: memref<286x1xf32, #tpu.memory_space<vmem>>, %arg4: memref<1x286x8xf32, #tpu.memory_space<vmem>>, %arg5: memref<1x2x8xf32, #tpu.memory_space<vmem>>) attributes {dimension_semantics = [#tpu.dimension_semantics<parallel>], iteration_bounds = array<i64: 2>, scalar_prefetch = 0 : i64, scratch_operands = 0 : i64, tpu.core_type = #tpu.core_type<tc>, window_params = [{transform_indices = @transform_0, window_bounds = array<i64: 1, 324, 4>}, {pipeline_mode = #tpu.pipeline_mode<synchronous>, transform_indices = @transform_1, window_bounds = array<i64: 36, 8>}, {pipeline_mode = #tpu.pipeline_mode<synchronous>, transform_indices = @transform_2, window_bounds = array<i64: 286, 1>}, {transform_indices = @transform_3, window_bounds = array<i64: 1, 286, 8>}, {transform_indices = @transform_4, window_bounds = array<i64: 1, 2, 8>}]} {
    %c0 = arith.constant 0 : index
    %c0_0 = arith.constant 0 : index
    %c0_1 = arith.constant 0 : index
    %0 = vector.load %arg1[%c0, %c0_0, %c0_1] : memref<1x324x4xf32, #tpu.memory_space<vmem>>, vector<1x286x4xf32>
    %1 = vector.shape_cast %0 : vector<1x286x4xf32> to vector<286x4xf32>
    %c0_2 = arith.constant 0 : index
    %c1 = arith.constant 1 : index
    %c0_3 = arith.constant 0 : index
    %2 = vector.load %arg1[%c0_2, %c1, %c0_3] : memref<1x324x4xf32, #tpu.memory_space<vmem>>, vector<1x286x4xf32>
    %3 = vector.shape_cast %2 : vector<1x286x4xf32> to vector<286x4xf32>
    %c0_4 = arith.constant 0 : index
    %c2 = arith.constant 2 : index
    %c0_5 = arith.constant 0 : index
    %4 = vector.load %arg1[%c0_4, %c2, %c0_5] : memref<1x324x4xf32, #tpu.memory_space<vmem>>, vector<1x286x4xf32>
    %5 = vector.shape_cast %4 : vector<1x286x4xf32> to vector<286x4xf32>
    %c0_6 = arith.constant 0 : index
    %c18 = arith.constant 18 : index
    %c0_7 = arith.constant 0 : index
    %6 = vector.load %arg1[%c0_6, %c18, %c0_7] : memref<1x324x4xf32, #tpu.memory_space<vmem>>, vector<1x286x4xf32>
    %7 = vector.shape_cast %6 : vector<1x286x4xf32> to vector<286x4xf32>
    %c0_8 = arith.constant 0 : index
    %c19 = arith.constant 19 : index
    %c0_9 = arith.constant 0 : index
    %8 = vector.load %arg1[%c0_8, %c19, %c0_9] : memref<1x324x4xf32, #tpu.memory_space<vmem>>, vector<1x286x4xf32>
    %9 = vector.shape_cast %8 : vector<1x286x4xf32> to vector<286x4xf32>
    %c0_10 = arith.constant 0 : index
    %c20 = arith.constant 20 : index
    %c0_11 = arith.constant 0 : index
    %10 = vector.load %arg1[%c0_10, %c20, %c0_11] : memref<1x324x4xf32, #tpu.memory_space<vmem>>, vector<1x286x4xf32>
    %11 = vector.shape_cast %10 : vector<1x286x4xf32> to vector<286x4xf32>
    %c0_12 = arith.constant 0 : index
    %c36 = arith.constant 36 : index
    %c0_13 = arith.constant 0 : index
    %12 = vector.load %arg1[%c0_12, %c36, %c0_13] : memref<1x324x4xf32, #tpu.memory_space<vmem>>, vector<1x286x4xf32>
    %13 = vector.shape_cast %12 : vector<1x286x4xf32> to vector<286x4xf32>
    %c0_14 = arith.constant 0 : index
    %c37 = arith.constant 37 : index
    %c0_15 = arith.constant 0 : index
    %14 = vector.load %arg1[%c0_14, %c37, %c0_15] : memref<1x324x4xf32, #tpu.memory_space<vmem>>, vector<1x286x4xf32>
    %15 = vector.shape_cast %14 : vector<1x286x4xf32> to vector<286x4xf32>
    %c0_16 = arith.constant 0 : index
    %c38 = arith.constant 38 : index
    %c0_17 = arith.constant 0 : index
    %16 = vector.load %arg1[%c0_16, %c38, %c0_17] : memref<1x324x4xf32, #tpu.memory_space<vmem>>, vector<1x286x4xf32>
    %17 = vector.shape_cast %16 : vector<1x286x4xf32> to vector<286x4xf32>
    %18 = tpu.concatenate %1, %3, %5, %7, %9, %11, %13, %15, %17 in 1 : vector<286x4xf32>, vector<286x4xf32>, vector<286x4xf32>, vector<286x4xf32>, vector<286x4xf32>, vector<286x4xf32>, vector<286x4xf32>, vector<286x4xf32>, vector<286x4xf32> -> vector<286x36xf32>
    %c0_18 = arith.constant 0 : index
    %c0_19 = arith.constant 0 : index
    %19 = vector.load %arg2[%c0_18, %c0_19] : memref<36x8xf32, #tpu.memory_space<vmem>>, vector<36x8xf32>
    %cst = arith.constant dense<0.000000e+00> : vector<286x8xf32>
    %20 = tpu.matmul %18, %19, %cst {dimension_numbers = #tpu.dot_dimension_numbers<[1], [0], [0], [1], [0, 0, 1, 1], [], []>} : vector<286x36xf32>, vector<36x8xf32>, vector<286x8xf32> -> vector<286x8xf32>
    %c0_20 = arith.constant 0 : index
    %c0_21 = arith.constant 0 : index
    %c0_22 = arith.constant 0 : index
    %21 = vector.load %arg4[%c0_20, %c0_21, %c0_22] : memref<1x286x8xf32, #tpu.memory_space<vmem>>, vector<1x286x8xf32>
    %22 = vector.shape_cast %21 : vector<1x286x8xf32> to vector<286x8xf32>
    %23 = vector.shape_cast %20 : vector<286x8xf32> to vector<1x286x8xf32>
    tpu.vector_store %arg4[%c0_20, %c0_21, %c0_22], %23 {strides = array<i32>} : memref<1x286x8xf32, #tpu.memory_space<vmem>>, vector<1x286x8xf32>,
    %c0_23 = arith.constant 0 : index
    %c0_24 = arith.constant 0 : index
    %24 = vector.load %arg3[%c0_23, %c0_24] : memref<286x1xf32, #tpu.memory_space<vmem>>, vector<286x1xf32>
    %25 = vector.broadcast %24 : vector<286x1xf32> to vector<286x8xf32>
    %26 = arith.mulf %20, %25 : vector<286x8xf32>
    %cst_25 = arith.constant dense<0.000000e+00> : vector<8xf32>
    %27 = vector.multi_reduction <add>, %26, %cst_25 [0] : vector<286x8xf32> to vector<8xf32>
    %28 = vector.shape_cast %27 : vector<8xf32> to vector<1x8xf32>
    %29 = arith.mulf %26, %20 : vector<286x8xf32>
    %cst_26 = arith.constant dense<0.000000e+00> : vector<8xf32>
    %30 = vector.multi_reduction <add>, %29, %cst_26 [0] : vector<286x8xf32> to vector<8xf32>
    %31 = vector.shape_cast %30 : vector<8xf32> to vector<1x8xf32>
    %32 = tpu.concatenate %28, %31 in 0 : vector<1x8xf32>, vector<1x8xf32> -> vector<2x8xf32>
    %c0_27 = arith.constant 0 : index
    %c0_28 = arith.constant 0 : index
    %c0_29 = arith.constant 0 : index
    %33 = vector.load %arg5[%c0_27, %c0_28, %c0_29] : memref<1x2x8xf32, #tpu.memory_space<vmem>>, vector<1x2x8xf32>
    %34 = vector.shape_cast %33 : vector<1x2x8xf32> to vector<2x8xf32>
    %35 = vector.shape_cast %32 : vector<2x8xf32> to vector<1x2x8xf32>
    tpu.vector_store %arg5[%c0_27, %c0_28, %c0_29], %35 {strides = array<i32>} : memref<1x2x8xf32, #tpu.memory_space<vmem>>, vector<1x2x8xf32>,
    return
  }
  func.func @transform_0(%arg0: i32) -> (i32, i32, i32) {
    %c0_i32 = arith.constant 0 : i32
    %c0_i32_0 = arith.constant 0 : i32
    %c0_i32_1 = arith.constant 0 : i32
    return %arg0, %c0_i32, %c0_i32_0 : i32, i32, i32
  }
  func.func @transform_1(%arg0: i32) -> (i32, i32) {
    %c0_i32 = arith.constant 0 : i32
    %c0_i32_0 = arith.constant 0 : i32
    %c0_i32_1 = arith.constant 0 : i32
    return %c0_i32, %c0_i32_0 : i32, i32
  }
  func.func @transform_2(%arg0: i32) -> (i32, i32) {
    %c0_i32 = arith.constant 0 : i32
    %c0_i32_0 = arith.constant 0 : i32
    %c0_i32_1 = arith.constant 0 : i32
    return %c0_i32, %c0_i32_0 : i32, i32
  }
  func.func @transform_3(%arg0: i32) -> (i32, i32, i32) {
    %c0_i32 = arith.constant 0 : i32
    %c0_i32_0 = arith.constant 0 : i32
    %c0_i32_1 = arith.constant 0 : i32
    return %arg0, %c0_i32, %c0_i32_0 : i32, i32, i32
  }
  func.func @transform_4(%arg0: i32) -> (i32, i32, i32) {
    %c0_i32 = arith.constant 0 : i32
    %c0_i32_0 = arith.constant 0 : i32
    %c0_i32_1 = arith.constant 0 : i32
    return %arg0, %c0_i32, %c0_i32_0 : i32, i32, i32
  }
}

module attributes {stable_mosaic.version = 11 : i64} {
  func.func @conv2_kernel(%arg0: i32, %arg1: memref<1x286x8xf32, #tpu.memory_space<vmem>>, %arg2: memref<1x8xf32, #tpu.memory_space<vmem>>, %arg3: memref<1x8xf32, #tpu.memory_space<vmem>>, %arg4: memref<72x8xf32, #tpu.memory_space<vmem>>, %arg5: memref<286x1xf32, #tpu.memory_space<vmem>>, %arg6: memref<1x286x8xf32, #tpu.memory_space<vmem>>, %arg7: memref<1x2x8xf32, #tpu.memory_space<vmem>>, %arg8: memref<324x8xf32, #tpu.memory_space<vmem>>) attributes {dimension_semantics = [#tpu.dimension_semantics<parallel>], iteration_bounds = array<i64: 2>, scalar_prefetch = 0 : i64, scratch_operands = 1 : i64, tpu.core_type = #tpu.core_type<tc>, window_params = [{transform_indices = @transform_0, window_bounds = array<i64: 1, 286, 8>}, {pipeline_mode = #tpu.pipeline_mode<synchronous>, transform_indices = @transform_1, window_bounds = array<i64: 1, 8>}, {pipeline_mode = #tpu.pipeline_mode<synchronous>, transform_indices = @transform_2, window_bounds = array<i64: 1, 8>}, {pipeline_mode = #tpu.pipeline_mode<synchronous>, transform_indices = @transform_3, window_bounds = array<i64: 72, 8>}, {pipeline_mode = #tpu.pipeline_mode<synchronous>, transform_indices = @transform_4, window_bounds = array<i64: 286, 1>}, {transform_indices = @transform_5, window_bounds = array<i64: 1, 286, 8>}, {transform_indices = @transform_6, window_bounds = array<i64: 1, 2, 8>}]} {
    %c0 = arith.constant 0 : index
    %c0_0 = arith.constant 0 : index
    %0 = vector.load %arg5[%c0, %c0_0] : memref<286x1xf32, #tpu.memory_space<vmem>>, vector<286x1xf32>
    %c0_1 = arith.constant 0 : index
    %c0_2 = arith.constant 0 : index
    %c0_3 = arith.constant 0 : index
    %1 = vector.load %arg1[%c0_1, %c0_2, %c0_3] : memref<1x286x8xf32, #tpu.memory_space<vmem>>, vector<1x286x8xf32>
    %2 = vector.shape_cast %1 : vector<1x286x8xf32> to vector<286x8xf32>
    %c0_4 = arith.constant 0 : index
    %c0_5 = arith.constant 0 : index
    %3 = vector.load %arg2[%c0_4, %c0_5] : memref<1x8xf32, #tpu.memory_space<vmem>>, vector<1x8xf32>
    %4 = vector.broadcast %3 : vector<1x8xf32> to vector<286x8xf32>
    %5 = arith.mulf %2, %4 : vector<286x8xf32>
    %c0_6 = arith.constant 0 : index
    %c0_7 = arith.constant 0 : index
    %6 = vector.load %arg3[%c0_6, %c0_7] : memref<1x8xf32, #tpu.memory_space<vmem>>, vector<1x8xf32>
    %7 = vector.broadcast %6 : vector<1x8xf32> to vector<286x8xf32>
    %8 = arith.addf %5, %7 : vector<286x8xf32>
    %cst = arith.constant 0.000000e+00 : f32
    %9 = vector.broadcast %cst : f32 to vector<286x8xf32>
    %10 = arith.maximumf %8, %9 : vector<286x8xf32>
    %11 = vector.broadcast %0 : vector<286x1xf32> to vector<286x8xf32>
    %12 = arith.mulf %10, %11 : vector<286x8xf32>
    %cst_8 = arith.constant 0.000000e+00 : f32
    %13 = vector.broadcast %cst_8 : f32 to vector<19x8xf32>
    %c0_9 = arith.constant 0 : index
    %c0_10 = arith.constant 0 : index
    %14 = vector.load %arg8[%c0_9, %c0_10] : memref<324x8xf32, #tpu.memory_space<vmem>>, vector<19x8xf32>
    tpu.vector_store %arg8[%c0_9, %c0_10], %13 {strides = array<i32>} : memref<324x8xf32, #tpu.memory_space<vmem>>, vector<19x8xf32>,
    %c19 = arith.constant 19 : index
    %c0_11 = arith.constant 0 : index
    %15 = vector.load %arg8[%c19, %c0_11] : memref<324x8xf32, #tpu.memory_space<vmem>>, vector<286x8xf32>
    tpu.vector_store %arg8[%c19, %c0_11], %12 {strides = array<i32>} : memref<324x8xf32, #tpu.memory_space<vmem>>, vector<286x8xf32>,
    %cst_12 = arith.constant 0.000000e+00 : f32
    %16 = vector.broadcast %cst_12 : f32 to vector<19x8xf32>
    %c305 = arith.constant 305 : index
    %c0_13 = arith.constant 0 : index
    %17 = vector.load %arg8[%c305, %c0_13] : memref<324x8xf32, #tpu.memory_space<vmem>>, vector<19x8xf32>
    tpu.vector_store %arg8[%c305, %c0_13], %16 {strides = array<i32>} : memref<324x8xf32, #tpu.memory_space<vmem>>, vector<19x8xf32>,
    %c0_14 = arith.constant 0 : index
    %c0_15 = arith.constant 0 : index
    %18 = vector.load %arg8[%c0_14, %c0_15] : memref<324x8xf32, #tpu.memory_space<vmem>>, vector<286x8xf32>
    %c1 = arith.constant 1 : index
    %c0_16 = arith.constant 0 : index
    %19 = vector.load %arg8[%c1, %c0_16] : memref<324x8xf32, #tpu.memory_space<vmem>>, vector<286x8xf32>
    %c2 = arith.constant 2 : index
    %c0_17 = arith.constant 0 : index
    %20 = vector.load %arg8[%c2, %c0_17] : memref<324x8xf32, #tpu.memory_space<vmem>>, vector<286x8xf32>
    %c18 = arith.constant 18 : index
    %c0_18 = arith.constant 0 : index
    %21 = vector.load %arg8[%c18, %c0_18] : memref<324x8xf32, #tpu.memory_space<vmem>>, vector<286x8xf32>
    %c19_19 = arith.constant 19 : index
    %c0_20 = arith.constant 0 : index
    %22 = vector.load %arg8[%c19_19, %c0_20] : memref<324x8xf32, #tpu.memory_space<vmem>>, vector<286x8xf32>
    %c20 = arith.constant 20 : index
    %c0_21 = arith.constant 0 : index
    %23 = vector.load %arg8[%c20, %c0_21] : memref<324x8xf32, #tpu.memory_space<vmem>>, vector<286x8xf32>
    %c36 = arith.constant 36 : index
    %c0_22 = arith.constant 0 : index
    %24 = vector.load %arg8[%c36, %c0_22] : memref<324x8xf32, #tpu.memory_space<vmem>>, vector<286x8xf32>
    %c37 = arith.constant 37 : index
    %c0_23 = arith.constant 0 : index
    %25 = vector.load %arg8[%c37, %c0_23] : memref<324x8xf32, #tpu.memory_space<vmem>>, vector<286x8xf32>
    %c38 = arith.constant 38 : index
    %c0_24 = arith.constant 0 : index
    %26 = vector.load %arg8[%c38, %c0_24] : memref<324x8xf32, #tpu.memory_space<vmem>>, vector<286x8xf32>
    %27 = tpu.concatenate %18, %19, %20, %21, %22, %23, %24, %25, %26 in 1 : vector<286x8xf32>, vector<286x8xf32>, vector<286x8xf32>, vector<286x8xf32>, vector<286x8xf32>, vector<286x8xf32>, vector<286x8xf32>, vector<286x8xf32>, vector<286x8xf32> -> vector<286x72xf32>
    %c0_25 = arith.constant 0 : index
    %c0_26 = arith.constant 0 : index
    %28 = vector.load %arg4[%c0_25, %c0_26] : memref<72x8xf32, #tpu.memory_space<vmem>>, vector<72x8xf32>
    %cst_27 = arith.constant dense<0.000000e+00> : vector<286x8xf32>
    %29 = tpu.matmul %27, %28, %cst_27 {dimension_numbers = #tpu.dot_dimension_numbers<[1], [0], [0], [1], [0, 0, 1, 1], [], []>} : vector<286x72xf32>, vector<72x8xf32>, vector<286x8xf32> -> vector<286x8xf32>
    %c0_28 = arith.constant 0 : index
    %c0_29 = arith.constant 0 : index
    %c0_30 = arith.constant 0 : index
    %30 = vector.load %arg6[%c0_28, %c0_29, %c0_30] : memref<1x286x8xf32, #tpu.memory_space<vmem>>, vector<1x286x8xf32>
    %31 = vector.shape_cast %30 : vector<1x286x8xf32> to vector<286x8xf32>
    %32 = vector.shape_cast %29 : vector<286x8xf32> to vector<1x286x8xf32>
    tpu.vector_store %arg6[%c0_28, %c0_29, %c0_30], %32 {strides = array<i32>} : memref<1x286x8xf32, #tpu.memory_space<vmem>>, vector<1x286x8xf32>,
    %33 = vector.broadcast %0 : vector<286x1xf32> to vector<286x8xf32>
    %34 = arith.mulf %29, %33 : vector<286x8xf32>
    %cst_31 = arith.constant dense<0.000000e+00> : vector<8xf32>
    %35 = vector.multi_reduction <add>, %34, %cst_31 [0] : vector<286x8xf32> to vector<8xf32>
    %36 = vector.shape_cast %35 : vector<8xf32> to vector<1x8xf32>
    %37 = arith.mulf %34, %29 : vector<286x8xf32>
    %cst_32 = arith.constant dense<0.000000e+00> : vector<8xf32>
    %38 = vector.multi_reduction <add>, %37, %cst_32 [0] : vector<286x8xf32> to vector<8xf32>
    %39 = vector.shape_cast %38 : vector<8xf32> to vector<1x8xf32>
    %40 = tpu.concatenate %36, %39 in 0 : vector<1x8xf32>, vector<1x8xf32> -> vector<2x8xf32>
    %c0_33 = arith.constant 0 : index
    %c0_34 = arith.constant 0 : index
    %c0_35 = arith.constant 0 : index
    %41 = vector.load %arg7[%c0_33, %c0_34, %c0_35] : memref<1x2x8xf32, #tpu.memory_space<vmem>>, vector<1x2x8xf32>
    %42 = vector.shape_cast %41 : vector<1x2x8xf32> to vector<2x8xf32>
    %43 = vector.shape_cast %40 : vector<2x8xf32> to vector<1x2x8xf32>
    tpu.vector_store %arg7[%c0_33, %c0_34, %c0_35], %43 {strides = array<i32>} : memref<1x2x8xf32, #tpu.memory_space<vmem>>, vector<1x2x8xf32>,
    return
  }
  func.func @transform_0(%arg0: i32) -> (i32, i32, i32) {
    %c0_i32 = arith.constant 0 : i32
    %c0_i32_0 = arith.constant 0 : i32
    %c0_i32_1 = arith.constant 0 : i32
    return %arg0, %c0_i32, %c0_i32_0 : i32, i32, i32
  }
  func.func @transform_1(%arg0: i32) -> (i32, i32) {
    %c0_i32 = arith.constant 0 : i32
    %c0_i32_0 = arith.constant 0 : i32
    %c0_i32_1 = arith.constant 0 : i32
    return %c0_i32, %c0_i32_0 : i32, i32
  }
  func.func @transform_2(%arg0: i32) -> (i32, i32) {
    %c0_i32 = arith.constant 0 : i32
    %c0_i32_0 = arith.constant 0 : i32
    %c0_i32_1 = arith.constant 0 : i32
    return %c0_i32, %c0_i32_0 : i32, i32
  }
  func.func @transform_3(%arg0: i32) -> (i32, i32) {
    %c0_i32 = arith.constant 0 : i32
    %c0_i32_0 = arith.constant 0 : i32
    %c0_i32_1 = arith.constant 0 : i32
    return %c0_i32, %c0_i32_0 : i32, i32
  }
  func.func @transform_4(%arg0: i32) -> (i32, i32) {
    %c0_i32 = arith.constant 0 : i32
    %c0_i32_0 = arith.constant 0 : i32
    %c0_i32_1 = arith.constant 0 : i32
    return %c0_i32, %c0_i32_0 : i32, i32
  }
  func.func @transform_5(%arg0: i32) -> (i32, i32, i32) {
    %c0_i32 = arith.constant 0 : i32
    %c0_i32_0 = arith.constant 0 : i32
    %c0_i32_1 = arith.constant 0 : i32
    return %arg0, %c0_i32, %c0_i32_0 : i32, i32, i32
  }
  func.func @transform_6(%arg0: i32) -> (i32, i32, i32) {
    %c0_i32 = arith.constant 0 : i32
    %c0_i32_0 = arith.constant 0 : i32
    %c0_i32_1 = arith.constant 0 : i32
    return %arg0, %c0_i32, %c0_i32_0 : i32, i32, i32
  }
}

module attributes {stable_mosaic.version = 11 : i64} {
  func.func @bn_pool_kernel(%arg0: i32, %arg1: memref<1x286x8xf32, #tpu.memory_space<vmem>>, %arg2: memref<1x8xf32, #tpu.memory_space<vmem>>, %arg3: memref<1x8xf32, #tpu.memory_space<vmem>>, %arg4: memref<286x1xf32, #tpu.memory_space<vmem>>, %arg5: memref<1x288x8xf32, #tpu.memory_space<vmem>>, %arg6: memref<1x64x8xf32, #tpu.memory_space<vmem>>) attributes {dimension_semantics = [#tpu.dimension_semantics<parallel>], iteration_bounds = array<i64: 2>, scalar_prefetch = 0 : i64, scratch_operands = 0 : i64, tpu.core_type = #tpu.core_type<tc>, window_params = [{transform_indices = @transform_0, window_bounds = array<i64: 1, 286, 8>}, {pipeline_mode = #tpu.pipeline_mode<synchronous>, transform_indices = @transform_1, window_bounds = array<i64: 1, 8>}, {pipeline_mode = #tpu.pipeline_mode<synchronous>, transform_indices = @transform_2, window_bounds = array<i64: 1, 8>}, {pipeline_mode = #tpu.pipeline_mode<synchronous>, transform_indices = @transform_3, window_bounds = array<i64: 286, 1>}, {transform_indices = @transform_4, window_bounds = array<i64: 1, 288, 8>}, {transform_indices = @transform_5, window_bounds = array<i64: 1, 64, 8>}]} {
    %c0 = arith.constant 0 : index
    %c0_0 = arith.constant 0 : index
    %c0_1 = arith.constant 0 : index
    %0 = vector.load %arg1[%c0, %c0_0, %c0_1] : memref<1x286x8xf32, #tpu.memory_space<vmem>>, vector<1x286x8xf32>
    %1 = vector.shape_cast %0 : vector<1x286x8xf32> to vector<286x8xf32>
    %c0_2 = arith.constant 0 : index
    %c0_3 = arith.constant 0 : index
    %2 = vector.load %arg2[%c0_2, %c0_3] : memref<1x8xf32, #tpu.memory_space<vmem>>, vector<1x8xf32>
    %3 = vector.broadcast %2 : vector<1x8xf32> to vector<286x8xf32>
    %4 = arith.mulf %1, %3 : vector<286x8xf32>
    %c0_4 = arith.constant 0 : index
    %c0_5 = arith.constant 0 : index
    %5 = vector.load %arg3[%c0_4, %c0_5] : memref<1x8xf32, #tpu.memory_space<vmem>>, vector<1x8xf32>
    %6 = vector.broadcast %5 : vector<1x8xf32> to vector<286x8xf32>
    %7 = arith.addf %4, %6 : vector<286x8xf32>
    %cst = arith.constant 0.000000e+00 : f32
    %8 = vector.broadcast %cst : f32 to vector<286x8xf32>
    %9 = arith.maximumf %7, %8 : vector<286x8xf32>
    %c0_6 = arith.constant 0 : index
    %c0_7 = arith.constant 0 : index
    %10 = vector.load %arg4[%c0_6, %c0_7] : memref<286x1xf32, #tpu.memory_space<vmem>>, vector<286x1xf32>
    %11 = vector.broadcast %10 : vector<286x1xf32> to vector<286x8xf32>
    %12 = arith.mulf %9, %11 : vector<286x8xf32>
    %c0_8 = arith.constant 0 : index
    %c0_9 = arith.constant 0 : index
    %c0_10 = arith.constant 0 : index
    %13 = vector.load %arg5[%c0_8, %c0_9, %c0_10] : memref<1x288x8xf32, #tpu.memory_space<vmem>>, vector<1x286x8xf32>
    %14 = vector.shape_cast %13 : vector<1x286x8xf32> to vector<286x8xf32>
    %15 = vector.shape_cast %12 : vector<286x8xf32> to vector<1x286x8xf32>
    tpu.vector_store %arg5[%c0_8, %c0_9, %c0_10], %15 {strides = array<i32>} : memref<1x288x8xf32, #tpu.memory_space<vmem>>, vector<1x286x8xf32>,
    %cst_11 = arith.constant 0.000000e+00 : f32
    %16 = vector.broadcast %cst_11 : f32 to vector<2x8xf32>
    %c0_12 = arith.constant 0 : index
    %c286 = arith.constant 286 : index
    %c0_13 = arith.constant 0 : index
    %17 = vector.load %arg5[%c0_12, %c286, %c0_13] : memref<1x288x8xf32, #tpu.memory_space<vmem>>, vector<1x2x8xf32>
    %18 = vector.shape_cast %17 : vector<1x2x8xf32> to vector<2x8xf32>
    %19 = vector.shape_cast %16 : vector<2x8xf32> to vector<1x2x8xf32>
    tpu.vector_store %arg5[%c0_12, %c286, %c0_13], %19 {strides = array<i32>} : memref<1x288x8xf32, #tpu.memory_space<vmem>>, vector<1x2x8xf32>,
    %c0_14 = arith.constant 0 : index
    %c0_15 = arith.constant 0 : index
    %c0_16 = arith.constant 0 : index
    %20 = tpu.strided_load %arg5[%c0_14, %c0_15, %c0_16] {strides = array<i32: 1, 2, 1>} : memref<1x288x8xf32, #tpu.memory_space<vmem>>, vector<1x8x8xf32>
    %21 = vector.shape_cast %20 : vector<1x8x8xf32> to vector<8x8xf32>
    %c0_17 = arith.constant 0 : index
    %c1 = arith.constant 1 : index
    %c0_18 = arith.constant 0 : index
    %22 = tpu.strided_load %arg5[%c0_17, %c1, %c0_18] {strides = array<i32: 1, 2, 1>} : memref<1x288x8xf32, #tpu.memory_space<vmem>>, vector<1x8x8xf32>
    %23 = vector.shape_cast %22 : vector<1x8x8xf32> to vector<8x8xf32>
    %c0_19 = arith.constant 0 : index
    %c18 = arith.constant 18 : index
    %c0_20 = arith.constant 0 : index
    %24 = tpu.strided_load %arg5[%c0_19, %c18, %c0_20] {strides = array<i32: 1, 2, 1>} : memref<1x288x8xf32, #tpu.memory_space<vmem>>, vector<1x8x8xf32>
    %25 = vector.shape_cast %24 : vector<1x8x8xf32> to vector<8x8xf32>
    %c0_21 = arith.constant 0 : index
    %c19 = arith.constant 19 : index
    %c0_22 = arith.constant 0 : index
    %26 = tpu.strided_load %arg5[%c0_21, %c19, %c0_22] {strides = array<i32: 1, 2, 1>} : memref<1x288x8xf32, #tpu.memory_space<vmem>>, vector<1x8x8xf32>
    %27 = vector.shape_cast %26 : vector<1x8x8xf32> to vector<8x8xf32>
    %28 = arith.maximumf %21, %23 : vector<8x8xf32>
    %29 = arith.maximumf %25, %27 : vector<8x8xf32>
    %30 = arith.maximumf %28, %29 : vector<8x8xf32>
    %c0_23 = arith.constant 0 : index
    %c0_24 = arith.constant 0 : index
    %c0_25 = arith.constant 0 : index
    %31 = vector.load %arg6[%c0_23, %c0_24, %c0_25] : memref<1x64x8xf32, #tpu.memory_space<vmem>>, vector<1x8x8xf32>
    %32 = vector.shape_cast %31 : vector<1x8x8xf32> to vector<8x8xf32>
    %33 = vector.shape_cast %30 : vector<8x8xf32> to vector<1x8x8xf32>
    tpu.vector_store %arg6[%c0_23, %c0_24, %c0_25], %33 {strides = array<i32>} : memref<1x64x8xf32, #tpu.memory_space<vmem>>, vector<1x8x8xf32>,
    %c0_26 = arith.constant 0 : index
    %c36 = arith.constant 36 : index
    %c0_27 = arith.constant 0 : index
    %34 = tpu.strided_load %arg5[%c0_26, %c36, %c0_27] {strides = array<i32: 1, 2, 1>} : memref<1x288x8xf32, #tpu.memory_space<vmem>>, vector<1x8x8xf32>
    %35 = vector.shape_cast %34 : vector<1x8x8xf32> to vector<8x8xf32>
    %c0_28 = arith.constant 0 : index
    %c37 = arith.constant 37 : index
    %c0_29 = arith.constant 0 : index
    %36 = tpu.strided_load %arg5[%c0_28, %c37, %c0_29] {strides = array<i32: 1, 2, 1>} : memref<1x288x8xf32, #tpu.memory_space<vmem>>, vector<1x8x8xf32>
    %37 = vector.shape_cast %36 : vector<1x8x8xf32> to vector<8x8xf32>
    %c0_30 = arith.constant 0 : index
    %c54 = arith.constant 54 : index
    %c0_31 = arith.constant 0 : index
    %38 = tpu.strided_load %arg5[%c0_30, %c54, %c0_31] {strides = array<i32: 1, 2, 1>} : memref<1x288x8xf32, #tpu.memory_space<vmem>>, vector<1x8x8xf32>
    %39 = vector.shape_cast %38 : vector<1x8x8xf32> to vector<8x8xf32>
    %c0_32 = arith.constant 0 : index
    %c55 = arith.constant 55 : index
    %c0_33 = arith.constant 0 : index
    %40 = tpu.strided_load %arg5[%c0_32, %c55, %c0_33] {strides = array<i32: 1, 2, 1>} : memref<1x288x8xf32, #tpu.memory_space<vmem>>, vector<1x8x8xf32>
    %41 = vector.shape_cast %40 : vector<1x8x8xf32> to vector<8x8xf32>
    %42 = arith.maximumf %35, %37 : vector<8x8xf32>
    %43 = arith.maximumf %39, %41 : vector<8x8xf32>
    %44 = arith.maximumf %42, %43 : vector<8x8xf32>
    %c0_34 = arith.constant 0 : index
    %c8 = arith.constant 8 : index
    %c0_35 = arith.constant 0 : index
    %45 = vector.load %arg6[%c0_34, %c8, %c0_35] : memref<1x64x8xf32, #tpu.memory_space<vmem>>, vector<1x8x8xf32>
    %46 = vector.shape_cast %45 : vector<1x8x8xf32> to vector<8x8xf32>
    %47 = vector.shape_cast %44 : vector<8x8xf32> to vector<1x8x8xf32>
    tpu.vector_store %arg6[%c0_34, %c8, %c0_35], %47 {strides = array<i32>} : memref<1x64x8xf32, #tpu.memory_space<vmem>>, vector<1x8x8xf32>,
    %c0_36 = arith.constant 0 : index
    %c72 = arith.constant 72 : index
    %c0_37 = arith.constant 0 : index
    %48 = tpu.strided_load %arg5[%c0_36, %c72, %c0_37] {strides = array<i32: 1, 2, 1>} : memref<1x288x8xf32, #tpu.memory_space<vmem>>, vector<1x8x8xf32>
    %49 = vector.shape_cast %48 : vector<1x8x8xf32> to vector<8x8xf32>
    %c0_38 = arith.constant 0 : index
    %c73 = arith.constant 73 : index
    %c0_39 = arith.constant 0 : index
    %50 = tpu.strided_load %arg5[%c0_38, %c73, %c0_39] {strides = array<i32: 1, 2, 1>} : memref<1x288x8xf32, #tpu.memory_space<vmem>>, vector<1x8x8xf32>
    %51 = vector.shape_cast %50 : vector<1x8x8xf32> to vector<8x8xf32>
    %c0_40 = arith.constant 0 : index
    %c90 = arith.constant 90 : index
    %c0_41 = arith.constant 0 : index
    %52 = tpu.strided_load %arg5[%c0_40, %c90, %c0_41] {strides = array<i32: 1, 2, 1>} : memref<1x288x8xf32, #tpu.memory_space<vmem>>, vector<1x8x8xf32>
    %53 = vector.shape_cast %52 : vector<1x8x8xf32> to vector<8x8xf32>
    %c0_42 = arith.constant 0 : index
    %c91 = arith.constant 91 : index
    %c0_43 = arith.constant 0 : index
    %54 = tpu.strided_load %arg5[%c0_42, %c91, %c0_43] {strides = array<i32: 1, 2, 1>} : memref<1x288x8xf32, #tpu.memory_space<vmem>>, vector<1x8x8xf32>
    %55 = vector.shape_cast %54 : vector<1x8x8xf32> to vector<8x8xf32>
    %56 = arith.maximumf %49, %51 : vector<8x8xf32>
    %57 = arith.maximumf %53, %55 : vector<8x8xf32>
    %58 = arith.maximumf %56, %57 : vector<8x8xf32>
    %c0_44 = arith.constant 0 : index
    %c16 = arith.constant 16 : index
    %c0_45 = arith.constant 0 : index
    %59 = vector.load %arg6[%c0_44, %c16, %c0_45] : memref<1x64x8xf32, #tpu.memory_space<vmem>>, vector<1x8x8xf32>
    %60 = vector.shape_cast %59 : vector<1x8x8xf32> to vector<8x8xf32>
    %61 = vector.shape_cast %58 : vector<8x8xf32> to vector<1x8x8xf32>
    tpu.vector_store %arg6[%c0_44, %c16, %c0_45], %61 {strides = array<i32>} : memref<1x64x8xf32, #tpu.memory_space<vmem>>, vector<1x8x8xf32>,
    %c0_46 = arith.constant 0 : index
    %c108 = arith.constant 108 : index
    %c0_47 = arith.constant 0 : index
    %62 = tpu.strided_load %arg5[%c0_46, %c108, %c0_47] {strides = array<i32: 1, 2, 1>} : memref<1x288x8xf32, #tpu.memory_space<vmem>>, vector<1x8x8xf32>
    %63 = vector.shape_cast %62 : vector<1x8x8xf32> to vector<8x8xf32>
    %c0_48 = arith.constant 0 : index
    %c109 = arith.constant 109 : index
    %c0_49 = arith.constant 0 : index
    %64 = tpu.strided_load %arg5[%c0_48, %c109, %c0_49] {strides = array<i32: 1, 2, 1>} : memref<1x288x8xf32, #tpu.memory_space<vmem>>, vector<1x8x8xf32>
    %65 = vector.shape_cast %64 : vector<1x8x8xf32> to vector<8x8xf32>
    %c0_50 = arith.constant 0 : index
    %c126 = arith.constant 126 : index
    %c0_51 = arith.constant 0 : index
    %66 = tpu.strided_load %arg5[%c0_50, %c126, %c0_51] {strides = array<i32: 1, 2, 1>} : memref<1x288x8xf32, #tpu.memory_space<vmem>>, vector<1x8x8xf32>
    %67 = vector.shape_cast %66 : vector<1x8x8xf32> to vector<8x8xf32>
    %c0_52 = arith.constant 0 : index
    %c127 = arith.constant 127 : index
    %c0_53 = arith.constant 0 : index
    %68 = tpu.strided_load %arg5[%c0_52, %c127, %c0_53] {strides = array<i32: 1, 2, 1>} : memref<1x288x8xf32, #tpu.memory_space<vmem>>, vector<1x8x8xf32>
    %69 = vector.shape_cast %68 : vector<1x8x8xf32> to vector<8x8xf32>
    %70 = arith.maximumf %63, %65 : vector<8x8xf32>
    %71 = arith.maximumf %67, %69 : vector<8x8xf32>
    %72 = arith.maximumf %70, %71 : vector<8x8xf32>
    %c0_54 = arith.constant 0 : index
    %c24 = arith.constant 24 : index
    %c0_55 = arith.constant 0 : index
    %73 = vector.load %arg6[%c0_54, %c24, %c0_55] : memref<1x64x8xf32, #tpu.memory_space<vmem>>, vector<1x8x8xf32>
    %74 = vector.shape_cast %73 : vector<1x8x8xf32> to vector<8x8xf32>
    %75 = vector.shape_cast %72 : vector<8x8xf32> to vector<1x8x8xf32>
    tpu.vector_store %arg6[%c0_54, %c24, %c0_55], %75 {strides = array<i32>} : memref<1x64x8xf32, #tpu.memory_space<vmem>>, vector<1x8x8xf32>,
    %c0_56 = arith.constant 0 : index
    %c144 = arith.constant 144 : index
    %c0_57 = arith.constant 0 : index
    %76 = tpu.strided_load %arg5[%c0_56, %c144, %c0_57] {strides = array<i32: 1, 2, 1>} : memref<1x288x8xf32, #tpu.memory_space<vmem>>, vector<1x8x8xf32>
    %77 = vector.shape_cast %76 : vector<1x8x8xf32> to vector<8x8xf32>
    %c0_58 = arith.constant 0 : index
    %c145 = arith.constant 145 : index
    %c0_59 = arith.constant 0 : index
    %78 = tpu.strided_load %arg5[%c0_58, %c145, %c0_59] {strides = array<i32: 1, 2, 1>} : memref<1x288x8xf32, #tpu.memory_space<vmem>>, vector<1x8x8xf32>
    %79 = vector.shape_cast %78 : vector<1x8x8xf32> to vector<8x8xf32>
    %c0_60 = arith.constant 0 : index
    %c162 = arith.constant 162 : index
    %c0_61 = arith.constant 0 : index
    %80 = tpu.strided_load %arg5[%c0_60, %c162, %c0_61] {strides = array<i32: 1, 2, 1>} : memref<1x288x8xf32, #tpu.memory_space<vmem>>, vector<1x8x8xf32>
    %81 = vector.shape_cast %80 : vector<1x8x8xf32> to vector<8x8xf32>
    %c0_62 = arith.constant 0 : index
    %c163 = arith.constant 163 : index
    %c0_63 = arith.constant 0 : index
    %82 = tpu.strided_load %arg5[%c0_62, %c163, %c0_63] {strides = array<i32: 1, 2, 1>} : memref<1x288x8xf32, #tpu.memory_space<vmem>>, vector<1x8x8xf32>
    %83 = vector.shape_cast %82 : vector<1x8x8xf32> to vector<8x8xf32>
    %84 = arith.maximumf %77, %79 : vector<8x8xf32>
    %85 = arith.maximumf %81, %83 : vector<8x8xf32>
    %86 = arith.maximumf %84, %85 : vector<8x8xf32>
    %c0_64 = arith.constant 0 : index
    %c32 = arith.constant 32 : index
    %c0_65 = arith.constant 0 : index
    %87 = vector.load %arg6[%c0_64, %c32, %c0_65] : memref<1x64x8xf32, #tpu.memory_space<vmem>>, vector<1x8x8xf32>
    %88 = vector.shape_cast %87 : vector<1x8x8xf32> to vector<8x8xf32>
    %89 = vector.shape_cast %86 : vector<8x8xf32> to vector<1x8x8xf32>
    tpu.vector_store %arg6[%c0_64, %c32, %c0_65], %89 {strides = array<i32>} : memref<1x64x8xf32, #tpu.memory_space<vmem>>, vector<1x8x8xf32>,
    %c0_66 = arith.constant 0 : index
    %c180 = arith.constant 180 : index
    %c0_67 = arith.constant 0 : index
    %90 = tpu.strided_load %arg5[%c0_66, %c180, %c0_67] {strides = array<i32: 1, 2, 1>} : memref<1x288x8xf32, #tpu.memory_space<vmem>>, vector<1x8x8xf32>
    %91 = vector.shape_cast %90 : vector<1x8x8xf32> to vector<8x8xf32>
    %c0_68 = arith.constant 0 : index
    %c181 = arith.constant 181 : index
    %c0_69 = arith.constant 0 : index
    %92 = tpu.strided_load %arg5[%c0_68, %c181, %c0_69] {strides = array<i32: 1, 2, 1>} : memref<1x288x8xf32, #tpu.memory_space<vmem>>, vector<1x8x8xf32>
    %93 = vector.shape_cast %92 : vector<1x8x8xf32> to vector<8x8xf32>
    %c0_70 = arith.constant 0 : index
    %c198 = arith.constant 198 : index
    %c0_71 = arith.constant 0 : index
    %94 = tpu.strided_load %arg5[%c0_70, %c198, %c0_71] {strides = array<i32: 1, 2, 1>} : memref<1x288x8xf32, #tpu.memory_space<vmem>>, vector<1x8x8xf32>
    %95 = vector.shape_cast %94 : vector<1x8x8xf32> to vector<8x8xf32>
    %c0_72 = arith.constant 0 : index
    %c199 = arith.constant 199 : index
    %c0_73 = arith.constant 0 : index
    %96 = tpu.strided_load %arg5[%c0_72, %c199, %c0_73] {strides = array<i32: 1, 2, 1>} : memref<1x288x8xf32, #tpu.memory_space<vmem>>, vector<1x8x8xf32>
    %97 = vector.shape_cast %96 : vector<1x8x8xf32> to vector<8x8xf32>
    %98 = arith.maximumf %91, %93 : vector<8x8xf32>
    %99 = arith.maximumf %95, %97 : vector<8x8xf32>
    %100 = arith.maximumf %98, %99 : vector<8x8xf32>
    %c0_74 = arith.constant 0 : index
    %c40 = arith.constant 40 : index
    %c0_75 = arith.constant 0 : index
    %101 = vector.load %arg6[%c0_74, %c40, %c0_75] : memref<1x64x8xf32, #tpu.memory_space<vmem>>, vector<1x8x8xf32>
    %102 = vector.shape_cast %101 : vector<1x8x8xf32> to vector<8x8xf32>
    %103 = vector.shape_cast %100 : vector<8x8xf32> to vector<1x8x8xf32>
    tpu.vector_store %arg6[%c0_74, %c40, %c0_75], %103 {strides = array<i32>} : memref<1x64x8xf32, #tpu.memory_space<vmem>>, vector<1x8x8xf32>,
    %c0_76 = arith.constant 0 : index
    %c216 = arith.constant 216 : index
    %c0_77 = arith.constant 0 : index
    %104 = tpu.strided_load %arg5[%c0_76, %c216, %c0_77] {strides = array<i32: 1, 2, 1>} : memref<1x288x8xf32, #tpu.memory_space<vmem>>, vector<1x8x8xf32>
    %105 = vector.shape_cast %104 : vector<1x8x8xf32> to vector<8x8xf32>
    %c0_78 = arith.constant 0 : index
    %c217 = arith.constant 217 : index
    %c0_79 = arith.constant 0 : index
    %106 = tpu.strided_load %arg5[%c0_78, %c217, %c0_79] {strides = array<i32: 1, 2, 1>} : memref<1x288x8xf32, #tpu.memory_space<vmem>>, vector<1x8x8xf32>
    %107 = vector.shape_cast %106 : vector<1x8x8xf32> to vector<8x8xf32>
    %c0_80 = arith.constant 0 : index
    %c234 = arith.constant 234 : index
    %c0_81 = arith.constant 0 : index
    %108 = tpu.strided_load %arg5[%c0_80, %c234, %c0_81] {strides = array<i32: 1, 2, 1>} : memref<1x288x8xf32, #tpu.memory_space<vmem>>, vector<1x8x8xf32>
    %109 = vector.shape_cast %108 : vector<1x8x8xf32> to vector<8x8xf32>
    %c0_82 = arith.constant 0 : index
    %c235 = arith.constant 235 : index
    %c0_83 = arith.constant 0 : index
    %110 = tpu.strided_load %arg5[%c0_82, %c235, %c0_83] {strides = array<i32: 1, 2, 1>} : memref<1x288x8xf32, #tpu.memory_space<vmem>>, vector<1x8x8xf32>
    %111 = vector.shape_cast %110 : vector<1x8x8xf32> to vector<8x8xf32>
    %112 = arith.maximumf %105, %107 : vector<8x8xf32>
    %113 = arith.maximumf %109, %111 : vector<8x8xf32>
    %114 = arith.maximumf %112, %113 : vector<8x8xf32>
    %c0_84 = arith.constant 0 : index
    %c48 = arith.constant 48 : index
    %c0_85 = arith.constant 0 : index
    %115 = vector.load %arg6[%c0_84, %c48, %c0_85] : memref<1x64x8xf32, #tpu.memory_space<vmem>>, vector<1x8x8xf32>
    %116 = vector.shape_cast %115 : vector<1x8x8xf32> to vector<8x8xf32>
    %117 = vector.shape_cast %114 : vector<8x8xf32> to vector<1x8x8xf32>
    tpu.vector_store %arg6[%c0_84, %c48, %c0_85], %117 {strides = array<i32>} : memref<1x64x8xf32, #tpu.memory_space<vmem>>, vector<1x8x8xf32>,
    %c0_86 = arith.constant 0 : index
    %c252 = arith.constant 252 : index
    %c0_87 = arith.constant 0 : index
    %118 = tpu.strided_load %arg5[%c0_86, %c252, %c0_87] {strides = array<i32: 1, 2, 1>} : memref<1x288x8xf32, #tpu.memory_space<vmem>>, vector<1x8x8xf32>
    %119 = vector.shape_cast %118 : vector<1x8x8xf32> to vector<8x8xf32>
    %c0_88 = arith.constant 0 : index
    %c253 = arith.constant 253 : index
    %c0_89 = arith.constant 0 : index
    %120 = tpu.strided_load %arg5[%c0_88, %c253, %c0_89] {strides = array<i32: 1, 2, 1>} : memref<1x288x8xf32, #tpu.memory_space<vmem>>, vector<1x8x8xf32>
    %121 = vector.shape_cast %120 : vector<1x8x8xf32> to vector<8x8xf32>
    %c0_90 = arith.constant 0 : index
    %c270 = arith.constant 270 : index
    %c0_91 = arith.constant 0 : index
    %122 = tpu.strided_load %arg5[%c0_90, %c270, %c0_91] {strides = array<i32: 1, 2, 1>} : memref<1x288x8xf32, #tpu.memory_space<vmem>>, vector<1x8x8xf32>
    %123 = vector.shape_cast %122 : vector<1x8x8xf32> to vector<8x8xf32>
    %c0_92 = arith.constant 0 : index
    %c271 = arith.constant 271 : index
    %c0_93 = arith.constant 0 : index
    %124 = tpu.strided_load %arg5[%c0_92, %c271, %c0_93] {strides = array<i32: 1, 2, 1>} : memref<1x288x8xf32, #tpu.memory_space<vmem>>, vector<1x8x8xf32>
    %125 = vector.shape_cast %124 : vector<1x8x8xf32> to vector<8x8xf32>
    %126 = arith.maximumf %119, %121 : vector<8x8xf32>
    %127 = arith.maximumf %123, %125 : vector<8x8xf32>
    %128 = arith.maximumf %126, %127 : vector<8x8xf32>
    %c0_94 = arith.constant 0 : index
    %c56 = arith.constant 56 : index
    %c0_95 = arith.constant 0 : index
    %129 = vector.load %arg6[%c0_94, %c56, %c0_95] : memref<1x64x8xf32, #tpu.memory_space<vmem>>, vector<1x8x8xf32>
    %130 = vector.shape_cast %129 : vector<1x8x8xf32> to vector<8x8xf32>
    %131 = vector.shape_cast %128 : vector<8x8xf32> to vector<1x8x8xf32>
    tpu.vector_store %arg6[%c0_94, %c56, %c0_95], %131 {strides = array<i32>} : memref<1x64x8xf32, #tpu.memory_space<vmem>>, vector<1x8x8xf32>,
    return
  }
  func.func @transform_0(%arg0: i32) -> (i32, i32, i32) {
    %c0_i32 = arith.constant 0 : i32
    %c0_i32_0 = arith.constant 0 : i32
    %c0_i32_1 = arith.constant 0 : i32
    return %arg0, %c0_i32, %c0_i32_0 : i32, i32, i32
  }
  func.func @transform_1(%arg0: i32) -> (i32, i32) {
    %c0_i32 = arith.constant 0 : i32
    %c0_i32_0 = arith.constant 0 : i32
    %c0_i32_1 = arith.constant 0 : i32
    return %c0_i32, %c0_i32_0 : i32, i32
  }
  func.func @transform_2(%arg0: i32) -> (i32, i32) {
    %c0_i32 = arith.constant 0 : i32
    %c0_i32_0 = arith.constant 0 : i32
    %c0_i32_1 = arith.constant 0 : i32
    return %c0_i32, %c0_i32_0 : i32, i32
  }
  func.func @transform_3(%arg0: i32) -> (i32, i32) {
    %c0_i32 = arith.constant 0 : i32
    %c0_i32_0 = arith.constant 0 : i32
    %c0_i32_1 = arith.constant 0 : i32
    return %c0_i32, %c0_i32_0 : i32, i32
  }
  func.func @transform_4(%arg0: i32) -> (i32, i32, i32) {
    %c0_i32 = arith.constant 0 : i32
    %c0_i32_0 = arith.constant 0 : i32
    %c0_i32_1 = arith.constant 0 : i32
    return %arg0, %c0_i32, %c0_i32_0 : i32, i32, i32
  }
  func.func @transform_5(%arg0: i32) -> (i32, i32, i32) {
    %c0_i32 = arith.constant 0 : i32
    %c0_i32_0 = arith.constant 0 : i32
    %c0_i32_1 = arith.constant 0 : i32
    return %arg0, %c0_i32, %c0_i32_0 : i32, i32, i32
  }
}

</mosaic_0001>

<bundles_post_ra>
// kernel: encoder_block_forward.5
= control target key start
LH: loop header
LB: loop body
LE: loop exit
PB: predicated region body
PF: predicated region fallthrough
CT: control target
= control target key end

     0   :  { %s969_s18 = smov 0   ;;  %s1365_s0 = inlined_call_operand.vmem [shape: f32[2,286,8], index: 0, kind: input, shape index: {}]   ;;  %s1366_s1 = inlined_call_operand.vmem [shape: f32[1,8], index: 1, kind: input, shape index: {}]   ;;  %s1367_s2 = inlined_call_operand.vmem [shape: f32[1,8], index: 2, kind: input, shape index: {}]   ;;  %s1368_s3 = inlined_call_operand.vmem [shape: f32[286,1], index: 3, kind: input, shape index: {}]   ;;  %s1369_s4 = inlined_call_operand.vmem [shape: f32[2,288,8], index: 4, kind: output, shape index: {0}]   ;;  %s1370_s5 = inlined_call_operand.vmem [shape: f32[2,64,8], index: 5, kind: output, shape index: {1}]  }
   0x1 LB: > { %s871_s19 = sadd.s32 4294967295, %s935_s18   ;;  %p875_p0 = scmp.ge.s32.totalorder %s935_s18, 1  ;;  %s935_s18 = sphi %s969_s18, %s16_s18  }
   0x2   : > { %p190_p1 = scmp.lt.s32.totalorder %s935_s18, 3 }
   0x4   : > { %p191_p2 = pnand %p875_p0, %p190_p1 }
   0x5   : > { %p223_p3 = scmp.lt.s32.totalorder (!%p191_p2), %s871_s19, 1 }
   0x6   : > { %194 = sbr.rel (%p191_p2) target bundleno = 221 (0xdd), region = 36 }
   0xb   : > { %v398_v0 = vld [vmem:[%s1368_s3 + $0x10] sm:$0xff]  ;;  %v396_v1 = vld [vmem:[%s1368_s3] sm:$0xff]  ;;  %v937_v2 = vmov 0   ;;  %v399_v3 = vld [vmem:[%s1368_s3 + $0x18] sm:$0xff]  ;;  %s1372_s19 = smov (!%p223_p3, %s871_s19), 1  ;;  %vm686_vm0 = vcmask 58368  }
   0xc   : > { %928 = vset.pattern.permute.xlu1 %v937_v2  ;;  %927 = vset.pattern.permute.xlu0 %v937_v2  ;;  %v397_v4 = vld [vmem:[%s1368_s3 + $0x8] sm:$0xff]  ;;  %v400_v6 = vld [vmem:[%s1368_s3 + $0x20] sm:$0xff]  ;;  %v403_v7 = vld [vmem:[%s1368_s3 + $0x38] sm:$0xff]  ;;  %s916_s26 = smul.u32 288, %s1372_s19  ;;  %v938_v51 = vmov 0.0   ;;  %vm648_vm1 = vcmask 64512  }
   0xd   : > { %444 = vperm.xlu1 %928, %v398_v0   ;;  %434 = vperm.xlu0 %927, %v396_v1   ;;  %v401_v5 = vld [vmem:[%s1368_s3 + $0x28] sm:$0xff]  ;;  %v402_v8 = vld [vmem:[%s1368_s3 + $0x30] sm:$0xff]  ;;  %v404_v10 = vld [vmem:[%s1368_s3 + $0x40] sm:$0xff]  ;;  %vm684_vm2 = vcmask 62464  }
   0xe   : > { %v405_v9 = vld [vmem:[%s1368_s3 + $0x48] sm:$0xff]  ;;  %v407_v11 = vld [vmem:[%s1368_s3 + $0x58] sm:$0xff]  ;;  %v406_v12 = vld [vmem:[%s1368_s3 + $0x50] sm:$0xff]  ;;  %s1079_s12 = scalar_lea.vmem %s1365_s0, %s916_s26  ;;  %s1134_s9 = scalar_lea.vmem %s1369_s4, %s916_s26 }
   0xf   : > { %v409_v13 = vld [vmem:[%s1368_s3 + $0x68] sm:$0xff]  ;;  %v408_v14 = vld [vmem:[%s1368_s3 + $0x60] sm:$0xff]  ;;  %v411_v15 = vld [vmem:[%s1368_s3 + $0x78] sm:$0xff]  ;;  %687 = vst.msk [vmem:[%s1134_s9 + $0x11e] sm:$0x3] %vm686_vm0, %v938_v51  ;;  %s915_s26 = sshll.u32 %s1372_s19, 6 }
  0x10   : > { %v410_v16 = vld [vmem:[%s1368_s3 + $0x70] sm:$0xff]  ;;  %v413_v17 = vld [vmem:[%s1368_s3 + $0x88] sm:$0xff]  ;;  %v412_v18 = vld [vmem:[%s1368_s3 + $0x80] sm:$0xff]  ;;  %s1214_s11 = scalar_lea.vmem %s1370_s5, %s915_s26 }
  0x11   : > { %449 = vperm.xlu1 %928, %v399_v3   ;;  %439 = vperm.xlu0 %927, %v397_v4   ;;  %v415_v19 = vld [vmem:[%s1368_s3 + $0x98] sm:$0xff]  ;;  %v414_v20 = vld [vmem:[%s1368_s3 + $0x90] sm:$0xff]  ;;  %v417_v21 = vld [vmem:[%s1368_s3 + $0xa8] sm:$0xff] }
  0x12   : > { %v416_v22 = vld [vmem:[%s1368_s3 + $0xa0] sm:$0xff]  ;;  %v419_v23 = vld [vmem:[%s1368_s3 + $0xb8] sm:$0xff]  ;;  %v418_v24 = vld [vmem:[%s1368_s3 + $0xb0] sm:$0xff] }
  0x13   : > { %v421_v25 = vld [vmem:[%s1368_s3 + $0xc8] sm:$0xff]  ;;  %v420_v26 = vld [vmem:[%s1368_s3 + $0xc0] sm:$0xff]  ;;  %v423_v27 = vld [vmem:[%s1368_s3 + $0xd8] sm:$0xff] }
  0x14   : > { %v422_v28 = vld [vmem:[%s1368_s3 + $0xd0] sm:$0xff]  ;;  %v425_v29 = vld [vmem:[%s1368_s3 + $0xe8] sm:$0xff]  ;;  %v424_v30 = vld [vmem:[%s1368_s3 + $0xe0] sm:$0xff] }
  0x15   : > { %459 = vperm.xlu1 %928, %v401_v5   ;;  %454 = vperm.xlu0 %927, %v400_v6   ;;  %v1084_v31 = vld [vmem:[%s1366_s1] ss:$0 sm:$0xff]  ;;  %v271_v32 = vld [vmem:[%s1079_s12 + $0x108] sm:$0xff]  ;;  %v427_v37 = vld [vmem:[%s1368_s3 + $0xf8] sm:$0xff] }
  0x16   : > { %v270_v33 = vld [vmem:[%s1079_s12 + $0x100] sm:$0xff]  ;;  %v314_v34 = vmul.f32 %v1084_v31, %v271_v32  ;;  %v426_v40 = vld [vmem:[%s1368_s3 + $0xf0] sm:$0xff]  ;;  %v273_v41 = vld [vmem:[%s1079_s12 + $0x118] sm:$0x3f] }
  0x17   : > { %v313_v35 = vmul.f32 %v1084_v31, %v270_v33  ;;  %v1093_v36 = vld [vmem:[%s1367_s2] ss:$0 sm:$0xff]  ;;  %v272_v42 = vld [vmem:[%s1079_s12 + $0x110] sm:$0xff]  ;;  %v316_v43 = vmul.f32 %v1084_v31, %v273_v41  ;;  %v429_v47 = vld [vmem:[%s1368_s3 + $0x108] sm:$0xff] }
  0x18   : > { %v1099_v38 = vadd.f32 %v1093_v36, %v314_v34  ;;  %v315_v44 = vmul.f32 %v1084_v31, %v272_v42  ;;  %v428_v48 = vld [vmem:[%s1368_s3 + $0x100] sm:$0xff]  ;;  %v431_v49 = vld [vmem:[%s1368_s3 + $0x118] sm:$0x3f]  ;;  %v430_v50 = vld [vmem:[%s1368_s3 + $0x110] sm:$0xff] }
  0x19   : > { %469 = vperm.xlu1 %928, %v403_v7   ;;  %464 = vperm.xlu0 %927, %v402_v8   ;;  %v1102_v39 = vadd.f32 %v1093_v36, %v313_v35  ;;  %v1112_v45 = vadd.f32 %v1093_v36, %v316_v43  ;;  %v240_v52 = vld [vmem:[%s1079_s12 + $0x10] sm:$0xff]  ;;  %v238_v53 = vld [vmem:[%s1079_s12] sm:$0xff]  ;;  %v241_v56 = vld [vmem:[%s1079_s12 + $0x18] sm:$0xff] }
  0x1a   : > { %v1115_v46 = vadd.f32 %v1093_v36, %v315_v44  ;;  %v283_v54 = vmul.f32 %v1084_v31, %v240_v52  ;;  %v281_v55 = vmul.f32 %v1084_v31, %v238_v53  ;;  %v239_v57 = vld [vmem:[%s1079_s12 + $0x8] sm:$0xff]  ;;  %v284_v60 = vmul.f32 %v1084_v31, %v241_v56  ;;  %v242_v63 = vld [vmem:[%s1079_s12 + $0x20] sm:$0xff]  ;;  %v245_v6 = vld [vmem:[%s1079_s12 + $0x38] sm:$0xff] }
  0x1b   : > { %v282_v61 = vmul.f32 %v1084_v31, %v239_v57  ;;  %v243_v62 = vld [vmem:[%s1079_s12 + $0x28] sm:$0xff]  ;;  %v285_v1 = vmul.f32 %v1084_v31, %v242_v63  ;;  %v244_v7 = vld [vmem:[%s1079_s12 + $0x30] sm:$0xff] }
  0x1c   : > { %v326_v58 = vadd.f32 %v1093_v36, %v283_v54  ;;  %v324_v59 = vadd.f32 %v1093_v36, %v281_v55  ;;  %v286_v0 = vmul.f32 %v1084_v31, %v243_v62  ;;  %v327_v4 = vadd.f32 %v1093_v36, %v284_v60  ;;  %v248_v32 = vld [vmem:[%s1079_s12 + $0x50] sm:$0xff]  ;;  %v253_v60 = vld [vmem:[%s1079_s12 + $0x78] sm:$0xff] }
  0x1d   : > { %479 = vperm.xlu1 %928, %v405_v9   ;;  %474 = vperm.xlu0 %927, %v404_v10   ;;  %v325_v5 = vadd.f32 %v1093_v36, %v282_v61  ;;  %v291_v41 = vmul.f32 %v1084_v31, %v248_v32  ;;  %v252_v61 = vld [vmem:[%s1079_s12 + $0x70] sm:$0xff] }
  0x1e   : > { %v362_v2 = vmax.f32 %v326_v58, 0.0  ;;  %v360_v3 = vmax.f32 %v324_v59, 0.0  ;;  %v329_v10 = vadd.f32 %v1093_v36, %v286_v0 }
  0x1f   : > { %v334_v53 = vadd.f32 %v1093_v36, %v291_v41 }
  0x21   : > { %489 = vperm.xlu1 %928, %v407_v11   ;;  %484 = vperm.xlu0 %927, %v406_v12   ;;  %v328_v11 = vadd.f32 %v1093_v36, %v285_v1  ;;  %v288_v12 = vmul.f32 %v1084_v31, %v245_v6  ;;  %v255_v6 = vld [vmem:[%s1079_s12 + $0x88] sm:$0xff] }
  0x25   : > { %499 = vperm.xlu1 %928, %v409_v13   ;;  %494 = vperm.xlu0 %927, %v408_v14   ;;  %v287_v13 = vmul.f32 %v1084_v31, %v244_v7 }
  0x29   : > { %509 = vperm.xlu1 %928, %v411_v15   ;;  %504 = vperm.xlu0 %927, %v410_v16   ;;  %v363_v16 = vmax.f32 %v327_v4, 0.0 }
  0x2d   : > { %519 = vperm.xlu1 %928, %v413_v17   ;;  %514 = vperm.xlu0 %927, %v412_v18   ;;  %v361_v17 = vmax.f32 %v325_v5, 0.0  ;;  %v247_v18 = vld [vmem:[%s1079_s12 + $0x48] sm:$0xff]  ;;  %v296_v5 = vmul.f32 %v1084_v31, %v253_v60 }
  0x31   : > { %529 = vperm.xlu1 %928, %v415_v19   ;;  %524 = vperm.xlu0 %927, %v414_v20   ;;  %v246_v19 = vld [vmem:[%s1079_s12 + $0x40] sm:$0xff] }
  0x35   : > { %539 = vperm.xlu1 %928, %v417_v21   ;;  %534 = vperm.xlu0 %927, %v416_v22   ;;  %v365_v22 = vmax.f32 %v329_v10, 0.0  ;;  %v295_v10 = vmul.f32 %v1084_v31, %v252_v61 }
  0x39   : > { %549 = vperm.xlu1 %928, %v419_v23   ;;  %544 = vperm.xlu0 %927, %v418_v24   ;;  %v364_v23 = vmax.f32 %v328_v11, 0.0  ;;  %v331_v24 = vadd.f32 %v1093_v36, %v288_v12  ;;  %v254_v11 = vld [vmem:[%s1079_s12 + $0x80] sm:$0xff] }
  0x3b   : > { %v367_v35 = vmax.f32 %v331_v24, 0.0 }
  0x3d   : > { %559 = vperm.xlu1 %928, %v421_v25   ;;  %554 = vperm.xlu0 %927, %v420_v26   ;;  %v330_v25 = vadd.f32 %v1093_v36, %v287_v13 }
  0x41   : > { %569 = vperm.xlu1 %928, %v423_v27   ;;  %564 = vperm.xlu0 %927, %v422_v28   ;;  %v290_v28 = vmul.f32 %v1084_v31, %v247_v18 }
  0x43   : > { %v333_v44 = vadd.f32 %v1093_v36, %v290_v28  ;;  %v256_v28 = vld [vmem:[%s1079_s12 + $0x90] sm:$0xff] }
  0x45   : > { %579 = vperm.xlu1 %928, %v425_v29   ;;  %574 = vperm.xlu0 %927, %v424_v30   ;;  %v289_v29 = vmul.f32 %v1084_v31, %v246_v19  ;;  %v249_v30 = vld [vmem:[%s1079_s12 + $0x58] sm:$0xff]  ;;  %v369_v58 = vmax.f32 %v333_v44, 0.0  ;;  %v299_v44 = vmul.f32 %v1084_v31, %v256_v28 }
  0x49   : > { %589 = vperm.xlu1 %928, %v427_v37   ;;  %584 = vperm.xlu0 %927, %v426_v40   ;;  %v366_v37 = vmax.f32 %v330_v25, 0.0  ;;  %v292_v40 = vmul.f32 %v1084_v31, %v249_v30 }
  0x4b   : > { %v335_v52 = vadd.f32 %v1093_v36, %v292_v40 }
  0x4d   : > { %599 = vperm.xlu1 %928, %v429_v47   ;;  %594 = vperm.xlu0 %927, %v428_v48   ;;  %v332_v47 = vadd.f32 %v1093_v36, %v289_v29  ;;  %v251_v48 = vld [vmem:[%s1079_s12 + $0x68] sm:$0xff] }
  0x4e   : > { %v294_v54 = vmul.f32 %v1084_v31, %v251_v48  ;;  %v258_v48 = vld [vmem:[%s1079_s12 + $0xa0] sm:$0xff] }
  0x4f   : > { %v368_v59 = vmax.f32 %v332_v47, 0.0  ;;  %v259_v47 = vld [vmem:[%s1079_s12 + $0xa8] sm:$0xff] }
  0x51   : > { %609 = vperm.xlu1 %928, %v431_v49   ;;  %604 = vperm.xlu0 %927, %v430_v50   ;;  %v250_v49 = vld [vmem:[%s1079_s12 + $0x60] sm:$0xff] }
  0x52   : > { %v293_v55 = vmul.f32 %v1084_v31, %v250_v49 }
  0x54   : > { %v336_v4 = vadd.f32 %v1093_v36, %v293_v55 }
  0x88   : > { %v445_v8 = vpop.permute.xlu1 %444  ;;  %v435_v9 = vpop.permute.xlu0 %434 }
  0x89   : > { %v614_v14 = vmul.f32 %v445_v8, %v362_v2  ;;  %v612_v15 = vmul.f32 %v435_v9, %v360_v3  ;;  %v371_v2 = vmax.f32 %v335_v52, 0.0  ;;  %v337_v3 = vadd.f32 %v1093_v36, %v294_v54 }
  0x8a   : > { %v370_v9 = vmax.f32 %v334_v53, 0.0 }
  0x8b   : > { %651 = vst.msk [vmem:[%s1134_s9 + $0x10] sm:$0xff] %vm648_vm1, %v614_v14  ;;  %649 = vst.msk [vmem:[%s1134_s9] sm:$0xff] %vm648_vm1, %v612_v15  ;;  %v373_v19 = vmax.f32 %v337_v3, 0.0 }
  0x8c   : > { %v450_v20 = vpop.permute.xlu1 %449  ;;  %v440_v21 = vpop.permute.xlu0 %439 }
  0x8d   : > { %v615_v26 = vmul.f32 %v450_v20, %v363_v16  ;;  %v613_v27 = vmul.f32 %v440_v21, %v361_v17  ;;  %v298_v16 = vmul.f32 %v1084_v31, %v255_v6  ;;  %v372_v20 = vmax.f32 %v336_v4, 0.0 }
  0x8e   : > { %v339_v21 = vadd.f32 %v1093_v36, %v296_v5 }
  0x8f   : > { %652 = vst.msk [vmem:[%s1134_s9 + $0x18] sm:$0xff] %vm648_vm1, %v615_v26  ;;  %650 = vst.msk [vmem:[%s1134_s9 + $0x8] sm:$0xff] %vm648_vm1, %v613_v27  ;;  %v338_v26 = vadd.f32 %v1093_v36, %v295_v10  ;;  %v257_v27 = vld [vmem:[%s1079_s12 + $0x98] sm:$0xff]  ;;  %v341_v29 = vadd.f32 %v1093_v36, %v298_v16  ;;  %v263_v10 = vld [vmem:[%s1079_s12 + $0xc8] sm:$0xff] }
  0x90   : > { %v460_v33 = vpop.permute.xlu1 %459  ;;  %v455_v34 = vpop.permute.xlu0 %454  ;;  %v300_v40 = vmul.f32 %v1084_v31, %v257_v27 }
  0x91   : > { %v617_v42 = vmul.f32 %v460_v33, %v365_v22  ;;  %v616_v43 = vmul.f32 %v455_v34, %v364_v23  ;;  %v297_v22 = vmul.f32 %v1084_v31, %v254_v11  ;;  %v377_v53 = vmax.f32 %v341_v29, 0.0 }
  0x93   : > { %654 = vst.msk [vmem:[%s1134_s9 + $0x28] sm:$0xff] %vm648_vm1, %v617_v42  ;;  %653 = vst.msk [vmem:[%s1134_s9 + $0x20] sm:$0xff] %vm648_vm1, %v616_v43  ;;  %v374_v43 = vmax.f32 %v338_v26, 0.0 }
  0x94   : > { %v470_v50 = vpop.permute.xlu1 %469  ;;  %v465_v51 = vpop.permute.xlu0 %464 }
  0x95   : > { %v619_v56 = vmul.f32 %v470_v50, %v367_v35  ;;  %v618_v57 = vmul.f32 %v465_v51, %v366_v37  ;;  %v375_v35 = vmax.f32 %v339_v21, 0.0  ;;  %v340_v37 = vadd.f32 %v1093_v36, %v297_v22 }
  0x96   : > { %v688_v62 = vld [vmem:[%s1134_s9] ss:$2 sm:$0xff]  ;;  %v882_v63 = vld [vmem:[%s1134_s9 + $0x1] ss:$2 sm:$0xff] }
  0x97   : > { %656 = vst.msk [vmem:[%s1134_s9 + $0x38] sm:$0xff] %vm648_vm1, %v619_v56  ;;  %655 = vst.msk [vmem:[%s1134_s9 + $0x30] sm:$0xff] %vm648_vm1, %v618_v57  ;;  %v695_v14 = vmax.f32 %v688_v62, %v882_v63  ;;  %v376_v56 = vmax.f32 %v340_v37, 0.0  ;;  %v343_v57 = vadd.f32 %v1093_v36, %v300_v40  ;;  %v342_v63 = vadd.f32 %v1093_v36, %v299_v44 }
  0x98   : > { %v480_v0 = vpop.permute.xlu1 %479  ;;  %v475_v1 = vpop.permute.xlu0 %474 }
  0x99   : > { %v621_v7 = vmul.f32 %v480_v0, %v369_v58  ;;  %v620_v8 = vmul.f32 %v475_v1, %v368_v59  ;;  %v302_v58 = vmul.f32 %v1084_v31, %v259_v47  ;;  %v301_v59 = vmul.f32 %v1084_v31, %v258_v48  ;;  %v261_v0 = vld [vmem:[%s1079_s12 + $0xb8] sm:$0xff]  ;;  %v260_v1 = vld [vmem:[%s1079_s12 + $0xb0] sm:$0xff] }
  0x9a   : > { %v883_v12 = vld [vmem:[%s1134_s9 + $0x12] ss:$2 sm:$0xff]  ;;  %v884_v13 = vld [vmem:[%s1134_s9 + $0x13] ss:$2 sm:$0xff]  ;;  %v379_v6 = vmax.f32 %v343_v57, 0.0 }
  0x9b   : > { %v696_v15 = vmax.f32 %v883_v12, %v884_v13  ;;  %658 = vst.msk [vmem:[%s1134_s9 + $0x48] sm:$0xff] %vm648_vm1, %v621_v7  ;;  %657 = vst.msk [vmem:[%s1134_s9 + $0x40] sm:$0xff] %vm648_vm1, %v620_v8  ;;  %v345_v7 = vadd.f32 %v1093_v36, %v302_v58  ;;  %v344_v8 = vadd.f32 %v1093_v36, %v301_v59  ;;  %v378_v13 = vmax.f32 %v342_v63, 0.0 }
  0x9c   : > { %v490_v17 = vpop.permute.xlu1 %489  ;;  %v485_v18 = vpop.permute.xlu0 %484 }
  0x9d   : > { %v697_v23 = vmax.f32 %v695_v14, %v696_v15  ;;  %v623_v24 = vmul.f32 %v490_v17, %v371_v2  ;;  %v622_v25 = vmul.f32 %v485_v18, %v370_v9  ;;  %v304_v9 = vmul.f32 %v1084_v31, %v261_v0  ;;  %v262_v15 = vld [vmem:[%s1079_s12 + $0xc0] sm:$0xff] }
  0x9e   : > { %v885_v30 = vld [vmem:[%s1134_s9 + $0x24] ss:$2 sm:$0xff]  ;;  %v886_v32 = vld [vmem:[%s1134_s9 + $0x25] ss:$2 sm:$0xff]  ;;  %v303_v14 = vmul.f32 %v1084_v31, %v260_v1  ;;  %v305_v26 = vmul.f32 %v1084_v31, %v262_v15 }
  0x9f   : > { %698 = vst.msk [vmem:[%s1214_s11] sm:$0xff] %vm648_vm1, %v697_v23  ;;  %660 = vst.msk [vmem:[%s1134_s9 + $0x58] sm:$0xff] %vm648_vm1, %v623_v24  ;;  %v707_v51 = vmax.f32 %v885_v30, %v886_v32  ;;  %v381_v23 = vmax.f32 %v345_v7, 0.0  ;;  %v380_v24 = vmax.f32 %v344_v8, 0.0  ;;  %v265_v32 = vld [vmem:[%s1079_s12 + $0xd8] sm:$0xff] }
  0xa0   : > { %659 = vst.msk [vmem:[%s1134_s9 + $0x50] sm:$0xff] %vm648_vm1, %v622_v25  ;;  %v500_v33 = vpop.permute.xlu1 %499  ;;  %v495_v34 = vpop.permute.xlu0 %494  ;;  %v347_v25 = vadd.f32 %v1093_v36, %v304_v9  ;;  %v346_v30 = vadd.f32 %v1093_v36, %v303_v14 }
  0xa1   : > { %v625_v41 = vmul.f32 %v500_v33, %v373_v19  ;;  %v624_v42 = vmul.f32 %v495_v34, %v372_v20  ;;  %v306_v20 = vmul.f32 %v1084_v31, %v263_v10  ;;  %v264_v33 = vld [vmem:[%s1079_s12 + $0xd0] sm:$0xff] }
  0xa2   : > { %v887_v49 = vld [vmem:[%s1134_s9 + $0x36] ss:$2 sm:$0xff]  ;;  %v888_v50 = vld [vmem:[%s1134_s9 + $0x37] ss:$2 sm:$0xff]  ;;  %v307_v44 = vmul.f32 %v1084_v31, %v264_v33 }
  0xa3   : > { %v708_v52 = vmax.f32 %v887_v49, %v888_v50  ;;  %662 = vst.msk [vmem:[%s1134_s9 + $0x68] sm:$0xff] %vm648_vm1, %v625_v41  ;;  %661 = vst.msk [vmem:[%s1134_s9 + $0x60] sm:$0xff] %vm648_vm1, %v624_v42  ;;  %v349_v34 = vadd.f32 %v1093_v36, %v306_v20  ;;  %v348_v42 = vadd.f32 %v1093_v36, %v305_v26  ;;  %v383_v49 = vmax.f32 %v347_v25, 0.0 }
  0xa4   : > { %v510_v54 = vpop.permute.xlu1 %509  ;;  %v505_v55 = vpop.permute.xlu0 %504  ;;  %v382_v50 = vmax.f32 %v346_v30, 0.0 }
  0xa5   : > { %v709_v60 = vmax.f32 %v707_v51, %v708_v52  ;;  %v627_v61 = vmul.f32 %v510_v54, %v375_v35  ;;  %v626_v62 = vmul.f32 %v505_v55, %v374_v43  ;;  %v308_v43 = vmul.f32 %v1084_v31, %v265_v32  ;;  %v267_v51 = vld [vmem:[%s1079_s12 + $0xe8] sm:$0xff]  ;;  %v266_v54 = vld [vmem:[%s1079_s12 + $0xe0] sm:$0xff] }
  0xa6   : > { %v385_v57 = vmax.f32 %v349_v34, 0.0  ;;  %v310_v63 = vmul.f32 %v1084_v31, %v267_v51 }
  0xa7   : > { %710 = vst.msk [vmem:[%s1214_s11 + $0x8] sm:$0xff] %vm648_vm1, %v709_v60  ;;  %664 = vst.msk [vmem:[%s1134_s9 + $0x78] sm:$0xff] %vm648_vm1, %v627_v61  ;;  %v889_v2 = vld [vmem:[%s1134_s9 + $0x48] ss:$2 sm:$0xff]  ;;  %v890_v3 = vld [vmem:[%s1134_s9 + $0x49] ss:$2 sm:$0xff]  ;;  %v351_v61 = vadd.f32 %v1093_v36, %v308_v43 }
  0xa8   : > { %663 = vst.msk [vmem:[%s1134_s9 + $0x70] sm:$0xff] %vm648_vm1, %v626_v62  ;;  %v520_v4 = vpop.permute.xlu1 %519  ;;  %v515_v5 = vpop.permute.xlu0 %514  ;;  %v719_v18 = vmax.f32 %v889_v2, %v890_v3  ;;  %v384_v60 = vmax.f32 %v348_v42, 0.0  ;;  %v350_v62 = vadd.f32 %v1093_v36, %v307_v44  ;;  %v309_v3 = vmul.f32 %v1084_v31, %v266_v54 }
  0xa9   : > { %v629_v11 = vmul.f32 %v520_v4, %v377_v53  ;;  %v628_v12 = vmul.f32 %v515_v5, %v376_v56  ;;  %v269_v4 = vld [vmem:[%s1079_s12 + $0xf8] sm:$0xff]  ;;  %v268_v5 = vld [vmem:[%s1079_s12 + $0xf0] sm:$0xff]  ;;  %v387_v8 = vmax.f32 %v351_v61, 0.0  ;;  %v353_v10 = vadd.f32 %v1093_v36, %v310_v63 }
  0xaa   : > { %v891_v16 = vld [vmem:[%s1134_s9 + $0x5a] ss:$2 sm:$0xff]  ;;  %v892_v17 = vld [vmem:[%s1134_s9 + $0x5b] ss:$2 sm:$0xff]  ;;  %v386_v9 = vmax.f32 %v350_v62, 0.0  ;;  %v352_v14 = vadd.f32 %v1093_v36, %v309_v3  ;;  %v311_v15 = vmul.f32 %v1084_v31, %v268_v5 }
  0xab   : > { %v720_v19 = vmax.f32 %v891_v16, %v892_v17  ;;  %666 = vst.msk [vmem:[%s1134_s9 + $0x88] sm:$0xff] %vm648_vm1, %v629_v11  ;;  %665 = vst.msk [vmem:[%s1134_s9 + $0x80] sm:$0xff] %vm648_vm1, %v628_v12  ;;  %v312_v11 = vmul.f32 %v1084_v31, %v269_v4  ;;  %v389_v20 = vmax.f32 %v353_v10, 0.0 }
  0xac   : > { %v530_v21 = vpop.permute.xlu1 %529  ;;  %v525_v22 = vpop.permute.xlu0 %524  ;;  %v354_v31 = vadd.f32 %v1093_v36, %v311_v15 }
  0xad   : > { %v721_v27 = vmax.f32 %v719_v18, %v720_v19  ;;  %v631_v28 = vmul.f32 %v530_v21, %v379_v6  ;;  %v630_v29 = vmul.f32 %v525_v22, %v378_v13  ;;  %v355_v21 = vadd.f32 %v1093_v36, %v312_v11 }
  0xae   : > { %v390_v36 = vmax.f32 %v354_v31, 0.0 }
  0xaf   : > { %722 = vst.msk [vmem:[%s1214_s11 + $0x10] sm:$0xff] %vm648_vm1, %v721_v27  ;;  %668 = vst.msk [vmem:[%s1134_s9 + $0x98] sm:$0xff] %vm648_vm1, %v631_v28  ;;  %v893_v35 = vld [vmem:[%s1134_s9 + $0x6c] ss:$2 sm:$0xff]  ;;  %v894_v37 = vld [vmem:[%s1134_s9 + $0x6d] ss:$2 sm:$0xff] }
  0xb0   : > { %667 = vst.msk [vmem:[%s1134_s9 + $0x90] sm:$0xff] %vm648_vm1, %v630_v29  ;;  %v540_v40 = vpop.permute.xlu1 %539  ;;  %v535_v41 = vpop.permute.xlu0 %534  ;;  %v731_v55 = vmax.f32 %v893_v35, %v894_v37  ;;  %v391_v32 = vmax.f32 %v355_v21, 0.0 }
  0xb1   : > { %v633_v47 = vmul.f32 %v540_v40, %v381_v23  ;;  %v632_v48 = vmul.f32 %v535_v41, %v380_v24  ;;  %v388_v24 = vmax.f32 %v352_v14, 0.0 }
  0xb2   : > { %v895_v52 = vld [vmem:[%s1134_s9 + $0x7e] ss:$2 sm:$0xff]  ;;  %v896_v53 = vld [vmem:[%s1134_s9 + $0x7f] ss:$2 sm:$0xff] }
  0xb3   : > { %v732_v56 = vmax.f32 %v895_v52, %v896_v53  ;;  %670 = vst.msk [vmem:[%s1134_s9 + $0xa8] sm:$0xff] %vm648_vm1, %v633_v47  ;;  %669 = vst.msk [vmem:[%s1134_s9 + $0xa0] sm:$0xff] %vm648_vm1, %v632_v48  ;;  %v393_v47 = vmax.f32 %v1099_v38, 0.0  ;;  %v392_v48 = vmax.f32 %v1102_v39, 0.0 }
  0xb4   : > { %v550_v58 = vpop.permute.xlu1 %549  ;;  %v545_v59 = vpop.permute.xlu0 %544 }
  0xb5   : > { %v733_v0 = vmax.f32 %v731_v55, %v732_v56  ;;  %v635_v1 = vmul.f32 %v550_v58, %v383_v49  ;;  %v634_v2 = vmul.f32 %v545_v59, %v382_v50  ;;  %v395_v55 = vmax.f32 %v1112_v45, 0.0 }
  0xb7   : > { %734 = vst.msk [vmem:[%s1214_s11 + $0x18] sm:$0xff] %vm648_vm1, %v733_v0  ;;  %672 = vst.msk [vmem:[%s1134_s9 + $0xb8] sm:$0xff] %vm648_vm1, %v635_v1  ;;  %v897_v16 = vld [vmem:[%s1134_s9 + $0x90] ss:$2 sm:$0xff]  ;;  %v898_v17 = vld [vmem:[%s1134_s9 + $0x91] ss:$2 sm:$0xff] }
  0xb8   : > { %671 = vst.msk [vmem:[%s1134_s9 + $0xb0] sm:$0xff] %vm648_vm1, %v634_v2  ;;  %v560_v6 = vpop.permute.xlu1 %559  ;;  %v555_v7 = vpop.permute.xlu0 %554  ;;  %v743_v27 = vmax.f32 %v897_v16, %v898_v17 }
  0xb9   : > { %v637_v12 = vmul.f32 %v560_v6, %v385_v57  ;;  %v636_v13 = vmul.f32 %v555_v7, %v384_v60  ;;  %v394_v57 = vmax.f32 %v1115_v46, 0.0 }
  0xbb   : > { %674 = vst.msk [vmem:[%s1134_s9 + $0xc8] sm:$0xff] %vm648_vm1, %v637_v12  ;;  %673 = vst.msk [vmem:[%s1134_s9 + $0xc0] sm:$0xff] %vm648_vm1, %v636_v13 }
  0xbc   : > { %v570_v18 = vpop.permute.xlu1 %569  ;;  %v565_v19 = vpop.permute.xlu0 %564 }
  0xbd   : > { %v639_v22 = vmul.f32 %v570_v18, %v387_v8  ;;  %v638_v23 = vmul.f32 %v565_v19, %v386_v9 }
  0xbf   : > { %v899_v25 = vld [vmem:[%s1134_s9 + $0xa2] ss:$2 sm:$0xff]  ;;  %v900_v26 = vld [vmem:[%s1134_s9 + $0xa3] ss:$2 sm:$0xff]  ;;  %676 = vst.msk [vmem:[%s1134_s9 + $0xd8] sm:$0xff] %vm648_vm1, %v639_v22  ;;  %675 = vst.msk [vmem:[%s1134_s9 + $0xd0] sm:$0xff] %vm648_vm1, %v638_v23 }
  0xc0   : > { %v744_v28 = vmax.f32 %v899_v25, %v900_v26  ;;  %v580_v29 = vpop.permute.xlu1 %579  ;;  %v575_v30 = vpop.permute.xlu0 %574 }
  0xc1   : > { %v641_v34 = vmul.f32 %v580_v29, %v389_v20  ;;  %v640_v35 = vmul.f32 %v575_v30, %v388_v24 }
  0xc2   : > { %v745_v33 = vmax.f32 %v743_v27, %v744_v28  ;;  %v901_v37 = vld [vmem:[%s1134_s9 + $0xb4] ss:$2 sm:$0xff]  ;;  %v902_v40 = vld [vmem:[%s1134_s9 + $0xb5] ss:$2 sm:$0xff] }
  0xc3   : > { %678 = vst.msk [vmem:[%s1134_s9 + $0xe8] sm:$0xff] %vm648_vm1, %v641_v34  ;;  %677 = vst.msk [vmem:[%s1134_s9 + $0xe0] sm:$0xff] %vm648_vm1, %v640_v35  ;;  %v755_v51 = vmax.f32 %v901_v37, %v902_v40 }
  0xc4   : > { %746 = vst.msk [vmem:[%s1214_s11 + $0x20] sm:$0xff] %vm648_vm1, %v745_v33  ;;  %v590_v41 = vpop.permute.xlu1 %589  ;;  %v585_v42 = vpop.permute.xlu0 %584 }
  0xc5   : > { %v643_v43 = vmul.f32 %v590_v41, %v391_v32  ;;  %v642_v44 = vmul.f32 %v585_v42, %v390_v36 }
  0xc6   : > { %v903_v49 = vld [vmem:[%s1134_s9 + $0xc6] ss:$2 sm:$0xff]  ;;  %v904_v50 = vld [vmem:[%s1134_s9 + $0xc7] ss:$2 sm:$0xff] }
  0xc7   : > { %v756_v52 = vmax.f32 %v903_v49, %v904_v50  ;;  %680 = vst.msk [vmem:[%s1134_s9 + $0xf8] sm:$0xff] %vm648_vm1, %v643_v43  ;;  %679 = vst.msk [vmem:[%s1134_s9 + $0xf0] sm:$0xff] %vm648_vm1, %v642_v44 }
  0xc8   : > { %v600_v53 = vpop.permute.xlu1 %599  ;;  %v595_v54 = vpop.permute.xlu0 %594 }
  0xc9   : > { %v757_v38 = vmax.f32 %v755_v51, %v756_v52  ;;  %v645_v56 = vmul.f32 %v600_v53, %v393_v47  ;;  %v644_v39 = vmul.f32 %v595_v54, %v392_v48 }
  0xca   : > { %v905_v58 = vld [vmem:[%s1134_s9 + $0xd8] ss:$2 sm:$0xff]  ;;  %v906_v59 = vld [vmem:[%s1134_s9 + $0xd9] ss:$2 sm:$0xff] }
  0xcb   : > { %758 = vst.msk [vmem:[%s1214_s11 + $0x28] sm:$0xff] %vm648_vm1, %v757_v38  ;;  %682 = vst.msk [vmem:[%s1134_s9 + $0x108] sm:$0xff] %vm648_vm1, %v645_v56  ;;  %v767_v0 = vmax.f32 %v905_v58, %v906_v59 }
  0xcc   : > { %681 = vst.msk [vmem:[%s1134_s9 + $0x100] sm:$0xff] %vm648_vm1, %v644_v39  ;;  %v610_v45 = vpop.permute.xlu1 %609  ;;  %v605_v60 = vpop.permute.xlu0 %604 }
  0xcd   : > { %v647_v61 = vmul.f32 %v610_v45, %v395_v55  ;;  %v646_v62 = vmul.f32 %v605_v60, %v394_v57 }
  0xce   : > { %v907_v46 = vld [vmem:[%s1134_s9 + $0xea] ss:$2 sm:$0xff]  ;;  %v908_v63 = vld [vmem:[%s1134_s9 + $0xeb] ss:$2 sm:$0xff] }
  0xcf   : > { %v768_v1 = vmax.f32 %v907_v46, %v908_v63  ;;  %685 = vst.msk [vmem:[%s1134_s9 + $0x118] sm:$0x3f] %vm684_vm2, %v647_v61 }
  0xd0   : > { %683 = vst.msk [vmem:[%s1134_s9 + $0x110] sm:$0xff] %vm648_vm1, %v646_v62 }
  0xd1   : > { %v769_v2 = vmax.f32 %v767_v0, %v768_v1 }
  0xd3   : > { %770 = vst.msk [vmem:[%s1214_s11 + $0x30] sm:$0xff] %vm648_vm1, %v769_v2  ;;  %v909_v3 = vld [vmem:[%s1134_s9 + $0xfc] ss:$2 sm:$0xff]  ;;  %v910_v4 = vld [vmem:[%s1134_s9 + $0xfd] ss:$2 sm:$0xff] }
  0xd4   : > { %v779_v7 = vmax.f32 %v909_v3, %v910_v4 }
  0xd7   : > { %v911_v5 = vld [vmem:[%s1134_s9 + $0x10e] ss:$2 sm:$0xff]  ;;  %v912_v6 = vld [vmem:[%s1134_s9 + $0x10f] ss:$2 sm:$0xff] }
  0xd8   : > { %v780_v8 = vmax.f32 %v911_v5, %v912_v6 }
  0xda   : > { %v781_v9 = vmax.f32 %v779_v7, %v780_v8 }
  0xdc   : > { %782 = vst.msk [vmem:[%s1214_s11 + $0x38] sm:$0xff] %vm648_vm1, %v781_v9 }
  0xdd PF: > { %s16_s18 = sadd.s32 1, %s935_s18  }
  0xde   : > { %p13_p4 = scmp.ge.s32.totalorder %s16_s18, 4  }
  0xe0   :  { %15 = sbr.rel (!%p13_p4) target bundleno = 1 (0x1), region = 109 }

// kernel: encoder_block_forward.3
= control target key start
LH: loop header
LB: loop body
LE: loop exit
PB: predicated region body
PF: predicated region fallthrough
CT: control target
= control target key end

     0   :  { %s3006_s15 = smov 0   ;;  %s5001_s0 = inlined_call_operand.vmem [shape: f32[2,324,4], index: 0, kind: input, shape index: {}]   ;;  %s5002_s1 = inlined_call_operand.vmem [shape: f32[36,8], index: 1, kind: input, shape index: {}]   ;;  %s5003_s2 = inlined_call_operand.vmem [shape: f32[286,1], index: 2, kind: input, shape index: {}]   ;;  %s5004_s3 = inlined_call_operand.vmem [shape: f32[2,286,8], index: 3, kind: output, shape index: {0}]   ;;  %s5005_s4 = inlined_call_operand.vmem [shape: f32[2,2,8], index: 4, kind: output, shape index: {1}]  }
   0x1 LB: > { %s2781_s16 = sadd.s32 4294967295, %s2970_s15   ;;  %p2785_p0 = scmp.ge.s32.totalorder %s2970_s15, 1  ;;  %s2970_s15 = sphi %s3006_s15, %s15_s15  }
   0x2   : > { %p165_p1 = scmp.lt.s32.totalorder %s2970_s15, 3 }
   0x4   : > { %p166_p2 = pnand %p2785_p0, %p165_p1 }
   0x6   : > { %169 = sbr.rel (%p166_p2) target bundleno = 925 (0x39d), region = 32 }
   0xb   : > { %p195_p3 = scmp.lt.s32.totalorder %s2781_s16, 1  ;;  %s2972_s21 = smov 4   ;;  %vm1963_vm0 = vcmask 1043456   ;;  %vm1553_vm1 = vcmask 31744   ;;  %vm1590_vm2 = vcmask 64512   ;;  %vm1627_vm3 = vcmask 97280  }
   0xc   : > { %s2973_s22 = smov 8   ;;  %s2974_s23 = smov 12   ;;  %vm1664_vm4 = vcmask 130048   ;;  %vm1701_vm5 = vcmask 162816   ;;  %vm1738_vm6 = vcmask 195584   ;;  %vm1775_vm7 = vcmask 228352  }
   0xd   : > { %s5302_s16 = smov (!%p195_p3, %s2781_s16), 1  ;;  %s2975_s24 = smov 16   ;;  %vm1812_vm8 = vcmask 261120   ;;  %vm1854_vm9 = vcmask 293888   ;;  %vm2247_vm10 = vcmask 62464   ;;  %vm2691_vm11 = vcmask 1040384  }
   0xe   : > { %s2943_s17 = smul.u32 328, %s5302_s16  ;;  %s2976_s25 = smov 20   ;;  %vm2693_vm12 = vcmask 58368  }
   0xf   : > { %s2977_s30 = smov 24   ;;  %s2978_s11 = smov 28  }
  0x10   : > { %s3020_s20 = scalar_lea.vmem %s5001_s0, %s2943_s17  ;;  %s2979_s12 = smov 32  }
  0x11   : > { %v247_v0 = vld [vmem:[%s3020_s20 + $0x11] sm:$0xff]  ;;  %v245_v1 = vld [vmem:[%s3020_s20 + $0x1] sm:$0xff]  ;;  %v248_v2 = vld [vmem:[%s3020_s20 + $0x19] sm:$0xff] }
  0x12   : > { %507 = vrot.lane.b32.xlu1 %v247_v0, %s2972_s21  ;;  %503 = vrot.lane.b32.xlu0 %v245_v1, %s2972_s21  ;;  %v246_v3 = vld [vmem:[%s3020_s20 + $0x9] sm:$0xff]  ;;  %v249_v5 = vld [vmem:[%s3020_s20 + $0x21] sm:$0xff] }
  0x13   : > { %v250_v4 = vld [vmem:[%s3020_s20 + $0x29] sm:$0xff]  ;;  %v252_v6 = vld [vmem:[%s3020_s20 + $0x39] sm:$0xff]  ;;  %v251_v7 = vld [vmem:[%s3020_s20 + $0x31] sm:$0xff] }
  0x14   : > { %v254_v8 = vld [vmem:[%s3020_s20 + $0x49] sm:$0xff]  ;;  %v253_v9 = vld [vmem:[%s3020_s20 + $0x41] sm:$0xff]  ;;  %v256_v10 = vld [vmem:[%s3020_s20 + $0x59] sm:$0xff] }
  0x15   : > { %v255_v11 = vld [vmem:[%s3020_s20 + $0x51] sm:$0xff]  ;;  %v258_v12 = vld [vmem:[%s3020_s20 + $0x69] sm:$0xff]  ;;  %v257_v13 = vld [vmem:[%s3020_s20 + $0x61] sm:$0xff] }
  0x16   : > { %509 = vrot.lane.b32.xlu1 %v248_v2, %s2972_s21  ;;  %505 = vrot.lane.b32.xlu0 %v246_v3, %s2972_s21  ;;  %v260_v14 = vld [vmem:[%s3020_s20 + $0x79] sm:$0xff]  ;;  %v259_v15 = vld [vmem:[%s3020_s20 + $0x71] sm:$0xff] }
  0x17   : > { %v262_v16 = vld [vmem:[%s3020_s20 + $0x89] sm:$0xff]  ;;  %v261_v17 = vld [vmem:[%s3020_s20 + $0x81] sm:$0xff]  ;;  %v264_v18 = vld [vmem:[%s3020_s20 + $0x99] sm:$0xff] }
  0x18   : > { %v263_v19 = vld [vmem:[%s3020_s20 + $0x91] sm:$0xff]  ;;  %v266_v20 = vld [vmem:[%s3020_s20 + $0xa9] sm:$0xff]  ;;  %v265_v21 = vld [vmem:[%s3020_s20 + $0xa1] sm:$0xff] }
  0x19   : > { %v268_v22 = vld [vmem:[%s3020_s20 + $0xb9] sm:$0xff]  ;;  %v267_v23 = vld [vmem:[%s3020_s20 + $0xb1] sm:$0xff]  ;;  %v270_v24 = vld [vmem:[%s3020_s20 + $0xc9] sm:$0xff] }
  0x1a   : > { %513 = vrot.lane.b32.xlu1 %v250_v4, %s2972_s21  ;;  %511 = vrot.lane.b32.xlu0 %v249_v5, %s2972_s21  ;;  %v269_v25 = vld [vmem:[%s3020_s20 + $0xc1] sm:$0xff]  ;;  %v272_v26 = vld [vmem:[%s3020_s20 + $0xd9] sm:$0xff] }
  0x1b   : > { %v271_v27 = vld [vmem:[%s3020_s20 + $0xd1] sm:$0xff]  ;;  %v274_v28 = vld [vmem:[%s3020_s20 + $0xe9] sm:$0xff]  ;;  %v273_v29 = vld [vmem:[%s3020_s20 + $0xe1] sm:$0xff] }
  0x1c   : > { %v276_v30 = vld [vmem:[%s3020_s20 + $0xf9] sm:$0xff]  ;;  %v275_v31 = vld [vmem:[%s3020_s20 + $0xf1] sm:$0xff]  ;;  %v278_v32 = vld [vmem:[%s3020_s20 + $0x109] sm:$0xff] }
  0x1d   : > { %v277_v33 = vld [vmem:[%s3020_s20 + $0x101] sm:$0xff]  ;;  %v280_v34 = vld [vmem:[%s3020_s20 + $0x119] sm:$0x3f]  ;;  %v279_v35 = vld [vmem:[%s3020_s20 + $0x111] sm:$0xff] }
  0x1e   : > { %517 = vrot.lane.b32.xlu1 %v252_v6, %s2972_s21  ;;  %515 = vrot.lane.b32.xlu0 %v251_v7, %s2972_s21  ;;  %v282_v36 = vld [vmem:[%s3020_s20 + $0xa] sm:$0xff]  ;;  %v281_v37 = vld [vmem:[%s3020_s20 + $0x2] sm:$0xff] }
  0x1f   : > { %v3099_v38 = vld [vmem:[%s3020_s20 + $0x1a] sm:$0xff]  ;;  %v3102_v39 = vld [vmem:[%s3020_s20 + $0x12] sm:$0xff]  ;;  %v3109_v40 = vld [vmem:[%s3020_s20 + $0x2a] sm:$0xff] }
  0x20   : > { %v3112_v41 = vld [vmem:[%s3020_s20 + $0x22] sm:$0xff]  ;;  %v3119_v42 = vld [vmem:[%s3020_s20 + $0x3a] sm:$0xff]  ;;  %v3122_v43 = vld [vmem:[%s3020_s20 + $0x32] sm:$0xff] }
  0x21   : > { %v3129_v44 = vld [vmem:[%s3020_s20 + $0x4a] sm:$0xff]  ;;  %v3132_v45 = vld [vmem:[%s3020_s20 + $0x42] sm:$0xff]  ;;  %v3139_v46 = vld [vmem:[%s3020_s20 + $0x5a] sm:$0xff] }
  0x22   : > { %521 = vrot.lane.b32.xlu1 %v254_v8, %s2972_s21  ;;  %519 = vrot.lane.b32.xlu0 %v253_v9, %s2972_s21  ;;  %v3142_v47 = vld [vmem:[%s3020_s20 + $0x52] sm:$0xff]  ;;  %v3149_v48 = vld [vmem:[%s3020_s20 + $0x6a] sm:$0xff] }
  0x23   : > { %v3152_v49 = vld [vmem:[%s3020_s20 + $0x62] sm:$0xff]  ;;  %v3159_v50 = vld [vmem:[%s3020_s20 + $0x7a] sm:$0xff]  ;;  %v3162_v51 = vld [vmem:[%s3020_s20 + $0x72] sm:$0xff] }
  0x24   : > { %v3169_v52 = vld [vmem:[%s3020_s20 + $0x8a] sm:$0xff]  ;;  %v3172_v53 = vld [vmem:[%s3020_s20 + $0x82] sm:$0xff]  ;;  %v3179_v54 = vld [vmem:[%s3020_s20 + $0x9a] sm:$0xff] }
  0x25   : > { %v3182_v55 = vld [vmem:[%s3020_s20 + $0x92] sm:$0xff]  ;;  %v3189_v56 = vld [vmem:[%s3020_s20 + $0xaa] sm:$0xff]  ;;  %v3192_v57 = vld [vmem:[%s3020_s20 + $0xa2] sm:$0xff] }
  0x26   : > { %525 = vrot.lane.b32.xlu1 %v256_v10, %s2972_s21  ;;  %523 = vrot.lane.b32.xlu0 %v255_v11, %s2972_s21  ;;  %v3199_v58 = vld [vmem:[%s3020_s20 + $0xba] sm:$0xff]  ;;  %v3202_v59 = vld [vmem:[%s3020_s20 + $0xb2] sm:$0xff] }
  0x27   : > { %v3213_v62 = vld [vmem:[%s3020_s20 + $0xca] sm:$0xff]  ;;  %v3216_v63 = vld [vmem:[%s3020_s20 + $0xc2] sm:$0xff]  ;;  %v3227_v2 = vld [vmem:[%s3020_s20 + $0xda] sm:$0xff] }
  0x28   : > { %v3230_v3 = vld [vmem:[%s3020_s20 + $0xd2] sm:$0xff]  ;;  %v3241_v6 = vld [vmem:[%s3020_s20 + $0xea] sm:$0xff]  ;;  %v3244_v7 = vld [vmem:[%s3020_s20 + $0xe2] sm:$0xff] }
  0x29   : > { %v3255_v10 = vld [vmem:[%s3020_s20 + $0xfa] sm:$0xff]  ;;  %v3258_v11 = vld [vmem:[%s3020_s20 + $0xf2] sm:$0xff] }
  0x2a   : > { %529 = vrot.lane.b32.xlu1 %v258_v12, %s2972_s21  ;;  %527 = vrot.lane.b32.xlu0 %v257_v13, %s2972_s21 }
  0x2e   : > { %533 = vrot.lane.b32.xlu1 %v260_v14, %s2972_s21  ;;  %531 = vrot.lane.b32.xlu0 %v259_v15, %s2972_s21  ;;  %v3269_v14 = vld [vmem:[%s3020_s20 + $0x10a] sm:$0xff]  ;;  %v3272_v15 = vld [vmem:[%s3020_s20 + $0x102] sm:$0xff] }
  0x32   : > { %537 = vrot.lane.b32.xlu1 %v262_v16, %s2972_s21  ;;  %535 = vrot.lane.b32.xlu0 %v261_v17, %s2972_s21 }
  0x36   : > { %541 = vrot.lane.b32.xlu1 %v264_v18, %s2972_s21  ;;  %539 = vrot.lane.b32.xlu0 %v263_v19, %s2972_s21  ;;  %v316_v18 = vld [vmem:[%s3020_s20 + $0x11a] sm:$0x3f]  ;;  %v3284_v19 = vld [vmem:[%s3020_s20 + $0x112] sm:$0xff] }
  0x3a   : > { %545 = vrot.lane.b32.xlu1 %v266_v20, %s2972_s21  ;;  %543 = vrot.lane.b32.xlu0 %v265_v21, %s2972_s21 }
  0x3e   : > { %549 = vrot.lane.b32.xlu1 %v268_v22, %s2972_s21  ;;  %547 = vrot.lane.b32.xlu0 %v267_v23, %s2972_s21 }
  0x42   : > { %553 = vrot.lane.b32.xlu1 %v270_v24, %s2972_s21  ;;  %551 = vrot.lane.b32.xlu0 %v269_v25, %s2972_s21 }
  0x46   : > { %557 = vrot.lane.b32.xlu1 %v272_v26, %s2972_s21  ;;  %555 = vrot.lane.b32.xlu0 %v271_v27, %s2972_s21 }
  0x4a   : > { %561 = vrot.lane.b32.xlu1 %v274_v28, %s2972_s21  ;;  %559 = vrot.lane.b32.xlu0 %v273_v29, %s2972_s21 }
  0x4e   : > { %565 = vrot.lane.b32.xlu1 %v276_v30, %s2972_s21  ;;  %563 = vrot.lane.b32.xlu0 %v275_v31, %s2972_s21 }
  0x52   : > { %569 = vrot.lane.b32.xlu1 %v278_v32, %s2972_s21  ;;  %567 = vrot.lane.b32.xlu0 %v277_v33, %s2972_s21 }
  0x56   : > { %573 = vrot.lane.b32.xlu1 %v280_v34, %s2972_s21  ;;  %571 = vrot.lane.b32.xlu0 %v279_v35, %s2972_s21 }
  0x5a   : > { %649 = vrot.lane.b32.xlu1 %v282_v36, %s2973_s22  ;;  %647 = vrot.lane.b32.xlu0 %v281_v37, %s2973_s22 }
  0x5e   : > { %653 = vrot.lane.b32.xlu1 %v3099_v38, %s2973_s22  ;;  %651 = vrot.lane.b32.xlu0 %v3102_v39, %s2973_s22 }
  0x62   : > { %657 = vrot.lane.b32.xlu1 %v3109_v40, %s2973_s22  ;;  %655 = vrot.lane.b32.xlu0 %v3112_v41, %s2973_s22 }
  0x66   : > { %661 = vrot.lane.b32.xlu1 %v3119_v42, %s2973_s22  ;;  %659 = vrot.lane.b32.xlu0 %v3122_v43, %s2973_s22 }
  0x6a   : > { %665 = vrot.lane.b32.xlu1 %v3129_v44, %s2973_s22  ;;  %663 = vrot.lane.b32.xlu0 %v3132_v45, %s2973_s22 }
  0x6e   : > { %669 = vrot.lane.b32.xlu1 %v3139_v46, %s2973_s22  ;;  %667 = vrot.lane.b32.xlu0 %v3142_v47, %s2973_s22 }
  0x72   : > { %673 = vrot.lane.b32.xlu1 %v3149_v48, %s2973_s22  ;;  %671 = vrot.lane.b32.xlu0 %v3152_v49, %s2973_s22 }
  0x76   : > { %677 = vrot.lane.b32.xlu1 %v3159_v50, %s2973_s22  ;;  %675 = vrot.lane.b32.xlu0 %v3162_v51, %s2973_s22 }
  0x7a   : > { %681 = vrot.lane.b32.xlu1 %v3169_v52, %s2973_s22  ;;  %679 = vrot.lane.b32.xlu0 %v3172_v53, %s2973_s22 }
  0x7e   : > { %685 = vrot.lane.b32.xlu1 %v3179_v54, %s2973_s22  ;;  %683 = vrot.lane.b32.xlu0 %v3182_v55, %s2973_s22 }
  0x82   : > { %689 = vrot.lane.b32.xlu1 %v3189_v56, %s2973_s22  ;;  %687 = vrot.lane.b32.xlu0 %v3192_v57, %s2973_s22 }
  0x84   : > { %v3204_v60 = vpop.permute.xlu1 %507  ;;  %v3206_v61 = vpop.permute.xlu0 %503 }
  0x86   : > { %693 = vrot.lane.b32.xlu1 %v3199_v58, %s2973_s22  ;;  %691 = vrot.lane.b32.xlu0 %v3202_v59, %s2973_s22 }
  0x88   : > { %v3218_v0 = vpop.permute.xlu1 %509  ;;  %v3220_v1 = vpop.permute.xlu0 %505 }
  0x8a   : > { %697 = vrot.lane.b32.xlu1 %v3213_v62, %s2973_s22  ;;  %695 = vrot.lane.b32.xlu0 %v3216_v63, %s2973_s22 }
  0x8c   : > { %v3232_v4 = vpop.permute.xlu1 %513  ;;  %v3234_v5 = vpop.permute.xlu0 %511 }
  0x8e   : > { %701 = vrot.lane.b32.xlu1 %v3227_v2, %s2973_s22  ;;  %699 = vrot.lane.b32.xlu0 %v3230_v3, %s2973_s22 }
  0x90   : > { %v3246_v8 = vpop.permute.xlu1 %517  ;;  %v3248_v9 = vpop.permute.xlu0 %515 }
  0x92   : > { %705 = vrot.lane.b32.xlu1 %v3241_v6, %s2973_s22  ;;  %703 = vrot.lane.b32.xlu0 %v3244_v7, %s2973_s22 }
  0x94   : > { %v3260_v12 = vpop.permute.xlu1 %521  ;;  %v3262_v13 = vpop.permute.xlu0 %519 }
  0x95   : > { %5013 = vst [vmem:[#allocation2_spill] sm:$0xff] %v3260_v12  ;;  %5014 = vst [vmem:[#allocation3_spill] sm:$0xff] %v3262_v13 }
  0x96   : > { %709 = vrot.lane.b32.xlu1 %v3255_v10, %s2973_s22  ;;  %707 = vrot.lane.b32.xlu0 %v3258_v11, %s2973_s22 }
  0x98   : > { %v3274_v16 = vpop.permute.xlu1 %525  ;;  %v3276_v17 = vpop.permute.xlu0 %523 }
  0x99   : > { %5015 = vst [vmem:[#allocation4_spill] sm:$0xff] %v3274_v16  ;;  %5016 = vst [vmem:[#allocation5_spill] sm:$0xff] %v3276_v17  ;;  %v3772_v17 = vld [vmem:[%s3020_s20 + $0xfc] sm:$0xff]  ;;  %v3775_v16 = vld [vmem:[%s3020_s20 + $0xf4] sm:$0xff] }
  0x9a   : > { %713 = vrot.lane.b32.xlu1 %v3269_v14, %s2973_s22  ;;  %711 = vrot.lane.b32.xlu0 %v3272_v15, %s2973_s22  ;;  %5097 = vst [vmem:[#allocation86_spill] sm:$0xff] %v3772_v17  ;;  %5098 = vst [vmem:[#allocation87_spill] sm:$0xff] %v3775_v16 }
  0x9c   : > { %v3286_v20 = vpop.permute.xlu1 %529  ;;  %v3288_v21 = vpop.permute.xlu0 %527 }
  0x9d   : > { %5017 = vst [vmem:[#allocation6_spill] sm:$0xff] %v3286_v20  ;;  %5018 = vst [vmem:[#allocation7_spill] sm:$0xff] %v3288_v21 }
  0x9e   : > { %717 = vrot.lane.b32.xlu1 %v316_v18, %s2973_s22  ;;  %715 = vrot.lane.b32.xlu0 %v3284_v19, %s2973_s22  ;;  %v324_v18 = vld [vmem:[%s3020_s20 + $0x33] sm:$0xff]  ;;  %s2788_s22 = sshll.u32 %s5302_s16, 1 }
  0xa0   : > { %v3293_v22 = vpop.permute.xlu1 %533  ;;  %v3295_v23 = vpop.permute.xlu0 %531 }
  0xa1   : > { %5019 = vst [vmem:[#allocation8_spill] sm:$0xff] %v3293_v22  ;;  %5020 = vst [vmem:[#allocation9_spill] sm:$0xff] %v3295_v23 }
  0xa2   : > { %760 = vrot.lane.b32.xlu1 %v3099_v38, %s2974_s23  ;;  %758 = vrot.lane.b32.xlu0 %v3102_v39, %s2974_s23 }
  0xa4   : > { %v3301_v24 = vpop.permute.xlu1 %537  ;;  %v3303_v25 = vpop.permute.xlu0 %535 }
  0xa5   : > { %5021 = vst [vmem:[#allocation10_spill] sm:$0xff] %v3301_v24  ;;  %5022 = vst [vmem:[#allocation11_spill] sm:$0xff] %v3303_v25 }
  0xa6   : > { %764 = vrot.lane.b32.xlu1 %v3109_v40, %s2974_s23  ;;  %762 = vrot.lane.b32.xlu0 %v3112_v41, %s2974_s23 }
  0xa8   : > { %v3309_v26 = vpop.permute.xlu1 %541  ;;  %v3311_v27 = vpop.permute.xlu0 %539 }
  0xa9   : > { %5023 = vst [vmem:[#allocation12_spill] sm:$0xff] %v3309_v26  ;;  %5024 = vst [vmem:[#allocation13_spill] sm:$0xff] %v3311_v27 }
  0xaa   : > { %768 = vrot.lane.b32.xlu1 %v3119_v42, %s2974_s23  ;;  %766 = vrot.lane.b32.xlu0 %v3122_v43, %s2974_s23 }
  0xac   : > { %v3317_v28 = vpop.permute.xlu1 %545  ;;  %v3319_v29 = vpop.permute.xlu0 %543 }
  0xad   : > { %5025 = vst [vmem:[#allocation14_spill] sm:$0xff] %v3317_v28  ;;  %5026 = vst [vmem:[#allocation15_spill] sm:$0xff] %v3319_v29  ;;  %v3604_v29 = vld [vmem:[%s3020_s20 + $0x3c] sm:$0xff] }
  0xae   : > { %772 = vrot.lane.b32.xlu1 %v3129_v44, %s2974_s23  ;;  %770 = vrot.lane.b32.xlu0 %v3132_v45, %s2974_s23 }
  0xb0   : > { %v3325_v30 = vpop.permute.xlu1 %549  ;;  %v3327_v31 = vpop.permute.xlu0 %547 }
  0xb1   : > { %5027 = vst [vmem:[#allocation16_spill] sm:$0xff] %v3325_v30  ;;  %5028 = vst [vmem:[#allocation17_spill] sm:$0xff] %v3327_v31 }
  0xb2   : > { %776 = vrot.lane.b32.xlu1 %v3139_v46, %s2974_s23  ;;  %774 = vrot.lane.b32.xlu0 %v3142_v47, %s2974_s23 }
  0xb4   : > { %v3333_v32 = vpop.permute.xlu1 %553  ;;  %v3335_v33 = vpop.permute.xlu0 %551 }
  0xb5   : > { %5029 = vst [vmem:[#allocation18_spill] sm:$0xff] %v3333_v32  ;;  %5030 = vst [vmem:[#allocation19_spill] sm:$0xff] %v3335_v33  ;;  %v352_v32 = vld [vmem:[%s3020_s20 + $0x113] sm:$0xff] }
  0xb6   : > { %780 = vrot.lane.b32.xlu1 %v3149_v48, %s2974_s23  ;;  %778 = vrot.lane.b32.xlu0 %v3152_v49, %s2974_s23 }
  0xb8   : > { %v3341_v34 = vpop.permute.xlu1 %557  ;;  %v3343_v35 = vpop.permute.xlu0 %555 }
  0xb9   : > { %5031 = vst [vmem:[#allocation20_spill] sm:$0xff] %v3341_v34  ;;  %5032 = vst [vmem:[#allocation21_spill] sm:$0xff] %v3343_v35  ;;  %v348_v34 = vld [vmem:[%s3020_s20 + $0xf3] sm:$0xff] }
  0xba   : > { %784 = vrot.lane.b32.xlu1 %v3159_v50, %s2974_s23  ;;  %782 = vrot.lane.b32.xlu0 %v3162_v51, %s2974_s23 }
  0xbc   : > { %v3349_v36 = vpop.permute.xlu1 %561  ;;  %v3351_v37 = vpop.permute.xlu0 %559 }
  0xbd   : > { %5033 = vst [vmem:[#allocation22_spill] sm:$0xff] %v3349_v36  ;;  %5034 = vst [vmem:[#allocation23_spill] sm:$0xff] %v3351_v37  ;;  %v336_v36 = vld [vmem:[%s3020_s20 + $0x93] sm:$0xff] }
  0xbe   : > { %788 = vrot.lane.b32.xlu1 %v3169_v52, %s2974_s23  ;;  %786 = vrot.lane.b32.xlu0 %v3172_v53, %s2974_s23 }
  0xc0   : > { %v3357_v38 = vpop.permute.xlu1 %565  ;;  %v3359_v39 = vpop.permute.xlu0 %563 }
  0xc1   : > { %5035 = vst [vmem:[#allocation24_spill] sm:$0xff] %v3357_v38  ;;  %5036 = vst [vmem:[#allocation25_spill] sm:$0xff] %v3359_v39  ;;  %v334_v38 = vld [vmem:[%s3020_s20 + $0x83] sm:$0xff] }
  0xc2   : > { %792 = vrot.lane.b32.xlu1 %v3179_v54, %s2974_s23  ;;  %790 = vrot.lane.b32.xlu0 %v3182_v55, %s2974_s23  ;;  %v317_v54 = vld [vmem:[%s3020_s20 + $0x11a] sm:$0xff] }
  0xc4   : > { %v3365_v40 = vpop.permute.xlu1 %569  ;;  %v3367_v41 = vpop.permute.xlu0 %567 }
  0xc5   : > { %5037 = vst [vmem:[#allocation26_spill] sm:$0xff] %v3365_v40  ;;  %5038 = vst [vmem:[#allocation27_spill] sm:$0xff] %v3367_v41  ;;  %v332_v40 = vld [vmem:[%s3020_s20 + $0x73] sm:$0xff] }
  0xc6   : > { %796 = vrot.lane.b32.xlu1 %v3189_v56, %s2974_s23  ;;  %794 = vrot.lane.b32.xlu0 %v3192_v57, %s2974_s23  ;;  %v319_v57 = vld [vmem:[%s3020_s20 + $0x12a] sm:$0x3f] }
  0xc8   : > { %v3373_v42 = vpop.permute.xlu1 %573  ;;  %v3375_v43 = vpop.permute.xlu0 %571 }
  0xc9   : > { %5039 = vst [vmem:[#allocation28_spill] sm:$0xff] %v3373_v42  ;;  %5040 = vst [vmem:[#allocation29_spill] sm:$0xff] %v3375_v43  ;;  %v330_v42 = vld [vmem:[%s3020_s20 + $0x63] sm:$0xff] }
  0xca   : > { %800 = vrot.lane.b32.xlu1 %v3199_v58, %s2974_s23  ;;  %798 = vrot.lane.b32.xlu0 %v3202_v59, %s2974_s23  ;;  %v318_v58 = vld [vmem:[%s3020_s20 + $0x122] sm:$0xff] }
  0xcc   : > { %v3381_v44 = vpop.permute.xlu1 %649  ;;  %v3383_v45 = vpop.permute.xlu0 %647 }
  0xce   : > { %804 = vrot.lane.b32.xlu1 %v3213_v62, %s2974_s23  ;;  %802 = vrot.lane.b32.xlu0 %v3216_v63, %s2974_s23  ;;  %v321_v63 = vld [vmem:[%s3020_s20 + $0x1b] sm:$0xff] }
  0xd0   : > { %v3389_v46 = vpop.permute.xlu1 %653  ;;  %v3391_v47 = vpop.permute.xlu0 %651 }
  0xd2   : > { %808 = vrot.lane.b32.xlu1 %v3227_v2, %s2974_s23  ;;  %806 = vrot.lane.b32.xlu0 %v3230_v3, %s2974_s23  ;;  %v320_v2 = vld [vmem:[%s3020_s20 + $0x13] sm:$0xff] }
  0xd4   : > { %v3397_v48 = vpop.permute.xlu1 %657  ;;  %v3399_v49 = vpop.permute.xlu0 %655 }
  0xd6   : > { %812 = vrot.lane.b32.xlu1 %v3241_v6, %s2974_s23  ;;  %810 = vrot.lane.b32.xlu0 %v3244_v7, %s2974_s23  ;;  %v323_v7 = vld [vmem:[%s3020_s20 + $0x2b] sm:$0xff] }
  0xd8   : > { %v3405_v50 = vpop.permute.xlu1 %661  ;;  %v3407_v51 = vpop.permute.xlu0 %659 }
  0xda   : > { %816 = vrot.lane.b32.xlu1 %v3255_v10, %s2974_s23  ;;  %814 = vrot.lane.b32.xlu0 %v3258_v11, %s2974_s23  ;;  %v322_v10 = vld [vmem:[%s3020_s20 + $0x23] sm:$0xff] }
  0xdc   : > { %v3413_v52 = vpop.permute.xlu1 %665  ;;  %v3415_v53 = vpop.permute.xlu0 %663 }
  0xdd   : > { %5041 = vst [vmem:[#allocation30_spill] sm:$0xff] %v3413_v52  ;;  %5042 = vst [vmem:[#allocation31_spill] sm:$0xff] %v3415_v53  ;;  %v3786_v53 = vld [vmem:[%s3020_s20 + $0x10c] sm:$0xff]  ;;  %v3789_v52 = vld [vmem:[%s3020_s20 + $0x104] sm:$0xff] }
  0xde   : > { %820 = vrot.lane.b32.xlu1 %v3269_v14, %s2974_s23  ;;  %818 = vrot.lane.b32.xlu0 %v3272_v15, %s2974_s23  ;;  %v325_v15 = vld [vmem:[%s3020_s20 + $0x3b] sm:$0xff]  ;;  %5101 = vst [vmem:[#allocation90_spill] sm:$0xff] %v3786_v53  ;;  %5102 = vst [vmem:[#allocation91_spill] sm:$0xff] %v3789_v52 }
  0xe0   : > { %v3422_v55 = vpop.permute.xlu1 %669  ;;  %v3424_v56 = vpop.permute.xlu0 %667 }
  0xe1   : > { %5043 = vst [vmem:[#allocation32_spill] sm:$0xff] %v3422_v55  ;;  %5044 = vst [vmem:[#allocation33_spill] sm:$0xff] %v3424_v56 }
  0xe2   : > { %824 = vrot.lane.b32.xlu1 %v317_v54, %s2974_s23  ;;  %822 = vrot.lane.b32.xlu0 %v3284_v19, %s2974_s23 }
  0xe4   : > { %v3431_v59 = vpop.permute.xlu1 %673  ;;  %v3433_v62 = vpop.permute.xlu0 %671 }
  0xe5   : > { %5045 = vst [vmem:[#allocation34_spill] sm:$0xff] %v3431_v59  ;;  %5046 = vst [vmem:[#allocation35_spill] sm:$0xff] %v3433_v62 }
  0xe6   : > { %828 = vrot.lane.b32.xlu1 %v319_v57, %s2974_s23  ;;  %826 = vrot.lane.b32.xlu0 %v318_v58, %s2974_s23  ;;  %v327_v57 = vld [vmem:[%s3020_s20 + $0x4b] sm:$0xff]  ;;  %v326_v58 = vld [vmem:[%s3020_s20 + $0x43] sm:$0xff] }
  0xe8   : > { %v3439_v3 = vpop.permute.xlu1 %677  ;;  %v3441_v6 = vpop.permute.xlu0 %675 }
  0xe9   : > { %5047 = vst [vmem:[#allocation36_spill] sm:$0xff] %v3439_v3  ;;  %5048 = vst [vmem:[#allocation37_spill] sm:$0xff] %v3441_v6 }
  0xea   : > { %904 = vrot.lane.b32.xlu1 %v321_v63, %s2975_s24  ;;  %902 = vrot.lane.b32.xlu0 %v320_v2, %s2975_s24 }
  0xec   : > { %v3447_v11 = vpop.permute.xlu1 %681  ;;  %v3449_v14 = vpop.permute.xlu0 %679 }
  0xed   : > { %5049 = vst [vmem:[#allocation38_spill] sm:$0xff] %v3447_v11  ;;  %5050 = vst [vmem:[#allocation39_spill] sm:$0xff] %v3449_v14 }
  0xee   : > { %908 = vrot.lane.b32.xlu1 %v323_v7, %s2975_s24  ;;  %906 = vrot.lane.b32.xlu0 %v322_v10, %s2975_s24  ;;  %v329_v7 = vld [vmem:[%s3020_s20 + $0x5b] sm:$0xff]  ;;  %v328_v10 = vld [vmem:[%s3020_s20 + $0x53] sm:$0xff] }
  0xf0   : > { %v3455_v19 = vpop.permute.xlu1 %685  ;;  %v3457_v54 = vpop.permute.xlu0 %683 }
  0xf1   : > { %5051 = vst [vmem:[#allocation40_spill] sm:$0xff] %v3455_v19  ;;  %5052 = vst [vmem:[#allocation41_spill] sm:$0xff] %v3457_v54  ;;  %v3618_v54 = vld [vmem:[%s3020_s20 + $0x4c] sm:$0xff]  ;;  %v3621_v19 = vld [vmem:[%s3020_s20 + $0x44] sm:$0xff] }
  0xf2   : > { %912 = vrot.lane.b32.xlu1 %v325_v15, %s2975_s24  ;;  %910 = vrot.lane.b32.xlu0 %v324_v18, %s2975_s24  ;;  %v331_v18 = vld [vmem:[%s3020_s20 + $0x6b] sm:$0xff] }
  0xf4   : > { %v3463_v63 = vpop.permute.xlu1 %689  ;;  %v3465_v2 = vpop.permute.xlu0 %687 }
  0xf5   : > { %5053 = vst [vmem:[#allocation42_spill] sm:$0xff] %v3463_v63  ;;  %5054 = vst [vmem:[#allocation43_spill] sm:$0xff] %v3465_v2  ;;  %v3593_v63 = vld [vmem:[%s3020_s20 + $0x24] sm:$0xff] }
  0xf6   : > { %916 = vrot.lane.b32.xlu1 %v327_v57, %s2975_s24  ;;  %914 = vrot.lane.b32.xlu0 %v326_v58, %s2975_s24  ;;  %v333_v58 = vld [vmem:[%s3020_s20 + $0x7b] sm:$0xff] }
  0xf8   : > { %v3471_v43 = vpop.permute.xlu1 %693  ;;  %v3473_v15 = vpop.permute.xlu0 %691 }
  0xf9   : > { %5055 = vst [vmem:[#allocation44_spill] sm:$0xff] %v3471_v43  ;;  %5056 = vst [vmem:[#allocation45_spill] sm:$0xff] %v3473_v15 }
  0xfa   : > { %920 = vrot.lane.b32.xlu1 %v329_v7, %s2975_s24  ;;  %918 = vrot.lane.b32.xlu0 %v328_v10, %s2975_s24  ;;  %v335_v10 = vld [vmem:[%s3020_s20 + $0x8b] sm:$0xff] }
  0xfc   : > { %v3479_v41 = vpop.permute.xlu1 %697  ;;  %v3481_v57 = vpop.permute.xlu0 %695 }
  0xfd   : > { %5057 = vst [vmem:[#allocation46_spill] sm:$0xff] %v3479_v41  ;;  %5058 = vst [vmem:[#allocation47_spill] sm:$0xff] %v3481_v57  ;;  %v350_v41 = vld [vmem:[%s3020_s20 + $0x103] sm:$0xff] }
  0xfe   : > { %924 = vrot.lane.b32.xlu1 %v331_v18, %s2975_s24  ;;  %922 = vrot.lane.b32.xlu0 %v330_v42, %s2975_s24  ;;  %v337_v42 = vld [vmem:[%s3020_s20 + $0x9b] sm:$0xff] }
 0x100   : > { %v3487_v39 = vpop.permute.xlu1 %701  ;;  %v3489_v7 = vpop.permute.xlu0 %699 }
 0x101   : > { %5059 = vst [vmem:[#allocation48_spill] sm:$0xff] %v3487_v39  ;;  %5060 = vst [vmem:[#allocation49_spill] sm:$0xff] %v3489_v7  ;;  %v346_v39 = vld [vmem:[%s3020_s20 + $0xe3] sm:$0xff] }
 0x102   : > { %928 = vrot.lane.b32.xlu1 %v333_v58, %s2975_s24  ;;  %926 = vrot.lane.b32.xlu0 %v332_v40, %s2975_s24  ;;  %v339_v40 = vld [vmem:[%s3020_s20 + $0xab] sm:$0xff] }
 0x104   : > { %v3495_v37 = vpop.permute.xlu1 %705  ;;  %v3497_v18 = vpop.permute.xlu0 %703 }
 0x105   : > { %5061 = vst [vmem:[#allocation50_spill] sm:$0xff] %v3495_v37  ;;  %5062 = vst [vmem:[#allocation51_spill] sm:$0xff] %v3497_v18  ;;  %v338_v37 = vld [vmem:[%s3020_s20 + $0xa3] sm:$0xff] }
 0x106   : > { %932 = vrot.lane.b32.xlu1 %v335_v10, %s2975_s24  ;;  %930 = vrot.lane.b32.xlu0 %v334_v38, %s2975_s24  ;;  %v341_v38 = vld [vmem:[%s3020_s20 + $0xbb] sm:$0xff] }
 0x108   : > { %v3503_v7 = vpop.permute.xlu1 %709  ;;  %v3505_v58 = vpop.permute.xlu0 %707 }
 0x109   : > { %5063 = vst [vmem:[#allocation52_spill] sm:$0xff] %v3503_v7  ;;  %5064 = vst [vmem:[#allocation53_spill] sm:$0xff] %v3505_v58  ;;  %v340_v7 = vld [vmem:[%s3020_s20 + $0xb3] sm:$0xff] }
 0x10a   : > { %936 = vrot.lane.b32.xlu1 %v337_v42, %s2975_s24  ;;  %934 = vrot.lane.b32.xlu0 %v336_v36, %s2975_s24  ;;  %v343_v36 = vld [vmem:[%s3020_s20 + $0xcb] sm:$0xff] }
 0x10c   : > { %v3511_v18 = vpop.permute.xlu1 %713  ;;  %v3513_v10 = vpop.permute.xlu0 %711 }
 0x10d   : > { %5065 = vst [vmem:[#allocation54_spill] sm:$0xff] %v3511_v18  ;;  %5066 = vst [vmem:[#allocation55_spill] sm:$0xff] %v3513_v10  ;;  %v342_v18 = vld [vmem:[%s3020_s20 + $0xc3] sm:$0xff] }
 0x10e   : > { %940 = vrot.lane.b32.xlu1 %v339_v40, %s2975_s24  ;;  %938 = vrot.lane.b32.xlu0 %v338_v37, %s2975_s24  ;;  %v345_v37 = vld [vmem:[%s3020_s20 + $0xdb] sm:$0xff] }
 0x110   : > { %v3519_v58 = vpop.permute.xlu1 %717  ;;  %v3521_v42 = vpop.permute.xlu0 %715 }
 0x111   : > { %5067 = vst [vmem:[#allocation56_spill] sm:$0xff] %v3519_v58  ;;  %5068 = vst [vmem:[#allocation57_spill] sm:$0xff] %v3521_v42  ;;  %v344_v58 = vld [vmem:[%s3020_s20 + $0xd3] sm:$0xff] }
 0x112   : > { %944 = vrot.lane.b32.xlu1 %v341_v38, %s2975_s24  ;;  %942 = vrot.lane.b32.xlu0 %v340_v7, %s2975_s24  ;;  %v347_v7 = vld [vmem:[%s3020_s20 + $0xeb] sm:$0xff] }
 0x114   : > { %v3527_v10 = vpop.permute.xlu1 %760  ;;  %v3529_v40 = vpop.permute.xlu0 %758 }
 0x116   : > { %948 = vrot.lane.b32.xlu1 %v343_v36, %s2975_s24  ;;  %946 = vrot.lane.b32.xlu0 %v342_v18, %s2975_s24  ;;  %v349_v18 = vld [vmem:[%s3020_s20 + $0xfb] sm:$0xff] }
 0x118   : > { %v3535_v42 = vpop.permute.xlu1 %764  ;;  %v3537_v38 = vpop.permute.xlu0 %762 }
 0x11a   : > { %952 = vrot.lane.b32.xlu1 %v345_v37, %s2975_s24  ;;  %950 = vrot.lane.b32.xlu0 %v344_v58, %s2975_s24  ;;  %v351_v58 = vld [vmem:[%s3020_s20 + $0x10b] sm:$0xff] }
 0x11c   : > { %v3543_v35 = vpop.permute.xlu1 %768  ;;  %v3545_v36 = vpop.permute.xlu0 %766 }
 0x11e   : > { %956 = vrot.lane.b32.xlu1 %v347_v7, %s2975_s24  ;;  %954 = vrot.lane.b32.xlu0 %v346_v39, %s2975_s24  ;;  %v353_v39 = vld [vmem:[%s3020_s20 + $0x11b] sm:$0xff] }
 0x120   : > { %v3551_v57 = vpop.permute.xlu1 %772  ;;  %v3553_v37 = vpop.permute.xlu0 %770 }
 0x122   : > { %960 = vrot.lane.b32.xlu1 %v349_v18, %s2975_s24  ;;  %958 = vrot.lane.b32.xlu0 %v348_v34, %s2975_s24  ;;  %v355_v34 = vld [vmem:[%s3020_s20 + $0x12b] sm:$0x3f]  ;;  %v354_v18 = vld [vmem:[%s3020_s20 + $0x123] sm:$0xff] }
 0x124   : > { %v3559_v33 = vpop.permute.xlu1 %776  ;;  %v3561_v7 = vpop.permute.xlu0 %774 }
 0x125   : > { %5069 = vst [vmem:[#allocation58_spill] sm:$0xff] %v3559_v33  ;;  %5070 = vst [vmem:[#allocation59_spill] sm:$0xff] %v3561_v7 }
 0x126   : > { %964 = vrot.lane.b32.xlu1 %v351_v58, %s2975_s24  ;;  %962 = vrot.lane.b32.xlu0 %v350_v41, %s2975_s24  ;;  %v357_v41 = vld [vmem:[%s3020_s20 + $0x1c] sm:$0xff]  ;;  %v356_v58 = vld [vmem:[%s3020_s20 + $0x14] sm:$0xff] }
 0x128   : > { %v3567_v15 = vpop.permute.xlu1 %780  ;;  %v3569_v43 = vpop.permute.xlu0 %778 }
 0x129   : > { %5071 = vst [vmem:[#allocation60_spill] sm:$0xff] %v3567_v15  ;;  %5072 = vst [vmem:[#allocation61_spill] sm:$0xff] %v3569_v43  ;;  %v3758_v43 = vld [vmem:[%s3020_s20 + $0xec] sm:$0xff]  ;;  %v3761_v15 = vld [vmem:[%s3020_s20 + $0xe4] sm:$0xff] }
 0x12a   : > { %968 = vrot.lane.b32.xlu1 %v353_v39, %s2975_s24  ;;  %966 = vrot.lane.b32.xlu0 %v352_v32, %s2975_s24  ;;  %v3590_v32 = vld [vmem:[%s3020_s20 + $0x2c] sm:$0xff] }
 0x12c   : > { %v3575_v31 = vpop.permute.xlu1 %784  ;;  %v3577_v30 = vpop.permute.xlu0 %782 }
 0x12d   : > { %5073 = vst [vmem:[#allocation62_spill] sm:$0xff] %v3575_v31  ;;  %5074 = vst [vmem:[#allocation63_spill] sm:$0xff] %v3577_v30 }
 0x12e   : > { %972 = vrot.lane.b32.xlu1 %v355_v34, %s2975_s24  ;;  %970 = vrot.lane.b32.xlu0 %v354_v18, %s2975_s24 }
 0x130   : > { %v3583_v2 = vpop.permute.xlu1 %788  ;;  %v3585_v39 = vpop.permute.xlu0 %786 }
 0x131   : > { %5075 = vst [vmem:[#allocation64_spill] sm:$0xff] %v3583_v2  ;;  %5076 = vst [vmem:[#allocation65_spill] sm:$0xff] %v3585_v39 }
 0x132   : > { %1048 = vrot.lane.b32.xlu1 %v357_v41, %s2976_s25  ;;  %1046 = vrot.lane.b32.xlu0 %v356_v58, %s2976_s25  ;;  %v3607_v41 = vld [vmem:[%s3020_s20 + $0x34] sm:$0xff] }
 0x134   : > { %v3595_v34 = vpop.permute.xlu1 %792  ;;  %v3597_v18 = vpop.permute.xlu0 %790 }
 0x135   : > { %5077 = vst [vmem:[#allocation66_spill] sm:$0xff] %v3595_v34  ;;  %5078 = vst [vmem:[#allocation67_spill] sm:$0xff] %v3597_v18 }
 0x136   : > { %1052 = vrot.lane.b32.xlu1 %v3590_v32, %s2976_s25  ;;  %1050 = vrot.lane.b32.xlu0 %v3593_v63, %s2976_s25 }
 0x138   : > { %v3609_v58 = vpop.permute.xlu1 %796  ;;  %v3611_v28 = vpop.permute.xlu0 %794 }
 0x139   : > { %5079 = vst [vmem:[#allocation68_spill] sm:$0xff] %v3609_v58  ;;  %5080 = vst [vmem:[#allocation69_spill] sm:$0xff] %v3611_v28  ;;  %v3632_v28 = vld [vmem:[%s3020_s20 + $0x5c] sm:$0xff]  ;;  %v3635_v58 = vld [vmem:[%s3020_s20 + $0x54] sm:$0xff] }
 0x13a   : > { %1056 = vrot.lane.b32.xlu1 %v3604_v29, %s2976_s25  ;;  %1054 = vrot.lane.b32.xlu0 %v3607_v41, %s2976_s25 }
 0x13c   : > { %v3623_v27 = vpop.permute.xlu1 %800  ;;  %v3625_v26 = vpop.permute.xlu0 %798 }
 0x13d   : > { %5081 = vst [vmem:[#allocation70_spill] sm:$0xff] %v3623_v27  ;;  %5082 = vst [vmem:[#allocation71_spill] sm:$0xff] %v3625_v26  ;;  %v3646_v26 = vld [vmem:[%s3020_s20 + $0x6c] sm:$0xff]  ;;  %v3649_v27 = vld [vmem:[%s3020_s20 + $0x64] sm:$0xff] }
 0x13e   : > { %1060 = vrot.lane.b32.xlu1 %v3618_v54, %s2976_s25  ;;  %1058 = vrot.lane.b32.xlu0 %v3621_v19, %s2976_s25 }
 0x140   : > { %v3637_v18 = vpop.permute.xlu1 %804  ;;  %v3639_v34 = vpop.permute.xlu0 %802 }
 0x141   : > { %5083 = vst [vmem:[#allocation72_spill] sm:$0xff] %v3637_v18  ;;  %5084 = vst [vmem:[#allocation73_spill] sm:$0xff] %v3639_v34  ;;  %v3660_v34 = vld [vmem:[%s3020_s20 + $0x7c] sm:$0xff]  ;;  %v3663_v18 = vld [vmem:[%s3020_s20 + $0x74] sm:$0xff] }
 0x142   : > { %1064 = vrot.lane.b32.xlu1 %v3632_v28, %s2976_s25  ;;  %1062 = vrot.lane.b32.xlu0 %v3635_v58, %s2976_s25 }
 0x144   : > { %v3651_v14 = vpop.permute.xlu1 %808  ;;  %v3653_v11 = vpop.permute.xlu0 %806 }
 0x145   : > { %5085 = vst [vmem:[#allocation74_spill] sm:$0xff] %v3651_v14  ;;  %5086 = vst [vmem:[#allocation75_spill] sm:$0xff] %v3653_v11  ;;  %v3674_v11 = vld [vmem:[%s3020_s20 + $0x8c] sm:$0xff]  ;;  %v3677_v14 = vld [vmem:[%s3020_s20 + $0x84] sm:$0xff] }
 0x146   : > { %1068 = vrot.lane.b32.xlu1 %v3646_v26, %s2976_s25  ;;  %1066 = vrot.lane.b32.xlu0 %v3649_v27, %s2976_s25 }
 0x148   : > { %v3665_v25 = vpop.permute.xlu1 %812  ;;  %v3667_v24 = vpop.permute.xlu0 %810 }
 0x149   : > { %5087 = vst [vmem:[#allocation76_spill] sm:$0xff] %v3665_v25  ;;  %5088 = vst [vmem:[#allocation77_spill] sm:$0xff] %v3667_v24  ;;  %v3688_v24 = vld [vmem:[%s3020_s20 + $0x9c] sm:$0xff]  ;;  %v3691_v25 = vld [vmem:[%s3020_s20 + $0x94] sm:$0xff] }
 0x14a   : > { %1072 = vrot.lane.b32.xlu1 %v3660_v34, %s2976_s25  ;;  %1070 = vrot.lane.b32.xlu0 %v3663_v18, %s2976_s25 }
 0x14c   : > { %v3679_v39 = vpop.permute.xlu1 %816  ;;  %v3681_v2 = vpop.permute.xlu0 %814 }
 0x14d   : > { %5089 = vst [vmem:[#allocation78_spill] sm:$0xff] %v3679_v39  ;;  %5090 = vst [vmem:[#allocation79_spill] sm:$0xff] %v3681_v2  ;;  %v3702_v2 = vld [vmem:[%s3020_s20 + $0xac] sm:$0xff]  ;;  %v3705_v39 = vld [vmem:[%s3020_s20 + $0xa4] sm:$0xff] }
 0x14e   : > { %1076 = vrot.lane.b32.xlu1 %v3674_v11, %s2976_s25  ;;  %1074 = vrot.lane.b32.xlu0 %v3677_v14, %s2976_s25 }
 0x150   : > { %v3693_v6 = vpop.permute.xlu1 %820  ;;  %v3695_v3 = vpop.permute.xlu0 %818 }
 0x151   : > { %5091 = vst [vmem:[#allocation80_spill] sm:$0xff] %v3693_v6  ;;  %5092 = vst [vmem:[#allocation81_spill] sm:$0xff] %v3695_v3  ;;  %v3716_v3 = vld [vmem:[%s3020_s20 + $0xbc] sm:$0xff]  ;;  %v3719_v6 = vld [vmem:[%s3020_s20 + $0xb4] sm:$0xff] }
 0x152   : > { %1080 = vrot.lane.b32.xlu1 %v3688_v24, %s2976_s25  ;;  %1078 = vrot.lane.b32.xlu0 %v3691_v25, %s2976_s25 }
 0x154   : > { %v3707_v23 = vpop.permute.xlu1 %824  ;;  %v3709_v22 = vpop.permute.xlu0 %822 }
 0x155   : > { %5093 = vst [vmem:[#allocation82_spill] sm:$0xff] %v3707_v23  ;;  %5094 = vst [vmem:[#allocation83_spill] sm:$0xff] %v3709_v22  ;;  %v3730_v22 = vld [vmem:[%s3020_s20 + $0xcc] sm:$0xff]  ;;  %v3733_v23 = vld [vmem:[%s3020_s20 + $0xc4] sm:$0xff] }
 0x156   : > { %1084 = vrot.lane.b32.xlu1 %v3702_v2, %s2976_s25  ;;  %1082 = vrot.lane.b32.xlu0 %v3705_v39, %s2976_s25 }
 0x158   : > { %v3721_v30 = vpop.permute.xlu1 %828  ;;  %v3723_v31 = vpop.permute.xlu0 %826 }
 0x159   : > { %5095 = vst [vmem:[#allocation84_spill] sm:$0xff] %v3721_v30  ;;  %5096 = vst [vmem:[#allocation85_spill] sm:$0xff] %v3723_v31  ;;  %v3744_v31 = vld [vmem:[%s3020_s20 + $0xdc] sm:$0xff]  ;;  %v3747_v30 = vld [vmem:[%s3020_s20 + $0xd4] sm:$0xff] }
 0x15a   : > { %1088 = vrot.lane.b32.xlu1 %v3716_v3, %s2976_s25  ;;  %1086 = vrot.lane.b32.xlu0 %v3719_v6, %s2976_s25 }
 0x15c   : > { %v3735_v62 = vpop.permute.xlu1 %904  ;;  %v3737_v59 = vpop.permute.xlu0 %902 }
 0x15e   : > { %1092 = vrot.lane.b32.xlu1 %v3730_v22, %s2976_s25  ;;  %1090 = vrot.lane.b32.xlu0 %v3733_v23, %s2976_s25 }
 0x160   : > { %v3749_v21 = vpop.permute.xlu1 %908  ;;  %v3751_v20 = vpop.permute.xlu0 %906 }
 0x162   : > { %1096 = vrot.lane.b32.xlu1 %v3744_v31, %s2976_s25  ;;  %1094 = vrot.lane.b32.xlu0 %v3747_v30, %s2976_s25 }
 0x164   : > { %v3763_v56 = vpop.permute.xlu1 %912  ;;  %v3765_v55 = vpop.permute.xlu0 %910 }
 0x166   : > { %1100 = vrot.lane.b32.xlu1 %v3758_v43, %s2976_s25  ;;  %1098 = vrot.lane.b32.xlu0 %v3761_v15, %s2976_s25 }
 0x168   : > { %v3777_v7 = vpop.permute.xlu1 %916  ;;  %v3779_v33 = vpop.permute.xlu0 %914 }
 0x169   : > { %5099 = vst [vmem:[#allocation88_spill] sm:$0xff] %v3777_v7  ;;  %5100 = vst [vmem:[#allocation89_spill] sm:$0xff] %v3779_v33  ;;  %v3800_v33 = vld [vmem:[%s3020_s20 + $0x11c] sm:$0xff] }
 0x16a   : > { %1104 = vrot.lane.b32.xlu1 %v3772_v17, %s2976_s25  ;;  %1102 = vrot.lane.b32.xlu0 %v3775_v16, %s2976_s25  ;;  %5105 = vst [vmem:[#allocation94_spill] sm:$0xff] %v3800_v33  ;;  %v3803_v17 = vld [vmem:[%s3020_s20 + $0x114] sm:$0xff] }
 0x16b   : > { %5106 = vst [vmem:[#allocation95_spill] sm:$0xff] %v3803_v17 }
 0x16c   : > { %v3791_v13 = vpop.permute.xlu1 %920  ;;  %v3793_v12 = vpop.permute.xlu0 %918 }
 0x16d   : > { %5103 = vst [vmem:[#allocation92_spill] sm:$0xff] %v3791_v13  ;;  %5104 = vst [vmem:[#allocation93_spill] sm:$0xff] %v3793_v12  ;;  %v391_v12 = vld [vmem:[%s3020_s20 + $0x12c] sm:$0x3f]  ;;  %v3815_v13 = vld [vmem:[%s3020_s20 + $0x124] sm:$0xff] }
 0x16e   : > { %1108 = vrot.lane.b32.xlu1 %v3786_v53, %s2976_s25  ;;  %1106 = vrot.lane.b32.xlu0 %v3789_v52, %s2976_s25  ;;  %5108 = vst [vmem:[#allocation97_spill] sm:$0xff] %v3815_v13 }
 0x170   : > { %v3805_v7 = vpop.permute.xlu1 %924  ;;  %v3807_v16 = vpop.permute.xlu0 %922 }
 0x171   : > { %5107 = vst [vmem:[#allocation96_spill] sm:$0xff] %v3807_v16  ;;  %v1853_v16 = vld [vmem:[%s5002_s1 + $0x20] sm:$0xf] }
 0x172   : > { %1112 = vrot.lane.b32.xlu1 %v3800_v33, %s2976_s25  ;;  %1110 = vrot.lane.b32.xlu0 %v3803_v17, %s2976_s25 }
 0x173   : > { %2869 = vmatprep.subr.msk.mxu0 %vm1963_vm0, %v1853_v16  ;;  %2933 = vmatprep.subr.msk.mxu1 %vm1963_vm0, %v1853_v16 }
 0x174   : > { %v3817_v53 = vpop.permute.xlu1 %928  ;;  %v3819_v52 = vpop.permute.xlu0 %926  ;;  %2870 = vmatpush3.msk.msra.mxu0 %vm1963_vm0, %v1853_v16  ;;  %2938 = vmatpush3.msk.msra.mxu1 %vm1963_vm0, %v1853_v16 }
 0x175   : > { %5109 = vst [vmem:[#allocation98_spill] sm:$0xff] %v3817_v53  ;;  %5110 = vst [vmem:[#allocation99_spill] sm:$0xff] %v3819_v52 }
 0x176   : > { %1116 = vrot.lane.b32.xlu1 %v391_v12, %s2976_s25  ;;  %1114 = vrot.lane.b32.xlu0 %v3815_v13, %s2976_s25  ;;  %v1852_v12 = vld [vmem:[%s5002_s1 + $0x18] sm:$0xff]  ;;  %v1851_v13 = vld [vmem:[%s5002_s1 + $0x10] sm:$0xff]  ;;  %s208_s25 = scalar_lea.vmem %s5005_s4, %s2788_s22 }
 0x177   : > { %2871 = vmatprep.subr.mxu0 %v1852_v12  ;;  %2934 = vmatprep.subr.mxu1 %v1852_v12 }
 0x178   : > { %v3827_v17 = vpop.permute.xlu1 %932  ;;  %v3829_v33 = vpop.permute.xlu0 %930  ;;  %2872 = vmatpush3.msra.mxu0 %v1852_v12  ;;  %2939 = vmatpush3.msra.mxu1 %v1852_v12  ;;  %v1849_v12 = vld [vmem:[%s5002_s1] sm:$0xff] }
 0x179   : > { %5111 = vst [vmem:[#allocation100_spill] sm:$0xff] %v3827_v17  ;;  %5112 = vst [vmem:[#allocation101_spill] sm:$0xff] %v3829_v33  ;;  %2873 = vmatprep.subr.mxu0 %v1851_v13  ;;  %2935 = vmatprep.subr.mxu1 %v1851_v13 }
 0x17a   : > { %1159 = vrot.lane.b32.xlu1 %v3590_v32, %s2977_s30  ;;  %1157 = vrot.lane.b32.xlu0 %v3593_v63, %s2977_s30  ;;  %v1850_v32 = vld [vmem:[%s5002_s1 + $0x8] sm:$0xff] }
 0x17b   : > { %2874 = vmatpush3.msra.mxu0 %v1851_v13  ;;  %2940 = vmatpush3.msra.mxu1 %v1851_v13  ;;  %v395_v13 = vld [vmem:[%s3020_s20 + $0x25] sm:$0xff] }
 0x17c   : > { %v3841_v33 = vpop.permute.xlu1 %936  ;;  %v3843_v16 = vpop.permute.xlu0 %934  ;;  %2875 = vmatprep.subr.mxu0 %v1850_v32  ;;  %2936 = vmatprep.subr.mxu1 %v1850_v32 }
 0x17d   : > { %5113 = vst [vmem:[#allocation102_spill] sm:$0xff] %v3841_v33  ;;  %5114 = vst [vmem:[#allocation103_spill] sm:$0xff] %v3843_v16  ;;  %2876 = vmatpush3.msra.mxu0 %v1850_v32  ;;  %2941 = vmatpush3.msra.mxu1 %v1850_v32 }
 0x17e   : > { %1163 = vrot.lane.b32.xlu1 %v3604_v29, %s2977_s30  ;;  %1161 = vrot.lane.b32.xlu0 %v3607_v41, %s2977_s30 }
 0x17f   : > { %2877 = vmatprep.subr.mxu0 %v1849_v12  ;;  %2937 = vmatprep.subr.mxu1 %v1849_v12 }
 0x180   : > { %v3852_v63 = vpop.permute.xlu1 %940  ;;  %v3854_v16 = vpop.permute.xlu0 %938  ;;  %2878 = vmatpush3.msra.mxu0 %v1849_v12  ;;  %2942 = vmatpush3.msra.mxu1 %v1849_v12  ;;  %v397_v12 = vld [vmem:[%s3020_s20 + $0x35] sm:$0xff] }
 0x181   : > { %5115 = vst [vmem:[#allocation104_spill] sm:$0xff] %v3852_v63  ;;  %5116 = vst [vmem:[#allocation105_spill] sm:$0xff] %v3854_v16 }
 0x182   : > { %1167 = vrot.lane.b32.xlu1 %v3618_v54, %s2977_s30  ;;  %1165 = vrot.lane.b32.xlu0 %v3621_v19, %s2977_s30  ;;  %v431_v19 = vld [vmem:[%s3020_s20 + $0x26] sm:$0xff] }
 0x183   : > { %v396_v54 = vld [vmem:[%s3020_s20 + $0x2d] sm:$0xff] }
 0x184   : > { %v3864_v29 = vpop.permute.xlu1 %944  ;;  %v3866_v41 = vpop.permute.xlu0 %942 }
 0x185   : > { %5117 = vst [vmem:[#allocation106_spill] sm:$0xff] %v3864_v29  ;;  %5118 = vst [vmem:[#allocation107_spill] sm:$0xff] %v3866_v41  ;;  %v432_v41 = vld [vmem:[%s3020_s20 + $0x2e] sm:$0xff] }
 0x186   : > { %1301 = vrot.lane.b32.xlu1 %v395_v13, %s2978_s11  ;;  %1169 = vrot.lane.b32.xlu0 %v3635_v58, %s2977_s30  ;;  %v433_v58 = vld [vmem:[%s3020_s20 + $0x36] sm:$0xff] }
 0x188   : > { %v3873_v32 = vpop.permute.xlu1 %948  ;;  %v3875_v16 = vpop.permute.xlu0 %946 }
 0x189   : > { %5119 = vst [vmem:[#allocation108_spill] sm:$0xff] %v3873_v32  ;;  %5120 = vst [vmem:[#allocation109_spill] sm:$0xff] %v3875_v16  ;;  %v398_v16 = vld [vmem:[%s3020_s20 + $0x3d] sm:$0xff] }
 0x18a   : > { %1445 = vrot.lane.b32.xlu1 %v431_v19, %s2979_s12  ;;  %1303 = vrot.lane.b32.xlu0 %v396_v54, %s2978_s11  ;;  %v399_v54 = vld [vmem:[%s3020_s20 + $0x45] sm:$0xff] }
 0x18c   : > { %v3881_v13 = vpop.permute.xlu1 %952  ;;  %v3883_v29 = vpop.permute.xlu0 %950 }
 0x18d   : > { %5121 = vst [vmem:[#allocation110_spill] sm:$0xff] %v3881_v13  ;;  %5122 = vst [vmem:[#allocation111_spill] sm:$0xff] %v3883_v29  ;;  %v434_v13 = vld [vmem:[%s3020_s20 + $0x3e] sm:$0xff] }
 0x18e   : > { %1305 = vrot.lane.b32.xlu1 %v397_v12, %s2978_s11  ;;  %1447 = vrot.lane.b32.xlu0 %v432_v41, %s2979_s12  ;;  %v435_v41 = vld [vmem:[%s3020_s20 + $0x46] sm:$0xff] }
 0x190   : > { %v3889_v32 = vpop.permute.xlu1 %956  ;;  %v3891_v19 = vpop.permute.xlu0 %954 }
 0x191   : > { %5123 = vst [vmem:[#allocation112_spill] sm:$0xff] %v3889_v32  ;;  %5124 = vst [vmem:[#allocation113_spill] sm:$0xff] %v3891_v19  ;;  %v400_v32 = vld [vmem:[%s3020_s20 + $0x4d] sm:$0xff] }
 0x192   : > { %1449 = vrot.lane.b32.xlu1 %v433_v58, %s2979_s12  ;;  %1307 = vrot.lane.b32.xlu0 %v398_v16, %s2978_s11  ;;  %v436_v16 = vld [vmem:[%s3020_s20 + $0x4e] sm:$0xff] }
 0x194   : > { %v3897_v29 = vpop.permute.xlu1 %960  ;;  %v3899_v12 = vpop.permute.xlu0 %958 }
 0x195   : > { %5125 = vst [vmem:[#allocation114_spill] sm:$0xff] %v3897_v29  ;;  %5126 = vst [vmem:[#allocation115_spill] sm:$0xff] %v3899_v12 }
 0x196   : > { %1309 = vrot.lane.b32.xlu1 %v399_v54, %s2978_s11  ;;  %1451 = vrot.lane.b32.xlu0 %v434_v13, %s2979_s12  ;;  %v402_v13 = vld [vmem:[%s3020_s20 + $0x5d] sm:$0xff]  ;;  %v401_v54 = vld [vmem:[%s3020_s20 + $0x55] sm:$0xff] }
 0x198   : > { %v3905_v19 = vpop.permute.xlu1 %964  ;;  %v3907_v58 = vpop.permute.xlu0 %962 }
 0x199   : > { %5127 = vst [vmem:[#allocation116_spill] sm:$0xff] %v3905_v19  ;;  %5128 = vst [vmem:[#allocation117_spill] sm:$0xff] %v3907_v58 }
 0x19a   : > { %1453 = vrot.lane.b32.xlu1 %v435_v41, %s2979_s12  ;;  %1311 = vrot.lane.b32.xlu0 %v400_v32, %s2978_s11  ;;  %v438_v32 = vld [vmem:[%s3020_s20 + $0x5e] sm:$0xff]  ;;  %v437_v41 = vld [vmem:[%s3020_s20 + $0x56] sm:$0xff] }
 0x19c   : > { %v3912_v29 = vpop.permute.xlu1 %968  ;;  %v3914_v12 = vpop.permute.xlu0 %966 }
 0x19d   : > { %5129 = vst [vmem:[#allocation118_spill] sm:$0xff] %v3912_v29  ;;  %5130 = vst [vmem:[#allocation119_spill] sm:$0xff] %v3914_v12 }
 0x19e   : > { %1171 = vrot.lane.b32.xlu1 %v3632_v28, %s2977_s30  ;;  %1455 = vrot.lane.b32.xlu0 %v436_v16, %s2979_s12 }
 0x1a0   : > { %v3921_v19 = vpop.permute.xlu1 %972  ;;  %v3923_v58 = vpop.permute.xlu0 %970 }
 0x1a1   : > { %5131 = vst [vmem:[#allocation120_spill] sm:$0xff] %v3921_v19  ;;  %5132 = vst [vmem:[#allocation121_spill] sm:$0xff] %v3923_v58 }
 0x1a2   : > { %1315 = vrot.lane.b32.xlu1 %v402_v13, %s2978_s11  ;;  %1313 = vrot.lane.b32.xlu0 %v401_v54, %s2978_s11  ;;  %v404_v13 = vld [vmem:[%s3020_s20 + $0x6d] sm:$0xff]  ;;  %v403_v54 = vld [vmem:[%s3020_s20 + $0x65] sm:$0xff] }
 0x1a4   : > { %v3929_v12 = vpop.permute.xlu1 %1048  ;;  %v3931_v28 = vpop.permute.xlu0 %1046 }
 0x1a6   : > { %1459 = vrot.lane.b32.xlu1 %v438_v32, %s2979_s12  ;;  %1457 = vrot.lane.b32.xlu0 %v437_v41, %s2979_s12  ;;  %v440_v32 = vld [vmem:[%s3020_s20 + $0x6e] sm:$0xff]  ;;  %v439_v41 = vld [vmem:[%s3020_s20 + $0x66] sm:$0xff] }
 0x1a8   : > { %v3935_v16 = vpop.permute.xlu1 %1052  ;;  %v3937_v19 = vpop.permute.xlu0 %1050 }
 0x1aa   : > { %1175 = vrot.lane.b32.xlu1 %v3646_v26, %s2977_s30  ;;  %1173 = vrot.lane.b32.xlu0 %v3649_v27, %s2977_s30 }
 0x1ac   : > { %v3945_v58 = vpop.permute.xlu1 %1056  ;;  %v3947_v29 = vpop.permute.xlu0 %1054 }
 0x1ae   : > { %1319 = vrot.lane.b32.xlu1 %v404_v13, %s2978_s11  ;;  %1317 = vrot.lane.b32.xlu0 %v403_v54, %s2978_s11  ;;  %v406_v13 = vld [vmem:[%s3020_s20 + $0x7d] sm:$0xff]  ;;  %v405_v54 = vld [vmem:[%s3020_s20 + $0x75] sm:$0xff] }
 0x1b0   : > { %v3953_v26 = vpop.permute.xlu1 %1060  ;;  %v3955_v63 = vpop.permute.xlu0 %1058 }
 0x1b2   : > { %1463 = vrot.lane.b32.xlu1 %v440_v32, %s2979_s12  ;;  %1461 = vrot.lane.b32.xlu0 %v439_v41, %s2979_s12  ;;  %v442_v32 = vld [vmem:[%s3020_s20 + $0x7e] sm:$0xff]  ;;  %v441_v41 = vld [vmem:[%s3020_s20 + $0x76] sm:$0xff] }
 0x1b4   : > { %v3959_v27 = vpop.permute.xlu1 %1064  ;;  %v3961_v33 = vpop.permute.xlu0 %1062 }
 0x1b6   : > { %1179 = vrot.lane.b32.xlu1 %v3660_v34, %s2977_s30  ;;  %1177 = vrot.lane.b32.xlu0 %v3663_v18, %s2977_s30 }
 0x1b8   : > { %v3969_v17 = vpop.permute.xlu1 %1068  ;;  %v3971_v52 = vpop.permute.xlu0 %1066 }
 0x1b9   : > { %5133 = vst [vmem:[#allocation122_spill] sm:$0xff] %v3969_v17 }
 0x1ba   : > { %1323 = vrot.lane.b32.xlu1 %v406_v13, %s2978_s11  ;;  %1321 = vrot.lane.b32.xlu0 %v405_v54, %s2978_s11  ;;  %v408_v13 = vld [vmem:[%s3020_s20 + $0x8d] sm:$0xff]  ;;  %v407_v54 = vld [vmem:[%s3020_s20 + $0x85] sm:$0xff] }
 0x1bc   : > { %v3977_v34 = vpop.permute.xlu1 %1072  ;;  %v3979_v53 = vpop.permute.xlu0 %1070 }
 0x1bd   : > { %5134 = vst [vmem:[#allocation123_spill] sm:$0xff] %v3977_v34  ;;  %5135 = vst [vmem:[#allocation124_spill] sm:$0xff] %v3979_v53 }
 0x1be   : > { %1467 = vrot.lane.b32.xlu1 %v442_v32, %s2979_s12  ;;  %1465 = vrot.lane.b32.xlu0 %v441_v41, %s2979_s12  ;;  %v444_v32 = vld [vmem:[%s3020_s20 + $0x8e] sm:$0xff]  ;;  %v443_v41 = vld [vmem:[%s3020_s20 + $0x86] sm:$0xff] }
 0x1c0   : > { %v3983_v18 = vpop.permute.xlu1 %1076  ;;  %v3985_v17 = vpop.permute.xlu0 %1074 }
 0x1c1   : > { %5136 = vst [vmem:[#allocation125_spill] sm:$0xff] %v3985_v17 }
 0x1c2   : > { %1183 = vrot.lane.b32.xlu1 %v3674_v11, %s2977_s30  ;;  %1181 = vrot.lane.b32.xlu0 %v3677_v14, %s2977_s30 }
 0x1c4   : > { %v3993_v34 = vpop.permute.xlu1 %1080  ;;  %v3995_v53 = vpop.permute.xlu0 %1078 }
 0x1c5   : > { %5137 = vst [vmem:[#allocation126_spill] sm:$0xff] %v3993_v34  ;;  %5138 = vst [vmem:[#allocation127_spill] sm:$0xff] %v3995_v53 }
 0x1c6   : > { %1327 = vrot.lane.b32.xlu1 %v408_v13, %s2978_s11  ;;  %1325 = vrot.lane.b32.xlu0 %v407_v54, %s2978_s11  ;;  %v410_v13 = vld [vmem:[%s3020_s20 + $0x9d] sm:$0xff]  ;;  %v409_v54 = vld [vmem:[%s3020_s20 + $0x95] sm:$0xff] }
 0x1c8   : > { %v4001_v11 = vpop.permute.xlu1 %1084  ;;  %v4003_v17 = vpop.permute.xlu0 %1082 }
 0x1c9   : > { %5139 = vst [vmem:[#allocation128_spill] sm:$0xff] %v4001_v11  ;;  %5140 = vst [vmem:[#allocation129_spill] sm:$0xff] %v4003_v17 }
 0x1ca   : > { %1471 = vrot.lane.b32.xlu1 %v444_v32, %s2979_s12  ;;  %1469 = vrot.lane.b32.xlu0 %v443_v41, %s2979_s12  ;;  %v446_v32 = vld [vmem:[%s3020_s20 + $0x9e] sm:$0xff]  ;;  %v445_v41 = vld [vmem:[%s3020_s20 + $0x96] sm:$0xff] }
 0x1cc   : > { %v4007_v14 = vpop.permute.xlu1 %1088  ;;  %v4009_v34 = vpop.permute.xlu0 %1086 }
 0x1cd   : > { %5141 = vst [vmem:[#allocation130_spill] sm:$0xff] %v4007_v14  ;;  %5142 = vst [vmem:[#allocation131_spill] sm:$0xff] %v4009_v34  ;;  %v2980_v34 = vmov 0  }
 0x1ce   : > { %1187 = vrot.lane.b32.xlu1 %v3688_v24, %s2977_s30  ;;  %1185 = vrot.lane.b32.xlu0 %v3691_v25, %s2977_s30 }
 0x1cf   : > { %2963 = vset.pattern.permute.xlu1 %v2980_v34  ;;  %2962 = vset.pattern.permute.xlu0 %v2980_v34  ;;  %v412_v34 = vld [vmem:[%s3020_s20 + $0xad] sm:$0xff] }
 0x1d0   : > { %v4017_v53 = vpop.permute.xlu1 %1092  ;;  %v4019_v11 = vpop.permute.xlu0 %1090 }
 0x1d1   : > { %5143 = vst [vmem:[#allocation132_spill] sm:$0xff] %v4017_v53  ;;  %5144 = vst [vmem:[#allocation133_spill] sm:$0xff] %v4019_v11 }
 0x1d2   : > { %1331 = vrot.lane.b32.xlu1 %v410_v13, %s2978_s11  ;;  %1329 = vrot.lane.b32.xlu0 %v409_v54, %s2978_s11  ;;  %v411_v54 = vld [vmem:[%s3020_s20 + $0xa5] sm:$0xff] }
 0x1d4   : > { %v4025_v24 = vpop.permute.xlu1 %1096  ;;  %v4027_v25 = vpop.permute.xlu0 %1094 }
 0x1d5   : > { %5145 = vst [vmem:[#allocation134_spill] sm:$0xff] %v4025_v24  ;;  %5146 = vst [vmem:[#allocation135_spill] sm:$0xff] %v4027_v25 }
 0x1d6   : > { %1475 = vrot.lane.b32.xlu1 %v446_v32, %s2979_s12  ;;  %1473 = vrot.lane.b32.xlu0 %v445_v41, %s2979_s12  ;;  %v448_v32 = vld [vmem:[%s3020_s20 + $0xae] sm:$0xff]  ;;  %v447_v41 = vld [vmem:[%s3020_s20 + $0xa6] sm:$0xff] }
 0x1d8   : > { %v4031_v11 = vpop.permute.xlu1 %1100  ;;  %v4033_v13 = vpop.permute.xlu0 %1098 }
 0x1d9   : > { %5147 = vst [vmem:[#allocation136_spill] sm:$0xff] %v4031_v11  ;;  %5148 = vst [vmem:[#allocation137_spill] sm:$0xff] %v4033_v13  ;;  %v451_v11 = vld [vmem:[%s3020_s20 + $0xc6] sm:$0xff] }
 0x1da   : > { %1191 = vrot.lane.b32.xlu1 %v3702_v2, %s2977_s30  ;;  %1189 = vrot.lane.b32.xlu0 %v3705_v39, %s2977_s30 }
 0x1dc   : > { %v4041_v24 = vpop.permute.xlu1 %1104  ;;  %v4043_v25 = vpop.permute.xlu0 %1102 }
 0x1dd   : > { %5149 = vst [vmem:[#allocation138_spill] sm:$0xff] %v4041_v24  ;;  %5150 = vst [vmem:[#allocation139_spill] sm:$0xff] %v4043_v25  ;;  %v452_v25 = vld [vmem:[%s3020_s20 + $0xce] sm:$0xff] }
 0x1de   : > { %1335 = vrot.lane.b32.xlu1 %v412_v34, %s2978_s11  ;;  %1333 = vrot.lane.b32.xlu0 %v411_v54, %s2978_s11  ;;  %v414_v34 = vld [vmem:[%s3020_s20 + $0xbd] sm:$0xff]  ;;  %v413_v54 = vld [vmem:[%s3020_s20 + $0xb5] sm:$0xff] }
 0x1e0   : > { %v4049_v2 = vpop.permute.xlu1 %1108  ;;  %v4051_v13 = vpop.permute.xlu0 %1106 }
 0x1e1   : > { %5151 = vst [vmem:[#allocation140_spill] sm:$0xff] %v4049_v2  ;;  %5152 = vst [vmem:[#allocation141_spill] sm:$0xff] %v4051_v13 }
 0x1e2   : > { %1479 = vrot.lane.b32.xlu1 %v448_v32, %s2979_s12  ;;  %1477 = vrot.lane.b32.xlu0 %v447_v41, %s2979_s12  ;;  %v450_v32 = vld [vmem:[%s3020_s20 + $0xbe] sm:$0xff]  ;;  %v449_v41 = vld [vmem:[%s3020_s20 + $0xb6] sm:$0xff] }
 0x1e4   : > { %v4055_v39 = vpop.permute.xlu1 %1112  ;;  %v4057_v24 = vpop.permute.xlu0 %1110 }
 0x1e5   : > { %5153 = vst [vmem:[#allocation142_spill] sm:$0xff] %v4055_v39  ;;  %5154 = vst [vmem:[#allocation143_spill] sm:$0xff] %v4057_v24 }
 0x1e6   : > { %1195 = vrot.lane.b32.xlu1 %v3716_v3, %s2977_s30  ;;  %1193 = vrot.lane.b32.xlu0 %v3719_v6, %s2977_s30 }
 0x1e8   : > { %v4065_v2 = vpop.permute.xlu1 %1116  ;;  %v4067_v13 = vpop.permute.xlu0 %1114 }
 0x1e9   : > { %5155 = vst [vmem:[#allocation144_spill] sm:$0xff] %v4065_v2  ;;  %5156 = vst [vmem:[#allocation145_spill] sm:$0xff] %v4067_v13  ;;  %v415_v13 = vld [vmem:[%s3020_s20 + $0xc5] sm:$0xff] }
 0x1ea   : > { %1339 = vrot.lane.b32.xlu1 %v414_v34, %s2978_s11  ;;  %1337 = vrot.lane.b32.xlu0 %v413_v54, %s2978_s11  ;;  %v209_v34 = vld [vmem:[%s3020_s20] sm:$0xff]  ;;  %v416_v54 = vld [vmem:[%s3020_s20 + $0xcd] sm:$0xff] }
 0x1eb   : > { %v1554_v39 = vsel %vm1553_vm1, %v209_v34, %v3206_v61 }
 0x1ec   : > { %v1160_v24 = vpop.permute.xlu1 %1159  ;;  %v1158_v3 = vpop.permute.xlu0 %1157 }
 0x1ee   : > { %1483 = vrot.lane.b32.xlu1 %v450_v32, %s2979_s12  ;;  %1481 = vrot.lane.b32.xlu0 %v449_v41, %s2979_s12 }
 0x1f0   : > { %v4075_v6 = vpop.permute.xlu1 %1163  ;;  %v4077_v2 = vpop.permute.xlu0 %1161 }
 0x1f2   : > { %1199 = vrot.lane.b32.xlu1 %v3730_v22, %s2977_s30  ;;  %1197 = vrot.lane.b32.xlu0 %v3733_v23, %s2977_s30  ;;  %v210_v22 = vld [vmem:[%s3020_s20 + $0x8] sm:$0xff]  ;;  %v1591_v23 = vsel %vm1590_vm2, %v1554_v39, %v3383_v45 }
 0x1f3   : > { %v1628_v53 = vsel %vm1627_vm3, %v1591_v23, %v3529_v40  ;;  %v211_v40 = vld [vmem:[%s3020_s20 + $0x10] sm:$0xff] }
 0x1f4   : > { %v4086_v32 = vpop.permute.xlu1 %1167  ;;  %v4088_v41 = vpop.permute.xlu0 %1165  ;;  %v1665_v61 = vsel %vm1664_vm4, %v1628_v53, %v3737_v59 }
 0x1f5   : > { %v1702_v45 = vsel %vm1701_vm5, %v1665_v61, %v3931_v28 }
 0x1f6   : > { %1343 = vrot.lane.b32.xlu1 %v416_v54, %s2978_s11  ;;  %1341 = vrot.lane.b32.xlu0 %v415_v13, %s2978_s11  ;;  %v1555_v13 = vsel %vm1553_vm1, %v210_v22, %v3220_v1  ;;  %v1739_v34 = vsel %vm1738_vm6, %v1702_v45, %v1158_v3  ;;  %v418_v54 = vld [vmem:[%s3020_s20 + $0xdd] sm:$0xff] }
 0x1f7   : > { %v1592_v39 = vsel %vm1590_vm2, %v1555_v13, %v3381_v44  ;;  %v1556_v44 = vsel %vm1553_vm1, %v211_v40, %v3204_v60  ;;  %v417_v60 = vld [vmem:[%s3020_s20 + $0xd5] sm:$0xff]  ;;  %v454_v45 = vld [vmem:[%s3020_s20 + $0xde] sm:$0xff] }
 0x1f8   : > { %v1302_v14 = vpop.permute.xlu1 %1301  ;;  %v4101_v17 = vpop.permute.xlu0 %1169  ;;  %v1629_v53 = vsel %vm1627_vm3, %v1592_v39, %v3527_v10  ;;  %v212_v10 = vld [vmem:[%s3020_s20 + $0x18] sm:$0xff] }
 0x1f9   : > { %v1776_v1 = vsel %vm1775_vm7, %v1739_v34, %v1302_v14  ;;  %v1593_v14 = vsel %vm1590_vm2, %v1556_v44, %v3391_v47  ;;  %v453_v40 = vld [vmem:[%s3020_s20 + $0xd6] sm:$0xff] }
 0x1fa   : > { %1487 = vrot.lane.b32.xlu1 %v452_v25, %s2979_s12  ;;  %1485 = vrot.lane.b32.xlu0 %v451_v11, %s2979_s12  ;;  %v1666_v11 = vsel %vm1664_vm4, %v1629_v53, %v3735_v62 }
 0x1fb   : > { %v1703_v3 = vsel %vm1701_vm5, %v1666_v11, %v3929_v12  ;;  %v1630_v12 = vsel %vm1627_vm3, %v1593_v14, %v3537_v38  ;;  %v213_v38 = vld [vmem:[%s3020_s20 + $0x20] sm:$0xff] }
 0x1fc   : > { %v1446_v59 = vpop.permute.xlu1 %1445  ;;  %v1304_v28 = vpop.permute.xlu0 %1303  ;;  %v1740_v62 = vsel %vm1738_vm6, %v1703_v3, %v1160_v24  ;;  %v1667_v23 = vsel %vm1664_vm4, %v1630_v12, %v3751_v20  ;;  %v1557_v24 = vsel %vm1553_vm1, %v212_v10, %v3218_v0  ;;  %v419_v3 = vld [vmem:[%s3020_s20 + $0xe5] sm:$0xff] }
 0x1fd   : > { %v1813_v25 = vsel %vm1812_vm8, %v1776_v1, %v1446_v59  ;;  %v1704_v61 = vsel %vm1701_vm5, %v1667_v23, %v3937_v19  ;;  %v1594_v13 = vsel %vm1590_vm2, %v1557_v24, %v3389_v46  ;;  %v1558_v46 = vsel %vm1553_vm1, %v213_v38, %v3234_v5  ;;  %v455_v12 = vld [vmem:[%s3020_s20 + $0xe6] sm:$0xff]  ;;  %v5157_v38 = vld [vmem:[#allocation88_spill] sm:$0xff] }
 0x1fe   : > { %1203 = vrot.lane.b32.xlu1 %v3744_v31, %s2977_s30  ;;  %1201 = vrot.lane.b32.xlu0 %v3747_v30, %s2977_s30  ;;  %v1777_v31 = vsel %vm1775_vm7, %v1740_v62, %v1304_v28  ;;  %v1741_v20 = vsel %vm1738_vm6, %v1704_v61, %v4077_v2  ;;  %v1631_v0 = vsel %vm1627_vm3, %v1594_v13, %v3535_v42  ;;  %v214_v42 = vld [vmem:[%s3020_s20 + $0x28] sm:$0xff]  ;;  %v216_v62 = vld [vmem:[%s3020_s20 + $0x38] sm:$0xff] }
 0x1ff   : > { %2879 = vmatprep.mubr.msk.f32.mxu0 %vm1854_vm9, %v1813_v25  ;;  %v1668_v53 = vsel %vm1664_vm4, %v1631_v0, %v3749_v21  ;;  %v1595_v59 = vsel %vm1590_vm2, %v1558_v46, %v3399_v49  ;;  %v1559_v49 = vsel %vm1553_vm1, %v214_v42, %v3232_v4  ;;  %v420_v4 = vld [vmem:[%s3020_s20 + $0xed] sm:$0xff]  ;;  %v458_v42 = vld [vmem:[%s3020_s20 + $0xfe] sm:$0xff] }
 0x200   : > { %v1306_v22 = vpop.permute.xlu1 %1305  ;;  %v1448_v30 = vpop.permute.xlu0 %1447  ;;  %v1705_v2 = vsel %vm1701_vm5, %v1668_v53, %v3935_v16  ;;  %v1632_v5 = vsel %vm1627_vm3, %v1595_v59, %v3545_v36  ;;  %v1596_v36 = vsel %vm1590_vm2, %v1559_v49, %v3397_v48  ;;  %v457_v59 = vld [vmem:[%s3020_s20 + $0xf6] sm:$0xff] }
 0x201   : > { %v1814_v47 = vsel %vm1812_vm8, %v1777_v31, %v1448_v30  ;;  %v1778_v19 = vsel %vm1775_vm7, %v1741_v20, %v1306_v22  ;;  %v1742_v21 = vsel %vm1738_vm6, %v1705_v2, %v4075_v6  ;;  %v1669_v25 = vsel %vm1664_vm4, %v1632_v5, %v3765_v55  ;;  %v5158_v20 = vld [vmem:[#allocation89_spill] sm:$0xff]  ;;  %v218_v2 = vld [vmem:[%s3020_s20 + $0x48] sm:$0xff] }
 0x202   : > { %1347 = vrot.lane.b32.xlu1 %v418_v54, %s2978_s11  ;;  %1345 = vrot.lane.b32.xlu0 %v417_v60, %s2978_s11  ;;  %v1706_v6 = vsel %vm1701_vm5, %v1669_v25, %v3947_v29  ;;  %v1633_v29 = vsel %vm1627_vm3, %v1596_v36, %v3543_v35  ;;  %v215_v54 = vld [vmem:[%s3020_s20 + $0x30] sm:$0xff] }
 0x203   : > { %2880 = vmatmul.mubr.msk.f32.vlgmr.msra.gmra.mxu0 %vm1854_vm9, %v1814_v47  ;;  %v1743_v55 = vsel %vm1738_vm6, %v1706_v6, %v4088_v41  ;;  %v1670_v14 = vsel %vm1664_vm4, %v1633_v29, %v3763_v56  ;;  %v456_v60 = vld [vmem:[%s3020_s20 + $0xee] sm:$0xff]  ;;  %v1560_v23 = vsel %vm1553_vm1, %v215_v54, %v3248_v9 }
 0x204   : > { %v1450_v39 = vpop.permute.xlu1 %1449  ;;  %v1308_v34 = vpop.permute.xlu0 %1307  ;;  %v1707_v41 = vsel %vm1701_vm5, %v1670_v14, %v3945_v58  ;;  %v1561_v58 = vsel %vm1553_vm1, %v216_v62, %v3246_v8  ;;  %v1597_v47 = vsel %vm1590_vm2, %v1560_v23, %v3407_v51  ;;  %v5164_v6 = vld [vmem:[#allocation31_spill] sm:$0xff] }
 0x205   : > { %v1815_v1 = vsel %vm1812_vm8, %v1778_v19, %v1450_v39  ;;  %v1779_v16 = vsel %vm1775_vm7, %v1742_v21, %v1308_v34  ;;  %v1744_v35 = vsel %vm1738_vm6, %v1707_v41, %v4086_v32  ;;  %v1598_v32 = vsel %vm1590_vm2, %v1561_v58, %v3405_v50  ;;  %v422_v19 = vld [vmem:[%s3020_s20 + $0xfd] sm:$0xff]  ;;  %v421_v39 = vld [vmem:[%s3020_s20 + $0xf5] sm:$0xff] }
 0x206   : > { %1491 = vrot.lane.b32.xlu1 %v454_v45, %s2979_s12  ;;  %1489 = vrot.lane.b32.xlu0 %v453_v40, %s2979_s12  ;;  %v1635_v8 = vsel %vm1627_vm3, %v1598_v32, %v3551_v57  ;;  %v1634_v9 = vsel %vm1627_vm3, %v1597_v47, %v3553_v37  ;;  %v5159_v57 = vld [vmem:[#allocation86_spill] sm:$0xff]  ;;  %v5160_v37 = vld [vmem:[#allocation87_spill] sm:$0xff]  ;;  %v220_v47 = vld [vmem:[%s3020_s20 + $0x58] sm:$0xff] }
 0x207   : > { %2882 = vmatprep.mubr.msk.f32.mxu0 %vm1854_vm9, %v1815_v1  ;;  %v1672_v13 = vsel %vm1664_vm4, %v1635_v8, %v5157_v38  ;;  %v1671_v50 = vsel %vm1664_vm4, %v1634_v9, %v5158_v20  ;;  %v219_v8 = vld [vmem:[%s3020_s20 + $0x50] sm:$0xff] }
 0x208   : > { %v1310_v28 = vpop.permute.xlu1 %1309  ;;  %v1452_v11 = vpop.permute.xlu0 %1451  ;;  %v1709_v51 = vsel %vm1701_vm5, %v1672_v13, %v3953_v26  ;;  %v1708_v45 = vsel %vm1701_vm5, %v1671_v50, %v3955_v63  ;;  %v460_v9 = vld [vmem:[%s3020_s20 + $0x10e] sm:$0xff]  ;;  %v5172_v50 = vld [vmem:[#allocation5_spill] sm:$0xff] }
 0x209   : > { %v1816_v44 = vsel %vm1812_vm8, %v1779_v16, %v1452_v11  ;;  %v1745_v40 = vsel %vm1738_vm6, %v1708_v45, %v4101_v17  ;;  %v217_v17 = vld [vmem:[%s3020_s20 + $0x40] sm:$0xff]  ;;  %v5162_v11 = vld [vmem:[#allocation3_spill] sm:$0xff]  ;;  %v5171_v13 = vld [vmem:[#allocation4_spill] sm:$0xff] }
 0x20a   : > { %1207 = vrot.lane.b32.xlu1 %v3758_v43, %s2977_s30  ;;  %1205 = vrot.lane.b32.xlu0 %v3761_v15, %s2977_s30  ;;  %v1780_v43 = vsel %vm1775_vm7, %v1743_v55, %v1310_v28  ;;  %v5161_v16 = vld [vmem:[#allocation2_spill] sm:$0xff]  ;;  %v1562_v25 = vsel %vm1553_vm1, %v217_v17, %v5162_v11  ;;  %v1565_v20 = vsel %vm1553_vm1, %v220_v47, %v5171_v13  ;;  %v5173_v45 = vld [vmem:[#allocation32_spill] sm:$0xff]  ;;  %v5189_v47 = vld [vmem:[#allocation123_spill] sm:$0xff] }
 0x20b   : > { %2883 = vmatmul.mubr.msk.f32.gmra.mxu0 %vm1854_vm9, %v1816_v44  ;;  %v1563_v28 = vsel %vm1553_vm1, %v218_v2, %v5161_v16  ;;  %v5163_v44 = vld [vmem:[#allocation30_spill] sm:$0xff]  ;;  %v1599_v36 = vsel %vm1590_vm2, %v1562_v25, %v5164_v6 }
 0x20c   : > { %v1454_v10 = vpop.permute.xlu1 %1453  ;;  %v1312_v15 = vpop.permute.xlu0 %1311  ;;  %v1600_v49 = vsel %vm1590_vm2, %v1563_v28, %v5163_v44  ;;  %v5165_v55 = vld [vmem:[#allocation58_spill] sm:$0xff]  ;;  %v425_v28 = vld [vmem:[%s3020_s20 + $0x115] sm:$0xff] }
 0x20d   : > { %v1817_v48 = vsel %vm1812_vm8, %v1780_v43, %v1454_v10  ;;  %v1781_v56 = vsel %vm1775_vm7, %v1744_v35, %v1312_v15  ;;  %v5167_v15 = vld [vmem:[#allocation92_spill] sm:$0xff]  ;;  %v5169_v35 = vld [vmem:[#allocation90_spill] sm:$0xff] }
 0x20e   : > { %1351 = vrot.lane.b32.xlu1 %v420_v4, %s2978_s11  ;;  %1349 = vrot.lane.b32.xlu0 %v419_v3, %s2978_s11  ;;  %v1637_v4 = vsel %vm1627_vm3, %v1600_v49, %v5165_v55  ;;  %v5166_v3 = vld [vmem:[#allocation59_spill] sm:$0xff]  ;;  %v5178_v2 = vld [vmem:[#allocation122_spill] sm:$0xff] }
 0x20f   : > { %2885 = vmatprep.mubr.msk.f32.mxu0 %vm1854_vm9, %v1817_v48  ;;  %v1636_v29 = vsel %vm1627_vm3, %v1599_v36, %v5166_v3  ;;  %v1674_v14 = vsel %vm1664_vm4, %v1637_v4, %v5167_v15  ;;  %v5168_v48 = vld [vmem:[#allocation93_spill] sm:$0xff]  ;;  %v222_v36 = vld [vmem:[%s3020_s20 + $0x68] sm:$0xff]  ;;  %v221_v55 = vld [vmem:[%s3020_s20 + $0x60] sm:$0xff] }
 0x210   : > { %v1172_v31 = vpop.permute.xlu1 %1171  ;;  %v1456_v22 = vpop.permute.xlu0 %1455  ;;  %v1673_v62 = vsel %vm1664_vm4, %v1636_v29, %v5168_v48  ;;  %v1711_v41 = vsel %vm1701_vm5, %v1674_v14, %v3959_v27  ;;  %v426_v16 = vld [vmem:[%s3020_s20 + $0x11d] sm:$0xff]  ;;  %v5182_v14 = vld [vmem:[#allocation7_spill] sm:$0xff] }
 0x211   : > { %v1818_v30 = vsel %vm1812_vm8, %v1781_v56, %v1456_v22  ;;  %v1746_v0 = vsel %vm1738_vm6, %v1709_v51, %v1172_v31  ;;  %v1710_v54 = vsel %vm1701_vm5, %v1673_v62, %v3961_v33  ;;  %v424_v31 = vld [vmem:[%s3020_s20 + $0x10d] sm:$0xff]  ;;  %v423_v22 = vld [vmem:[%s3020_s20 + $0x105] sm:$0xff]  ;;  %v1564_v51 = vsel %vm1553_vm1, %v219_v8, %v5172_v50  ;;  %v461_v3 = vld [vmem:[%s3020_s20 + $0x116] sm:$0xff] }
 0x212   : > { %1495 = vrot.lane.b32.xlu1 %v456_v60, %s2979_s12  ;;  %1493 = vrot.lane.b32.xlu0 %v455_v12, %s2979_s12  ;;  %v5170_v60 = vld [vmem:[#allocation91_spill] sm:$0xff]  ;;  %v462_v4 = vld [vmem:[%s3020_s20 + $0x11e] sm:$0xff]  ;;  %v1566_v48 = vsel %vm1553_vm1, %v221_v55, %v5182_v14 }
 0x213   : > { %2886 = vmatmul.mubr.msk.f32.gmra.mxu0 %vm1854_vm9, %v1818_v30  ;;  %v5183_v62 = vld [vmem:[#allocation34_spill] sm:$0xff]  ;;  %v5199_v55 = vld [vmem:[#allocation101_spill] sm:$0xff] }
 0x214   : > { %v1316_v24 = vpop.permute.xlu1 %1315  ;;  %v1314_v61 = vpop.permute.xlu0 %1313  ;;  %v427_v50 = vld [vmem:[%s3020_s20 + $0x125] sm:$0xff]  ;;  %v430_v14 = vld [vmem:[%s3020_s20 + $0x13d] sm:$0x3f] }
 0x215   : > { %v1783_v26 = vsel %vm1775_vm7, %v1746_v0, %v1316_v24  ;;  %v1782_v63 = vsel %vm1775_vm7, %v1745_v40, %v1314_v61  ;;  %v459_v24 = vld [vmem:[%s3020_s20 + $0x106] sm:$0xff]  ;;  %v5175_v0 = vld [vmem:[#allocation60_spill] sm:$0xff] }
 0x216   : > { %1211 = vrot.lane.b32.xlu1 %v5159_v57, %s2977_s30  ;;  %1209 = vrot.lane.b32.xlu0 %v5160_v37, %s2977_s30  ;;  %v1602_v57 = vsel %vm1590_vm2, %v1565_v20, %v5173_v45  ;;  %v5174_v37 = vld [vmem:[#allocation33_spill] sm:$0xff]  ;;  %v428_v20 = vld [vmem:[%s3020_s20 + $0x12d] sm:$0xff] }
 0x217   : > { %v1601_v40 = vsel %vm1590_vm2, %v1564_v51, %v5174_v37 }
 0x218   : > { %v1460_v34 = vpop.permute.xlu1 %1459  ;;  %v1458_v53 = vpop.permute.xlu0 %1457 }
 0x219   : > { %v1820_v1 = vsel %vm1812_vm8, %v1783_v26, %v1460_v34  ;;  %v1819_v46 = vsel %vm1812_vm8, %v1782_v63, %v1458_v53 }
 0x21a   : > { %1355 = vrot.lane.b32.xlu1 %v422_v19, %s2978_s11  ;;  %1353 = vrot.lane.b32.xlu0 %v421_v39, %s2978_s11  ;;  %v1639_v19 = vsel %vm1627_vm3, %v1602_v57, %v5175_v0  ;;  %v5176_v39 = vld [vmem:[#allocation61_spill] sm:$0xff] }
 0x21b   : > { %2888 = vmatprep.mubr.msk.f32.mxu0 %vm1854_vm9, %v1819_v46  ;;  %v1638_v26 = vsel %vm1627_vm3, %v1601_v40, %v5176_v39  ;;  %v1676_v53 = vsel %vm1664_vm4, %v1639_v19, %v3805_v7  ;;  %v224_v19 = vld [vmem:[%s3020_s20 + $0x78] sm:$0xff]  ;;  %v223_v39 = vld [vmem:[%s3020_s20 + $0x70] sm:$0xff] }
 0x21c   : > { %2889 = vmatmul.mubr.msk.f32.gmra.mxu0 %vm1854_vm9, %v1820_v1  ;;  %v1176_v21 = vpop.permute.xlu1 %1175  ;;  %v1174_v5 = vpop.permute.xlu0 %1173  ;;  %v5177_v1 = vld [vmem:[#allocation96_spill] sm:$0xff]  ;;  %v1713_v17 = vsel %vm1701_vm5, %v1676_v53, %v5178_v2  ;;  %v5193_v2 = vld [vmem:[#allocation9_spill] sm:$0xff] }
 0x21d   : > { %v1748_v12 = vsel %vm1738_vm6, %v1711_v41, %v1176_v21  ;;  %v1747_v56 = vsel %vm1738_vm6, %v1710_v54, %v1174_v5  ;;  %v1675_v46 = vsel %vm1664_vm4, %v1638_v26, %v5177_v1  ;;  %v5180_v21 = vld [vmem:[#allocation95_spill] sm:$0xff]  ;;  %v5192_v1 = vld [vmem:[#allocation8_spill] sm:$0xff] }
 0x21e   : > { %1499 = vrot.lane.b32.xlu1 %v458_v42, %s2979_s12  ;;  %1497 = vrot.lane.b32.xlu0 %v457_v59, %s2979_s12  ;;  %v1712_v42 = vsel %vm1701_vm5, %v1675_v46, %v3971_v52  ;;  %v5179_v59 = vld [vmem:[#allocation94_spill] sm:$0xff]  ;;  %v5184_v54 = vld [vmem:[#allocation35_spill] sm:$0xff]  ;;  %v1569_v46 = vsel %vm1553_vm1, %v224_v19, %v5192_v1 }
 0x21f   : > { %v464_v26 = vld [vmem:[%s3020_s20 + $0x12e] sm:$0xff] }
 0x220   : > { %v1320_v43 = vpop.permute.xlu1 %1319  ;;  %v1318_v10 = vpop.permute.xlu0 %1317 }
 0x221   : > { %v1785_v27 = vsel %vm1775_vm7, %v1748_v12, %v1320_v43  ;;  %v1784_v30 = vsel %vm1775_vm7, %v1747_v56, %v1318_v10  ;;  %v5181_v10 = vld [vmem:[#allocation6_spill] sm:$0xff] }
 0x222   : > { %1215 = vrot.lane.b32.xlu1 %v5169_v35, %s2977_s30  ;;  %1213 = vrot.lane.b32.xlu0 %v5170_v60, %s2977_s30  ;;  %v1567_v15 = vsel %vm1553_vm1, %v222_v36, %v5181_v10  ;;  %v1603_v35 = vsel %vm1590_vm2, %v1566_v48, %v5184_v54  ;;  %v392_v60 = vld [vmem:[%s3020_s20 + $0x12c] sm:$0xff]  ;;  %v5185_v12 = vld [vmem:[#allocation62_spill] sm:$0xff]  ;;  %v429_v48 = vld [vmem:[%s3020_s20 + $0x135] sm:$0xff] }
 0x223   : > { %v1604_v41 = vsel %vm1590_vm2, %v1567_v15, %v5183_v62 }
 0x224   : > { %v1464_v33 = vpop.permute.xlu1 %1463  ;;  %v1462_v58 = vpop.permute.xlu0 %1461  ;;  %v1641_v56 = vsel %vm1627_vm3, %v1604_v41, %v5185_v12  ;;  %v226_v12 = vld [vmem:[%s3020_s20 + $0x88] sm:$0xff] }
 0x225   : > { %v1822_v23 = vsel %vm1812_vm8, %v1785_v27, %v1464_v33  ;;  %v1821_v32 = vsel %vm1812_vm8, %v1784_v30, %v1462_v58  ;;  %v5187_v33 = vld [vmem:[#allocation98_spill] sm:$0xff] }
 0x226   : > { %1359 = vrot.lane.b32.xlu1 %v424_v31, %s2978_s11  ;;  %1357 = vrot.lane.b32.xlu0 %v423_v22, %s2978_s11  ;;  %v5186_v31 = vld [vmem:[#allocation63_spill] sm:$0xff]  ;;  %v1678_v58 = vsel %vm1664_vm4, %v1641_v56, %v5187_v33  ;;  %v225_v56 = vld [vmem:[%s3020_s20 + $0x80] sm:$0xff] }
 0x227   : > { %2891 = vmatprep.mubr.msk.f32.mxu0 %vm1854_vm9, %v1821_v32  ;;  %v1640_v22 = vsel %vm1627_vm3, %v1603_v35, %v5186_v31  ;;  %v1715_v8 = vsel %vm1701_vm5, %v1678_v58, %v5189_v47  ;;  %v466_v31 = vld [vmem:[%s3020_s20 + $0x13e] sm:$0x3f] }
 0x228   : > { %2892 = vmatmul.mubr.msk.f32.gmra.mxu0 %vm1854_vm9, %v1822_v23  ;;  %v1180_v61 = vpop.permute.xlu1 %1179  ;;  %v1178_v38 = vpop.permute.xlu0 %1177  ;;  %v5188_v23 = vld [vmem:[#allocation99_spill] sm:$0xff]  ;;  %v5201_v33 = vld [vmem:[#allocation10_spill] sm:$0xff] }
 0x229   : > { %v1750_v7 = vsel %vm1738_vm6, %v1713_v17, %v1180_v61  ;;  %v1749_v5 = vsel %vm1738_vm6, %v1712_v42, %v1178_v38  ;;  %v1677_v32 = vsel %vm1664_vm4, %v1640_v22, %v5188_v23  ;;  %v5191_v61 = vld [vmem:[#allocation97_spill] sm:$0xff]  ;;  %v1568_v17 = vsel %vm1553_vm1, %v223_v39, %v5193_v2  ;;  %v5194_v42 = vld [vmem:[#allocation36_spill] sm:$0xff]  ;;  %v5202_v23 = vld [vmem:[#allocation11_spill] sm:$0xff] }
 0x22a   : > { %1503 = vrot.lane.b32.xlu1 %v460_v9, %s2979_s12  ;;  %1501 = vrot.lane.b32.xlu0 %v459_v24, %s2979_s12  ;;  %v5190_v9 = vld [vmem:[#allocation124_spill] sm:$0xff]  ;;  %v1571_v58 = vsel %vm1553_vm1, %v226_v12, %v5201_v33  ;;  %v5203_v47 = vld [vmem:[#allocation38_spill] sm:$0xff]  ;;  %v2252_v2 = vld [vmem:[%s5003_s2 + $0x18] sm:$0xff] }
 0x22b   : > { %v1714_v24 = vsel %vm1701_vm5, %v1677_v32, %v5190_v9  ;;  %v465_v22 = vld [vmem:[%s3020_s20 + $0x136] sm:$0xff]  ;;  %v1570_v32 = vsel %vm1553_vm1, %v225_v56, %v5202_v23  ;;  %v5204_v9 = vld [vmem:[#allocation39_spill] sm:$0xff]  ;;  %v5209_v39 = vld [vmem:[#allocation126_spill] sm:$0xff] }
 0x22c   : > { %v1324_v63 = vpop.permute.xlu1 %1323  ;;  %v1322_v34 = vpop.permute.xlu0 %1321  ;;  %v5218_v12 = vld [vmem:[#allocation105_spill] sm:$0xff]  ;;  %v2258_v23 = vld [vmem:[%s5003_s2 + $0x48] sm:$0xff] }
 0x22d   : > { %v1787_v11 = vsel %vm1775_vm7, %v1750_v7, %v1324_v63  ;;  %v1786_v25 = vsel %vm1775_vm7, %v1749_v5, %v1322_v34  ;;  %v463_v63 = vld [vmem:[%s3020_s20 + $0x126] sm:$0xff]  ;;  %v394_v5 = vld [vmem:[%s3020_s20 + $0x13c] sm:$0x3f] }
 0x22e   : > { %1219 = vrot.lane.b32.xlu1 %v5179_v59, %s2977_s30  ;;  %1217 = vrot.lane.b32.xlu0 %v5180_v21, %s2977_s30  ;;  %v1606_v59 = vsel %vm1590_vm2, %v1569_v46, %v5194_v42  ;;  %v5195_v21 = vld [vmem:[#allocation37_spill] sm:$0xff]  ;;  %v2251_v46 = vld [vmem:[%s5003_s2 + $0x10] sm:$0xff] }
 0x22f   : > { %v1605_v7 = vsel %vm1590_vm2, %v1568_v17, %v5195_v21 }
 0x230   : > { %v1468_v52 = vpop.permute.xlu1 %1467  ;;  %v1466_v44 = vpop.permute.xlu0 %1465 }
 0x231   : > { %v1824_v49 = vsel %vm1812_vm8, %v1787_v11, %v1468_v52  ;;  %v1823_v6 = vsel %vm1812_vm8, %v1786_v25, %v1466_v44  ;;  %v5197_v25 = vld [vmem:[#allocation65_spill] sm:$0xff] }
 0x232   : > { %1363 = vrot.lane.b32.xlu1 %v426_v16, %s2978_s11  ;;  %1361 = vrot.lane.b32.xlu0 %v425_v28, %s2978_s11  ;;  %v393_v16 = vld [vmem:[%s3020_s20 + $0x134] sm:$0xff]  ;;  %v1642_v52 = vsel %vm1627_vm3, %v1605_v7, %v5197_v25  ;;  %v2254_v25 = vld [vmem:[%s5003_s2 + $0x28] sm:$0xff] }
 0x233   : > { %2894 = vmatprep.mubr.msk.f32.mxu0 %vm1854_vm9, %v1823_v6  ;;  %v5196_v28 = vld [vmem:[#allocation64_spill] sm:$0xff] }
 0x234   : > { %2895 = vmatmul.mubr.msk.f32.gmra.mxu0 %vm1854_vm9, %v1824_v49  ;;  %v1184_v29 = vpop.permute.xlu1 %1183  ;;  %v1182_v43 = vpop.permute.xlu0 %1181  ;;  %v1643_v11 = vsel %vm1627_vm3, %v1606_v59, %v5196_v28  ;;  %v5198_v6 = vld [vmem:[#allocation100_spill] sm:$0xff] }
 0x235   : > { %v1752_v38 = vsel %vm1738_vm6, %v1715_v8, %v1184_v29  ;;  %v1751_v13 = vsel %vm1738_vm6, %v1714_v24, %v1182_v43  ;;  %v1680_v36 = vsel %vm1664_vm4, %v1643_v11, %v5198_v6  ;;  %v5200_v29 = vld [vmem:[#allocation125_spill] sm:$0xff]  ;;  %v1608_v8 = vsel %vm1590_vm2, %v1571_v58, %v5203_v47  ;;  %v227_v28 = vld [vmem:[%s3020_s20 + $0x90] sm:$0xff]  ;;  %v2253_v11 = vld [vmem:[%s5003_s2 + $0x20] sm:$0xff] }
 0x236   : > { %1507 = vrot.lane.b32.xlu1 %v462_v4, %s2979_s12  ;;  %1505 = vrot.lane.b32.xlu0 %v461_v3, %s2979_s12  ;;  %v1679_v4 = vsel %vm1664_vm4, %v1642_v52, %v5199_v55  ;;  %v1717_v3 = vsel %vm1701_vm5, %v1680_v36, %v3983_v18  ;;  %v1607_v24 = vsel %vm1590_vm2, %v1570_v32, %v5204_v9  ;;  %v5212_v36 = vld [vmem:[#allocation13_spill] sm:$0xff] }
 0x237   : > { %v1716_v43 = vsel %vm1701_vm5, %v1679_v4, %v5200_v29  ;;  %v1572_v55 = vsel %vm1553_vm1, %v227_v28, %v5212_v36  ;;  %v5213_v4 = vld [vmem:[#allocation40_spill] sm:$0xff]  ;;  %v5214_v29 = vld [vmem:[#allocation41_spill] sm:$0xff] }
 0x238   : > { %v1328_v27 = vpop.permute.xlu1 %1327  ;;  %v1326_v30 = vpop.permute.xlu0 %1325  ;;  %v2264_v36 = vld [vmem:[%s5003_s2 + $0x78] sm:$0xff] }
 0x239   : > { %v1789_v51 = vsel %vm1775_vm7, %v1752_v38, %v1328_v27  ;;  %v1788_v45 = vsel %vm1775_vm7, %v1751_v13, %v1326_v30  ;;  %v2249_v38 = vld [vmem:[%s5003_s2] sm:$0xff] }
 0x23a   : > { %1223 = vrot.lane.b32.xlu1 %v392_v60, %s2977_s30  ;;  %1221 = vrot.lane.b32.xlu0 %v5191_v61, %s2977_s30  ;;  %v2250_v61 = vld [vmem:[%s5003_s2 + $0x8] sm:$0xff]  ;;  %v5205_v13 = vld [vmem:[#allocation66_spill] sm:$0xff] }
 0x23c   : > { %v1472_v57 = vpop.permute.xlu1 %1471  ;;  %v1470_v37 = vpop.permute.xlu0 %1469 }
 0x23d   : > { %v1826_v40 = vsel %vm1812_vm8, %v1789_v51, %v1472_v57  ;;  %v1825_v0 = vsel %vm1812_vm8, %v1788_v45, %v1470_v37  ;;  %v5207_v37 = vld [vmem:[#allocation102_spill] sm:$0xff] }
 0x23e   : > { %1367 = vrot.lane.b32.xlu1 %v428_v20, %s2978_s11  ;;  %1365 = vrot.lane.b32.xlu0 %v427_v50, %s2978_s11  ;;  %v1645_v20 = vsel %vm1627_vm3, %v1608_v8, %v5205_v13  ;;  %v5206_v50 = vld [vmem:[#allocation67_spill] sm:$0xff] }
 0x23f   : > { %2897 = vmatprep.mubr.msk.f32.mxu0 %vm1854_vm9, %v1825_v0  ;;  %v1644_v51 = vsel %vm1627_vm3, %v1607_v24, %v5206_v50  ;;  %v5208_v0 = vld [vmem:[#allocation103_spill] sm:$0xff]  ;;  %v2257_v24 = vld [vmem:[%s5003_s2 + $0x40] sm:$0xff]  ;;  %v2260_v50 = vld [vmem:[%s5003_s2 + $0x58] sm:$0xff] }
 0x240   : > { %2898 = vmatmul.mubr.msk.f32.gmra.mxu0 %vm1854_vm9, %v1826_v40  ;;  %v1188_v34 = vpop.permute.xlu1 %1187  ;;  %v1186_v53 = vpop.permute.xlu0 %1185  ;;  %v1682_v40 = vsel %vm1664_vm4, %v1645_v20, %v5207_v37  ;;  %v1681_v19 = vsel %vm1664_vm4, %v1644_v51, %v5208_v0  ;;  %v230_v13 = vld [vmem:[%s3020_s20 + $0xa8] sm:$0xff]  ;;  %v229_v20 = vld [vmem:[%s3020_s20 + $0xa0] sm:$0xff] }
 0x241   : > { %v1754_v10 = vsel %vm1738_vm6, %v1717_v3, %v1188_v34  ;;  %v1753_v15 = vsel %vm1738_vm6, %v1716_v43, %v1186_v53  ;;  %v1609_v43 = vsel %vm1590_vm2, %v1572_v55, %v5214_v29  ;;  %v5221_v37 = vld [vmem:[#allocation14_spill] sm:$0xff]  ;;  %v5222_v0 = vld [vmem:[#allocation15_spill] sm:$0xff] }
 0x242   : > { %1511 = vrot.lane.b32.xlu1 %v464_v26, %s2979_s12  ;;  %1509 = vrot.lane.b32.xlu0 %v463_v63, %s2979_s12  ;;  %v1719_v26 = vsel %vm1701_vm5, %v1682_v40, %v5209_v39  ;;  %v5210_v63 = vld [vmem:[#allocation127_spill] sm:$0xff]  ;;  %v1575_v40 = vsel %vm1553_vm1, %v230_v13, %v5221_v37  ;;  %v5223_v39 = vld [vmem:[#allocation42_spill] sm:$0xff]  ;;  %v5238_v13 = vld [vmem:[#allocation109_spill] sm:$0xff] }
 0x243   : > { %v1718_v34 = vsel %vm1701_vm5, %v1681_v19, %v5210_v63  ;;  %v1574_v19 = vsel %vm1553_vm1, %v229_v20, %v5222_v0  ;;  %v5224_v63 = vld [vmem:[#allocation43_spill] sm:$0xff] }
 0x244   : > { %v1332_v44 = vpop.permute.xlu1 %1331  ;;  %v1330_v49 = vpop.permute.xlu0 %1329  ;;  %v2270_v0 = vld [vmem:[%s5003_s2 + $0xa8] sm:$0xff] }
 0x245   : > { %v1791_v62 = vsel %vm1775_vm7, %v1754_v10, %v1332_v44  ;;  %v1790_v18 = vsel %vm1775_vm7, %v1753_v15, %v1330_v49  ;;  %v5211_v49 = vld [vmem:[#allocation12_spill] sm:$0xff]  ;;  %v2256_v10 = vld [vmem:[%s5003_s2 + $0x38] sm:$0xff] }
 0x246   : > { %1227 = vrot.lane.b32.xlu1 %v394_v5, %s2977_s30  ;;  %1225 = vrot.lane.b32.xlu0 %v393_v16, %s2977_s30  ;;  %v228_v16 = vld [vmem:[%s3020_s20 + $0x98] sm:$0xff]  ;;  %v2255_v15 = vld [vmem:[%s5003_s2 + $0x30] sm:$0xff] }
 0x247   : > { %v1573_v6 = vsel %vm1553_vm1, %v228_v16, %v5211_v49  ;;  %v5228_v16 = vld [vmem:[#allocation107_spill] sm:$0xff] }
 0x248   : > { %v1476_v41 = vpop.permute.xlu1 %1475  ;;  %v1474_v54 = vpop.permute.xlu0 %1473  ;;  %v1610_v3 = vsel %vm1590_vm2, %v1573_v6, %v5213_v4 }
 0x249   : > { %v1828_v35 = vsel %vm1812_vm8, %v1791_v62, %v1476_v41  ;;  %v1827_v60 = vsel %vm1812_vm8, %v1790_v18, %v1474_v54  ;;  %v5216_v62 = vld [vmem:[#allocation69_spill] sm:$0xff] }
 0x24a   : > { %1371 = vrot.lane.b32.xlu1 %v430_v14, %s2978_s11  ;;  %1369 = vrot.lane.b32.xlu0 %v429_v48, %s2978_s11  ;;  %v5215_v14 = vld [vmem:[#allocation68_spill] sm:$0xff]  ;;  %v1646_v18 = vsel %vm1627_vm3, %v1609_v43, %v5216_v62  ;;  %v2266_v62 = vld [vmem:[%s5003_s2 + $0x88] sm:$0xff] }
 0x24b   : > { %2900 = vmatprep.mubr.msk.f32.mxu0 %vm1854_vm9, %v1827_v60  ;;  %v1647_v48 = vsel %vm1627_vm3, %v1610_v3, %v5215_v14  ;;  %v1683_v56 = vsel %vm1664_vm4, %v1646_v18, %v5218_v12  ;;  %v2263_v43 = vld [vmem:[%s5003_s2 + $0x70] sm:$0xff]  ;;  %v232_v14 = vld [vmem:[%s3020_s20 + $0xb8] sm:$0xff] }
 0x24c   : > { %2901 = vmatmul.mubr.msk.f32.gmra.mxu0 %vm1854_vm9, %v1828_v35  ;;  %v1192_v27 = vpop.permute.xlu1 %1191  ;;  %v1190_v30 = vpop.permute.xlu0 %1189  ;;  %v5217_v35 = vld [vmem:[#allocation104_spill] sm:$0xff]  ;;  %v5232_v12 = vld [vmem:[#allocation17_spill] sm:$0xff] }
 0x24d   : > { %v1756_v53 = vsel %vm1738_vm6, %v1719_v26, %v1192_v27  ;;  %v1755_v1 = vsel %vm1738_vm6, %v1718_v34, %v1190_v30  ;;  %v1684_v60 = vsel %vm1664_vm4, %v1647_v48, %v5217_v35  ;;  %v5220_v27 = vld [vmem:[#allocation129_spill] sm:$0xff]  ;;  %v1612_v26 = vsel %vm1590_vm2, %v1575_v40, %v5223_v39  ;;  %v231_v48 = vld [vmem:[%s3020_s20 + $0xb0] sm:$0xff] }
 0x24e   : > { %1515 = vrot.lane.b32.xlu1 %v466_v31, %s2979_s12  ;;  %1513 = vrot.lane.b32.xlu0 %v465_v22, %s2979_s12  ;;  %v5219_v31 = vld [vmem:[#allocation128_spill] sm:$0xff]  ;;  %v1720_v30 = vsel %vm1701_vm5, %v1683_v56, %v5220_v27  ;;  %v1611_v34 = vsel %vm1590_vm2, %v1574_v19, %v5224_v63  ;;  %v1576_v56 = vsel %vm1553_vm1, %v231_v48, %v5232_v12  ;;  %v5234_v27 = vld [vmem:[#allocation45_spill] sm:$0xff] }
 0x24f   : > { %v1721_v22 = vsel %vm1701_vm5, %v1684_v60, %v5219_v31  ;;  %v5231_v35 = vld [vmem:[#allocation16_spill] sm:$0xff]  ;;  %v2276_v12 = vld [vmem:[%s5003_s2 + $0xd8] sm:$0xff] }
 0x250   : > { %v1336_v45 = vpop.permute.xlu1 %1335  ;;  %v1334_v57 = vpop.permute.xlu0 %1333  ;;  %v1577_v60 = vsel %vm1553_vm1, %v232_v14, %v5231_v35  ;;  %v5233_v31 = vld [vmem:[#allocation44_spill] sm:$0xff]  ;;  %v5248_v14 = vld [vmem:[#allocation111_spill] sm:$0xff] }
 0x251   : > { %v1793_v17 = vsel %vm1775_vm7, %v1756_v53, %v1336_v45  ;;  %v1792_v42 = vsel %vm1775_vm7, %v1755_v1, %v1334_v57  ;;  %v2259_v57 = vld [vmem:[%s5003_s2 + $0x50] sm:$0xff]  ;;  %v2262_v53 = vld [vmem:[%s5003_s2 + $0x68] sm:$0xff]  ;;  %v5225_v1 = vld [vmem:[#allocation70_spill] sm:$0xff] }
 0x252   : > { %2292 = vperm.xlu1 %2963, %v2250_v61   ;;  %2287 = vperm.xlu0 %2962, %v2249_v38  }
 0x254   : > { %v1480_v59 = vpop.permute.xlu1 %1479  ;;  %v1478_v21 = vpop.permute.xlu0 %1477 }
 0x255   : > { %v1830_v7 = vsel %vm1812_vm8, %v1793_v17, %v1480_v59  ;;  %v1829_v5 = vsel %vm1812_vm8, %v1792_v42, %v1478_v21  ;;  %v2261_v21 = vld [vmem:[%s5003_s2 + $0x60] sm:$0xff] }
 0x256   : > { %2297 = vperm.xlu1 %2963, %v2251_v46   ;;  %2302 = vperm.xlu0 %2962, %v2252_v2   ;;  %v1649_v46 = vsel %vm1627_vm3, %v1612_v26, %v5225_v1  ;;  %v5226_v2 = vld [vmem:[#allocation71_spill] sm:$0xff] }
 0x257   : > { %2903 = vmatprep.mubr.msk.f32.mxu0 %vm1854_vm9, %v1829_v5  ;;  %v1648_v17 = vsel %vm1627_vm3, %v1611_v34, %v5226_v2  ;;  %v2269_v34 = vld [vmem:[%s5003_s2 + $0xa0] sm:$0xff] }
 0x258   : > { %2904 = vmatmul.mubr.msk.f32.gmra.mxu0 %vm1854_vm9, %v1830_v7  ;;  %v1196_v52 = vpop.permute.xlu1 %1195  ;;  %v1194_v44 = vpop.permute.xlu0 %1193  ;;  %v5227_v7 = vld [vmem:[#allocation106_spill] sm:$0xff]  ;;  %v1685_v28 = vsel %vm1664_vm4, %v1648_v17, %v5228_v16  ;;  %v2272_v17 = vld [vmem:[%s5003_s2 + $0xb8] sm:$0xff]  ;;  %v5242_v16 = vld [vmem:[#allocation19_spill] sm:$0xff] }
 0x259   : > { %v1758_v33 = vsel %vm1738_vm6, %v1721_v22, %v1196_v52  ;;  %v1757_v58 = vsel %vm1738_vm6, %v1720_v30, %v1194_v44  ;;  %v1686_v5 = vsel %vm1664_vm4, %v1649_v46, %v5227_v7  ;;  %v5230_v52 = vld [vmem:[#allocation131_spill] sm:$0xff]  ;;  %v1614_v22 = vsel %vm1590_vm2, %v1577_v60, %v5233_v31  ;;  %v233_v2 = vld [vmem:[%s3020_s20 + $0xc0] sm:$0xff] }
 0x25a   : > { %2307 = vperm.xlu1 %2963, %v2253_v11   ;;  %2312 = vperm.xlu0 %2962, %v2254_v25   ;;  %v5229_v11 = vld [vmem:[#allocation130_spill] sm:$0xff]  ;;  %v1722_v44 = vsel %vm1701_vm5, %v1685_v28, %v5230_v52  ;;  %v1613_v30 = vsel %vm1590_vm2, %v1576_v56, %v5234_v27  ;;  %v234_v46 = vld [vmem:[%s3020_s20 + $0xc8] sm:$0xff]  ;;  %v1578_v28 = vsel %vm1553_vm1, %v233_v2, %v5242_v16 }
 0x25b   : > { %v1723_v25 = vsel %vm1701_vm5, %v1686_v5, %v5229_v11  ;;  %v5241_v7 = vld [vmem:[#allocation18_spill] sm:$0xff]  ;;  %v5244_v52 = vld [vmem:[#allocation47_spill] sm:$0xff] }
 0x25c   : > { %v1340_v41 = vpop.permute.xlu1 %1339  ;;  %v1338_v54 = vpop.permute.xlu0 %1337  ;;  %v1579_v5 = vsel %vm1553_vm1, %v234_v46, %v5241_v7  ;;  %v5243_v11 = vld [vmem:[#allocation46_spill] sm:$0xff]  ;;  %v5258_v46 = vld [vmem:[#allocation113_spill] sm:$0xff]  ;;  %v2282_v16 = vld [vmem:[%s5003_s2 + $0x108] sm:$0xff] }
 0x25d   : > { %v1795_v32 = vsel %vm1775_vm7, %v1758_v33, %v1340_v41  ;;  %v1794_v47 = vsel %vm1775_vm7, %v1757_v58, %v1338_v54  ;;  %v2265_v54 = vld [vmem:[%s5003_s2 + $0x80] sm:$0xff]  ;;  %v2268_v33 = vld [vmem:[%s5003_s2 + $0x98] sm:$0xff]  ;;  %v5235_v58 = vld [vmem:[#allocation72_spill] sm:$0xff] }
 0x25e   : > { %2322 = vperm.xlu0 %2962, %v2256_v10   ;;  %2317 = vperm.xlu1 %2963, %v2255_v15  }
 0x260   : > { %v1484_v8 = vpop.permute.xlu1 %1483  ;;  %v1482_v9 = vpop.permute.xlu0 %1481 }
 0x261   : > { %v1832_v61 = vsel %vm1812_vm8, %v1795_v32, %v1484_v8  ;;  %v1831_v38 = vsel %vm1812_vm8, %v1794_v47, %v1482_v9  ;;  %v5236_v32 = vld [vmem:[#allocation73_spill] sm:$0xff] }
 0x262   : > { %2906 = vmatprep.mubr.msk.f32.mxu1 %vm1854_vm9, %v1831_v38  ;;  %2332 = vperm.xlu0 %2962, %v2258_v23   ;;  %v1651_v23 = vsel %vm1627_vm3, %v1614_v22, %v5235_v58  ;;  %v1650_v47 = vsel %vm1627_vm3, %v1613_v30, %v5236_v32  ;;  %v2275_v30 = vld [vmem:[%s5003_s2 + $0xd0] sm:$0xff] }
 0x263   : > { %2907 = vmatmul.mubr.msk.f32.vlgmr.msra.gmra.mxu1 %vm1854_vm9, %v1832_v61  ;;  %2327 = vperm.xlu1 %2963, %v2257_v24   ;;  %v2267_v24 = vld [vmem:[%s5003_s2 + $0x90] sm:$0xff]  ;;  %v1687_v20 = vsel %vm1664_vm4, %v1650_v47, %v5238_v13  ;;  %v2278_v47 = vld [vmem:[%s5003_s2 + $0xe8] sm:$0xff]  ;;  %v5252_v13 = vld [vmem:[#allocation21_spill] sm:$0xff] }
 0x264   : > { %v1200_v51 = vpop.permute.xlu1 %1199  ;;  %v1198_v45 = vpop.permute.xlu0 %1197  ;;  %v5237_v61 = vld [vmem:[#allocation108_spill] sm:$0xff] }
 0x265   : > { %v1760_v49 = vsel %vm1738_vm6, %v1723_v25, %v1200_v51  ;;  %v1759_v6 = vsel %vm1738_vm6, %v1722_v44, %v1198_v45  ;;  %v1688_v38 = vsel %vm1664_vm4, %v1651_v23, %v5237_v61  ;;  %v5240_v45 = vld [vmem:[#allocation133_spill] sm:$0xff]  ;;  %v1616_v25 = vsel %vm1590_vm2, %v1579_v5, %v5243_v11  ;;  %v235_v32 = vld [vmem:[%s3020_s20 + $0xd0] sm:$0xff] }
 0x266   : > { %2342 = vperm.xlu0 %2962, %v2260_v50   ;;  %v5239_v50 = vld [vmem:[#allocation132_spill] sm:$0xff]  ;;  %v1615_v44 = vsel %vm1590_vm2, %v1578_v28, %v5244_v52  ;;  %v236_v23 = vld [vmem:[%s3020_s20 + $0xd8] sm:$0xff] }
 0x267   : > { %2337 = vperm.xlu1 %2963, %v2259_v57   ;;  %v1725_v51 = vsel %vm1701_vm5, %v1688_v38, %v5239_v50  ;;  %v1724_v57 = vsel %vm1701_vm5, %v1687_v20, %v5240_v45  ;;  %v5251_v61 = vld [vmem:[#allocation20_spill] sm:$0xff]  ;;  %v1580_v20 = vsel %vm1553_vm1, %v235_v32, %v5252_v13  ;;  %v5254_v45 = vld [vmem:[#allocation49_spill] sm:$0xff] }
 0x268   : > { %v1344_v42 = vpop.permute.xlu1 %1343  ;;  %v1342_v59 = vpop.permute.xlu0 %1341  ;;  %v1581_v38 = vsel %vm1553_vm1, %v236_v23, %v5251_v61  ;;  %v5253_v50 = vld [vmem:[#allocation48_spill] sm:$0xff]  ;;  %v5269_v23 = vld [vmem:[#allocation138_spill] sm:$0xff] }
 0x269   : > { %v1797_v55 = vsel %vm1775_vm7, %v1760_v49, %v1344_v42  ;;  %v1796_v4 = vsel %vm1775_vm7, %v1759_v6, %v1342_v59  ;;  %v2274_v49 = vld [vmem:[%s5003_s2 + $0xc8] sm:$0xff]  ;;  %v5245_v6 = vld [vmem:[#allocation74_spill] sm:$0xff] }
 0x26a   : > { %2352 = vperm.xlu0 %2962, %v2262_v53  }
 0x26b   : > { %2347 = vperm.xlu1 %2963, %v2261_v21   ;;  %v2271_v21 = vld [vmem:[%s5003_s2 + $0xb0] sm:$0xff] }
 0x26c   : > { %v1488_v3 = vpop.permute.xlu1 %1487  ;;  %v1486_v29 = vpop.permute.xlu0 %1485 }
 0x26d   : > { %v1834_v10 = vsel %vm1812_vm8, %v1797_v55, %v1488_v3  ;;  %v1833_v15 = vsel %vm1812_vm8, %v1796_v4, %v1486_v29  ;;  %v5246_v55 = vld [vmem:[#allocation75_spill] sm:$0xff] }
 0x26e   : > { %2909 = vmatprep.mubr.msk.f32.mxu1 %vm1854_vm9, %v1833_v15  ;;  %2362 = vperm.xlu0 %2962, %v2264_v36   ;;  %v1653_v36 = vsel %vm1627_vm3, %v1616_v25, %v5245_v6  ;;  %v1652_v4 = vsel %vm1627_vm3, %v1615_v44, %v5246_v55  ;;  %v2281_v44 = vld [vmem:[%s5003_s2 + $0x100] sm:$0xff] }
 0x26f   : > { %2910 = vmatmul.mubr.msk.f32.gmra.mxu1 %vm1854_vm9, %v1834_v10  ;;  %2357 = vperm.xlu1 %2963, %v2263_v43   ;;  %v2273_v43 = vld [vmem:[%s5003_s2 + $0xc0] sm:$0xff]  ;;  %v1689_v48 = vsel %vm1664_vm4, %v1652_v4, %v5248_v14  ;;  %v2284_v4 = vld [vmem:[%s5003_s2 + $0x118] sm:$0x3f]  ;;  %v5262_v14 = vld [vmem:[#allocation23_spill] sm:$0xff] }
 0x270   : > { %v1204_v18 = vpop.permute.xlu1 %1203  ;;  %v1202_v41 = vpop.permute.xlu0 %1201  ;;  %v5247_v10 = vld [vmem:[#allocation110_spill] sm:$0xff] }
 0x271   : > { %v1762_v37 = vsel %vm1738_vm6, %v1725_v51, %v1204_v18  ;;  %v1761_v40 = vsel %vm1738_vm6, %v1724_v57, %v1202_v41  ;;  %v1690_v15 = vsel %vm1664_vm4, %v1653_v36, %v5247_v10  ;;  %v5250_v41 = vld [vmem:[#allocation135_spill] sm:$0xff]  ;;  %v1618_v51 = vsel %vm1590_vm2, %v1581_v38, %v5253_v50  ;;  %v237_v55 = vld [vmem:[%s3020_s20 + $0xe0] sm:$0xff] }
 0x272   : > { %2372 = vperm.xlu0 %2962, %v2266_v62   ;;  %v5249_v62 = vld [vmem:[#allocation134_spill] sm:$0xff]  ;;  %v1617_v57 = vsel %vm1590_vm2, %v1580_v20, %v5254_v45  ;;  %v238_v36 = vld [vmem:[%s3020_s20 + $0xe8] sm:$0xff]  ;;  %v240_v45 = vld [vmem:[%s3020_s20 + $0xf8] sm:$0xff] }
 0x273   : > { %2367 = vperm.xlu1 %2963, %v2265_v54   ;;  %v1727_v18 = vsel %vm1701_vm5, %v1690_v15, %v5249_v62  ;;  %v1726_v54 = vsel %vm1701_vm5, %v1689_v48, %v5250_v41  ;;  %v5261_v10 = vld [vmem:[#allocation22_spill] sm:$0xff]  ;;  %v1582_v48 = vsel %vm1553_vm1, %v237_v55, %v5262_v14  ;;  %v5264_v41 = vld [vmem:[#allocation51_spill] sm:$0xff] }
 0x274   : > { %v1348_v8 = vpop.permute.xlu1 %1347  ;;  %v1346_v9 = vpop.permute.xlu0 %1345  ;;  %v1583_v15 = vsel %vm1553_vm1, %v238_v36, %v5261_v10  ;;  %v5263_v62 = vld [vmem:[#allocation50_spill] sm:$0xff]  ;;  %v242_v10 = vld [vmem:[%s3020_s20 + $0x108] sm:$0xff] }
 0x275   : > { %v1799_v19 = vsel %vm1775_vm7, %v1762_v37, %v1348_v8  ;;  %v1798_v39 = vsel %vm1775_vm7, %v1761_v40, %v1346_v9  ;;  %v2280_v37 = vld [vmem:[%s5003_s2 + $0xf8] sm:$0xff]  ;;  %v5255_v40 = vld [vmem:[#allocation76_spill] sm:$0xff] }
 0x276   : > { %2382 = vperm.xlu0 %2962, %v2268_v33  }
 0x277   : > { %2377 = vperm.xlu1 %2963, %v2267_v24   ;;  %v2277_v24 = vld [vmem:[%s5003_s2 + $0xe0] sm:$0xff] }
 0x278   : > { %v1492_v26 = vpop.permute.xlu1 %1491  ;;  %v1490_v63 = vpop.permute.xlu0 %1489 }
 0x279   : > { %v1836_v53 = vsel %vm1812_vm8, %v1799_v19, %v1492_v26  ;;  %v1835_v1 = vsel %vm1812_vm8, %v1798_v39, %v1490_v63  ;;  %v5256_v19 = vld [vmem:[#allocation77_spill] sm:$0xff] }
 0x27a   : > { %2912 = vmatprep.mubr.msk.f32.mxu1 %vm1854_vm9, %v1835_v1  ;;  %2392 = vperm.xlu0 %2962, %v2270_v0   ;;  %v1655_v0 = vsel %vm1627_vm3, %v1618_v51, %v5255_v40  ;;  %v1654_v39 = vsel %vm1627_vm3, %v1617_v57, %v5256_v19  ;;  %v239_v57 = vld [vmem:[%s3020_s20 + $0xf0] sm:$0xff] }
 0x27b   : > { %2913 = vmatmul.mubr.msk.f32.gmra.mxu1 %vm1854_vm9, %v1836_v53  ;;  %2387 = vperm.xlu1 %2963, %v2269_v34   ;;  %v2279_v34 = vld [vmem:[%s5003_s2 + $0xf0] sm:$0xff]  ;;  %v1691_v2 = vsel %vm1664_vm4, %v1654_v39, %v5258_v46  ;;  %v5272_v39 = vld [vmem:[#allocation25_spill] sm:$0xff] }
 0x27c   : > { %v1208_v42 = vpop.permute.xlu1 %1207  ;;  %v1206_v59 = vpop.permute.xlu0 %1205  ;;  %v5257_v53 = vld [vmem:[#allocation112_spill] sm:$0xff] }
 0x27d   : > { %v1764_v35 = vsel %vm1738_vm6, %v1727_v18, %v1208_v42  ;;  %v1763_v60 = vsel %vm1738_vm6, %v1726_v54, %v1206_v59  ;;  %v1692_v1 = vsel %vm1664_vm4, %v1655_v0, %v5257_v53  ;;  %v5260_v59 = vld [vmem:[#allocation137_spill] sm:$0xff]  ;;  %v1620_v18 = vsel %vm1590_vm2, %v1583_v15, %v5263_v62  ;;  %v5271_v0 = vld [vmem:[#allocation24_spill] sm:$0xff]  ;;  %v241_v15 = vld [vmem:[%s3020_s20 + $0x100] sm:$0xff] }
 0x27e   : > { %2402 = vperm.xlu0 %2962, %v2272_v17   ;;  %v5259_v17 = vld [vmem:[#allocation136_spill] sm:$0xff]  ;;  %v1619_v54 = vsel %vm1590_vm2, %v1582_v48, %v5264_v41  ;;  %v1585_v19 = vsel %vm1553_vm1, %v240_v45, %v5271_v0  ;;  %v5274_v53 = vld [vmem:[#allocation53_spill] sm:$0xff]  ;;  %v5281_v62 = vld [vmem:[#allocation26_spill] sm:$0xff] }
 0x27f   : > { %2397 = vperm.xlu1 %2963, %v2271_v21   ;;  %v1729_v42 = vsel %vm1701_vm5, %v1692_v1, %v5259_v17  ;;  %v1728_v21 = vsel %vm1701_vm5, %v1691_v2, %v5260_v59  ;;  %v5275_v46 = vld [vmem:[#allocation80_spill] sm:$0xff]  ;;  %v5276_v17 = vld [vmem:[#allocation81_spill] sm:$0xff]  ;;  %v5282_v41 = vld [vmem:[#allocation27_spill] sm:$0xff] }
 0x280   : > { %v1352_v3 = vpop.permute.xlu1 %1351  ;;  %v1350_v29 = vpop.permute.xlu0 %1349  ;;  %v244_v0 = vld [vmem:[%s3020_s20 + $0x118] sm:$0x3f] }
 0x281   : > { %v1801_v56 = vsel %vm1775_vm7, %v1764_v35, %v1352_v3  ;;  %v1800_v31 = vsel %vm1775_vm7, %v1763_v60, %v1350_v29  ;;  %v5265_v35 = vld [vmem:[#allocation78_spill] sm:$0xff] }
 0x282   : > { %2412 = vperm.xlu0 %2962, %v2274_v49   ;;  %v1657_v60 = vsel %vm1627_vm3, %v1620_v18, %v5265_v35  ;;  %v1587_v18 = vsel %vm1553_vm1, %v242_v10, %v5281_v62  ;;  %v5283_v35 = vld [vmem:[#allocation54_spill] sm:$0xff] }
 0x283   : > { %2407 = vperm.xlu1 %2963, %v2273_v43   ;;  %v2283_v43 = vld [vmem:[%s5003_s2 + $0x110] sm:$0xff] }
 0x284   : > { %v1496_v22 = vpop.permute.xlu1 %1495  ;;  %v1494_v27 = vpop.permute.xlu0 %1493 }
 0x285   : > { %v1838_v33 = vsel %vm1812_vm8, %v1801_v56, %v1496_v22  ;;  %v1837_v58 = vsel %vm1812_vm8, %v1800_v31, %v1494_v27  ;;  %v5267_v27 = vld [vmem:[#allocation114_spill] sm:$0xff] }
 0x286   : > { %2915 = vmatprep.mubr.msk.f32.mxu1 %vm1854_vm9, %v1837_v58  ;;  %2422 = vperm.xlu0 %2962, %v2276_v12   ;;  %v5266_v12 = vld [vmem:[#allocation79_spill] sm:$0xff] }
 0x287   : > { %2916 = vmatmul.mubr.msk.f32.gmra.mxu1 %vm1854_vm9, %v1838_v33  ;;  %2417 = vperm.xlu1 %2963, %v2275_v30   ;;  %v1656_v56 = vsel %vm1627_vm3, %v1619_v54, %v5266_v12  ;;  %v1694_v30 = vsel %vm1664_vm4, %v1657_v60, %v5267_v27  ;;  %v5268_v33 = vld [vmem:[#allocation115_spill] sm:$0xff]  ;;  %v1586_v54 = vsel %vm1553_vm1, %v241_v15, %v5282_v41 }
 0x288   : > { %v1212_v8 = vpop.permute.xlu1 %1211  ;;  %v1210_v9 = vpop.permute.xlu0 %1209  ;;  %v1693_v58 = vsel %vm1664_vm4, %v1656_v56, %v5268_v33  ;;  %v1731_v32 = vsel %vm1701_vm5, %v1694_v30, %v5269_v23  ;;  %v1624_v60 = vsel %vm1590_vm2, %v1587_v18, %v5283_v35  ;;  %v5284_v12 = vld [vmem:[#allocation55_spill] sm:$0xff]  ;;  %v5287_v23 = vld [vmem:[#allocation118_spill] sm:$0xff] }
 0x289   : > { %v1766_v7 = vsel %vm1738_vm6, %v1729_v42, %v1212_v8  ;;  %v1765_v5 = vsel %vm1738_vm6, %v1728_v21, %v1210_v9  ;;  %v1623_v56 = vsel %vm1590_vm2, %v1586_v54, %v5284_v12  ;;  %v5286_v27 = vld [vmem:[#allocation83_spill] sm:$0xff] }
 0x28a   : > { %2432 = vperm.xlu0 %2962, %v2278_v47   ;;  %v5270_v47 = vld [vmem:[#allocation139_spill] sm:$0xff]  ;;  %v1660_v30 = vsel %vm1627_vm3, %v1623_v56, %v5286_v27 }
 0x28b   : > { %2427 = vperm.xlu1 %2963, %v2277_v24   ;;  %v1730_v8 = vsel %vm1701_vm5, %v1693_v58, %v5270_v47  ;;  %v5288_v47 = vld [vmem:[#allocation119_spill] sm:$0xff] }
 0x28c   : > { %v1356_v26 = vpop.permute.xlu1 %1355  ;;  %v1354_v63 = vpop.permute.xlu0 %1353 }
 0x28d   : > { %v1803_v28 = vsel %vm1775_vm7, %v1766_v7, %v1356_v26  ;;  %v1802_v11 = vsel %vm1775_vm7, %v1765_v5, %v1354_v63  ;;  %v1584_v26 = vsel %vm1553_vm1, %v239_v57, %v5272_v39  ;;  %v5273_v63 = vld [vmem:[#allocation52_spill] sm:$0xff] }
 0x28e   : > { %2442 = vperm.xlu0 %2962, %v2280_v37   ;;  %v1621_v1 = vsel %vm1590_vm2, %v1584_v26, %v5274_v53  ;;  %v5277_v7 = vld [vmem:[#allocation116_spill] sm:$0xff]  ;;  %v5292_v53 = vld [vmem:[#allocation29_spill] sm:$0xff] }
 0x28f   : > { %2437 = vperm.xlu1 %2963, %v2279_v34   ;;  %v1622_v34 = vsel %vm1590_vm2, %v1585_v19, %v5273_v63  ;;  %v1658_v42 = vsel %vm1627_vm3, %v1621_v1, %v5276_v17  ;;  %v243_v19 = vld [vmem:[%s3020_s20 + $0x110] sm:$0xff]  ;;  %v5294_v17 = vld [vmem:[#allocation57_spill] sm:$0xff]  ;;  %s2944_s20 = smul.u32 288, %s5302_s16 }
 0x290   : > { %v1500_v25 = vpop.permute.xlu1 %1499  ;;  %v1498_v52 = vpop.permute.xlu0 %1497  ;;  %v1659_v2 = vsel %vm1627_vm3, %v1622_v34, %v5275_v46  ;;  %v5291_v63 = vld [vmem:[#allocation28_spill] sm:$0xff]  ;;  %v1588_v1 = vsel %vm1553_vm1, %v243_v19, %v5292_v53 }
 0x291   : > { %v1840_v49 = vsel %vm1812_vm8, %v1803_v28, %v1500_v25  ;;  %v1839_v6 = vsel %vm1812_vm8, %v1802_v11, %v1498_v52  ;;  %v1696_v5 = vsel %vm1664_vm4, %v1659_v2, %v5277_v7  ;;  %v5279_v11 = vld [vmem:[#allocation140_spill] sm:$0xff]  ;;  %v5280_v52 = vld [vmem:[#allocation141_spill] sm:$0xff]  ;;  %v1589_v34 = vsel %vm1553_vm1, %v244_v0, %v5291_v63  ;;  %s4836_s21 = scalar_lea.vmem %s5004_s3, %s2944_s20 }
 0x292   : > { %2918 = vmatprep.mubr.msk.f32.mxu1 %vm1854_vm9, %v1839_v6  ;;  %2452 = vperm.xlu0 %2962, %v2282_v16   ;;  %v5278_v16 = vld [vmem:[#allocation117_spill] sm:$0xff]  ;;  %v1733_v25 = vsel %vm1701_vm5, %v1696_v5, %v5279_v11  ;;  %v5293_v46 = vld [vmem:[#allocation56_spill] sm:$0xff] }
 0x293   : > { %2919 = vmatmul.mubr.msk.f32.gmra.mxu1 %vm1854_vm9, %v1840_v49  ;;  %2447 = vperm.xlu1 %2963, %v2281_v44   ;;  %v1695_v28 = vsel %vm1664_vm4, %v1658_v42, %v5278_v16  ;;  %v1626_v2 = vsel %vm1590_vm2, %v1589_v34, %v5293_v46  ;;  %v1625_v42 = vsel %vm1590_vm2, %v1588_v1, %v5294_v17  ;;  %v5296_v7 = vld [vmem:[#allocation85_spill] sm:$0xff]  ;;  %v5297_v11 = vld [vmem:[#allocation120_spill] sm:$0xff] }
 0x294   : > { %v1216_v3 = vpop.permute.xlu1 %1215  ;;  %v1214_v29 = vpop.permute.xlu0 %1213  ;;  %v1732_v44 = vsel %vm1701_vm5, %v1695_v28, %v5280_v52  ;;  %v1662_v5 = vsel %vm1627_vm3, %v1625_v42, %v5296_v7  ;;  %v5298_v52 = vld [vmem:[#allocation121_spill] sm:$0xff] }
 0x295   : > { %v1768_v9 = vsel %vm1738_vm6, %v1731_v32, %v1216_v3  ;;  %v1767_v24 = vsel %vm1738_vm6, %v1730_v8, %v1214_v29  ;;  %v1697_v8 = vsel %vm1664_vm4, %v1660_v30, %v5288_v47 }
 0x296   : > { %2462 = vperm.xlu0 %2962, %v2284_v4  }
 0x297   : > { %2457 = vperm.xlu1 %2963, %v2283_v43  }
 0x298   : > { %v1360_v31 = vpop.permute.xlu1 %1359  ;;  %v1358_v22 = vpop.permute.xlu0 %1357 }
 0x299   : > { %v1805_v61 = vsel %vm1775_vm7, %v1768_v9, %v1360_v31  ;;  %v1804_v38 = vsel %vm1775_vm7, %v1767_v24, %v1358_v22  ;;  %v5285_v31 = vld [vmem:[#allocation82_spill] sm:$0xff] }
 0x29a   : > { %v1661_v22 = vsel %vm1627_vm3, %v1624_v60, %v5285_v31  ;;  %v5289_v9 = vld [vmem:[#allocation142_spill] sm:$0xff] }
 0x29b   : > { %v1698_v32 = vsel %vm1664_vm4, %v1661_v22, %v5287_v23 }
 0x29c   : > { %v1504_v13 = vpop.permute.xlu1 %1503  ;;  %v1502_v20 = vpop.permute.xlu0 %1501  ;;  %v1735_v24 = vsel %vm1701_vm5, %v1698_v32, %v5289_v9 }
 0x29d   : > { %v1842_v50 = vsel %vm1812_vm8, %v1805_v61, %v1504_v13  ;;  %v1841_v51 = vsel %vm1812_vm8, %v1804_v38, %v1502_v20  ;;  %v5290_v61 = vld [vmem:[#allocation143_spill] sm:$0xff] }
 0x29e   : > { %2921 = vmatprep.mubr.msk.f32.mxu1 %vm1854_vm9, %v1841_v51  ;;  %v1734_v38 = vsel %vm1701_vm5, %v1697_v8, %v5290_v61 }
 0x29f   : > { %2922 = vmatmul.mubr.msk.f32.gmra.mxu1 %vm1854_vm9, %v1842_v50 }
 0x2a0   : > { %v1220_v37 = vpop.permute.xlu1 %1219  ;;  %v1218_v40 = vpop.permute.xlu0 %1217 }
 0x2a1   : > { %v1770_v49 = vsel %vm1738_vm6, %v1733_v25, %v1220_v37  ;;  %v1769_v6 = vsel %vm1738_vm6, %v1732_v44, %v1218_v40  ;;  %v1699_v44 = vsel %vm1664_vm4, %v1662_v5, %v5298_v52 }
 0x2a4   : > { %v1364_v59 = vpop.permute.xlu1 %1363  ;;  %v1362_v21 = vpop.permute.xlu0 %1361 }
 0x2a5   : > { %v1807_v36 = vsel %vm1775_vm7, %v1770_v49, %v1364_v59  ;;  %v1806_v55 = vsel %vm1775_vm7, %v1769_v6, %v1362_v21  ;;  %v5295_v59 = vld [vmem:[#allocation84_spill] sm:$0xff] }
 0x2a6   : > { %v1663_v21 = vsel %vm1627_vm3, %v1626_v2, %v5295_v59  ;;  %v5299_v49 = vld [vmem:[#allocation144_spill] sm:$0xff] }
 0x2a7   : > { %v1700_v25 = vsel %vm1664_vm4, %v1663_v21, %v5297_v11 }
 0x2a8   : > { %v1508_v4 = vpop.permute.xlu1 %1507  ;;  %v1506_v3 = vpop.permute.xlu0 %1505  ;;  %v1737_v6 = vsel %vm1701_vm5, %v1700_v25, %v5299_v49 }
 0x2a9   : > { %v1844_v29 = vsel %vm1812_vm8, %v1807_v36, %v1508_v4  ;;  %v1843_v43 = vsel %vm1812_vm8, %v1806_v55, %v1506_v3  ;;  %v5300_v36 = vld [vmem:[#allocation145_spill] sm:$0xff] }
 0x2aa   : > { %2924 = vmatprep.mubr.msk.f32.mxu1 %vm1854_vm9, %v1843_v43  ;;  %v1736_v55 = vsel %vm1701_vm5, %v1699_v44, %v5300_v36 }
 0x2ab   : > { %2925 = vmatmul.mubr.msk.f32.gmra.mxu1 %vm1854_vm9, %v1844_v29 }
 0x2ac   : > { %v1224_v14 = vpop.permute.xlu1 %1223  ;;  %v1222_v48 = vpop.permute.xlu0 %1221 }
 0x2ad   : > { %v1772_v13 = vsel %vm1738_vm6, %v1735_v24, %v1224_v14  ;;  %v1771_v20 = vsel %vm1738_vm6, %v1734_v38, %v1222_v48 }
 0x2b0   : > { %v1368_v33 = vpop.permute.xlu1 %1367  ;;  %v1366_v58 = vpop.permute.xlu0 %1365 }
 0x2b1   : > { %v1809_v50 = vsel %vm1775_vm7, %v1772_v13, %v1368_v33  ;;  %v1808_v51 = vsel %vm1775_vm7, %v1771_v20, %v1366_v58 }
 0x2b4   : > { %v1512_v45 = vpop.permute.xlu1 %1511  ;;  %v1510_v57 = vpop.permute.xlu0 %1509 }
 0x2b5   : > { %v1846_v37 = vsel %vm1812_vm8, %v1809_v50, %v1512_v45  ;;  %v1845_v40 = vsel %vm1812_vm8, %v1808_v51, %v1510_v57 }
 0x2b6   : > { %2927 = vmatprep.mubr.msk.f32.mxu1 %vm1854_vm9, %v1845_v40 }
 0x2b7   : > { %2928 = vmatmul.mubr.msk.f32.gmra.mxu1 %vm1854_vm9, %v1846_v37 }
 0x2b8   : > { %v1228_v39 = vpop.permute.xlu1 %1227  ;;  %v1226_v26 = vpop.permute.xlu0 %1225 }
 0x2b9   : > { %v1774_v4 = vsel %vm1738_vm6, %v1737_v6, %v1228_v39  ;;  %v1773_v3 = vsel %vm1738_vm6, %v1736_v55, %v1226_v26 }
 0x2bc   : > { %v1372_v16 = vpop.permute.xlu1 %1371  ;;  %v1370_v28 = vpop.permute.xlu0 %1369 }
 0x2bd   : > { %v1811_v29 = vsel %vm1775_vm7, %v1774_v4, %v1372_v16  ;;  %v1810_v43 = vsel %vm1775_vm7, %v1773_v3, %v1370_v28 }
 0x2c0   : > { %v1516_v10 = vpop.permute.xlu1 %1515  ;;  %v1514_v15 = vpop.permute.xlu0 %1513 }
 0x2c1   : > { %v1848_v14 = vsel %vm1812_vm8, %v1811_v29, %v1516_v10  ;;  %v1847_v48 = vsel %vm1812_vm8, %v1810_v43, %v1514_v15 }
 0x2c2   : > { %2930 = vmatprep.mubr.msk.f32.mxu1 %vm1854_vm9, %v1847_v48 }
 0x2c3   : > { %v2881_v62 = vpop.f32.mrf.mxu0  ;;  %2931 = vmatmul.mubr.msk.f32.gmra.mxu1 %vm1854_vm9, %v1848_v14 }
 0x2c4   : > { %2213 = vst.msk [vmem:[%s4836_s21 + $0x8] sm:$0xff] %vm1590_vm2, %v2881_v62 }
 0x2c5   : > { %v2033_v18 = vpop.f32.mrf.mxu0 }
 0x2c6   : > { %2212 = vst.msk [vmem:[%s4836_s21] sm:$0xff] %vm1590_vm2, %v2033_v18 }
 0x2cb   : > { %v2884_v41 = vpop.f32.mrf.mxu0 }
 0x2cc   : > { %2215 = vst.msk [vmem:[%s4836_s21 + $0x18] sm:$0xff] %vm1590_vm2, %v2884_v41 }
 0x2cd   : > { %v2043_v54 = vpop.f32.mrf.mxu0  ;;  %v2293_v35 = vpop.permute.xlu1 %2292 }
 0x2ce   : > { %2214 = vst.msk [vmem:[%s4836_s21 + $0x10] sm:$0xff] %vm1590_vm2, %v2043_v54  ;;  %v2466_v60 = vmul.f32 %v2881_v62, %v2293_v35  ;;  %v2288_v12 = vpop.permute.xlu0 %2287 }
 0x2cf   : > { %v2465_v56 = vmul.f32 %v2288_v12, %v2033_v18 }
 0x2d0   : > { %v2502_v31 = vsel %vm1590_vm2, %v2466_v60, 0.0  ;;  %v2579_v22 = vmul.f32 %v2881_v62, %v2466_v60 }
 0x2d1   : > { %v2501_v27 = vsel %vm1590_vm2, %v2465_v56, 0.0  ;;  %v2578_v30 = vmul.f32 %v2465_v56, %v2033_v18  ;;  %v2298_v33 = vpop.permute.xlu1 %2297 }
 0x2d2   : > { %v2615_v58 = vsel %vm1590_vm2, %v2579_v22, 0.0  ;;  %v2503_v23 = vadd.f32 %v2502_v31, %v2501_v27  ;;  %v2467_v32 = vmul.f32 %v2298_v33, %v2043_v54  ;;  %v2303_v47 = vpop.permute.xlu0 %2302 }
 0x2d3   : > { %v2614_v8 = vsel %vm1590_vm2, %v2578_v30, 0.0  ;;  %v2468_v9 = vmul.f32 %v2884_v41, %v2303_v47  ;;  %v2887_v24 = vpop.f32.mrf.mxu0 }
 0x2d4   : > { %v2616_v61 = vadd.f32 %v2615_v58, %v2614_v8  ;;  %v2504_v38 = vsel %vm1590_vm2, %v2467_v32, 0.0  ;;  %v2580_v13 = vmul.f32 %v2467_v32, %v2043_v54  ;;  %2217 = vst.msk [vmem:[%s4836_s21 + $0x28] sm:$0xff] %vm1590_vm2, %v2887_v24 }
 0x2d5   : > { %v2505_v20 = vadd.f32 %v2504_v38, %v2503_v23  ;;  %v2581_v50 = vmul.f32 %v2884_v41, %v2468_v9  ;;  %v2053_v51 = vpop.f32.mrf.mxu0  ;;  %v2308_v45 = vpop.permute.xlu1 %2307  ;;  %v2506_v37 = vsel %vm1590_vm2, %v2468_v9, 0.0 }
 0x2d6   : > { %v2617_v57 = vsel %vm1590_vm2, %v2580_v13, 0.0  ;;  %2216 = vst.msk [vmem:[%s4836_s21 + $0x20] sm:$0xff] %vm1590_vm2, %v2053_v51  ;;  %v2469_v40 = vmul.f32 %v2308_v45, %v2053_v51  ;;  %v2313_v0 = vpop.permute.xlu0 %2312 }
 0x2d7   : > { %v2618_v19 = vadd.f32 %v2617_v57, %v2616_v61  ;;  %v2507_v39 = vadd.f32 %v2506_v37, %v2505_v20  ;;  %v2470_v26 = vmul.f32 %v2887_v24, %v2313_v0  ;;  %v2619_v63 = vsel %vm1590_vm2, %v2581_v50, 0.0 }
 0x2d8   : > { %v2508_v34 = vsel %vm1590_vm2, %v2469_v40, 0.0  ;;  %v2582_v53 = vmul.f32 %v2469_v40, %v2053_v51 }
 0x2d9   : > { %v2620_v1 = vadd.f32 %v2619_v63, %v2618_v19  ;;  %v2509_v46 = vadd.f32 %v2508_v34, %v2507_v39  ;;  %v2583_v2 = vmul.f32 %v2887_v24, %v2470_v26  ;;  %v2510_v42 = vsel %vm1590_vm2, %v2470_v26, 0.0  ;;  %v2318_v28 = vpop.permute.xlu1 %2317 }
 0x2da   : > { %v2621_v17 = vsel %vm1590_vm2, %v2582_v53, 0.0  ;;  %v2323_v59 = vpop.permute.xlu0 %2322 }
 0x2db   : > { %v2622_v21 = vadd.f32 %v2621_v17, %v2620_v1  ;;  %v2511_v7 = vadd.f32 %v2510_v42, %v2509_v46  ;;  %v2623_v5 = vsel %vm1590_vm2, %v2583_v2, 0.0 }
 0x2dc   : > { %v2890_v16 = vpop.f32.mrf.mxu0 }
 0x2dd   : > { %v2624_v11 = vadd.f32 %v2623_v5, %v2622_v21  ;;  %2219 = vst.msk [vmem:[%s4836_s21 + $0x38] sm:$0xff] %vm1590_vm2, %v2890_v16  ;;  %v2472_v25 = vmul.f32 %v2890_v16, %v2323_v59 }
 0x2de   : > { %v2063_v52 = vpop.f32.mrf.mxu0  ;;  %v2333_v15 = vpop.permute.xlu0 %2332 }
 0x2df   : > { %2218 = vst.msk [vmem:[%s4836_s21 + $0x30] sm:$0xff] %vm1590_vm2, %v2063_v52  ;;  %v2471_v44 = vmul.f32 %v2318_v28, %v2063_v52  ;;  %v2585_v49 = vmul.f32 %v2890_v16, %v2472_v25  ;;  %v2514_v4 = vsel %vm1590_vm2, %v2472_v25, 0.0  ;;  %v2328_v62 = vpop.permute.xlu1 %2327 }
 0x2e1   : > { %v2512_v6 = vsel %vm1590_vm2, %v2471_v44, 0.0  ;;  %v2584_v36 = vmul.f32 %v2471_v44, %v2063_v52  ;;  %v2627_v10 = vsel %vm1590_vm2, %v2585_v49, 0.0 }
 0x2e2   : > { %v2513_v55 = vadd.f32 %v2512_v6, %v2511_v7  ;;  %v2343_v58 = vpop.permute.xlu0 %2342 }
 0x2e3   : > { %v2625_v3 = vsel %vm1590_vm2, %v2584_v36, 0.0  ;;  %v2338_v47 = vpop.permute.xlu1 %2337 }
 0x2e4   : > { %v2626_v29 = vadd.f32 %v2625_v3, %v2624_v11  ;;  %v2515_v43 = vadd.f32 %v2514_v4, %v2513_v55 }
 0x2e6   : > { %v2628_v14 = vadd.f32 %v2627_v10, %v2626_v29  ;;  %v2353_v40 = vpop.permute.xlu0 %2352 }
 0x2e7   : > { %v2348_v39 = vpop.permute.xlu1 %2347 }
 0x2e8   : > { %v2893_v48 = vpop.f32.mrf.mxu0 }
 0x2e9   : > { %2221 = vst.msk [vmem:[%s4836_s21 + $0x48] sm:$0xff] %vm1590_vm2, %v2893_v48  ;;  %v2474_v18 = vmul.f32 %v2893_v48, %v2333_v15 }
 0x2ea   : > { %v2073_v41 = vpop.f32.mrf.mxu0  ;;  %v2363_v5 = vpop.permute.xlu0 %2362 }
 0x2eb   : > { %2220 = vst.msk [vmem:[%s4836_s21 + $0x40] sm:$0xff] %vm1590_vm2, %v2073_v41  ;;  %v2473_v54 = vmul.f32 %v2328_v62, %v2073_v41  ;;  %v2587_v35 = vmul.f32 %v2893_v48, %v2474_v18  ;;  %v2518_v31 = vsel %vm1590_vm2, %v2474_v18, 0.0  ;;  %v2358_v11 = vpop.permute.xlu1 %2357 }
 0x2ed   : > { %v2516_v60 = vsel %vm1590_vm2, %v2473_v54, 0.0  ;;  %v2586_v12 = vmul.f32 %v2473_v54, %v2073_v41  ;;  %v2631_v33 = vsel %vm1590_vm2, %v2587_v35, 0.0 }
 0x2ee   : > { %v2517_v56 = vadd.f32 %v2516_v60, %v2515_v43  ;;  %v2373_v15 = vpop.permute.xlu0 %2372 }
 0x2ef   : > { %v2629_v22 = vsel %vm1590_vm2, %v2586_v12, 0.0  ;;  %v2368_v62 = vpop.permute.xlu1 %2367 }
 0x2f0   : > { %v2630_v27 = vadd.f32 %v2629_v22, %v2628_v14  ;;  %v2519_v30 = vadd.f32 %v2518_v31, %v2517_v56 }
 0x2f2   : > { %v2632_v23 = vadd.f32 %v2631_v33, %v2630_v27 }
 0x2f4   : > { %v2896_v32 = vpop.f32.mrf.mxu0 }
 0x2f5   : > { %2223 = vst.msk [vmem:[%s4836_s21 + $0x58] sm:$0xff] %vm1590_vm2, %v2896_v32  ;;  %v2476_v8 = vmul.f32 %v2896_v32, %v2343_v58  ;;  %v2383_v58 = vpop.permute.xlu0 %2382 }
 0x2f6   : > { %v2083_v9 = vpop.f32.mrf.mxu0 }
 0x2f7   : > { %2222 = vst.msk [vmem:[%s4836_s21 + $0x50] sm:$0xff] %vm1590_vm2, %v2083_v9  ;;  %v2475_v24 = vmul.f32 %v2338_v47, %v2083_v9  ;;  %v2589_v61 = vmul.f32 %v2896_v32, %v2476_v8  ;;  %v2522_v50 = vsel %vm1590_vm2, %v2476_v8, 0.0  ;;  %v2378_v8 = vpop.permute.xlu1 %2377 }
 0x2f9   : > { %v2520_v38 = vsel %vm1590_vm2, %v2475_v24, 0.0  ;;  %v2588_v13 = vmul.f32 %v2475_v24, %v2083_v9  ;;  %v2635_v37 = vsel %vm1590_vm2, %v2589_v61, 0.0 }
 0x2fa   : > { %v2521_v20 = vadd.f32 %v2520_v38, %v2519_v30 }
 0x2fb   : > { %v2633_v51 = vsel %vm1590_vm2, %v2588_v13, 0.0 }
 0x2fc   : > { %v2634_v45 = vadd.f32 %v2633_v51, %v2632_v23  ;;  %v2523_v57 = vadd.f32 %v2522_v50, %v2521_v20 }
 0x2fe   : > { %v2636_v0 = vadd.f32 %v2635_v37, %v2634_v45 }
 0x300   : > { %v2899_v19 = vpop.f32.mrf.mxu0 }
 0x301   : > { %2225 = vst.msk [vmem:[%s4836_s21 + $0x68] sm:$0xff] %vm1590_vm2, %v2899_v19  ;;  %v2478_v26 = vmul.f32 %v2899_v19, %v2353_v40 }
 0x302   : > { %v2093_v63 = vpop.f32.mrf.mxu0 }
 0x303   : > { %2224 = vst.msk [vmem:[%s4836_s21 + $0x60] sm:$0xff] %vm1590_vm2, %v2093_v63  ;;  %v2477_v34 = vmul.f32 %v2348_v39, %v2093_v63  ;;  %v2591_v53 = vmul.f32 %v2899_v19, %v2478_v26  ;;  %v2526_v17 = vsel %vm1590_vm2, %v2478_v26, 0.0 }
 0x305   : > { %v2524_v1 = vsel %vm1590_vm2, %v2477_v34, 0.0  ;;  %v2590_v46 = vmul.f32 %v2477_v34, %v2093_v63  ;;  %v2639_v7 = vsel %vm1590_vm2, %v2591_v53, 0.0 }
 0x306   : > { %v2525_v2 = vadd.f32 %v2524_v1, %v2523_v57  ;;  %v2388_v1 = vpop.permute.xlu1 %2387 }
 0x307   : > { %v2637_v42 = vsel %vm1590_vm2, %v2590_v46, 0.0 }
 0x308   : > { %v2638_v59 = vadd.f32 %v2637_v42, %v2636_v0  ;;  %v2527_v21 = vadd.f32 %v2526_v17, %v2525_v2  ;;  %v2393_v17 = vpop.permute.xlu0 %2392 }
 0x30a   : > { %v2640_v16 = vadd.f32 %v2639_v7, %v2638_v59  ;;  %v2398_v59 = vpop.permute.xlu1 %2397 }
 0x30c   : > { %v2902_v28 = vpop.f32.mrf.mxu0 }
 0x30d   : > { %2227 = vst.msk [vmem:[%s4836_s21 + $0x78] sm:$0xff] %vm1590_vm2, %v2902_v28  ;;  %v2480_v25 = vmul.f32 %v2902_v28, %v2363_v5 }
 0x30e   : > { %v2103_v52 = vpop.f32.mrf.mxu0 }
 0x30f   : > { %2226 = vst.msk [vmem:[%s4836_s21 + $0x70] sm:$0xff] %vm1590_vm2, %v2103_v52  ;;  %v2479_v44 = vmul.f32 %v2358_v11, %v2103_v52  ;;  %v2593_v49 = vmul.f32 %v2902_v28, %v2480_v25  ;;  %v2530_v4 = vsel %vm1590_vm2, %v2480_v25, 0.0  ;;  %v2403_v28 = vpop.permute.xlu0 %2402 }
 0x311   : > { %v2528_v6 = vsel %vm1590_vm2, %v2479_v44, 0.0  ;;  %v2592_v36 = vmul.f32 %v2479_v44, %v2103_v52  ;;  %v2643_v10 = vsel %vm1590_vm2, %v2593_v49, 0.0  ;;  %v2408_v49 = vpop.permute.xlu1 %2407 }
 0x312   : > { %v2529_v55 = vadd.f32 %v2528_v6, %v2527_v21 }
 0x313   : > { %v2641_v3 = vsel %vm1590_vm2, %v2592_v36, 0.0 }
 0x314   : > { %v2642_v29 = vadd.f32 %v2641_v3, %v2640_v16  ;;  %v2531_v43 = vadd.f32 %v2530_v4, %v2529_v55 }
 0x316   : > { %v2644_v14 = vadd.f32 %v2643_v10, %v2642_v29 }
 0x318   : > { %v2905_v48 = vpop.f32.mrf.mxu0 }
 0x319   : > { %2229 = vst.msk [vmem:[%s4836_s21 + $0x88] sm:$0xff] %vm1590_vm2, %v2905_v48  ;;  %v2482_v18 = vmul.f32 %v2905_v48, %v2373_v15 }
 0x31a   : > { %v2113_v41 = vpop.f32.mrf.mxu0 }
 0x31b   : > { %2228 = vst.msk [vmem:[%s4836_s21 + $0x80] sm:$0xff] %vm1590_vm2, %v2113_v41  ;;  %v2481_v54 = vmul.f32 %v2368_v62, %v2113_v41  ;;  %v2595_v35 = vmul.f32 %v2905_v48, %v2482_v18  ;;  %v2534_v31 = vsel %vm1590_vm2, %v2482_v18, 0.0 }
 0x31d   : > { %v2532_v60 = vsel %vm1590_vm2, %v2481_v54, 0.0  ;;  %v2594_v12 = vmul.f32 %v2481_v54, %v2113_v41  ;;  %v2647_v33 = vsel %vm1590_vm2, %v2595_v35, 0.0  ;;  %v2418_v54 = vpop.permute.xlu1 %2417 }
 0x31e   : > { %v2533_v56 = vadd.f32 %v2532_v60, %v2531_v43 }
 0x31f   : > { %v2645_v22 = vsel %vm1590_vm2, %v2594_v12, 0.0 }
 0x320   : > { %v2535_v27 = vadd.f32 %v2534_v31, %v2533_v56  ;;  %v2646_v30 = vadd.f32 %v2645_v22, %v2644_v14  ;;  %v2413_v14 = vpop.permute.xlu0 %2412 }
 0x322   : > { %v2648_v23 = vadd.f32 %v2647_v33, %v2646_v30 }
 0x323   : > { %v2908_v32 = vpop.f32.mrf.mxu1 }
 0x324   : > { %2231 = vst.msk [vmem:[%s4836_s21 + $0x98] sm:$0xff] %vm1590_vm2, %v2908_v32  ;;  %v2484_v47 = vmul.f32 %v2908_v32, %v2383_v58  ;;  %v2423_v33 = vpop.permute.xlu0 %2422 }
 0x325   : > { %v2123_v9 = vpop.f32.mrf.mxu1 }
 0x326   : > { %2230 = vst.msk [vmem:[%s4836_s21 + $0x90] sm:$0xff] %vm1590_vm2, %v2123_v9  ;;  %v2483_v24 = vmul.f32 %v2378_v8, %v2123_v9  ;;  %v2597_v61 = vmul.f32 %v2908_v32, %v2484_v47  ;;  %v2538_v50 = vsel %vm1590_vm2, %v2484_v47, 0.0 }
 0x328   : > { %v2536_v38 = vsel %vm1590_vm2, %v2483_v24, 0.0  ;;  %v2596_v13 = vmul.f32 %v2483_v24, %v2123_v9  ;;  %v2651_v37 = vsel %vm1590_vm2, %v2597_v61, 0.0  ;;  %v2428_v9 = vpop.permute.xlu1 %2427 }
 0x329   : > { %v2537_v20 = vadd.f32 %v2536_v38, %v2535_v27 }
 0x32a   : > { %v2649_v51 = vsel %vm1590_vm2, %v2596_v13, 0.0 }
 0x32b   : > { %v2650_v45 = vadd.f32 %v2649_v51, %v2648_v23  ;;  %v2539_v57 = vadd.f32 %v2538_v50, %v2537_v20 }
 0x32d   : > { %v2652_v40 = vadd.f32 %v2651_v37, %v2650_v45  ;;  %v2433_v37 = vpop.permute.xlu0 %2432 }
 0x32f   : > { %v2911_v0 = vpop.f32.mrf.mxu1 }
 0x330   : > { %2233 = vst.msk [vmem:[%s4836_s21 + $0xa8] sm:$0xff] %vm1590_vm2, %v2911_v0  ;;  %v2486_v21 = vmul.f32 %v2911_v0, %v2393_v17 }
 0x331   : > { %v2133_v19 = vpop.f32.mrf.mxu1 }
 0x332   : > { %2232 = vst.msk [vmem:[%s4836_s21 + $0xa0] sm:$0xff] %vm1590_vm2, %v2133_v19  ;;  %v2485_v2 = vmul.f32 %v2388_v1, %v2133_v19  ;;  %v2599_v52 = vmul.f32 %v2911_v0, %v2486_v21  ;;  %v2542_v55 = vsel %vm1590_vm2, %v2486_v21, 0.0  ;;  %v2443_v21 = vpop.permute.xlu0 %2442 }
 0x334   : > { %v2598_v42 = vmul.f32 %v2485_v2, %v2133_v19  ;;  %v2540_v7 = vsel %vm1590_vm2, %v2485_v2, 0.0  ;;  %v2655_v10 = vsel %vm1590_vm2, %v2599_v52, 0.0 }
 0x335   : > { %v2541_v11 = vadd.f32 %v2540_v7, %v2539_v57 }
 0x336   : > { %v2653_v16 = vsel %vm1590_vm2, %v2598_v42, 0.0 }
 0x337   : > { %v2654_v6 = vadd.f32 %v2653_v16, %v2652_v40  ;;  %v2543_v43 = vadd.f32 %v2542_v55, %v2541_v11 }
 0x339   : > { %v2656_v62 = vadd.f32 %v2655_v10, %v2654_v6 }
 0x33b   : > { %v2914_v39 = vpop.f32.mrf.mxu1 }
 0x33c   : > { %2235 = vst.msk [vmem:[%s4836_s21 + $0xb8] sm:$0xff] %vm1590_vm2, %v2914_v39  ;;  %v2488_v4 = vmul.f32 %v2914_v39, %v2403_v28 }
 0x33d   : > { %v2143_v26 = vpop.f32.mrf.mxu1 }
 0x33e   : > { %2234 = vst.msk [vmem:[%s4836_s21 + $0xb0] sm:$0xff] %vm1590_vm2, %v2143_v26  ;;  %v2487_v5 = vmul.f32 %v2398_v59, %v2143_v26  ;;  %v2601_v18 = vmul.f32 %v2914_v39, %v2488_v4  ;;  %v2546_v60 = vsel %vm1590_vm2, %v2488_v4, 0.0 }
 0x340   : > { %v2600_v44 = vmul.f32 %v2487_v5, %v2143_v26  ;;  %v2544_v3 = vsel %vm1590_vm2, %v2487_v5, 0.0  ;;  %v2659_v27 = vsel %vm1590_vm2, %v2601_v18, 0.0  ;;  %v2438_v26 = vpop.permute.xlu1 %2437 }
 0x341   : > { %v2545_v48 = vadd.f32 %v2544_v3, %v2543_v43 }
 0x342   : > { %v2657_v15 = vsel %vm1590_vm2, %v2600_v44, 0.0 }
 0x343   : > { %v2658_v35 = vadd.f32 %v2657_v15, %v2656_v62  ;;  %v2547_v22 = vadd.f32 %v2546_v60, %v2545_v48 }
 0x344   : > { %v2448_v11 = vpop.permute.xlu1 %2447 }
 0x345   : > { %v2660_v23 = vadd.f32 %v2659_v27, %v2658_v35 }
 0x347   : > { %v2917_v63 = vpop.f32.mrf.mxu1 }
 0x348   : > { %2237 = vst.msk [vmem:[%s4836_s21 + $0xc8] sm:$0xff] %vm1590_vm2, %v2917_v63  ;;  %v2490_v12 = vmul.f32 %v2917_v63, %v2413_v14 }
 0x349   : > { %v2153_v34 = vpop.f32.mrf.mxu1 }
 0x34a   : > { %2236 = vst.msk [vmem:[%s4836_s21 + $0xc0] sm:$0xff] %vm1590_vm2, %v2153_v34  ;;  %v2489_v29 = vmul.f32 %v2408_v49, %v2153_v34  ;;  %v2603_v47 = vmul.f32 %v2917_v63, %v2490_v12  ;;  %v2550_v38 = vsel %vm1590_vm2, %v2490_v12, 0.0 }
 0x34c   : > { %v2602_v41 = vmul.f32 %v2489_v29, %v2153_v34  ;;  %v2548_v56 = vsel %vm1590_vm2, %v2489_v29, 0.0  ;;  %v2663_v45 = vsel %vm1590_vm2, %v2603_v47, 0.0 }
 0x34d   : > { %v2549_v58 = vadd.f32 %v2548_v56, %v2547_v22 }
 0x34e   : > { %v2661_v30 = vsel %vm1590_vm2, %v2602_v41, 0.0 }
 0x34f   : > { %v2662_v24 = vadd.f32 %v2661_v30, %v2660_v23  ;;  %v2551_v51 = vadd.f32 %v2550_v38, %v2549_v58 }
 0x351   : > { %v2664_v0 = vadd.f32 %v2663_v45, %v2662_v24 }
 0x353   : > { %v4932_v53 = vpop.f32.mrf.mxu1 }
 0x354   : > { %2239 = vst.msk [vmem:[%s4836_s21 + $0xd8] sm:$0xff] %vm1590_vm2, %v4932_v53  ;;  %v2492_v13 = vmul.f32 %v4932_v53, %v2423_v33  ;;  %v2458_v33 = vpop.permute.xlu1 %2457 }
 0x355   : > { %v2163_v46 = vpop.f32.mrf.mxu1 }
 0x356   : > { %2238 = vst.msk [vmem:[%s4836_s21 + $0xd0] sm:$0xff] %vm1590_vm2, %v2163_v46  ;;  %v2491_v31 = vmul.f32 %v2418_v54, %v2163_v46  ;;  %v2605_v19 = vmul.f32 %v4932_v53, %v2492_v13  ;;  %v2554_v34 = vsel %vm1590_vm2, %v2492_v13, 0.0 }
 0x358   : > { %v2604_v8 = vmul.f32 %v2491_v31, %v2163_v46  ;;  %v2552_v20 = vsel %vm1590_vm2, %v2491_v31, 0.0  ;;  %v2667_v42 = vsel %vm1590_vm2, %v2605_v19, 0.0 }
 0x359   : > { %v2553_v40 = vadd.f32 %v2552_v20, %v2551_v51 }
 0x35a   : > { %v2665_v57 = vsel %vm1590_vm2, %v2604_v8, 0.0 }
 0x35b   : > { %v2666_v63 = vadd.f32 %v2665_v57, %v2664_v0  ;;  %v2555_v17 = vadd.f32 %v2554_v34, %v2553_v40 }
 0x35d   : > { %v2668_v53 = vadd.f32 %v2667_v42, %v2666_v63 }
 0x35f   : > { %v4941_v25 = vpop.f32.mrf.mxu1 }
 0x360   : > { %2241 = vst.msk [vmem:[%s4836_s21 + $0xe8] sm:$0xff] %vm1590_vm2, %v4941_v25  ;;  %v2494_v1 = vmul.f32 %v4941_v25, %v2433_v37 }
 0x361   : > { %v2173_v36 = vpop.f32.mrf.mxu1 }
 0x362   : > { %2240 = vst.msk [vmem:[%s4836_s21 + $0xe0] sm:$0xff] %vm1590_vm2, %v2173_v36  ;;  %v2493_v50 = vmul.f32 %v2428_v9, %v2173_v36  ;;  %v2607_v16 = vmul.f32 %v4941_v25, %v2494_v1  ;;  %v2558_v49 = vsel %vm1590_vm2, %v2494_v1, 0.0  ;;  %v2453_v25 = vpop.permute.xlu0 %2452 }
 0x364   : > { %v2606_v39 = vmul.f32 %v2493_v50, %v2173_v36  ;;  %v2556_v46 = vsel %vm1590_vm2, %v2493_v50, 0.0  ;;  %v2671_v3 = vsel %vm1590_vm2, %v2607_v16, 0.0 }
 0x365   : > { %v2557_v7 = vadd.f32 %v2556_v46, %v2555_v17 }
 0x366   : > { %v2669_v59 = vsel %vm1590_vm2, %v2606_v39, 0.0  ;;  %v2463_v12 = vpop.permute.xlu0 %2462 }
 0x367   : > { %v2670_v52 = vadd.f32 %v2669_v59, %v2668_v53  ;;  %v2559_v4 = vadd.f32 %v2558_v49, %v2557_v7 }
 0x369   : > { %v2672_v10 = vadd.f32 %v2671_v3, %v2670_v52 }
 0x36b   : > { %v2926_v32 = vpop.f32.mrf.mxu1 }
 0x36c   : > { %2243 = vst.msk [vmem:[%s4836_s21 + $0xf8] sm:$0xff] %vm1590_vm2, %v2926_v32  ;;  %v2496_v6 = vmul.f32 %v2926_v32, %v2443_v21 }
 0x36d   : > { %v2183_v61 = vpop.f32.mrf.mxu1 }
 0x36e   : > { %2242 = vst.msk [vmem:[%s4836_s21 + $0xf0] sm:$0xff] %vm1590_vm2, %v2183_v61  ;;  %v2495_v2 = vmul.f32 %v2438_v26, %v2183_v61  ;;  %v2609_v15 = vmul.f32 %v2926_v32, %v2496_v6  ;;  %v2562_v62 = vsel %vm1590_vm2, %v2496_v6, 0.0 }
 0x370   : > { %v2608_v28 = vmul.f32 %v2495_v2, %v2183_v61  ;;  %v2560_v36 = vsel %vm1590_vm2, %v2495_v2, 0.0  ;;  %v2675_v35 = vsel %vm1590_vm2, %v2609_v15, 0.0 }
 0x371   : > { %v2561_v43 = vadd.f32 %v2560_v36, %v2559_v4 }
 0x372   : > { %v2673_v29 = vsel %vm1590_vm2, %v2608_v28, 0.0 }
 0x373   : > { %v2674_v48 = vadd.f32 %v2673_v29, %v2672_v10  ;;  %v2563_v54 = vadd.f32 %v2562_v62, %v2561_v43 }
 0x375   : > { %v2676_v31 = vadd.f32 %v2675_v35, %v2674_v48 }
 0x377   : > { %v2929_v5 = vpop.f32.mrf.mxu1 }
 0x378   : > { %2245 = vst.msk [vmem:[%s4836_s21 + $0x108] sm:$0xff] %vm1590_vm2, %v2929_v5  ;;  %v2498_v18 = vmul.f32 %v2929_v5, %v2453_v25 }
 0x379   : > { %v2193_v44 = vpop.f32.mrf.mxu1 }
 0x37a   : > { %2244 = vst.msk [vmem:[%s4836_s21 + $0x100] sm:$0xff] %vm1590_vm2, %v2193_v44  ;;  %v2497_v55 = vmul.f32 %v2448_v11, %v2193_v44  ;;  %v2611_v27 = vmul.f32 %v2929_v5, %v2498_v18  ;;  %v2566_v32 = vsel %vm1590_vm2, %v2498_v18, 0.0 }
 0x37c   : > { %v2610_v14 = vmul.f32 %v2497_v55, %v2193_v44  ;;  %v2564_v41 = vsel %vm1590_vm2, %v2497_v55, 0.0  ;;  %v2679_v9 = vsel %vm1590_vm2, %v2611_v27, 0.0 }
 0x37d   : > { %v2565_v56 = vadd.f32 %v2564_v41, %v2563_v54 }
 0x37e   : > { %v2677_v60 = vsel %vm1590_vm2, %v2610_v14, 0.0 }
 0x37f   : > { %v2678_v58 = vadd.f32 %v2677_v60, %v2676_v31  ;;  %v2567_v8 = vadd.f32 %v2566_v32, %v2565_v56 }
 0x381   : > { %v2680_v20 = vadd.f32 %v2679_v9, %v2678_v58 }
 0x383   : > { %v2932_v22 = vpop.f32.mrf.mxu1 }
 0x384   : > { %2248 = vst.msk [vmem:[%s4836_s21 + $0x118] sm:$0x3f] %vm2247_vm10, %v2932_v22  ;;  %v2500_v30 = vmul.f32 %v2932_v22, %v2463_v12 }
 0x385   : > { %v2203_v23 = vpop.f32.mrf.mxu1 }
 0x386   : > { %2246 = vst.msk [vmem:[%s4836_s21 + $0x110] sm:$0xff] %vm1590_vm2, %v2203_v23  ;;  %v2499_v47 = vmul.f32 %v2458_v33, %v2203_v23  ;;  %v2613_v24 = vmul.f32 %v2932_v22, %v2500_v30  ;;  %v2570_v50 = vsel %vm2247_vm10, %v2500_v30, 0.0 }
 0x388   : > { %v2568_v61 = vsel %vm1590_vm2, %v2499_v47, 0.0  ;;  %v2612_v38 = vmul.f32 %v2499_v47, %v2203_v23  ;;  %v2683_v37 = vsel %vm2247_vm10, %v2613_v24, 0.0 }
 0x389   : > { %v2569_v13 = vadd.f32 %v2568_v61, %v2567_v8 }
 0x38a   : > { %v2681_v51 = vsel %vm1590_vm2, %v2612_v38, 0.0 }
 0x38b   : > { %v2571_v45 = vadd.f32 %v2570_v50, %v2569_v13  ;;  %v2682_v57 = vadd.f32 %v2681_v51, %v2680_v20 }
 0x38d   : > { %v2572_v40 = vrot.slane %v2571_v45, 4  ;;  %v2684_v0 = vadd.f32 %v2683_v37, %v2682_v57 }
 0x38f   : > { %v2573_v19 = vadd.f32 %v2572_v40, %v2571_v45  ;;  %v2685_v39 = vrot.slane %v2684_v0, 4 }
 0x391   : > { %v2574_v26 = vrot.slane %v2573_v19, 2  ;;  %v2686_v63 = vadd.f32 %v2685_v39, %v2684_v0 }
 0x393   : > { %v2575_v34 = vadd.f32 %v2574_v26, %v2573_v19  ;;  %v2687_v1 = vrot.slane %v2686_v63, 2 }
 0x395   : > { %v2576_v46 = vrot.slane %v2575_v34, 1  ;;  %v2688_v2 = vadd.f32 %v2687_v1, %v2686_v63 }
 0x397   : > { %v2689_v17 = vrot.slane %v2688_v2, 1  ;;  %v2577_v42 = vadd.f32 %v2576_v46, %v2575_v34 }
 0x399   : > { %v2690_v59 = vadd.f32 %v2689_v17, %v2688_v2 }
 0x39b   : > { %v2692_v21 = vsel %vm2691_vm11, %v2577_v42, %v2690_v59 }
 0x39c   : > { %2694 = vst.msk [vmem:[%s208_s25] sm:$0x3] %vm2693_vm12, %v2692_v21 }
 0x39d PF: > { %s15_s15 = sadd.s32 1, %s2970_s15  }
 0x39e   : > { %p12_p4 = scmp.ge.s32.totalorder %s15_s15, 4  }
 0x3a0   :  { %14 = sbr.rel (!%p12_p4) target bundleno = 1 (0x1), region = 74 }

// kernel: encoder_block_forward.4
= control target key start
LH: loop header
LB: loop body
LE: loop exit
PB: predicated region body
PF: predicated region fallthrough
CT: control target
= control target key end

     0   :  { %s3329_s21 = smov 0   ;;  %s5044_s0 = inlined_call_operand.vmem [shape: f32[2,286,8], index: 0, kind: input, shape index: {}]   ;;  %s5045_s1 = inlined_call_operand.vmem [shape: f32[1,8], index: 1, kind: input, shape index: {}]   ;;  %s5046_s2 = inlined_call_operand.vmem [shape: f32[1,8], index: 2, kind: input, shape index: {}]   ;;  %s5047_s3 = inlined_call_operand.vmem [shape: f32[72,8], index: 3, kind: input, shape index: {}]   ;;  %s5048_s4 = inlined_call_operand.vmem [shape: f32[286,1], index: 4, kind: input, shape index: {}]   ;;  %s5049_s5 = inlined_call_operand.vmem [shape: f32[2,286,8], index: 5, kind: output, shape index: {0}]   ;;  %s5050_s6 = inlined_call_operand.vmem [shape: f32[2,2,8], index: 6, kind: output, shape index: {1}]  }
   0x1 LB: > { %s3072_s22 = sadd.s32 4294967295, %s3282_s21   ;;  %p3076_p0 = scmp.ge.s32.totalorder %s3282_s21, 1  ;;  %s3282_s21 = sphi %s3329_s21, %s17_s21  }
   0x2   : > { %p215_p1 = scmp.lt.s32.totalorder %s3282_s21, 3 }
   0x4   : > { %p216_p2 = pnand %p3076_p0, %p215_p1 }
   0x6   : > { %219 = sbr.rel (%p216_p2) target bundleno = 1053 (0x41d), region = 40 }
   0xb   : > { %v265_v0 = vld [vmem:[%s5048_s4 + $0x10] sm:$0xff]  ;;  %v263_v1 = vld [vmem:[%s5048_s4] sm:$0xff]  ;;  %vm673_vm0 = vcmask 64512   ;;  %v3284_v2 = vmov 0   ;;  %vm676_vm1 = vcmask 59392   ;;  %v3285_v3 = vmov 0.0  }
   0xc   : > { %3275 = vset.pattern.permute.xlu1 %v3284_v2  ;;  %3274 = vset.pattern.permute.xlu0 %v3284_v2  ;;  %674 = vst.msk [vmem:[#allocation2] sm:$0xff] %vm673_vm0, %v3285_v3  ;;  %675 = vst.msk [vmem:[#allocation2 + $0x8] sm:$0xff] %vm673_vm0, %v3285_v3  ;;  %v266_v4 = vld [vmem:[%s5048_s4 + $0x18] sm:$0xff]  ;;  %v264_v5 = vld [vmem:[%s5048_s4 + $0x8] sm:$0xff]  ;;  %p249_p3 = scmp.lt.s32.totalorder %s3072_s22, 1  ;;  %s3286_s14 = smov 8  }
   0xd   : > { %469 = vperm.xlu1 %3275, %v265_v0   ;;  %459 = vperm.xlu0 %3274, %v263_v1   ;;  %715 = vst.msk [vmem:[#allocation2 + $0x131] sm:$0xff] %vm673_vm0, %v3285_v3  ;;  %716 = vst.msk [vmem:[#allocation2 + $0x139] sm:$0xff] %vm673_vm0, %v3285_v3  ;;  %v268_v6 = vld [vmem:[%s5048_s4 + $0x28] sm:$0xff]  ;;  %v267_v7 = vld [vmem:[%s5048_s4 + $0x20] sm:$0xff]  ;;  %vm713_vm2 = vcmask 62464   ;;  %s3287_s15 = smov 16  }
   0xe   : > { %677 = vst.msk [vmem:[#allocation2 + $0x10] sm:$0x7] %vm676_vm1, %v3285_v3  ;;  %717 = vst.msk [vmem:[#allocation2 + $0x141] sm:$0x7] %vm676_vm1, %v3285_v3  ;;  %v270_v8 = vld [vmem:[%s5048_s4 + $0x38] sm:$0xff]  ;;  %v269_v9 = vld [vmem:[%s5048_s4 + $0x30] sm:$0xff] }
   0xf   : > { %v272_v10 = vld [vmem:[%s5048_s4 + $0x48] sm:$0xff]  ;;  %v271_v11 = vld [vmem:[%s5048_s4 + $0x40] sm:$0xff]  ;;  %v274_v12 = vld [vmem:[%s5048_s4 + $0x58] sm:$0xff]  ;;  %s5290_s22 = smov (!%p249_p3, %s3072_s22), 1  ;;  %s3288_s16 = smov 24   ;;  %vm2098_vm3 = vcmask 130048  }
  0x10   : > { %v273_v13 = vld [vmem:[%s5048_s4 + $0x50] sm:$0xff]  ;;  %v276_v14 = vld [vmem:[%s5048_s4 + $0x68] sm:$0xff]  ;;  %v275_v15 = vld [vmem:[%s5048_s4 + $0x60] sm:$0xff]  ;;  %s3255_s7 = smul.u32 288, %s5290_s22  ;;  %s3289_s23 = smov 32   ;;  %vm2135_vm4 = vcmask 195584  }
  0x11   : > { %474 = vperm.xlu1 %3275, %v266_v4   ;;  %464 = vperm.xlu0 %3274, %v264_v5   ;;  %v278_v16 = vld [vmem:[%s5048_s4 + $0x78] sm:$0xff]  ;;  %v277_v17 = vld [vmem:[%s5048_s4 + $0x70] sm:$0xff]  ;;  %v280_v18 = vld [vmem:[%s5048_s4 + $0x88] sm:$0xff]  ;;  %s3290_s11 = smov 40   ;;  %s3292_s17 = smov 56   ;;  %vm2172_vm5 = vcmask 261120  }
  0x12   : > { %v279_v19 = vld [vmem:[%s5048_s4 + $0x80] sm:$0xff]  ;;  %v282_v20 = vld [vmem:[%s5048_s4 + $0x98] sm:$0xff]  ;;  %v281_v21 = vld [vmem:[%s5048_s4 + $0x90] sm:$0xff]  ;;  %s3443_s18 = scalar_lea.vmem %s5044_s0, %s3255_s7  ;;  %vm2209_vm6 = vcmask 326656   ;;  %vm2246_vm7 = vcmask 392192   ;;  %vm2283_vm8 = vcmask 457728   ;;  %s4666_s24 = scalar_lea.vmem %s5049_s5, %s3255_s7 }
  0x13   : > { %v284_v22 = vld [vmem:[%s5048_s4 + $0xa8] sm:$0xff]  ;;  %v283_v23 = vld [vmem:[%s5048_s4 + $0xa0] sm:$0xff]  ;;  %v286_v24 = vld [vmem:[%s5048_s4 + $0xb8] sm:$0xff]  ;;  %vm2320_vm9 = vcmask 523264   ;;  %vm2366_vm10 = vcmask 588800   ;;  %s3079_s7 = sshll.u32 %s5290_s22, 1 }
  0x14   : > { %v285_v25 = vld [vmem:[%s5048_s4 + $0xb0] sm:$0xff]  ;;  %v288_v26 = vld [vmem:[%s5048_s4 + $0xc8] sm:$0xff]  ;;  %v287_v27 = vld [vmem:[%s5048_s4 + $0xc0] sm:$0xff]  ;;  %vm2982_vm11 = vcmask 1040384   ;;  %s262_s26 = scalar_lea.vmem %s5050_s6, %s3079_s7  ;;  %vm2984_vm12 = vcmask 58368  }
  0x15   : > { %484 = vperm.xlu1 %3275, %v268_v6   ;;  %479 = vperm.xlu0 %3274, %v267_v7   ;;  %v290_v28 = vld [vmem:[%s5048_s4 + $0xd8] sm:$0xff]  ;;  %v289_v29 = vld [vmem:[%s5048_s4 + $0xd0] sm:$0xff]  ;;  %v292_v30 = vld [vmem:[%s5048_s4 + $0xe8] sm:$0xff] }
  0x16   : > { %v291_v31 = vld [vmem:[%s5048_s4 + $0xe0] sm:$0xff]  ;;  %v332_v33 = vld [vmem:[%s3443_s18 + $0x108] sm:$0xff]  ;;  %v294_v38 = vld [vmem:[%s5048_s4 + $0xf8] sm:$0xff] }
  0x17   : > { %v3448_v32 = vld [vmem:[%s5045_s1] ss:$0 sm:$0xff]  ;;  %v293_v41 = vld [vmem:[%s5048_s4 + $0xf0] sm:$0xff]  ;;  %v334_v42 = vld [vmem:[%s3443_s18 + $0x118] sm:$0x3f] }
  0x18   : > { %v331_v34 = vld [vmem:[%s3443_s18 + $0x100] sm:$0xff]  ;;  %v375_v35 = vmul.f32 %v3448_v32, %v332_v33  ;;  %v333_v43 = vld [vmem:[%s3443_s18 + $0x110] sm:$0xff]  ;;  %v377_v44 = vmul.f32 %v3448_v32, %v334_v42  ;;  %v296_v48 = vld [vmem:[%s5048_s4 + $0x108] sm:$0xff] }
  0x19   : > { %494 = vperm.xlu1 %3275, %v270_v8   ;;  %489 = vperm.xlu0 %3274, %v269_v9   ;;  %v374_v36 = vmul.f32 %v3448_v32, %v331_v34  ;;  %v3457_v37 = vld [vmem:[%s5046_s2] ss:$0 sm:$0xff]  ;;  %v376_v45 = vmul.f32 %v3448_v32, %v333_v43  ;;  %v298_v50 = vld [vmem:[%s5048_s4 + $0x118] sm:$0x3f]  ;;  %v297_v51 = vld [vmem:[%s5048_s4 + $0x110] sm:$0xff] }
  0x1a   : > { %v3463_v39 = vadd.f32 %v3457_v37, %v375_v35  ;;  %v3476_v46 = vadd.f32 %v3457_v37, %v377_v44  ;;  %v295_v49 = vld [vmem:[%s5048_s4 + $0x100] sm:$0xff]  ;;  %v755_v53 = vld [vmem:[#allocation2 + $0x9] sm:$0xff]  ;;  %v302_v58 = vld [vmem:[%s3443_s18 + $0x18] sm:$0xff] }
  0x1b   : > { %v3466_v40 = vadd.f32 %v3457_v37, %v374_v36  ;;  %v3479_v47 = vadd.f32 %v3457_v37, %v376_v45  ;;  %v754_v52 = vld [vmem:[#allocation2 + $0x1] sm:$0xff]  ;;  %v301_v54 = vld [vmem:[%s3443_s18 + $0x10] sm:$0xff]  ;;  %v345_v62 = vmul.f32 %v3448_v32, %v302_v58  ;;  %v306_v8 = vld [vmem:[%s3443_s18 + $0x38] sm:$0xff] }
  0x1c   : > { %v299_v55 = vld [vmem:[%s3443_s18] sm:$0xff]  ;;  %v344_v56 = vmul.f32 %v3448_v32, %v301_v54  ;;  %v300_v59 = vld [vmem:[%s3443_s18 + $0x8] sm:$0xff]  ;;  %v305_v9 = vld [vmem:[%s3443_s18 + $0x30] sm:$0xff] }
  0x1d   : > { %504 = vperm.xlu1 %3275, %v272_v10   ;;  %499 = vperm.xlu0 %3274, %v271_v11   ;;  %v342_v57 = vmul.f32 %v3448_v32, %v299_v55  ;;  %v343_v63 = vmul.f32 %v3448_v32, %v300_v59  ;;  %v304_v0 = vld [vmem:[%s3443_s18 + $0x28] sm:$0xff]  ;;  %v303_v1 = vld [vmem:[%s3443_s18 + $0x20] sm:$0xff]  ;;  %v388_v6 = vadd.f32 %v3457_v37, %v345_v62  ;;  %v310_v33 = vld [vmem:[%s3443_s18 + $0x58] sm:$0xff] }
  0x1e   : > { %v387_v60 = vadd.f32 %v3457_v37, %v344_v56  ;;  %v347_v2 = vmul.f32 %v3448_v32, %v304_v0  ;;  %v346_v3 = vmul.f32 %v3448_v32, %v303_v1  ;;  %v309_v34 = vld [vmem:[%s3443_s18 + $0x50] sm:$0xff]  ;;  %v353_v42 = vmul.f32 %v3448_v32, %v310_v33 }
  0x1f   : > { %v385_v61 = vadd.f32 %v3457_v37, %v342_v57  ;;  %v386_v7 = vadd.f32 %v3457_v37, %v343_v63  ;;  %v352_v43 = vmul.f32 %v3448_v32, %v309_v34  ;;  %v314_v63 = vld [vmem:[%s3443_s18 + $0x78] sm:$0xff]  ;;  %v313_v0 = vld [vmem:[%s3443_s18 + $0x70] sm:$0xff] }
  0x20   : > { %v423_v4 = vmax.f32 %v387_v60, 0.0  ;;  %v396_v55 = vadd.f32 %v3457_v37, %v353_v42 }
  0x21   : > { %514 = vperm.xlu1 %3275, %v274_v12   ;;  %509 = vperm.xlu0 %3274, %v273_v13   ;;  %v421_v5 = vmax.f32 %v385_v61, 0.0  ;;  %v390_v12 = vadd.f32 %v3457_v37, %v347_v2  ;;  %v389_v13 = vadd.f32 %v3457_v37, %v346_v3  ;;  %v395_v56 = vadd.f32 %v3457_v37, %v352_v43 }
  0x25   : > { %524 = vperm.xlu1 %3275, %v276_v14   ;;  %519 = vperm.xlu0 %3274, %v275_v15   ;;  %v349_v14 = vmul.f32 %v3448_v32, %v306_v8  ;;  %v348_v15 = vmul.f32 %v3448_v32, %v305_v9  ;;  %v356_v8 = vmul.f32 %v3448_v32, %v313_v0 }
  0x29   : > { %534 = vperm.xlu1 %3275, %v278_v16   ;;  %529 = vperm.xlu0 %3274, %v277_v17  }
  0x2d   : > { %544 = vperm.xlu1 %3275, %v280_v18   ;;  %539 = vperm.xlu0 %3274, %v279_v19   ;;  %v424_v18 = vmax.f32 %v388_v6, 0.0  ;;  %v422_v19 = vmax.f32 %v386_v7, 0.0  ;;  %v357_v7 = vmul.f32 %v3448_v32, %v314_v63 }
  0x31   : > { %554 = vperm.xlu1 %3275, %v282_v20   ;;  %549 = vperm.xlu0 %3274, %v281_v21   ;;  %v308_v20 = vld [vmem:[%s3443_s18 + $0x48] sm:$0xff]  ;;  %v307_v21 = vld [vmem:[%s3443_s18 + $0x40] sm:$0xff] }
  0x35   : > { %564 = vperm.xlu1 %3275, %v284_v22   ;;  %559 = vperm.xlu0 %3274, %v283_v23  }
  0x39   : > { %574 = vperm.xlu1 %3275, %v286_v24   ;;  %569 = vperm.xlu0 %3274, %v285_v25   ;;  %v426_v24 = vmax.f32 %v390_v12, 0.0  ;;  %v425_v25 = vmax.f32 %v389_v13, 0.0  ;;  %v432_v13 = vmax.f32 %v396_v55, 0.0  ;;  %v320_v55 = vld [vmem:[%s3443_s18 + $0xa8] sm:$0xff] }
  0x3a   : > { %v363_v63 = vmul.f32 %v3448_v32, %v320_v55 }
  0x3d   : > { %584 = vperm.xlu1 %3275, %v288_v26   ;;  %579 = vperm.xlu0 %3274, %v287_v27   ;;  %v392_v26 = vadd.f32 %v3457_v37, %v349_v14  ;;  %v391_v27 = vadd.f32 %v3457_v37, %v348_v15  ;;  %v431_v14 = vmax.f32 %v395_v56, 0.0  ;;  %v316_v15 = vld [vmem:[%s3443_s18 + $0x88] sm:$0xff]  ;;  %v319_v56 = vld [vmem:[%s3443_s18 + $0xa0] sm:$0xff] }
  0x3e   : > { %v362_v0 = vmul.f32 %v3448_v32, %v319_v56 }
  0x41   : > { %594 = vperm.xlu1 %3275, %v290_v28   ;;  %589 = vperm.xlu0 %3274, %v289_v29  }
  0x45   : > { %604 = vperm.xlu1 %3275, %v292_v30   ;;  %599 = vperm.xlu0 %3274, %v291_v31   ;;  %v351_v30 = vmul.f32 %v3448_v32, %v308_v20  ;;  %v350_v31 = vmul.f32 %v3448_v32, %v307_v21  ;;  %v400_v21 = vadd.f32 %v3457_v37, %v357_v7  ;;  %v322_v7 = vld [vmem:[%s3443_s18 + $0xb8] sm:$0xff] }
  0x47   : > { %v436_v43 = vmax.f32 %v400_v21, 0.0 }
  0x49   : > { %614 = vperm.xlu1 %3275, %v294_v38   ;;  %609 = vperm.xlu0 %3274, %v293_v41   ;;  %v428_v38 = vmax.f32 %v392_v26, 0.0  ;;  %v427_v41 = vmax.f32 %v391_v27, 0.0 }
  0x4d   : > { %624 = vperm.xlu1 %3275, %v296_v48   ;;  %619 = vperm.xlu0 %3274, %v295_v49   ;;  %v394_v48 = vadd.f32 %v3457_v37, %v351_v30  ;;  %v393_v49 = vadd.f32 %v3457_v37, %v350_v31  ;;  %v318_v31 = vld [vmem:[%s3443_s18 + $0x98] sm:$0xff] }
  0x4f   : > { %v430_v61 = vmax.f32 %v394_v48, 0.0  ;;  %v429_v62 = vmax.f32 %v393_v49, 0.0 }
  0x51   : > { %634 = vperm.xlu1 %3275, %v298_v50   ;;  %629 = vperm.xlu0 %3274, %v297_v51   ;;  %v312_v50 = vld [vmem:[%s3443_s18 + $0x68] sm:$0xff]  ;;  %v311_v51 = vld [vmem:[%s3443_s18 + $0x60] sm:$0xff] }
  0x52   : > { %v355_v57 = vmul.f32 %v3448_v32, %v312_v50  ;;  %v354_v58 = vmul.f32 %v3448_v32, %v311_v51  ;;  %v361_v51 = vmul.f32 %v3448_v32, %v318_v31 }
  0x54   : > { %v397_v6 = vadd.f32 %v3457_v37, %v354_v58 }
  0x55   : > { %1012 = vrot.lane.b32.xlu0 %v754_v52, %s3286_s14  ;;  %1014 = vrot.lane.b32.xlu1 %v755_v53, %s3286_s14 }
  0x56   : > { %v433_v30 = vmax.f32 %v397_v6, 0.0 }
  0x88   : > { %v3513_v10 = vpop.permute.xlu1 %469  ;;  %v3515_v11 = vpop.permute.xlu0 %459 }
  0x89   : > { %5087 = vst [vmem:[#allocation3_spill] sm:$0xff] %v3513_v10  ;;  %5088 = vst [vmem:[#allocation4_spill] sm:$0xff] %v3515_v11  ;;  %v639_v16 = vmul.f32 %v3513_v10, %v423_v4  ;;  %v637_v17 = vmul.f32 %v3515_v11, %v421_v5  ;;  %v398_v5 = vadd.f32 %v3457_v37, %v355_v57 }
  0x8b   : > { %680 = vst.msk [vmem:[#allocation2 + $0x23] sm:$0xff] %vm673_vm0, %v639_v16  ;;  %678 = vst.msk [vmem:[#allocation2 + $0x13] sm:$0xff] %vm673_vm0, %v637_v17  ;;  %v315_v16 = vld [vmem:[%s3443_s18 + $0x80] sm:$0xff] }
  0x8c   : > { %v3527_v22 = vpop.permute.xlu1 %474  ;;  %v3529_v23 = vpop.permute.xlu0 %464  ;;  %v358_v26 = vmul.f32 %v3448_v32, %v315_v16  ;;  %v405_v16 = vadd.f32 %v3457_v37, %v362_v0 }
  0x8d   : > { %5089 = vst [vmem:[#allocation5_spill] sm:$0xff] %v3527_v22  ;;  %5090 = vst [vmem:[#allocation6_spill] sm:$0xff] %v3529_v23  ;;  %v640_v28 = vmul.f32 %v3527_v22, %v424_v18  ;;  %v638_v29 = vmul.f32 %v3529_v23, %v422_v19 }
  0x8e   : > { %v401_v48 = vadd.f32 %v3457_v37, %v358_v26 }
  0x8f   : > { %681 = vst.msk [vmem:[#allocation2 + $0x2b] sm:$0xff] %vm673_vm0, %v640_v28  ;;  %679 = vst.msk [vmem:[#allocation2 + $0x1b] sm:$0xff] %vm673_vm0, %v638_v29  ;;  %v434_v29 = vmax.f32 %v398_v5, 0.0  ;;  %v404_v5 = vadd.f32 %v3457_v37, %v361_v51  ;;  %v326_v51 = vld [vmem:[%s3443_s18 + $0xd8] sm:$0xff] }
  0x90   : > { %v3541_v35 = vpop.permute.xlu1 %484  ;;  %v3543_v36 = vpop.permute.xlu0 %479 }
  0x91   : > { %5091 = vst [vmem:[#allocation7_spill] sm:$0xff] %v3541_v35  ;;  %5092 = vst [vmem:[#allocation8_spill] sm:$0xff] %v3543_v36  ;;  %v642_v44 = vmul.f32 %v3541_v35, %v426_v24  ;;  %v641_v45 = vmul.f32 %v3543_v36, %v425_v25  ;;  %v399_v24 = vadd.f32 %v3457_v37, %v356_v8  ;;  %v321_v8 = vld [vmem:[%s3443_s18 + $0xb0] sm:$0xff] }
  0x92   : > { %v756_v52 = vld [vmem:[#allocation2 + $0x11] sm:$0xff]  ;;  %v359_v25 = vmul.f32 %v3448_v32, %v316_v15  ;;  %v406_v15 = vadd.f32 %v3457_v37, %v363_v63  ;;  %v369_v63 = vmul.f32 %v3448_v32, %v326_v51 }
  0x93   : > { %683 = vst.msk [vmem:[#allocation2 + $0x3b] sm:$0xff] %vm673_vm0, %v642_v44  ;;  %682 = vst.msk [vmem:[#allocation2 + $0x33] sm:$0xff] %vm673_vm0, %v641_v45  ;;  %1016 = vrot.lane.b32.xlu0 %v756_v52, %s3286_s14  ;;  %v435_v44 = vmax.f32 %v399_v24, 0.0 }
  0x94   : > { %v3556_v53 = vpop.permute.xlu1 %494  ;;  %v3558_v54 = vpop.permute.xlu0 %489  ;;  %v402_v45 = vadd.f32 %v3457_v37, %v359_v25  ;;  %v440_v25 = vmax.f32 %v404_v5, 0.0 }
  0x95   : > { %5093 = vst [vmem:[#allocation9_spill] sm:$0xff] %v3556_v53  ;;  %5094 = vst [vmem:[#allocation10_spill] sm:$0xff] %v3558_v54  ;;  %v644_v59 = vmul.f32 %v3556_v53, %v428_v38  ;;  %v643_v60 = vmul.f32 %v3558_v54, %v427_v41  ;;  %v317_v38 = vld [vmem:[%s3443_s18 + $0x90] sm:$0xff] }
  0x96   : > { %v757_v1 = vld [vmem:[#allocation2 + $0x19] sm:$0xff]  ;;  %v758_v2 = vld [vmem:[#allocation2 + $0x21] sm:$0xff]  ;;  %v759_v17 = vld [vmem:[#allocation2 + $0x29] sm:$0xff]  ;;  %v360_v52 = vmul.f32 %v3448_v32, %v317_v38  ;;  %v441_v38 = vmax.f32 %v405_v16, 0.0 }
  0x97   : > { %685 = vst.msk [vmem:[#allocation2 + $0x4b] sm:$0xff] %vm673_vm0, %v644_v59  ;;  %684 = vst.msk [vmem:[#allocation2 + $0x43] sm:$0xff] %vm673_vm0, %v643_v60  ;;  %1018 = vrot.lane.b32.xlu1 %v757_v1, %s3286_s14  ;;  %1020 = vrot.lane.b32.xlu0 %v758_v2, %s3286_s14  ;;  %v866_v54 = vld [vmem:[#allocation2 + $0x1c] sm:$0xff]  ;;  %v867_v53 = vld [vmem:[#allocation2 + $0x24] sm:$0xff] }
  0x98   : > { %v3572_v3 = vpop.permute.xlu1 %504  ;;  %v3574_v4 = vpop.permute.xlu0 %499  ;;  %v403_v6 = vadd.f32 %v3457_v37, %v360_v52  ;;  %v325_v52 = vld [vmem:[%s3443_s18 + $0xd0] sm:$0xff]  ;;  %v940_v35 = vld [vmem:[#allocation2 + $0x26] sm:$0xff] }
  0x99   : > { %5095 = vst [vmem:[#allocation11_spill] sm:$0xff] %v3572_v3  ;;  %5096 = vst [vmem:[#allocation12_spill] sm:$0xff] %v3574_v4  ;;  %v646_v9 = vmul.f32 %v3572_v3, %v430_v61  ;;  %v645_v12 = vmul.f32 %v3574_v4, %v429_v62  ;;  %v438_v61 = vmax.f32 %v402_v45, 0.0  ;;  %v437_v62 = vmax.f32 %v401_v48, 0.0  ;;  %v832_v4 = vld [vmem:[#allocation2 + $0x2b] sm:$0xff] }
  0x9a   : > { %v760_v18 = vld [vmem:[#allocation2 + $0x31] sm:$0xff]  ;;  %v761_v33 = vld [vmem:[#allocation2 + $0x39] sm:$0xff]  ;;  %v439_v26 = vmax.f32 %v403_v6, 0.0  ;;  %v368_v0 = vmul.f32 %v3448_v32, %v325_v52 }
  0x9b   : > { %687 = vst.msk [vmem:[#allocation2 + $0x5b] sm:$0xff] %vm673_vm0, %v646_v9  ;;  %686 = vst.msk [vmem:[#allocation2 + $0x53] sm:$0xff] %vm673_vm0, %v645_v12  ;;  %1022 = vrot.lane.b32.xlu1 %v759_v17, %s3286_s14  ;;  %1024 = vrot.lane.b32.xlu0 %v760_v18, %s3286_s14  ;;  %v365_v17 = vmul.f32 %v3448_v32, %v322_v7  ;;  %v364_v18 = vmul.f32 %v3448_v32, %v321_v8  ;;  %v328_v7 = vld [vmem:[%s3443_s18 + $0xe8] sm:$0xff]  ;;  %v327_v8 = vld [vmem:[%s3443_s18 + $0xe0] sm:$0xff] }
  0x9c   : > { %v3588_v19 = vpop.permute.xlu1 %514  ;;  %v3590_v20 = vpop.permute.xlu0 %509  ;;  %v833_v3 = vld [vmem:[#allocation2 + $0x33] sm:$0xff] }
  0x9d   : > { %5097 = vst [vmem:[#allocation13_spill] sm:$0xff] %v3588_v19  ;;  %5098 = vst [vmem:[#allocation14_spill] sm:$0xff] %v3590_v20  ;;  %v648_v27 = vmul.f32 %v3588_v19, %v432_v13  ;;  %v647_v28 = vmul.f32 %v3590_v20, %v431_v14  ;;  %v830_v19 = vld [vmem:[#allocation2 + $0x1b] sm:$0xff]  ;;  %v905_v36 = vld [vmem:[#allocation2 + $0x2d] sm:$0xff] }
  0x9e   : > { %v762_v34 = vld [vmem:[#allocation2 + $0x41] sm:$0xff]  ;;  %v763_v57 = vld [vmem:[#allocation2 + $0x49] sm:$0xff] }
  0x9f   : > { %689 = vst.msk [vmem:[#allocation2 + $0x6b] sm:$0xff] %vm673_vm0, %v648_v27  ;;  %688 = vst.msk [vmem:[#allocation2 + $0x63] sm:$0xff] %vm673_vm0, %v647_v28  ;;  %1026 = vrot.lane.b32.xlu1 %v761_v33, %s3286_s14  ;;  %1028 = vrot.lane.b32.xlu0 %v762_v34, %s3286_s14  ;;  %v324_v27 = vld [vmem:[%s3443_s18 + $0xc8] sm:$0xff]  ;;  %v442_v34 = vmax.f32 %v406_v15, 0.0 }
  0xa0   : > { %v3604_v41 = vpop.permute.xlu1 %524  ;;  %v3606_v42 = vpop.permute.xlu0 %519 }
  0xa1   : > { %5099 = vst [vmem:[#allocation15_spill] sm:$0xff] %v3604_v41  ;;  %5100 = vst [vmem:[#allocation16_spill] sm:$0xff] %v3606_v42  ;;  %v650_v49 = vmul.f32 %v3604_v41, %v434_v29  ;;  %v649_v50 = vmul.f32 %v3606_v42, %v433_v30  ;;  %v323_v30 = vld [vmem:[%s3443_s18 + $0xc0] sm:$0xff] }
  0xa2   : > { %v764_v58 = vld [vmem:[#allocation2 + $0x51] sm:$0xff]  ;;  %v765_v9 = vld [vmem:[#allocation2 + $0x59] sm:$0xff] }
  0xa3   : > { %691 = vst.msk [vmem:[#allocation2 + $0x7b] sm:$0xff] %vm673_vm0, %v650_v49  ;;  %690 = vst.msk [vmem:[#allocation2 + $0x73] sm:$0xff] %vm673_vm0, %v649_v50  ;;  %1030 = vrot.lane.b32.xlu1 %v763_v57, %s3286_s14  ;;  %1032 = vrot.lane.b32.xlu0 %v764_v58, %s3286_s14  ;;  %v367_v49 = vmul.f32 %v3448_v32, %v324_v27  ;;  %v366_v50 = vmul.f32 %v3448_v32, %v323_v30  ;;  %v909_v10 = vld [vmem:[#allocation2 + $0x4d] sm:$0xff] }
  0xa4   : > { %v3620_v59 = vpop.permute.xlu1 %534  ;;  %v3622_v60 = vpop.permute.xlu0 %529  ;;  %v873_v11 = vld [vmem:[#allocation2 + $0x54] sm:$0xff] }
  0xa5   : > { %5101 = vst [vmem:[#allocation17_spill] sm:$0xff] %v3620_v59  ;;  %5102 = vst [vmem:[#allocation18_spill] sm:$0xff] %v3622_v60  ;;  %v652_v1 = vmul.f32 %v3620_v59, %v436_v43  ;;  %v651_v2 = vmul.f32 %v3622_v60, %v435_v44  ;;  %v408_v43 = vadd.f32 %v3457_v37, %v365_v17 }
  0xa6   : > { %v766_v12 = vld [vmem:[#allocation2 + $0x61] sm:$0xff]  ;;  %v767_v28 = vld [vmem:[#allocation2 + $0x69] sm:$0xff]  ;;  %v407_v44 = vadd.f32 %v3457_v37, %v364_v18  ;;  %v410_v5 = vadd.f32 %v3457_v37, %v367_v49  ;;  %v409_v6 = vadd.f32 %v3457_v37, %v366_v50  ;;  %v412_v17 = vadd.f32 %v3457_v37, %v369_v63 }
  0xa7   : > { %693 = vst.msk [vmem:[#allocation2 + $0x8b] sm:$0xff] %vm673_vm0, %v652_v1  ;;  %692 = vst.msk [vmem:[#allocation2 + $0x83] sm:$0xff] %vm673_vm0, %v651_v2  ;;  %1034 = vrot.lane.b32.xlu1 %v765_v9, %s3286_s14  ;;  %1036 = vrot.lane.b32.xlu0 %v766_v12, %s3286_s14  ;;  %v411_v18 = vadd.f32 %v3457_v37, %v368_v0  ;;  %v874_v23 = vld [vmem:[#allocation2 + $0x5c] sm:$0xff] }
  0xa8   : > { %v3636_v13 = vpop.permute.xlu1 %544  ;;  %v3638_v14 = vpop.permute.xlu0 %539  ;;  %v446_v27 = vmax.f32 %v410_v5, 0.0 }
  0xa9   : > { %5103 = vst [vmem:[#allocation19_spill] sm:$0xff] %v3636_v13  ;;  %5104 = vst [vmem:[#allocation20_spill] sm:$0xff] %v3638_v14  ;;  %v654_v21 = vmul.f32 %v3636_v13, %v438_v61  ;;  %v653_v24 = vmul.f32 %v3638_v14, %v437_v62  ;;  %v444_v61 = vmax.f32 %v408_v43, 0.0  ;;  %v443_v62 = vmax.f32 %v407_v44, 0.0 }
  0xaa   : > { %v768_v29 = vld [vmem:[#allocation2 + $0x71] sm:$0xff]  ;;  %v769_v55 = vld [vmem:[#allocation2 + $0x79] sm:$0xff] }
  0xab   : > { %695 = vst.msk [vmem:[#allocation2 + $0x9b] sm:$0xff] %vm673_vm0, %v654_v21  ;;  %694 = vst.msk [vmem:[#allocation2 + $0x93] sm:$0xff] %vm673_vm0, %v653_v24  ;;  %1038 = vrot.lane.b32.xlu1 %v767_v28, %s3286_s14  ;;  %1040 = vrot.lane.b32.xlu0 %v768_v29, %s3286_s14  ;;  %v371_v21 = vmul.f32 %v3448_v32, %v328_v7  ;;  %v370_v24 = vmul.f32 %v3448_v32, %v327_v8  ;;  %v445_v28 = vmax.f32 %v409_v6, 0.0  ;;  %v330_v29 = vld [vmem:[%s3443_s18 + $0xf8] sm:$0xff] }
  0xac   : > { %v3652_v31 = vpop.permute.xlu1 %554  ;;  %v3654_v33 = vpop.permute.xlu0 %549 }
  0xad   : > { %5105 = vst [vmem:[#allocation21_spill] sm:$0xff] %v3652_v31  ;;  %5106 = vst [vmem:[#allocation22_spill] sm:$0xff] %v3654_v33  ;;  %v656_v45 = vmul.f32 %v3652_v31, %v440_v25  ;;  %v655_v48 = vmul.f32 %v3654_v33, %v439_v26  ;;  %v414_v49 = vadd.f32 %v3457_v37, %v371_v21 }
  0xae   : > { %v770_v56 = vld [vmem:[#allocation2 + $0x81] sm:$0xff]  ;;  %v771_v9 = vld [vmem:[#allocation2 + $0x89] sm:$0xff]  ;;  %v413_v50 = vadd.f32 %v3457_v37, %v370_v24 }
  0xaf   : > { %697 = vst.msk [vmem:[#allocation2 + $0xab] sm:$0xff] %vm673_vm0, %v656_v45  ;;  %696 = vst.msk [vmem:[#allocation2 + $0xa3] sm:$0xff] %vm673_vm0, %v655_v48  ;;  %1042 = vrot.lane.b32.xlu1 %v769_v55, %s3286_s14  ;;  %1044 = vrot.lane.b32.xlu0 %v770_v56, %s3286_s14  ;;  %v448_v45 = vmax.f32 %v412_v17, 0.0  ;;  %v447_v48 = vmax.f32 %v411_v18, 0.0  ;;  %v373_v55 = vmul.f32 %v3448_v32, %v330_v29 }
  0xb0   : > { %v3668_v57 = vpop.permute.xlu1 %564  ;;  %v3670_v58 = vpop.permute.xlu0 %559 }
  0xb1   : > { %5107 = vst [vmem:[#allocation23_spill] sm:$0xff] %v3668_v57  ;;  %5108 = vst [vmem:[#allocation24_spill] sm:$0xff] %v3670_v58  ;;  %v658_v1 = vmul.f32 %v3668_v57, %v442_v34  ;;  %v657_v2 = vmul.f32 %v3670_v58, %v441_v38  ;;  %v329_v38 = vld [vmem:[%s3443_s18 + $0xf0] sm:$0xff]  ;;  %v416_v6 = vadd.f32 %v3457_v37, %v373_v55  ;;  %s3293_s18 = smov 64  }
  0xb2   : > { %v772_v12 = vld [vmem:[#allocation2 + $0x91] sm:$0xff]  ;;  %v773_v30 = vld [vmem:[#allocation2 + $0x99] sm:$0xff]  ;;  %v372_v56 = vmul.f32 %v3448_v32, %v329_v38  ;;  %v453_v38 = vmax.f32 %v3466_v40, 0.0  ;;  %v456_v40 = vmax.f32 %v3476_v46, 0.0 }
  0xb3   : > { %699 = vst.msk [vmem:[#allocation2 + $0xbb] sm:$0xff] %vm673_vm0, %v658_v1  ;;  %698 = vst.msk [vmem:[#allocation2 + $0xb3] sm:$0xff] %vm673_vm0, %v657_v2  ;;  %1046 = vrot.lane.b32.xlu1 %v771_v9, %s3286_s14  ;;  %1048 = vrot.lane.b32.xlu0 %v772_v12, %s3286_s14  ;;  %v450_v1 = vmax.f32 %v414_v49, 0.0  ;;  %v449_v2 = vmax.f32 %v413_v50, 0.0  ;;  %v452_v24 = vmax.f32 %v416_v6, 0.0  ;;  %v790_v6 = vld [vmem:[#allocation2 + $0x2] sm:$0xff] }
  0xb4   : > { %v3684_v15 = vpop.permute.xlu1 %574  ;;  %v3686_v16 = vpop.permute.xlu0 %569  ;;  %v415_v7 = vadd.f32 %v3457_v37, %v372_v56 }
  0xb5   : > { %5109 = vst [vmem:[#allocation25_spill] sm:$0xff] %v3684_v15  ;;  %5110 = vst [vmem:[#allocation26_spill] sm:$0xff] %v3686_v16  ;;  %v660_v25 = vmul.f32 %v3684_v15, %v444_v61  ;;  %v659_v26 = vmul.f32 %v3686_v16, %v443_v62 }
  0xb6   : > { %v774_v34 = vld [vmem:[#allocation2 + $0xa1] sm:$0xff]  ;;  %v775_v61 = vld [vmem:[#allocation2 + $0xa9] sm:$0xff]  ;;  %v451_v37 = vmax.f32 %v415_v7, 0.0 }
  0xb7   : > { %701 = vst.msk [vmem:[#allocation2 + $0xcb] sm:$0xff] %vm673_vm0, %v660_v25  ;;  %700 = vst.msk [vmem:[#allocation2 + $0xc3] sm:$0xff] %vm673_vm0, %v659_v26  ;;  %1050 = vrot.lane.b32.xlu1 %v773_v30, %s3286_s14  ;;  %1052 = vrot.lane.b32.xlu0 %v774_v34, %s3286_s14  ;;  %v454_v34 = vmax.f32 %v3463_v39, 0.0 }
  0xb8   : > { %v3700_v43 = vpop.permute.xlu1 %584  ;;  %v3702_v44 = vpop.permute.xlu0 %579 }
  0xb9   : > { %5111 = vst [vmem:[#allocation27_spill] sm:$0xff] %v3700_v43  ;;  %5112 = vst [vmem:[#allocation28_spill] sm:$0xff] %v3702_v44  ;;  %v662_v51 = vmul.f32 %v3700_v43, %v446_v27  ;;  %v661_v52 = vmul.f32 %v3702_v44, %v445_v28 }
  0xba   : > { %v776_v62 = vld [vmem:[#allocation2 + $0xb1] sm:$0xff]  ;;  %v777_v8 = vld [vmem:[#allocation2 + $0xb9] sm:$0xff] }
  0xbb   : > { %703 = vst.msk [vmem:[#allocation2 + $0xdb] sm:$0xff] %vm673_vm0, %v662_v51  ;;  %702 = vst.msk [vmem:[#allocation2 + $0xd3] sm:$0xff] %vm673_vm0, %v661_v52  ;;  %1054 = vrot.lane.b32.xlu1 %v775_v61, %s3286_s14  ;;  %1056 = vrot.lane.b32.xlu0 %v776_v62, %s3286_s14  ;;  %v455_v52 = vmax.f32 %v3479_v47, 0.0 }
  0xbc   : > { %v3714_v63 = vpop.permute.xlu1 %594  ;;  %v3716_v0 = vpop.permute.xlu0 %589 }
  0xbd   : > { %5113 = vst [vmem:[#allocation29_spill] sm:$0xff] %v3714_v63  ;;  %5114 = vst [vmem:[#allocation30_spill] sm:$0xff] %v3716_v0  ;;  %v664_v5 = vmul.f32 %v3714_v63, %v448_v45  ;;  %v663_v32 = vmul.f32 %v3716_v0, %v447_v48 }
  0xbe   : > { %v778_v9 = vld [vmem:[#allocation2 + $0xc1] sm:$0xff]  ;;  %v779_v25 = vld [vmem:[#allocation2 + $0xc9] sm:$0xff] }
  0xbf   : > { %705 = vst.msk [vmem:[#allocation2 + $0xeb] sm:$0xff] %vm673_vm0, %v664_v5  ;;  %704 = vst.msk [vmem:[#allocation2 + $0xe3] sm:$0xff] %vm673_vm0, %v663_v32  ;;  %1058 = vrot.lane.b32.xlu1 %v777_v8, %s3286_s14  ;;  %1060 = vrot.lane.b32.xlu0 %v778_v9, %s3286_s14  ;;  %v791_v8 = vld [vmem:[#allocation2 + $0xa] sm:$0xff]  ;;  %v3774_v9 = vld [vmem:[#allocation2 + $0x12] sm:$0xff] }
  0xc0   : > { %v3726_v12 = vpop.permute.xlu1 %604  ;;  %v3728_v17 = vpop.permute.xlu0 %599 }
  0xc1   : > { %5115 = vst [vmem:[#allocation31_spill] sm:$0xff] %v3726_v12  ;;  %5116 = vst [vmem:[#allocation32_spill] sm:$0xff] %v3728_v17  ;;  %v666_v18 = vmul.f32 %v3726_v12, %v450_v1  ;;  %v665_v21 = vmul.f32 %v3728_v17, %v449_v2 }
  0xc2   : > { %v780_v26 = vld [vmem:[#allocation2 + $0xd1] sm:$0xff]  ;;  %v781_v45 = vld [vmem:[#allocation2 + $0xd9] sm:$0xff] }
  0xc3   : > { %707 = vst.msk [vmem:[#allocation2 + $0xfb] sm:$0xff] %vm673_vm0, %v666_v18  ;;  %706 = vst.msk [vmem:[#allocation2 + $0xf3] sm:$0xff] %vm673_vm0, %v665_v21  ;;  %1062 = vrot.lane.b32.xlu1 %v779_v25, %s3286_s14  ;;  %1064 = vrot.lane.b32.xlu0 %v780_v26, %s3286_s14  ;;  %v3779_v18 = vld [vmem:[#allocation2 + $0x1a] sm:$0xff]  ;;  %v3781_v21 = vld [vmem:[#allocation2 + $0x22] sm:$0xff] }
  0xc4   : > { %v3736_v27 = vpop.permute.xlu1 %614  ;;  %v3738_v28 = vpop.permute.xlu0 %609  ;;  %v3795_v25 = vld [vmem:[#allocation2 + $0x3a] sm:$0xff]  ;;  %v3797_v26 = vld [vmem:[#allocation2 + $0x42] sm:$0xff] }
  0xc5   : > { %5117 = vst [vmem:[#allocation33_spill] sm:$0xff] %v3736_v27  ;;  %5118 = vst [vmem:[#allocation34_spill] sm:$0xff] %v3738_v28  ;;  %v668_v29 = vmul.f32 %v3736_v27, %v452_v24  ;;  %v667_v30 = vmul.f32 %v3738_v28, %v451_v37  ;;  %v3787_v24 = vld [vmem:[#allocation2 + $0x2a] sm:$0xff]  ;;  %v3789_v37 = vld [vmem:[#allocation2 + $0x32] sm:$0xff] }
  0xc6   : > { %v782_v48 = vld [vmem:[#allocation2 + $0xe1] sm:$0xff]  ;;  %v783_v55 = vld [vmem:[#allocation2 + $0xe9] sm:$0xff] }
  0xc7   : > { %709 = vst.msk [vmem:[#allocation2 + $0x10b] sm:$0xff] %vm673_vm0, %v668_v29  ;;  %708 = vst.msk [vmem:[#allocation2 + $0x103] sm:$0xff] %vm673_vm0, %v667_v30  ;;  %1066 = vrot.lane.b32.xlu1 %v781_v45, %s3286_s14  ;;  %1068 = vrot.lane.b32.xlu0 %v782_v48, %s3286_s14  ;;  %v3803_v29 = vld [vmem:[#allocation2 + $0x4a] sm:$0xff]  ;;  %v3805_v30 = vld [vmem:[#allocation2 + $0x52] sm:$0xff] }
  0xc8   : > { %v3748_v49 = vpop.permute.xlu1 %624  ;;  %v3750_v50 = vpop.permute.xlu0 %619  ;;  %v3819_v45 = vld [vmem:[#allocation2 + $0x6a] sm:$0xff]  ;;  %v3821_v48 = vld [vmem:[#allocation2 + $0x72] sm:$0xff]  ;;  %v3889_v27 = vld [vmem:[#allocation2 + $0xda] sm:$0xff] }
  0xc9   : > { %5119 = vst [vmem:[#allocation35_spill] sm:$0xff] %v3748_v49  ;;  %5120 = vst [vmem:[#allocation36_spill] sm:$0xff] %v3750_v50  ;;  %v670_v51 = vmul.f32 %v3748_v49, %v454_v34  ;;  %v669_v39 = vmul.f32 %v3750_v50, %v453_v38  ;;  %v3811_v34 = vld [vmem:[#allocation2 + $0x5a] sm:$0xff]  ;;  %v3813_v38 = vld [vmem:[#allocation2 + $0x62] sm:$0xff] }
  0xca   : > { %v784_v56 = vld [vmem:[#allocation2 + $0xf1] sm:$0xff]  ;;  %v785_v47 = vld [vmem:[#allocation2 + $0xf9] sm:$0xff]  ;;  %v3891_v28 = vld [vmem:[#allocation2 + $0xe2] sm:$0xff] }
  0xcb   : > { %711 = vst.msk [vmem:[#allocation2 + $0x11b] sm:$0xff] %vm673_vm0, %v670_v51  ;;  %710 = vst.msk [vmem:[#allocation2 + $0x113] sm:$0xff] %vm673_vm0, %v669_v39  ;;  %1070 = vrot.lane.b32.xlu1 %v783_v55, %s3286_s14  ;;  %1072 = vrot.lane.b32.xlu0 %v784_v56, %s3286_s14  ;;  %v3827_v51 = vld [vmem:[#allocation2 + $0x7a] sm:$0xff]  ;;  %v3829_v39 = vld [vmem:[#allocation2 + $0x82] sm:$0xff] }
  0xcc   : > { %v3760_v61 = vpop.permute.xlu1 %634  ;;  %v3762_v62 = vpop.permute.xlu0 %629  ;;  %v3843_v55 = vld [vmem:[#allocation2 + $0x9a] sm:$0xff]  ;;  %v3845_v56 = vld [vmem:[#allocation2 + $0xa2] sm:$0xff]  ;;  %v3901_v0 = vld [vmem:[#allocation2 + $0xea] sm:$0xff] }
  0xcd   : > { %5121 = vst [vmem:[#allocation37_spill] sm:$0xff] %v3760_v61  ;;  %5122 = vst [vmem:[#allocation38_spill] sm:$0xff] %v3762_v62  ;;  %v672_v1 = vmul.f32 %v3760_v61, %v456_v40  ;;  %v671_v46 = vmul.f32 %v3762_v62, %v455_v52  ;;  %v3835_v40 = vld [vmem:[#allocation2 + $0x8a] sm:$0xff]  ;;  %v3837_v52 = vld [vmem:[#allocation2 + $0x92] sm:$0xff] }
  0xce   : > { %v786_v2 = vld [vmem:[#allocation2 + $0x101] sm:$0xff]  ;;  %v787_v5 = vld [vmem:[#allocation2 + $0x109] sm:$0xff]  ;;  %v3879_v61 = vld [vmem:[#allocation2 + $0xd2] sm:$0xff] }
  0xcf   : > { %714 = vst.msk [vmem:[#allocation2 + $0x12b] sm:$0x3f] %vm713_vm2, %v672_v1  ;;  %1074 = vrot.lane.b32.xlu1 %v785_v47, %s3286_s14  ;;  %1076 = vrot.lane.b32.xlu0 %v786_v2, %s3286_s14  ;;  %v3855_v47 = vld [vmem:[#allocation2 + $0xb2] sm:$0xff]  ;;  %v3877_v62 = vld [vmem:[#allocation2 + $0xca] sm:$0xff]  ;;  %v3913_v16 = vld [vmem:[#allocation2 + $0xfa] sm:$0xff] }
  0xd0   : > { %712 = vst.msk [vmem:[#allocation2 + $0x123] sm:$0xff] %vm673_vm0, %v671_v46  ;;  %v3851_v1 = vpop.permute.xlu0 %1012  ;;  %v3853_v46 = vld [vmem:[#allocation2 + $0xaa] sm:$0xff]  ;;  %v3861_v2 = vpop.permute.xlu1 %1014  ;;  %v3903_v63 = vld [vmem:[#allocation2 + $0xf2] sm:$0xff]  ;;  %v3915_v15 = vld [vmem:[#allocation2 + $0x102] sm:$0xff] }
  0xd1   : > { %v3925_v33 = vld [vmem:[#allocation2 + $0x10a] sm:$0xff] }
  0xd2   : > { %v788_v32 = vld [vmem:[#allocation2 + $0x111] sm:$0xff]  ;;  %v789_v7 = vld [vmem:[#allocation2 + $0x119] sm:$0x3f] }
  0xd3   : > { %1078 = vrot.lane.b32.xlu1 %v787_v5, %s3286_s14  ;;  %1080 = vrot.lane.b32.xlu0 %v788_v32, %s3286_s14  ;;  %v3865_v32 = vld [vmem:[#allocation2 + $0xba] sm:$0xff]  ;;  %v3927_v31 = vld [vmem:[#allocation2 + $0x112] sm:$0xff] }
  0xd4   : > { %v825_v60 = vld [vmem:[#allocation2 + $0x11a] sm:$0x3f] }
  0xd7   : > { %1082 = vrot.lane.b32.xlu1 %v789_v7, %s3286_s14  ;;  %1156 = vrot.lane.b32.xlu0 %v790_v6, %s3287_s15  ;;  %v3867_v6 = vld [vmem:[#allocation2 + $0xc2] sm:$0xff]  ;;  %s3291_s14 = smov 48  }
  0xdb   : > { %1158 = vrot.lane.b32.xlu1 %v791_v8, %s3287_s15  ;;  %1160 = vrot.lane.b32.xlu0 %v3774_v9, %s3287_s15 }
  0xdf   : > { %1162 = vrot.lane.b32.xlu1 %v3779_v18, %s3287_s15  ;;  %1164 = vrot.lane.b32.xlu0 %v3781_v21, %s3287_s15 }
  0xe3   : > { %1166 = vrot.lane.b32.xlu1 %v3787_v24, %s3287_s15  ;;  %1168 = vrot.lane.b32.xlu0 %v3789_v37, %s3287_s15 }
  0xe7   : > { %1170 = vrot.lane.b32.xlu1 %v3795_v25, %s3287_s15  ;;  %1172 = vrot.lane.b32.xlu0 %v3797_v26, %s3287_s15 }
  0xeb   : > { %1174 = vrot.lane.b32.xlu1 %v3803_v29, %s3287_s15  ;;  %1176 = vrot.lane.b32.xlu0 %v3805_v30, %s3287_s15 }
  0xef   : > { %1178 = vrot.lane.b32.xlu1 %v3811_v34, %s3287_s15  ;;  %1180 = vrot.lane.b32.xlu0 %v3813_v38, %s3287_s15 }
  0xf3   : > { %1182 = vrot.lane.b32.xlu1 %v3819_v45, %s3287_s15  ;;  %1184 = vrot.lane.b32.xlu0 %v3821_v48, %s3287_s15 }
  0xf7   : > { %1186 = vrot.lane.b32.xlu1 %v3827_v51, %s3287_s15  ;;  %1188 = vrot.lane.b32.xlu0 %v3829_v39, %s3287_s15 }
  0xfb   : > { %1190 = vrot.lane.b32.xlu1 %v3835_v40, %s3287_s15  ;;  %1192 = vrot.lane.b32.xlu0 %v3837_v52, %s3287_s15 }
  0xff   : > { %1194 = vrot.lane.b32.xlu1 %v3843_v55, %s3287_s15  ;;  %1196 = vrot.lane.b32.xlu0 %v3845_v56, %s3287_s15 }
 0x103   : > { %1198 = vrot.lane.b32.xlu1 %v3853_v46, %s3287_s15  ;;  %1200 = vrot.lane.b32.xlu0 %v3855_v47, %s3287_s15 }
 0x105   : > { %v3863_v5 = vpop.permute.xlu0 %1016 }
 0x107   : > { %1202 = vrot.lane.b32.xlu1 %v3865_v32, %s3287_s15  ;;  %1204 = vrot.lane.b32.xlu0 %v3867_v6, %s3287_s15 }
 0x109   : > { %v3873_v7 = vpop.permute.xlu1 %1018  ;;  %v3875_v8 = vpop.permute.xlu0 %1020 }
 0x10b   : > { %1206 = vrot.lane.b32.xlu1 %v3877_v62, %s3287_s15  ;;  %1208 = vrot.lane.b32.xlu0 %v3879_v61, %s3287_s15 }
 0x10d   : > { %v3885_v49 = vpop.permute.xlu1 %1022  ;;  %v3887_v50 = vpop.permute.xlu0 %1024 }
 0x10f   : > { %1210 = vrot.lane.b32.xlu1 %v3889_v27, %s3287_s15  ;;  %1212 = vrot.lane.b32.xlu0 %v3891_v28, %s3287_s15 }
 0x111   : > { %v3897_v12 = vpop.permute.xlu1 %1026  ;;  %v3899_v17 = vpop.permute.xlu0 %1028 }
 0x113   : > { %1214 = vrot.lane.b32.xlu1 %v3901_v0, %s3287_s15  ;;  %1216 = vrot.lane.b32.xlu0 %v3903_v63, %s3287_s15 }
 0x115   : > { %v3909_v44 = vpop.permute.xlu1 %1030  ;;  %v3911_v43 = vpop.permute.xlu0 %1032 }
 0x117   : > { %1218 = vrot.lane.b32.xlu1 %v3913_v16, %s3287_s15  ;;  %1220 = vrot.lane.b32.xlu0 %v3915_v15, %s3287_s15 }
 0x119   : > { %v3921_v58 = vpop.permute.xlu1 %1034  ;;  %v3923_v57 = vpop.permute.xlu0 %1036 }
 0x11b   : > { %1222 = vrot.lane.b32.xlu1 %v3925_v33, %s3287_s15  ;;  %1224 = vrot.lane.b32.xlu0 %v3927_v31, %s3287_s15 }
 0x11d   : > { %v3933_v14 = vpop.permute.xlu1 %1038  ;;  %v3935_v13 = vpop.permute.xlu0 %1040 }
 0x11f   : > { %1226 = vrot.lane.b32.xlu1 %v825_v60, %s3287_s15  ;;  %1267 = vrot.lane.b32.xlu0 %v3774_v9, %s3288_s16 }
 0x121   : > { %v3940_v59 = vpop.permute.xlu1 %1042  ;;  %v3942_v42 = vpop.permute.xlu0 %1044 }
 0x122   : > { %5123 = vst [vmem:[#allocation39_spill] sm:$0xff] %v3940_v59  ;;  %5124 = vst [vmem:[#allocation40_spill] sm:$0xff] %v3942_v42  ;;  %v916_v42 = vld [vmem:[#allocation2 + $0x85] sm:$0xff] }
 0x123   : > { %1269 = vrot.lane.b32.xlu1 %v3779_v18, %s3288_s16  ;;  %1271 = vrot.lane.b32.xlu0 %v3781_v21, %s3288_s16 }
 0x125   : > { %v3948_v41 = vpop.permute.xlu1 %1046  ;;  %v3950_v20 = vpop.permute.xlu0 %1048 }
 0x126   : > { %5125 = vst [vmem:[#allocation41_spill] sm:$0xff] %v3948_v41  ;;  %5126 = vst [vmem:[#allocation42_spill] sm:$0xff] %v3950_v20  ;;  %v947_v20 = vld [vmem:[#allocation2 + $0x5e] sm:$0xff] }
 0x127   : > { %1273 = vrot.lane.b32.xlu1 %v3787_v24, %s3288_s16  ;;  %1275 = vrot.lane.b32.xlu0 %v3789_v37, %s3288_s16  ;;  %v879_v41 = vld [vmem:[#allocation2 + $0x84] sm:$0xff] }
 0x129   : > { %v3956_v60 = vpop.permute.xlu1 %1050  ;;  %v3958_v9 = vpop.permute.xlu0 %1052 }
 0x12a   : > { %5127 = vst [vmem:[#allocation43_spill] sm:$0xff] %v3956_v60  ;;  %5128 = vst [vmem:[#allocation44_spill] sm:$0xff] %v3958_v9  ;;  %v838_v60 = vld [vmem:[#allocation2 + $0x5b] sm:$0xff] }
 0x12b   : > { %1277 = vrot.lane.b32.xlu1 %v3795_v25, %s3288_s16  ;;  %1279 = vrot.lane.b32.xlu0 %v3797_v26, %s3288_s16 }
 0x12d   : > { %v3964_v18 = vpop.permute.xlu1 %1054  ;;  %v3966_v21 = vpop.permute.xlu0 %1056 }
 0x12e   : > { %5129 = vst [vmem:[#allocation45_spill] sm:$0xff] %v3964_v18  ;;  %5130 = vst [vmem:[#allocation46_spill] sm:$0xff] %v3966_v21  ;;  %v945_v21 = vld [vmem:[#allocation2 + $0x4e] sm:$0xff] }
 0x12f   : > { %1281 = vrot.lane.b32.xlu1 %v3803_v29, %s3288_s16  ;;  %1283 = vrot.lane.b32.xlu0 %v3805_v30, %s3288_s16  ;;  %v837_v18 = vld [vmem:[#allocation2 + $0x53] sm:$0xff] }
 0x131   : > { %v3972_v24 = vpop.permute.xlu1 %1058  ;;  %v3974_v37 = vpop.permute.xlu0 %1060 }
 0x132   : > { %5131 = vst [vmem:[#allocation47_spill] sm:$0xff] %v3972_v24  ;;  %5132 = vst [vmem:[#allocation48_spill] sm:$0xff] %v3974_v37  ;;  %v835_v37 = vld [vmem:[#allocation2 + $0x43] sm:$0xff]  ;;  %v836_v24 = vld [vmem:[#allocation2 + $0x4b] sm:$0xff] }
 0x133   : > { %1285 = vrot.lane.b32.xlu1 %v3811_v34, %s3288_s16  ;;  %1287 = vrot.lane.b32.xlu0 %v3813_v38, %s3288_s16 }
 0x135   : > { %v3980_v25 = vpop.permute.xlu1 %1062  ;;  %v3982_v26 = vpop.permute.xlu0 %1064 }
 0x136   : > { %5133 = vst [vmem:[#allocation49_spill] sm:$0xff] %v3980_v25  ;;  %5134 = vst [vmem:[#allocation50_spill] sm:$0xff] %v3982_v26  ;;  %v904_v26 = vld [vmem:[#allocation2 + $0x25] sm:$0xff] }
 0x137   : > { %1289 = vrot.lane.b32.xlu1 %v3819_v45, %s3288_s16  ;;  %1291 = vrot.lane.b32.xlu0 %v3821_v48, %s3288_s16 }
 0x139   : > { %v3988_v29 = vpop.permute.xlu1 %1066  ;;  %v3990_v30 = vpop.permute.xlu0 %1068 }
 0x13a   : > { %5135 = vst [vmem:[#allocation51_spill] sm:$0xff] %v3988_v29  ;;  %5136 = vst [vmem:[#allocation52_spill] sm:$0xff] %v3990_v30  ;;  %v865_v30 = vld [vmem:[#allocation2 + $0x14] sm:$0xff]  ;;  %v868_v29 = vld [vmem:[#allocation2 + $0x2c] sm:$0xff] }
 0x13b   : > { %1293 = vrot.lane.b32.xlu1 %v3827_v51, %s3288_s16  ;;  %1295 = vrot.lane.b32.xlu0 %v3829_v39, %s3288_s16 }
 0x13d   : > { %v3996_v34 = vpop.permute.xlu1 %1070  ;;  %v3998_v38 = vpop.permute.xlu0 %1072 }
 0x13e   : > { %5137 = vst [vmem:[#allocation53_spill] sm:$0xff] %v3996_v34  ;;  %5138 = vst [vmem:[#allocation54_spill] sm:$0xff] %v3998_v38  ;;  %v834_v34 = vld [vmem:[#allocation2 + $0x3b] sm:$0xff] }
 0x13f   : > { %1297 = vrot.lane.b32.xlu1 %v3835_v40, %s3288_s16  ;;  %1299 = vrot.lane.b32.xlu0 %v3837_v52, %s3288_s16 }
 0x141   : > { %v4004_v45 = vpop.permute.xlu1 %1074  ;;  %v4006_v48 = vpop.permute.xlu0 %1076 }
 0x142   : > { %5139 = vst [vmem:[#allocation55_spill] sm:$0xff] %v4004_v45  ;;  %5140 = vst [vmem:[#allocation56_spill] sm:$0xff] %v4006_v48  ;;  %v831_v45 = vld [vmem:[#allocation2 + $0x23] sm:$0xff] }
 0x143   : > { %1301 = vrot.lane.b32.xlu1 %v3843_v55, %s3288_s16  ;;  %1303 = vrot.lane.b32.xlu0 %v3845_v56, %s3288_s16 }
 0x145   : > { %v4012_v51 = vpop.permute.xlu1 %1078  ;;  %v4014_v39 = vpop.permute.xlu0 %1080 }
 0x146   : > { %5141 = vst [vmem:[#allocation57_spill] sm:$0xff] %v4012_v51  ;;  %5142 = vst [vmem:[#allocation58_spill] sm:$0xff] %v4014_v39  ;;  %v827_v39 = vld [vmem:[#allocation2 + $0x122] sm:$0xff]  ;;  %v829_v51 = vld [vmem:[#allocation2 + $0x13] sm:$0xff] }
 0x147   : > { %1305 = vrot.lane.b32.xlu1 %v3853_v46, %s3288_s16  ;;  %1307 = vrot.lane.b32.xlu0 %v3855_v47, %s3288_s16 }
 0x149   : > { %v4020_v40 = vpop.permute.xlu1 %1082  ;;  %v4022_v52 = vpop.permute.xlu0 %1156 }
 0x14a   : > { %5143 = vst [vmem:[#allocation59_spill] sm:$0xff] %v4020_v40  ;;  %v826_v40 = vld [vmem:[#allocation2 + $0x11a] sm:$0xff] }
 0x14b   : > { %1309 = vrot.lane.b32.xlu1 %v3865_v32, %s3288_s16  ;;  %1311 = vrot.lane.b32.xlu0 %v3867_v6, %s3288_s16 }
 0x14d   : > { %v4028_v55 = vpop.permute.xlu1 %1158  ;;  %v4030_v56 = vpop.permute.xlu0 %1160 }
 0x14f   : > { %1313 = vrot.lane.b32.xlu1 %v3877_v62, %s3288_s16  ;;  %1315 = vrot.lane.b32.xlu0 %v3879_v61, %s3288_s16 }
 0x151   : > { %v4036_v46 = vpop.permute.xlu1 %1162  ;;  %v4038_v47 = vpop.permute.xlu0 %1164 }
 0x153   : > { %1317 = vrot.lane.b32.xlu1 %v3889_v27, %s3288_s16  ;;  %1319 = vrot.lane.b32.xlu0 %v3891_v28, %s3288_s16 }
 0x155   : > { %v4044_v32 = vpop.permute.xlu1 %1166  ;;  %v4046_v6 = vpop.permute.xlu0 %1168 }
 0x157   : > { %1321 = vrot.lane.b32.xlu1 %v3901_v0, %s3288_s16  ;;  %1323 = vrot.lane.b32.xlu0 %v3903_v63, %s3288_s16 }
 0x159   : > { %v4052_v61 = vpop.permute.xlu1 %1170  ;;  %v4054_v62 = vpop.permute.xlu0 %1172 }
 0x15b   : > { %1325 = vrot.lane.b32.xlu1 %v3913_v16, %s3288_s16  ;;  %1327 = vrot.lane.b32.xlu0 %v3915_v15, %s3288_s16  ;;  %v2365_v15 = vld [vmem:[%s5047_s3 + $0x40] sm:$0xff] }
 0x15c   : > { %3165 = vmatprep.subr.mxu0 %v2365_v15  ;;  %3237 = vmatprep.subr.mxu1 %v2365_v15 }
 0x15d   : > { %v4060_v27 = vpop.permute.xlu1 %1174  ;;  %v4062_v28 = vpop.permute.xlu0 %1176  ;;  %3166 = vmatpush3.msra.mxu0 %v2365_v15  ;;  %3246 = vmatpush3.msra.mxu1 %v2365_v15 }
 0x15f   : > { %1329 = vrot.lane.b32.xlu1 %v3925_v33, %s3288_s16  ;;  %1331 = vrot.lane.b32.xlu0 %v3927_v31, %s3288_s16  ;;  %v828_v31 = vld [vmem:[#allocation2 + $0x12a] sm:$0x3f] }
 0x161   : > { %v4068_v63 = vpop.permute.xlu1 %1178  ;;  %v4070_v0 = vpop.permute.xlu0 %1180 }
 0x163   : > { %1333 = vrot.lane.b32.xlu1 %v826_v40, %s3288_s16  ;;  %1335 = vrot.lane.b32.xlu0 %v827_v39, %s3288_s16  ;;  %v2364_v40 = vld [vmem:[%s5047_s3 + $0x38] sm:$0xff]  ;;  %v2363_v39 = vld [vmem:[%s5047_s3 + $0x30] sm:$0xff] }
 0x164   : > { %3167 = vmatprep.subr.mxu0 %v2364_v40  ;;  %3238 = vmatprep.subr.mxu1 %v2364_v40 }
 0x165   : > { %v4077_v33 = vpop.permute.xlu1 %1182  ;;  %v4079_v16 = vpop.permute.xlu0 %1184  ;;  %3168 = vmatpush3.msra.mxu0 %v2364_v40  ;;  %3247 = vmatpush3.msra.mxu1 %v2364_v40  ;;  %v2361_v40 = vld [vmem:[%s5047_s3 + $0x20] sm:$0xff] }
 0x166   : > { %5144 = vst [vmem:[#allocation60_spill] sm:$0xff] %v4079_v16  ;;  %3169 = vmatprep.subr.mxu0 %v2363_v39  ;;  %3239 = vmatprep.subr.mxu1 %v2363_v39 }
 0x167   : > { %1337 = vrot.lane.b32.xlu1 %v828_v31, %s3288_s16  ;;  %1411 = vrot.lane.b32.xlu0 %v829_v51, %s3289_s23  ;;  %v2362_v31 = vld [vmem:[%s5047_s3 + $0x28] sm:$0xff] }
 0x168   : > { %3170 = vmatpush3.msra.mxu0 %v2363_v39  ;;  %3248 = vmatpush3.msra.mxu1 %v2363_v39 }
 0x169   : > { %v4089_v48 = vpop.permute.xlu1 %1186  ;;  %v4091_v15 = vpop.permute.xlu0 %1188  ;;  %3171 = vmatprep.subr.mxu0 %v2362_v31  ;;  %3240 = vmatprep.subr.mxu1 %v2362_v31 }
 0x16a   : > { %5145 = vst [vmem:[#allocation61_spill] sm:$0xff] %v4089_v48  ;;  %5146 = vst [vmem:[#allocation62_spill] sm:$0xff] %v4091_v15  ;;  %3172 = vmatpush3.msra.mxu0 %v2362_v31  ;;  %3249 = vmatpush3.msra.mxu1 %v2362_v31  ;;  %v880_v15 = vld [vmem:[#allocation2 + $0x8c] sm:$0xff] }
 0x16b   : > { %1413 = vrot.lane.b32.xlu1 %v830_v19, %s3289_s23  ;;  %1415 = vrot.lane.b32.xlu0 %v831_v45, %s3289_s23  ;;  %v2360_v19 = vld [vmem:[%s5047_s3 + $0x18] sm:$0xff] }
 0x16c   : > { %3173 = vmatprep.subr.mxu0 %v2361_v40  ;;  %3241 = vmatprep.subr.mxu1 %v2361_v40 }
 0x16d   : > { %v4098_v51 = vpop.permute.xlu1 %1190  ;;  %v4100_v38 = vpop.permute.xlu0 %1192  ;;  %3174 = vmatpush3.msra.mxu0 %v2361_v40  ;;  %3250 = vmatpush3.msra.mxu1 %v2361_v40  ;;  %v2358_v40 = vld [vmem:[%s5047_s3 + $0x8] sm:$0xff] }
 0x16e   : > { %5147 = vst [vmem:[#allocation63_spill] sm:$0xff] %v4098_v51  ;;  %5148 = vst [vmem:[#allocation64_spill] sm:$0xff] %v4100_v38  ;;  %3175 = vmatprep.subr.mxu0 %v2360_v19  ;;  %3242 = vmatprep.subr.mxu1 %v2360_v19 }
 0x16f   : > { %1417 = vrot.lane.b32.xlu1 %v832_v4, %s3289_s23  ;;  %1419 = vrot.lane.b32.xlu0 %v833_v3, %s3289_s23  ;;  %v2359_v4 = vld [vmem:[%s5047_s3 + $0x10] sm:$0xff] }
 0x170   : > { %3176 = vmatpush3.msra.mxu0 %v2360_v19  ;;  %3251 = vmatpush3.msra.mxu1 %v2360_v19 }
 0x171   : > { %v4110_v45 = vpop.permute.xlu1 %1194  ;;  %v4112_v39 = vpop.permute.xlu0 %1196  ;;  %3177 = vmatprep.subr.mxu0 %v2359_v4  ;;  %3243 = vmatprep.subr.mxu1 %v2359_v4 }
 0x172   : > { %5149 = vst [vmem:[#allocation65_spill] sm:$0xff] %v4110_v45  ;;  %5150 = vst [vmem:[#allocation66_spill] sm:$0xff] %v4112_v39  ;;  %3178 = vmatpush3.msra.mxu0 %v2359_v4  ;;  %3252 = vmatpush3.msra.mxu1 %v2359_v4  ;;  %v911_v39 = vld [vmem:[#allocation2 + $0x5d] sm:$0xff] }
 0x173   : > { %1421 = vrot.lane.b32.xlu1 %v834_v34, %s3289_s23  ;;  %1555 = vrot.lane.b32.xlu0 %v865_v30, %s3290_s11  ;;  %v2357_v30 = vld [vmem:[%s5047_s3] sm:$0xff]  ;;  %v946_v45 = vld [vmem:[#allocation2 + $0x56] sm:$0xff] }
 0x174   : > { %3179 = vmatprep.subr.mxu0 %v2358_v40  ;;  %3244 = vmatprep.subr.mxu1 %v2358_v40 }
 0x175   : > { %v4119_v3 = vpop.permute.xlu1 %1198  ;;  %v4121_v31 = vpop.permute.xlu0 %1200  ;;  %3180 = vmatpush3.msra.mxu0 %v2358_v40  ;;  %3253 = vmatpush3.msra.mxu1 %v2358_v40 }
 0x176   : > { %5151 = vst [vmem:[#allocation67_spill] sm:$0xff] %v4119_v3  ;;  %5152 = vst [vmem:[#allocation68_spill] sm:$0xff] %v4121_v31  ;;  %3181 = vmatprep.subr.mxu0 %v2357_v30  ;;  %3245 = vmatprep.subr.mxu1 %v2357_v30  ;;  %v910_v3 = vld [vmem:[#allocation2 + $0x55] sm:$0xff] }
 0x177   : > { %1557 = vrot.lane.b32.xlu1 %v866_v54, %s3290_s11  ;;  %1666 = vrot.lane.b32.xlu0 %v867_v53, %s3291_s14 }
 0x178   : > { %3182 = vmatpush3.msra.mxu0 %v2357_v30  ;;  %3254 = vmatpush3.msra.mxu1 %v2357_v30 }
 0x179   : > { %v4131_v34 = vpop.permute.xlu1 %1202  ;;  %v4133_v19 = vpop.permute.xlu0 %1204 }
 0x17a   : > { %5153 = vst [vmem:[#allocation69_spill] sm:$0xff] %v4131_v34  ;;  %5154 = vst [vmem:[#allocation70_spill] sm:$0xff] %v4133_v19  ;;  %v941_v19 = vld [vmem:[#allocation2 + $0x2e] sm:$0xff]  ;;  %v944_v34 = vld [vmem:[#allocation2 + $0x46] sm:$0xff] }
 0x17b   : > { %1668 = vrot.lane.b32.xlu1 %v868_v29, %s3291_s14  ;;  %1810 = vrot.lane.b32.xlu0 %v904_v26, %s3292_s17 }
 0x17d   : > { %v4137_v54 = vpop.permute.xlu1 %1206  ;;  %v4139_v4 = vpop.permute.xlu0 %1208 }
 0x17e   : > { %5155 = vst [vmem:[#allocation71_spill] sm:$0xff] %v4137_v54  ;;  %5156 = vst [vmem:[#allocation72_spill] sm:$0xff] %v4139_v4  ;;  %v869_v4 = vld [vmem:[#allocation2 + $0x34] sm:$0xff]  ;;  %v908_v54 = vld [vmem:[#allocation2 + $0x45] sm:$0xff] }
 0x17f   : > { %1812 = vrot.lane.b32.xlu1 %v905_v36, %s3292_s17  ;;  %1954 = vrot.lane.b32.xlu0 %v940_v35, %s3293_s18 }
 0x181   : > { %v4143_v40 = vpop.permute.xlu1 %1210  ;;  %v4145_v25 = vpop.permute.xlu0 %1212 }
 0x182   : > { %5157 = vst [vmem:[#allocation73_spill] sm:$0xff] %v4143_v40  ;;  %5158 = vst [vmem:[#allocation74_spill] sm:$0xff] %v4145_v25  ;;  %v870_v40 = vld [vmem:[#allocation2 + $0x3c] sm:$0xff] }
 0x183   : > { %1559 = vrot.lane.b32.xlu1 %v867_v53, %s3290_s11  ;;  %1956 = vrot.lane.b32.xlu0 %v941_v19, %s3293_s18  ;;  %v906_v25 = vld [vmem:[#allocation2 + $0x35] sm:$0xff] }
 0x185   : > { %v4149_v26 = vpop.permute.xlu1 %1214  ;;  %v4151_v30 = vpop.permute.xlu0 %1216 }
 0x186   : > { %5159 = vst [vmem:[#allocation75_spill] sm:$0xff] %v4149_v26  ;;  %5160 = vst [vmem:[#allocation76_spill] sm:$0xff] %v4151_v30  ;;  %v907_v30 = vld [vmem:[#allocation2 + $0x3d] sm:$0xff] }
 0x187   : > { %1561 = vrot.lane.b32.xlu1 %v868_v29, %s3290_s11  ;;  %1670 = vrot.lane.b32.xlu0 %v869_v4, %s3291_s14  ;;  %v942_v26 = vld [vmem:[#allocation2 + $0x36] sm:$0xff] }
 0x189   : > { %v4155_v36 = vpop.permute.xlu1 %1218  ;;  %v4157_v35 = vpop.permute.xlu0 %1220 }
 0x18a   : > { %5161 = vst [vmem:[#allocation77_spill] sm:$0xff] %v4155_v36  ;;  %5162 = vst [vmem:[#allocation78_spill] sm:$0xff] %v4157_v35  ;;  %v943_v35 = vld [vmem:[#allocation2 + $0x3e] sm:$0xff] }
 0x18b   : > { %1672 = vrot.lane.b32.xlu1 %v870_v40, %s3291_s14  ;;  %1814 = vrot.lane.b32.xlu0 %v906_v25, %s3292_s17 }
 0x18d   : > { %v4161_v53 = vpop.permute.xlu1 %1222  ;;  %v4163_v19 = vpop.permute.xlu0 %1224 }
 0x18e   : > { %5163 = vst [vmem:[#allocation79_spill] sm:$0xff] %v4161_v53  ;;  %5164 = vst [vmem:[#allocation80_spill] sm:$0xff] %v4163_v19  ;;  %v871_v19 = vld [vmem:[#allocation2 + $0x44] sm:$0xff] }
 0x18f   : > { %1816 = vrot.lane.b32.xlu1 %v907_v30, %s3292_s17  ;;  %1958 = vrot.lane.b32.xlu0 %v942_v26, %s3293_s18 }
 0x191   : > { %v4167_v29 = vpop.permute.xlu1 %1226  ;;  %v4169_v36 = vpop.permute.xlu0 %1267 }
 0x192   : > { %5165 = vst [vmem:[#allocation81_spill] sm:$0xff] %v4167_v29  ;;  %v872_v29 = vld [vmem:[#allocation2 + $0x4c] sm:$0xff] }
 0x193   : > { %1563 = vrot.lane.b32.xlu1 %v869_v4, %s3290_s11  ;;  %1960 = vrot.lane.b32.xlu0 %v943_v35, %s3293_s18 }
 0x195   : > { %v4173_v25 = vpop.permute.xlu1 %1269  ;;  %v4175_v53 = vpop.permute.xlu0 %1271 }
 0x197   : > { %1565 = vrot.lane.b32.xlu1 %v870_v40, %s3290_s11  ;;  %1674 = vrot.lane.b32.xlu0 %v871_v19, %s3291_s14 }
 0x199   : > { %v4179_v30 = vpop.permute.xlu1 %1273  ;;  %v4181_v26 = vpop.permute.xlu0 %1275 }
 0x19b   : > { %1676 = vrot.lane.b32.xlu1 %v872_v29, %s3291_s14  ;;  %1818 = vrot.lane.b32.xlu0 %v908_v54, %s3292_s17 }
 0x19d   : > { %v4185_v4 = vpop.permute.xlu1 %1277  ;;  %v4187_v35 = vpop.permute.xlu0 %1279 }
 0x19f   : > { %1423 = vrot.lane.b32.xlu1 %v835_v37, %s3289_s23  ;;  %1820 = vrot.lane.b32.xlu0 %v909_v10, %s3292_s17 }
 0x1a1   : > { %v4191_v40 = vpop.permute.xlu1 %1281  ;;  %v4193_v22 = vpop.permute.xlu0 %1283 }
 0x1a3   : > { %1962 = vrot.lane.b32.xlu1 %v944_v34, %s3293_s18  ;;  %1425 = vrot.lane.b32.xlu0 %v836_v24, %s3289_s23 }
 0x1a5   : > { %v4197_v54 = vpop.permute.xlu1 %1285  ;;  %v4199_v31 = vpop.permute.xlu0 %1287 }
 0x1a7   : > { %1567 = vrot.lane.b32.xlu1 %v871_v19, %s3290_s11  ;;  %1964 = vrot.lane.b32.xlu0 %v945_v21, %s3293_s18 }
 0x1a9   : > { %v4203_v10 = vpop.permute.xlu1 %1289  ;;  %v4205_v37 = vpop.permute.xlu0 %1291 }
 0x1ab   : > { %1569 = vrot.lane.b32.xlu1 %v872_v29, %s3290_s11  ;;  %1678 = vrot.lane.b32.xlu0 %v873_v11, %s3291_s14 }
 0x1ad   : > { %v4209_v34 = vpop.permute.xlu1 %1293  ;;  %v4211_v24 = vpop.permute.xlu0 %1295 }
 0x1ae   : > { %5166 = vst [vmem:[#allocation82_spill] sm:$0xff] %v4211_v24 }
 0x1af   : > { %1680 = vrot.lane.b32.xlu1 %v874_v23, %s3291_s14  ;;  %1822 = vrot.lane.b32.xlu0 %v910_v3, %s3292_s17 }
 0x1b1   : > { %v4215_v21 = vpop.permute.xlu1 %1297  ;;  %v4217_v19 = vpop.permute.xlu0 %1299 }
 0x1b2   : > { %5167 = vst [vmem:[#allocation83_spill] sm:$0xff] %v4215_v21  ;;  %5168 = vst [vmem:[#allocation84_spill] sm:$0xff] %v4217_v19 }
 0x1b3   : > { %1427 = vrot.lane.b32.xlu1 %v837_v18, %s3289_s23  ;;  %1824 = vrot.lane.b32.xlu0 %v911_v39, %s3292_s17 }
 0x1b5   : > { %v4221_v29 = vpop.permute.xlu1 %1301  ;;  %v4223_v9 = vpop.permute.xlu0 %1303 }
 0x1b6   : > { %5169 = vst [vmem:[#allocation85_spill] sm:$0xff] %v4221_v29  ;;  %5170 = vst [vmem:[#allocation86_spill] sm:$0xff] %v4223_v9  ;;  %v875_v9 = vld [vmem:[#allocation2 + $0x64] sm:$0xff] }
 0x1b7   : > { %1966 = vrot.lane.b32.xlu1 %v946_v45, %s3293_s18  ;;  %1429 = vrot.lane.b32.xlu0 %v838_v60, %s3289_s23  ;;  %v840_v29 = vld [vmem:[#allocation2 + $0x6b] sm:$0xff] }
 0x1b9   : > { %v4227_v3 = vpop.permute.xlu1 %1305  ;;  %v4229_v38 = vpop.permute.xlu0 %1307 }
 0x1ba   : > { %5171 = vst [vmem:[#allocation87_spill] sm:$0xff] %v4227_v3  ;;  %5172 = vst [vmem:[#allocation88_spill] sm:$0xff] %v4229_v38  ;;  %v876_v3 = vld [vmem:[#allocation2 + $0x6c] sm:$0xff] }
 0x1bb   : > { %1571 = vrot.lane.b32.xlu1 %v873_v11, %s3290_s11  ;;  %1968 = vrot.lane.b32.xlu0 %v947_v20, %s3293_s18  ;;  %v912_v38 = vld [vmem:[#allocation2 + $0x65] sm:$0xff] }
 0x1bd   : > { %v4233_v18 = vpop.permute.xlu1 %1309  ;;  %v4235_v39 = vpop.permute.xlu0 %1311 }
 0x1be   : > { %5173 = vst [vmem:[#allocation89_spill] sm:$0xff] %v4233_v18  ;;  %5174 = vst [vmem:[#allocation90_spill] sm:$0xff] %v4235_v39  ;;  %v839_v39 = vld [vmem:[#allocation2 + $0x63] sm:$0xff]  ;;  %v913_v18 = vld [vmem:[#allocation2 + $0x6d] sm:$0xff] }
 0x1bf   : > { %1573 = vrot.lane.b32.xlu1 %v874_v23, %s3290_s11  ;;  %1682 = vrot.lane.b32.xlu0 %v875_v9, %s3291_s14 }
 0x1c1   : > { %v4239_v45 = vpop.permute.xlu1 %1313  ;;  %v4241_v60 = vpop.permute.xlu0 %1315 }
 0x1c2   : > { %5175 = vst [vmem:[#allocation91_spill] sm:$0xff] %v4239_v45  ;;  %5176 = vst [vmem:[#allocation92_spill] sm:$0xff] %v4241_v60  ;;  %v948_v60 = vld [vmem:[#allocation2 + $0x66] sm:$0xff] }
 0x1c3   : > { %1684 = vrot.lane.b32.xlu1 %v876_v3, %s3291_s14  ;;  %1826 = vrot.lane.b32.xlu0 %v912_v38, %s3292_s17 }
 0x1c5   : > { %v4245_v11 = vpop.permute.xlu1 %1317  ;;  %v4247_v20 = vpop.permute.xlu0 %1319 }
 0x1c6   : > { %5177 = vst [vmem:[#allocation93_spill] sm:$0xff] %v4245_v11  ;;  %5178 = vst [vmem:[#allocation94_spill] sm:$0xff] %v4247_v20  ;;  %v949_v20 = vld [vmem:[#allocation2 + $0x6e] sm:$0xff] }
 0x1c7   : > { %1431 = vrot.lane.b32.xlu1 %v839_v39, %s3289_s23  ;;  %1828 = vrot.lane.b32.xlu0 %v913_v18, %s3292_s17 }
 0x1c9   : > { %v4251_v23 = vpop.permute.xlu1 %1321  ;;  %v4253_v45 = vpop.permute.xlu0 %1323 }
 0x1ca   : > { %5179 = vst [vmem:[#allocation95_spill] sm:$0xff] %v4251_v23  ;;  %5180 = vst [vmem:[#allocation96_spill] sm:$0xff] %v4253_v45  ;;  %v877_v45 = vld [vmem:[#allocation2 + $0x74] sm:$0xff] }
 0x1cb   : > { %1970 = vrot.lane.b32.xlu1 %v948_v60, %s3293_s18  ;;  %1433 = vrot.lane.b32.xlu0 %v840_v29, %s3289_s23 }
 0x1cd   : > { %v4257_v38 = vpop.permute.xlu1 %1325  ;;  %v4259_v11 = vpop.permute.xlu0 %1327 }
 0x1ce   : > { %5181 = vst [vmem:[#allocation97_spill] sm:$0xff] %v4257_v38  ;;  %5182 = vst [vmem:[#allocation98_spill] sm:$0xff] %v4259_v11  ;;  %v878_v38 = vld [vmem:[#allocation2 + $0x7c] sm:$0xff] }
 0x1cf   : > { %1575 = vrot.lane.b32.xlu1 %v875_v9, %s3290_s11  ;;  %1972 = vrot.lane.b32.xlu0 %v949_v20, %s3293_s18  ;;  %v914_v11 = vld [vmem:[#allocation2 + $0x75] sm:$0xff] }
 0x1d1   : > { %v4263_v18 = vpop.permute.xlu1 %1329  ;;  %v4265_v39 = vpop.permute.xlu0 %1331 }
 0x1d2   : > { %5183 = vst [vmem:[#allocation99_spill] sm:$0xff] %v4263_v18  ;;  %5184 = vst [vmem:[#allocation100_spill] sm:$0xff] %v4265_v39  ;;  %v841_v18 = vld [vmem:[#allocation2 + $0x73] sm:$0xff]  ;;  %v915_v39 = vld [vmem:[#allocation2 + $0x7d] sm:$0xff] }
 0x1d3   : > { %1577 = vrot.lane.b32.xlu1 %v876_v3, %s3290_s11  ;;  %1686 = vrot.lane.b32.xlu0 %v877_v45, %s3291_s14 }
 0x1d5   : > { %v4269_v60 = vpop.permute.xlu1 %1333  ;;  %v4271_v29 = vpop.permute.xlu0 %1335 }
 0x1d6   : > { %5185 = vst [vmem:[#allocation101_spill] sm:$0xff] %v4269_v60  ;;  %5186 = vst [vmem:[#allocation102_spill] sm:$0xff] %v4271_v29  ;;  %v950_v60 = vld [vmem:[#allocation2 + $0x76] sm:$0xff] }
 0x1d7   : > { %1688 = vrot.lane.b32.xlu1 %v878_v38, %s3291_s14  ;;  %1830 = vrot.lane.b32.xlu0 %v914_v11, %s3292_s17  ;;  %v842_v29 = vld [vmem:[#allocation2 + $0x7b] sm:$0xff] }
 0x1d9   : > { %v4275_v9 = vpop.permute.xlu1 %1337  ;;  %v1412_v20 = vpop.permute.xlu0 %1411 }
 0x1da   : > { %5187 = vst [vmem:[#allocation103_spill] sm:$0xff] %v4275_v9  ;;  %v951_v9 = vld [vmem:[#allocation2 + $0x7e] sm:$0xff] }
 0x1db   : > { %1435 = vrot.lane.b32.xlu1 %v841_v18, %s3289_s23  ;;  %1832 = vrot.lane.b32.xlu0 %v915_v39, %s3292_s17 }
 0x1dd   : > { %v1414_v3 = vpop.permute.xlu1 %1413  ;;  %v4279_v23 = vpop.permute.xlu0 %1415 }
 0x1df   : > { %1974 = vrot.lane.b32.xlu1 %v950_v60, %s3293_s18  ;;  %1437 = vrot.lane.b32.xlu0 %v842_v29, %s3289_s23  ;;  %v718_v60 = vld [vmem:[#allocation2] sm:$0xff] }
 0x1e1   : > { %v4283_v51 = vpop.permute.xlu1 %1417  ;;  %v4285_v11 = vpop.permute.xlu0 %1419 }
 0x1e3   : > { %1579 = vrot.lane.b32.xlu1 %v877_v45, %s3290_s11  ;;  %1976 = vrot.lane.b32.xlu0 %v951_v9, %s3293_s18  ;;  %v2062_v45 = vsel %vm673_vm0, %v718_v60, %v3851_v1  ;;  %v719_v9 = vld [vmem:[#allocation2 + $0x8] sm:$0xff] }
 0x1e4   : > { %v843_v1 = vld [vmem:[#allocation2 + $0x83] sm:$0xff]  ;;  %v917_v60 = vld [vmem:[#allocation2 + $0x8d] sm:$0xff]  ;;  %v2063_v16 = vsel %vm673_vm0, %v719_v9, %v3861_v2 }
 0x1e5   : > { %v4289_v18 = vpop.permute.xlu1 %1421  ;;  %v1556_v39 = vpop.permute.xlu0 %1555 }
 0x1e7   : > { %1581 = vrot.lane.b32.xlu1 %v878_v38, %s3290_s11  ;;  %1690 = vrot.lane.b32.xlu0 %v879_v41, %s3291_s14  ;;  %v2099_v38 = vsel %vm2098_vm3, %v2062_v45, %v4022_v52  ;;  %v2100_v52 = vsel %vm2098_vm3, %v2063_v16, %v4028_v55 }
 0x1e8   : > { %v2136_v21 = vsel %vm2135_vm4, %v2099_v38, %v4169_v36 }
 0x1e9   : > { %v1558_v29 = vpop.permute.xlu1 %1557  ;;  %v1667_v19 = vpop.permute.xlu0 %1666  ;;  %v2173_v24 = vsel %vm2172_vm5, %v2136_v21, %v1412_v20  ;;  %v2137_v21 = vsel %vm2135_vm4, %v2100_v52, %v4173_v25  ;;  %v881_v52 = vld [vmem:[#allocation2 + $0x94] sm:$0xff] }
 0x1ea   : > { %v2174_v2 = vsel %vm2172_vm5, %v2137_v21, %v1414_v3  ;;  %v953_v3 = vld [vmem:[#allocation2 + $0x8e] sm:$0xff] }
 0x1eb   : > { %1692 = vrot.lane.b32.xlu1 %v880_v15, %s3291_s14  ;;  %1834 = vrot.lane.b32.xlu0 %v916_v42, %s3292_s17  ;;  %v2210_v42 = vsel %vm2209_vm6, %v2173_v24, %v1556_v39  ;;  %v952_v24 = vld [vmem:[#allocation2 + $0x86] sm:$0xff] }
 0x1ec   : > { %v2247_v36 = vsel %vm2246_vm7, %v2210_v42, %v1667_v19  ;;  %v844_v39 = vld [vmem:[#allocation2 + $0x8b] sm:$0xff] }
 0x1ed   : > { %v1669_v48 = vpop.permute.xlu1 %1668  ;;  %v1811_v59 = vpop.permute.xlu0 %1810  ;;  %v720_v42 = vld [vmem:[#allocation2 + $0x10] sm:$0xff] }
 0x1ee   : > { %v2284_v20 = vsel %vm2283_vm8, %v2247_v36, %v1811_v59 }
 0x1ef   : > { %1439 = vrot.lane.b32.xlu1 %v843_v1, %s3289_s23  ;;  %1836 = vrot.lane.b32.xlu0 %v917_v60, %s3292_s17  ;;  %v2211_v1 = vsel %vm2209_vm6, %v2174_v2, %v1558_v29  ;;  %v882_v2 = vld [vmem:[#allocation2 + $0x9c] sm:$0xff] }
 0x1f0   : > { %v2248_v55 = vsel %vm2246_vm7, %v2211_v1, %v1669_v48  ;;  %v2064_v48 = vsel %vm673_vm0, %v720_v42, %v3863_v5  ;;  %v846_v42 = vld [vmem:[#allocation2 + $0x9b] sm:$0xff] }
 0x1f1   : > { %v1813_v45 = vpop.permute.xlu1 %1812  ;;  %v1955_v38 = vpop.permute.xlu0 %1954  ;;  %v2101_v36 = vsel %vm2098_vm3, %v2064_v48, %v4030_v56 }
 0x1f2   : > { %v2321_v9 = vsel %vm2320_vm9, %v2284_v20, %v1955_v38  ;;  %v2285_v59 = vsel %vm2283_vm8, %v2248_v55, %v1813_v45  ;;  %v721_v45 = vld [vmem:[#allocation2 + $0x18] sm:$0xff] }
 0x1f3   : > { %1978 = vrot.lane.b32.xlu1 %v952_v24, %s3293_s18  ;;  %1441 = vrot.lane.b32.xlu0 %v844_v39, %s3289_s23  ;;  %v918_v24 = vld [vmem:[#allocation2 + $0x95] sm:$0xff]  ;;  %v2065_v5 = vsel %vm673_vm0, %v721_v45, %v3873_v7  ;;  %v883_v45 = vld [vmem:[#allocation2 + $0xa4] sm:$0xff] }
 0x1f4   : > { %3183 = vmatprep.mubr.msk.f32.mxu0 %vm2366_vm10, %v2321_v9  ;;  %v2102_v56 = vsel %vm2098_vm3, %v2065_v5, %v4036_v46 }
 0x1f5   : > { %v1560_v16 = vpop.permute.xlu1 %1559  ;;  %v1957_v25 = vpop.permute.xlu0 %1956  ;;  %v2139_v39 = vsel %vm2135_vm4, %v2102_v56, %v4179_v30  ;;  %v723_v56 = vld [vmem:[#allocation2 + $0x28] sm:$0xff] }
 0x1f6   : > { %v2322_v19 = vsel %vm2320_vm9, %v2285_v59, %v1957_v25  ;;  %v2176_v7 = vsel %vm2172_vm5, %v2139_v39, %v4283_v51  ;;  %v845_v59 = vld [vmem:[#allocation2 + $0x93] sm:$0xff] }
 0x1f7   : > { %1583 = vrot.lane.b32.xlu1 %v879_v41, %s3290_s11  ;;  %1980 = vrot.lane.b32.xlu0 %v953_v3, %s3293_s18  ;;  %v2138_v41 = vsel %vm2135_vm4, %v2101_v36, %v4175_v53  ;;  %v955_v36 = vld [vmem:[#allocation2 + $0x9e] sm:$0xff]  ;;  %v884_v39 = vld [vmem:[#allocation2 + $0xac] sm:$0xff] }
 0x1f8   : > { %3184 = vmatmul.mubr.msk.f32.vlgmr.msra.gmra.mxu0 %vm2366_vm10, %v2322_v19  ;;  %v2175_v38 = vsel %vm2172_vm5, %v2138_v41, %v4279_v23 }
 0x1f9   : > { %v1562_v29 = vpop.permute.xlu1 %1561  ;;  %v1671_v60 = vpop.permute.xlu0 %1670 }
 0x1fa   : > { %v2213_v25 = vsel %vm2209_vm6, %v2176_v7, %v1562_v29 }
 0x1fb   : > { %1585 = vrot.lane.b32.xlu1 %v880_v15, %s3290_s11  ;;  %1694 = vrot.lane.b32.xlu0 %v881_v52, %s3291_s14  ;;  %v2212_v15 = vsel %vm2209_vm6, %v2175_v38, %v1560_v16  ;;  %v919_v16 = vld [vmem:[#allocation2 + $0x9d] sm:$0xff] }
 0x1fc   : > { %v2249_v53 = vsel %vm2246_vm7, %v2212_v15, %v1671_v60  ;;  %v954_v60 = vld [vmem:[#allocation2 + $0x96] sm:$0xff] }
 0x1fd   : > { %v1673_v21 = vpop.permute.xlu1 %1672  ;;  %v1815_v20 = vpop.permute.xlu0 %1814 }
 0x1fe   : > { %v2286_v23 = vsel %vm2283_vm8, %v2249_v53, %v1815_v20  ;;  %v2250_v46 = vsel %vm2246_vm7, %v2213_v25, %v1673_v21  ;;  %v722_v20 = vld [vmem:[#allocation2 + $0x20] sm:$0xff] }
 0x1ff   : > { %1696 = vrot.lane.b32.xlu1 %v882_v2, %s3291_s14  ;;  %1838 = vrot.lane.b32.xlu0 %v918_v24, %s3292_s17  ;;  %v2066_v38 = vsel %vm673_vm0, %v722_v20, %v3875_v8  ;;  %v2067_v8 = vsel %vm673_vm0, %v723_v56, %v3885_v49  ;;  %v886_v56 = vld [vmem:[#allocation2 + $0xbc] sm:$0xff] }
 0x200   : > { %v2103_v24 = vsel %vm2098_vm3, %v2066_v38, %v4038_v47  ;;  %v2104_v47 = vsel %vm2098_vm3, %v2067_v8, %v4044_v32 }
 0x201   : > { %v1817_v9 = vpop.permute.xlu1 %1816  ;;  %v1959_v1 = vpop.permute.xlu0 %1958  ;;  %v2140_v5 = vsel %vm2135_vm4, %v2103_v24, %v4181_v26 }
 0x202   : > { %v2323_v55 = vsel %vm2320_vm9, %v2286_v23, %v1959_v1  ;;  %v2287_v30 = vsel %vm2283_vm8, %v2250_v46, %v1817_v9  ;;  %v2177_v53 = vsel %vm2172_vm5, %v2140_v5, %v4285_v11  ;;  %v920_v23 = vld [vmem:[#allocation2 + $0xa5] sm:$0xff]  ;;  %v2141_v9 = vsel %vm2135_vm4, %v2104_v47, %v4185_v4  ;;  %v725_v5 = vld [vmem:[#allocation2 + $0x38] sm:$0xff] }
 0x203   : > { %1443 = vrot.lane.b32.xlu1 %v845_v59, %s3289_s23  ;;  %1840 = vrot.lane.b32.xlu0 %v919_v16, %s3292_s17  ;;  %v2178_v49 = vsel %vm2172_vm5, %v2141_v9, %v4289_v18  ;;  %v847_v59 = vld [vmem:[#allocation2 + $0xa3] sm:$0xff]  ;;  %v921_v16 = vld [vmem:[#allocation2 + $0xad] sm:$0xff] }
 0x204   : > { %3186 = vmatprep.mubr.msk.f32.mxu0 %vm2366_vm10, %v2323_v55  ;;  %v923_v9 = vld [vmem:[#allocation2 + $0xbd] sm:$0xff] }
 0x205   : > { %v1564_v19 = vpop.permute.xlu1 %1563  ;;  %v1961_v3 = vpop.permute.xlu0 %1960 }
 0x206   : > { %v2324_v51 = vsel %vm2320_vm9, %v2287_v30, %v1961_v3  ;;  %v848_v3 = vld [vmem:[#allocation2 + $0xab] sm:$0xff] }
 0x207   : > { %1982 = vrot.lane.b32.xlu1 %v954_v60, %s3293_s18  ;;  %1445 = vrot.lane.b32.xlu0 %v846_v42, %s3289_s23  ;;  %v957_v42 = vld [vmem:[#allocation2 + $0xae] sm:$0xff] }
 0x208   : > { %3187 = vmatmul.mubr.msk.f32.gmra.mxu0 %vm2366_vm10, %v2324_v51 }
 0x209   : > { %v1566_v29 = vpop.permute.xlu1 %1565  ;;  %v1675_v48 = vpop.permute.xlu0 %1674 }
 0x20a   : > { %v2215_v25 = vsel %vm2209_vm6, %v2178_v49, %v1566_v29 }
 0x20b   : > { %1587 = vrot.lane.b32.xlu1 %v881_v52, %s3290_s11  ;;  %1984 = vrot.lane.b32.xlu0 %v955_v36, %s3293_s18  ;;  %v724_v36 = vld [vmem:[#allocation2 + $0x30] sm:$0xff] }
 0x20d   : > { %v1677_v41 = vpop.permute.xlu1 %1676  ;;  %v1819_v21 = vpop.permute.xlu0 %1818 }
 0x20e   : > { %v2252_v32 = vsel %vm2246_vm7, %v2215_v25, %v1677_v41  ;;  %v885_v41 = vld [vmem:[#allocation2 + $0xb4] sm:$0xff] }
 0x20f   : > { %1589 = vrot.lane.b32.xlu1 %v882_v2, %s3290_s11  ;;  %1698 = vrot.lane.b32.xlu0 %v883_v45, %s3291_s14  ;;  %v2214_v2 = vsel %vm2209_vm6, %v2177_v53, %v1564_v19  ;;  %v956_v19 = vld [vmem:[#allocation2 + $0xa6] sm:$0xff]  ;;  %v922_v53 = vld [vmem:[#allocation2 + $0xb5] sm:$0xff] }
 0x210   : > { %v2251_v26 = vsel %vm2246_vm7, %v2214_v2, %v1675_v48 }
 0x211   : > { %v1424_v52 = vpop.permute.xlu1 %1423  ;;  %v1821_v15 = vpop.permute.xlu0 %1820  ;;  %v2288_v11 = vsel %vm2283_vm8, %v2251_v26, %v1819_v21  ;;  %v2068_v21 = vsel %vm673_vm0, %v724_v36, %v3887_v50  ;;  %v2069_v50 = vsel %vm673_vm0, %v725_v5, %v3897_v12  ;;  %v849_v26 = vld [vmem:[#allocation2 + $0xb3] sm:$0xff] }
 0x212   : > { %v2289_v4 = vsel %vm2283_vm8, %v2252_v32, %v1821_v15  ;;  %v2105_v20 = vsel %vm2098_vm3, %v2068_v21, %v4046_v6  ;;  %v2106_v6 = vsel %vm2098_vm3, %v2069_v50, %v4052_v61  ;;  %v959_v32 = vld [vmem:[#allocation2 + $0xbe] sm:$0xff]  ;;  %v888_v36 = vld [vmem:[#allocation2 + $0xcc] sm:$0xff] }
 0x213   : > { %1700 = vrot.lane.b32.xlu1 %v884_v39, %s3291_s14  ;;  %1842 = vrot.lane.b32.xlu0 %v920_v23, %s3292_s17  ;;  %v2142_v38 = vsel %vm2135_vm4, %v2105_v20, %v4187_v35  ;;  %v2143_v23 = vsel %vm2135_vm4, %v2106_v6, %v4191_v40 }
 0x214   : > { %v2179_v15 = vsel %vm2172_vm5, %v2142_v38, %v1424_v52 }
 0x215   : > { %v1963_v1 = vpop.permute.xlu1 %1962  ;;  %v1426_v7 = vpop.permute.xlu0 %1425 }
 0x216   : > { %v2325_v55 = vsel %vm2320_vm9, %v2288_v11, %v1963_v1  ;;  %v2180_v12 = vsel %vm2172_vm5, %v2143_v23, %v1426_v7  ;;  %v852_v23 = vld [vmem:[#allocation2 + $0xcb] sm:$0xff] }
 0x217   : > { %1447 = vrot.lane.b32.xlu1 %v847_v59, %s3289_s23  ;;  %1844 = vrot.lane.b32.xlu0 %v921_v16, %s3292_s17  ;;  %v850_v59 = vld [vmem:[#allocation2 + $0xbb] sm:$0xff] }
 0x218   : > { %3189 = vmatprep.mubr.msk.f32.mxu0 %vm2366_vm10, %v2325_v55  ;;  %v958_v55 = vld [vmem:[#allocation2 + $0xb6] sm:$0xff] }
 0x219   : > { %v1568_v46 = vpop.permute.xlu1 %1567  ;;  %v1965_v30 = vpop.permute.xlu0 %1964 }
 0x21a   : > { %v2326_v18 = vsel %vm2320_vm9, %v2289_v4, %v1965_v30  ;;  %v726_v30 = vld [vmem:[#allocation2 + $0x40] sm:$0xff] }
 0x21b   : > { %1986 = vrot.lane.b32.xlu1 %v956_v19, %s3293_s18  ;;  %1449 = vrot.lane.b32.xlu0 %v848_v3, %s3289_s23  ;;  %v2070_v19 = vsel %vm673_vm0, %v726_v30, %v3899_v17 }
 0x21c   : > { %3190 = vmatmul.mubr.msk.f32.gmra.mxu0 %vm2366_vm10, %v2326_v18  ;;  %v887_v18 = vld [vmem:[#allocation2 + $0xc4] sm:$0xff]  ;;  %v2107_v3 = vsel %vm2098_vm3, %v2070_v19, %v4054_v62  ;;  %v853_v19 = vld [vmem:[#allocation2 + $0xd3] sm:$0xff] }
 0x21d   : > { %v1570_v51 = vpop.permute.xlu1 %1569  ;;  %v1679_v60 = vpop.permute.xlu0 %1678 }
 0x21e   : > { %v2217_v11 = vsel %vm2209_vm6, %v2180_v12, %v1570_v51  ;;  %v2144_v51 = vsel %vm2135_vm4, %v2107_v3, %v4193_v22  ;;  %v927_v3 = vld [vmem:[#allocation2 + $0xdd] sm:$0xff] }
 0x21f   : > { %1591 = vrot.lane.b32.xlu1 %v883_v45, %s3290_s11  ;;  %1988 = vrot.lane.b32.xlu0 %v957_v42, %s3293_s18 }
 0x221   : > { %v1681_v29 = vpop.permute.xlu1 %1680  ;;  %v1823_v48 = vpop.permute.xlu0 %1822 }
 0x222   : > { %v2254_v61 = vsel %vm2246_vm7, %v2217_v11, %v1681_v29  ;;  %v727_v29 = vld [vmem:[#allocation2 + $0x48] sm:$0xff] }
 0x223   : > { %1593 = vrot.lane.b32.xlu1 %v884_v39, %s3290_s11  ;;  %1702 = vrot.lane.b32.xlu0 %v885_v41, %s3291_s14  ;;  %v2216_v39 = vsel %vm2209_vm6, %v2179_v15, %v1568_v46  ;;  %v2071_v17 = vsel %vm673_vm0, %v727_v29, %v3909_v44  ;;  %v851_v15 = vld [vmem:[#allocation2 + $0xc3] sm:$0xff] }
 0x224   : > { %v2253_v35 = vsel %vm2246_vm7, %v2216_v39, %v1679_v60  ;;  %v2108_v62 = vsel %vm2098_vm3, %v2071_v17, %v4060_v27 }
 0x225   : > { %v1428_v45 = vpop.permute.xlu1 %1427  ;;  %v1825_v24 = vpop.permute.xlu0 %1824  ;;  %v2290_v52 = vsel %vm2283_vm8, %v2253_v35, %v1823_v48  ;;  %v2145_v20 = vsel %vm2135_vm4, %v2108_v62, %v4197_v54  ;;  %v960_v35 = vld [vmem:[#allocation2 + $0xc6] sm:$0xff] }
 0x226   : > { %v2291_v40 = vsel %vm2283_vm8, %v2254_v61, %v1825_v24  ;;  %v2181_v48 = vsel %vm2172_vm5, %v2144_v51, %v1428_v45 }
 0x227   : > { %1704 = vrot.lane.b32.xlu1 %v886_v56, %s3291_s14  ;;  %1846 = vrot.lane.b32.xlu0 %v922_v53, %s3292_s17 }
 0x229   : > { %v1967_v8 = vpop.permute.xlu1 %1966  ;;  %v1430_v2 = vpop.permute.xlu0 %1429 }
 0x22a   : > { %v2327_v47 = vsel %vm2320_vm9, %v2290_v52, %v1967_v8  ;;  %v2182_v44 = vsel %vm2172_vm5, %v2145_v20, %v1430_v2  ;;  %v961_v2 = vld [vmem:[#allocation2 + $0xce] sm:$0xff]  ;;  %v730_v20 = vld [vmem:[#allocation2 + $0x60] sm:$0xff] }
 0x22b   : > { %1451 = vrot.lane.b32.xlu1 %v849_v26, %s3289_s23  ;;  %1848 = vrot.lane.b32.xlu0 %v923_v9, %s3292_s17  ;;  %v728_v26 = vld [vmem:[#allocation2 + $0x50] sm:$0xff] }
 0x22c   : > { %3192 = vmatprep.mubr.msk.f32.mxu0 %vm2366_vm10, %v2327_v47  ;;  %v889_v9 = vld [vmem:[#allocation2 + $0xd4] sm:$0xff]  ;;  %v2072_v11 = vsel %vm673_vm0, %v728_v26, %v3911_v43 }
 0x22d   : > { %v1572_v1 = vpop.permute.xlu1 %1571  ;;  %v1969_v49 = vpop.permute.xlu0 %1968  ;;  %v2109_v61 = vsel %vm2098_vm3, %v2072_v11, %v4062_v28  ;;  %v964_v11 = vld [vmem:[#allocation2 + $0xe6] sm:$0xff] }
 0x22e   : > { %v2328_v7 = vsel %vm2320_vm9, %v2291_v40, %v1969_v49  ;;  %v2218_v21 = vsel %vm2209_vm6, %v2181_v48, %v1572_v1  ;;  %v2146_v40 = vsel %vm2135_vm4, %v2109_v61, %v4199_v31  ;;  %v962_v48 = vld [vmem:[#allocation2 + $0xd6] sm:$0xff]  ;;  %v856_v61 = vld [vmem:[#allocation2 + $0xeb] sm:$0xff] }
 0x22f   : > { %1990 = vrot.lane.b32.xlu1 %v958_v55, %s3293_s18  ;;  %1453 = vrot.lane.b32.xlu0 %v850_v59, %s3289_s23  ;;  %v890_v59 = vld [vmem:[#allocation2 + $0xdc] sm:$0xff] }
 0x230   : > { %3193 = vmatmul.mubr.msk.f32.gmra.mxu0 %vm2366_vm10, %v2328_v7  ;;  %v729_v7 = vld [vmem:[#allocation2 + $0x58] sm:$0xff] }
 0x231   : > { %v1574_v16 = vpop.permute.xlu1 %1573  ;;  %v1683_v25 = vpop.permute.xlu0 %1682  ;;  %v2073_v43 = vsel %vm673_vm0, %v729_v7, %v3921_v58 }
 0x232   : > { %v2255_v22 = vsel %vm2246_vm7, %v2218_v21, %v1683_v25  ;;  %v2219_v53 = vsel %vm2209_vm6, %v2182_v44, %v1574_v16  ;;  %v926_v16 = vld [vmem:[#allocation2 + $0xd5] sm:$0xff]  ;;  %v2110_v28 = vsel %vm2098_vm3, %v2073_v43, %v4068_v63  ;;  %v963_v21 = vld [vmem:[#allocation2 + $0xde] sm:$0xff] }
 0x233   : > { %1595 = vrot.lane.b32.xlu1 %v885_v41, %s3290_s11  ;;  %1992 = vrot.lane.b32.xlu0 %v959_v32, %s3293_s18  ;;  %v924_v41 = vld [vmem:[#allocation2 + $0xc5] sm:$0xff]  ;;  %v2147_v32 = vsel %vm2135_vm4, %v2110_v28, %v4203_v10 }
 0x235   : > { %v1685_v4 = vpop.permute.xlu1 %1684  ;;  %v1827_v46 = vpop.permute.xlu0 %1826 }
 0x236   : > { %v2292_v38 = vsel %vm2283_vm8, %v2255_v22, %v1827_v46  ;;  %v2256_v27 = vsel %vm2246_vm7, %v2219_v53, %v1685_v4 }
 0x237   : > { %1597 = vrot.lane.b32.xlu1 %v886_v56, %s3290_s11  ;;  %1706 = vrot.lane.b32.xlu0 %v887_v18, %s3291_s14  ;;  %v925_v56 = vld [vmem:[#allocation2 + $0xcd] sm:$0xff] }
 0x239   : > { %v1432_v60 = vpop.permute.xlu1 %1431  ;;  %v1829_v42 = vpop.permute.xlu0 %1828 }
 0x23a   : > { %v2293_v54 = vsel %vm2283_vm8, %v2256_v27, %v1829_v42  ;;  %v2183_v55 = vsel %vm2172_vm5, %v2146_v40, %v1432_v60  ;;  %v892_v27 = vld [vmem:[#allocation2 + $0xec] sm:$0xff] }
 0x23b   : > { %1708 = vrot.lane.b32.xlu1 %v888_v36, %s3291_s14  ;;  %1850 = vrot.lane.b32.xlu0 %v924_v41, %s3292_s17 }
 0x23d   : > { %v1971_v45 = vpop.permute.xlu1 %1970  ;;  %v1434_v24 = vpop.permute.xlu0 %1433 }
 0x23e   : > { %v2329_v5 = vsel %vm2320_vm9, %v2292_v38, %v1971_v45  ;;  %v2184_v58 = vsel %vm2172_vm5, %v2147_v32, %v1434_v24  ;;  %v891_v38 = vld [vmem:[#allocation2 + $0xe4] sm:$0xff]  ;;  %v2074_v45 = vsel %vm673_vm0, %v730_v20, %v3923_v57 }
 0x23f   : > { %1455 = vrot.lane.b32.xlu1 %v851_v15, %s3289_s23  ;;  %1852 = vrot.lane.b32.xlu0 %v925_v56, %s3292_s17  ;;  %v2111_v24 = vsel %vm2098_vm3, %v2074_v45, %v4070_v0  ;;  %v731_v56 = vld [vmem:[#allocation2 + $0x68] sm:$0xff] }
 0x240   : > { %3195 = vmatprep.mubr.msk.f32.mxu0 %vm2366_vm10, %v2329_v5  ;;  %v2148_v44 = vsel %vm2135_vm4, %v2111_v24, %v4205_v37  ;;  %v2075_v57 = vsel %vm673_vm0, %v731_v56, %v3933_v14  ;;  %v858_v56 = vld [vmem:[#allocation2 + $0xfb] sm:$0xff] }
 0x241   : > { %v1576_v50 = vpop.permute.xlu1 %1575  ;;  %v1973_v39 = vpop.permute.xlu0 %1972  ;;  %v2112_v0 = vsel %vm2098_vm3, %v2075_v57, %v4077_v33 }
 0x242   : > { %v2330_v6 = vsel %vm2320_vm9, %v2293_v54, %v1973_v39  ;;  %v2220_v25 = vsel %vm2209_vm6, %v2183_v55, %v1576_v50  ;;  %v928_v54 = vld [vmem:[#allocation2 + $0xe5] sm:$0xff]  ;;  %v2149_v39 = vsel %vm2135_vm4, %v2112_v0, %v4209_v34 }
 0x243   : > { %1994 = vrot.lane.b32.xlu1 %v960_v35, %s3293_s18  ;;  %1457 = vrot.lane.b32.xlu0 %v852_v23, %s3289_s23  ;;  %v734_v0 = vld [vmem:[#allocation2 + $0x80] sm:$0xff] }
 0x244   : > { %3196 = vmatmul.mubr.msk.f32.gmra.mxu0 %vm2366_vm10, %v2330_v6 }
 0x245   : > { %v1578_v52 = vpop.permute.xlu1 %1577  ;;  %v1687_v8 = vpop.permute.xlu0 %1686 }
 0x246   : > { %v2257_v31 = vsel %vm2246_vm7, %v2220_v25, %v1687_v8  ;;  %v2221_v51 = vsel %vm2209_vm6, %v2184_v58, %v1578_v52  ;;  %v855_v8 = vld [vmem:[#allocation2 + $0xe3] sm:$0xff]  ;;  %v5188_v25 = vld [vmem:[#allocation60_spill] sm:$0xff] }
 0x247   : > { %1599 = vrot.lane.b32.xlu1 %v887_v18, %s3290_s11  ;;  %1996 = vrot.lane.b32.xlu0 %v961_v2, %s3293_s18  ;;  %v929_v2 = vld [vmem:[#allocation2 + $0xed] sm:$0xff] }
 0x249   : > { %v1689_v12 = vpop.permute.xlu1 %1688  ;;  %v1831_v47 = vpop.permute.xlu0 %1830 }
 0x24a   : > { %v2294_v4 = vsel %vm2283_vm8, %v2257_v31, %v1831_v47  ;;  %v2258_v63 = vsel %vm2246_vm7, %v2221_v51, %v1689_v12  ;;  %v5189_v31 = vld [vmem:[#allocation82_spill] sm:$0xff] }
 0x24b   : > { %1601 = vrot.lane.b32.xlu1 %v888_v36, %s3290_s11  ;;  %1710 = vrot.lane.b32.xlu0 %v889_v9, %s3291_s14  ;;  %v854_v36 = vld [vmem:[#allocation2 + $0xdb] sm:$0xff] }
 0x24d   : > { %v1436_v1 = vpop.permute.xlu1 %1435  ;;  %v1833_v49 = vpop.permute.xlu0 %1832 }
 0x24e   : > { %v2295_v10 = vsel %vm2283_vm8, %v2258_v63, %v1833_v49  ;;  %v2185_v53 = vsel %vm2172_vm5, %v2148_v44, %v1436_v1  ;;  %v965_v49 = vld [vmem:[#allocation2 + $0xee] sm:$0xff]  ;;  %v5191_v63 = vld [vmem:[#allocation61_spill] sm:$0xff] }
 0x24f   : > { %1712 = vrot.lane.b32.xlu1 %v890_v59, %s3291_s14  ;;  %1854 = vrot.lane.b32.xlu0 %v926_v16, %s3292_s17  ;;  %v893_v16 = vld [vmem:[#allocation2 + $0xf4] sm:$0xff] }
 0x251   : > { %v1975_v46 = vpop.permute.xlu1 %1974  ;;  %v1438_v30 = vpop.permute.xlu0 %1437 }
 0x252   : > { %v2331_v18 = vsel %vm2320_vm9, %v2294_v4, %v1975_v46  ;;  %v2186_v14 = vsel %vm2172_vm5, %v2149_v39, %v1438_v30  ;;  %v733_v30 = vld [vmem:[#allocation2 + $0x78] sm:$0xff]  ;;  %v5193_v39 = vld [vmem:[#allocation40_spill] sm:$0xff] }
 0x253   : > { %1459 = vrot.lane.b32.xlu1 %v853_v19, %s3289_s23  ;;  %1856 = vrot.lane.b32.xlu0 %v927_v3, %s3292_s17  ;;  %v930_v19 = vld [vmem:[#allocation2 + $0xf5] sm:$0xff]  ;;  %v5190_v3 = vld [vmem:[#allocation39_spill] sm:$0xff] }
 0x254   : > { %3198 = vmatprep.mubr.msk.f32.mxu0 %vm2366_vm10, %v2331_v18  ;;  %v894_v18 = vld [vmem:[#allocation2 + $0xfc] sm:$0xff] }
 0x255   : > { %v1580_v60 = vpop.permute.xlu1 %1579  ;;  %v1977_v42 = vpop.permute.xlu0 %1976 }
 0x256   : > { %v2332_v29 = vsel %vm2320_vm9, %v2295_v10, %v1977_v42  ;;  %v2222_v50 = vsel %vm2209_vm6, %v2185_v53, %v1580_v60  ;;  %v5192_v42 = vld [vmem:[#allocation83_spill] sm:$0xff] }
 0x257   : > { %1998 = vrot.lane.b32.xlu1 %v962_v48, %s3293_s18  ;;  %1461 = vrot.lane.b32.xlu0 %v854_v36, %s3289_s23 }
 0x258   : > { %3199 = vmatmul.mubr.msk.f32.gmra.mxu0 %vm2366_vm10, %v2332_v29 }
 0x259   : > { %v1582_v41 = vpop.permute.xlu1 %1581  ;;  %v1691_v17 = vpop.permute.xlu0 %1690 }
 0x25a   : > { %v2259_v37 = vsel %vm2246_vm7, %v2222_v50, %v1691_v17  ;;  %v2223_v12 = vsel %vm2209_vm6, %v2186_v14, %v1582_v41  ;;  %v5195_v14 = vld [vmem:[#allocation84_spill] sm:$0xff] }
 0x25b   : > { %1603 = vrot.lane.b32.xlu1 %v889_v9, %s3290_s11  ;;  %2000 = vrot.lane.b32.xlu0 %v963_v21, %s3293_s18 }
 0x25d   : > { %v1693_v62 = vpop.permute.xlu1 %1692  ;;  %v1835_v22 = vpop.permute.xlu0 %1834 }
 0x25e   : > { %v2296_v6 = vsel %vm2283_vm8, %v2259_v37, %v1835_v22  ;;  %v2260_v33 = vsel %vm2246_vm7, %v2223_v12, %v1693_v62  ;;  %v857_v62 = vld [vmem:[#allocation2 + $0xf3] sm:$0xff]  ;;  %v931_v22 = vld [vmem:[#allocation2 + $0xfd] sm:$0xff]  ;;  %v735_v12 = vld [vmem:[#allocation2 + $0x88] sm:$0xff] }
 0x25f   : > { %1605 = vrot.lane.b32.xlu1 %v890_v59, %s3290_s11  ;;  %1714 = vrot.lane.b32.xlu0 %v891_v38, %s3291_s14  ;;  %v732_v59 = vld [vmem:[#allocation2 + $0x70] sm:$0xff]  ;;  %v895_v37 = vld [vmem:[#allocation2 + $0x104] sm:$0xff] }
 0x260   : > { %v2076_v43 = vsel %vm673_vm0, %v732_v59, %v3935_v13  ;;  %v2077_v13 = vsel %vm673_vm0, %v733_v30, %v5190_v3  ;;  %v860_v3 = vld [vmem:[#allocation2 + $0x10b] sm:$0xff] }
 0x261   : > { %v1440_v5 = vpop.permute.xlu1 %1439  ;;  %v1837_v15 = vpop.permute.xlu0 %1836  ;;  %v2113_v28 = vsel %vm2098_vm3, %v2076_v43, %v5188_v25  ;;  %v2114_v10 = vsel %vm2098_vm3, %v2077_v13, %v5191_v63  ;;  %v969_v63 = vld [vmem:[#allocation2 + $0x10e] sm:$0xff] }
 0x262   : > { %v2297_v34 = vsel %vm2283_vm8, %v2260_v33, %v1837_v15  ;;  %v2150_v32 = vsel %vm2135_vm4, %v2113_v28, %v5189_v31  ;;  %v2151_v29 = vsel %vm2135_vm4, %v2114_v10, %v5192_v42  ;;  %v966_v15 = vld [vmem:[#allocation2 + $0xf6] sm:$0xff]  ;;  %v859_v28 = vld [vmem:[#allocation2 + $0x103] sm:$0xff]  ;;  %v933_v31 = vld [vmem:[#allocation2 + $0x10d] sm:$0xff] }
 0x263   : > { %1716 = vrot.lane.b32.xlu1 %v892_v27, %s3291_s14  ;;  %1858 = vrot.lane.b32.xlu0 %v928_v54, %s3292_s17  ;;  %v2187_v58 = vsel %vm2172_vm5, %v2150_v32, %v1440_v5  ;;  %v967_v54 = vld [vmem:[#allocation2 + $0xfe] sm:$0xff]  ;;  %v736_v42 = vld [vmem:[#allocation2 + $0x90] sm:$0xff] }
 0x265   : > { %v1979_v35 = vpop.permute.xlu1 %1978  ;;  %v1442_v23 = vpop.permute.xlu0 %1441 }
 0x266   : > { %v2333_v52 = vsel %vm2320_vm9, %v2296_v6, %v1979_v35  ;;  %v2188_v17 = vsel %vm2172_vm5, %v2151_v29, %v1442_v23  ;;  %v2078_v6 = vsel %vm673_vm0, %v734_v0, %v5193_v39  ;;  %v5194_v35 = vld [vmem:[#allocation62_spill] sm:$0xff]  ;;  %v897_v29 = vld [vmem:[#allocation2 + $0x114] sm:$0xff] }
 0x267   : > { %1463 = vrot.lane.b32.xlu1 %v855_v8, %s3289_s23  ;;  %1860 = vrot.lane.b32.xlu0 %v929_v2, %s3292_s17  ;;  %v2115_v23 = vsel %vm2098_vm3, %v2078_v6, %v5194_v35  ;;  %v861_v35 = vld [vmem:[#allocation2 + $0x113] sm:$0xff] }
 0x268   : > { %3201 = vmatprep.mubr.msk.f32.mxu0 %vm2366_vm10, %v2333_v52  ;;  %v2152_v52 = vsel %vm2135_vm4, %v2115_v23, %v5195_v14  ;;  %v935_v23 = vld [vmem:[#allocation2 + $0x11d] sm:$0xff] }
 0x269   : > { %v1584_v47 = vpop.permute.xlu1 %1583  ;;  %v1981_v26 = vpop.permute.xlu0 %1980 }
 0x26a   : > { %v2334_v9 = vsel %vm2320_vm9, %v2297_v34, %v1981_v26  ;;  %v2224_v51 = vsel %vm2209_vm6, %v2187_v58, %v1584_v47  ;;  %v896_v34 = vld [vmem:[#allocation2 + $0x10c] sm:$0xff]  ;;  %v5196_v26 = vld [vmem:[#allocation41_spill] sm:$0xff] }
 0x26b   : > { %2002 = vrot.lane.b32.xlu1 %v964_v11, %s3293_s18  ;;  %1465 = vrot.lane.b32.xlu0 %v856_v61, %s3289_s23  ;;  %v932_v47 = vld [vmem:[#allocation2 + $0x105] sm:$0xff] }
 0x26c   : > { %3202 = vmatmul.mubr.msk.f32.gmra.mxu0 %vm2366_vm10, %v2334_v9  ;;  %v2079_v9 = vsel %vm673_vm0, %v735_v12, %v5196_v26  ;;  %v5197_v61 = vld [vmem:[#allocation63_spill] sm:$0xff]  ;;  %v862_v26 = vld [vmem:[#allocation2 + $0x11b] sm:$0xff] }
 0x26d   : > { %v1586_v40 = vpop.permute.xlu1 %1585  ;;  %v1695_v1 = vpop.permute.xlu0 %1694 }
 0x26e   : > { %v2261_v60 = vsel %vm2246_vm7, %v2224_v51, %v1695_v1  ;;  %v2225_v20 = vsel %vm2209_vm6, %v2188_v17, %v1586_v40  ;;  %v2116_v40 = vsel %vm2098_vm3, %v2079_v9, %v5197_v61  ;;  %v971_v61 = vld [vmem:[#allocation2 + $0x11e] sm:$0xff] }
 0x26f   : > { %1607 = vrot.lane.b32.xlu1 %v891_v38, %s3290_s11  ;;  %2004 = vrot.lane.b32.xlu0 %v965_v49, %s3293_s18  ;;  %v5198_v49 = vld [vmem:[#allocation85_spill] sm:$0xff] }
 0x271   : > { %v1697_v7 = vpop.permute.xlu1 %1696  ;;  %v1839_v55 = vpop.permute.xlu0 %1838 }
 0x272   : > { %v2298_v48 = vsel %vm2283_vm8, %v2261_v60, %v1839_v55  ;;  %v2262_v38 = vsel %vm2246_vm7, %v2225_v20, %v1697_v7  ;;  %v2153_v7 = vsel %vm2135_vm4, %v2116_v40, %v5198_v49  ;;  %v738_v49 = vld [vmem:[#allocation2 + $0xa0] sm:$0xff] }
 0x273   : > { %1609 = vrot.lane.b32.xlu1 %v892_v27, %s3290_s11  ;;  %1718 = vrot.lane.b32.xlu0 %v893_v16, %s3291_s14 }
 0x275   : > { %v1444_v4 = vpop.permute.xlu1 %1443  ;;  %v1841_v46 = vpop.permute.xlu0 %1840 }
 0x276   : > { %v2299_v45 = vsel %vm2283_vm8, %v2262_v38, %v1841_v46  ;;  %v2189_v33 = vsel %vm2172_vm5, %v2152_v52, %v1444_v4  ;;  %v737_v38 = vld [vmem:[#allocation2 + $0x98] sm:$0xff] }
 0x277   : > { %1720 = vrot.lane.b32.xlu1 %v894_v18, %s3291_s14  ;;  %1862 = vrot.lane.b32.xlu0 %v930_v19, %s3292_s17  ;;  %v968_v19 = vld [vmem:[#allocation2 + $0x106] sm:$0xff] }
 0x279   : > { %v1983_v36 = vpop.permute.xlu1 %1982  ;;  %v1446_v41 = vpop.permute.xlu0 %1445 }
 0x27a   : > { %v2335_v21 = vsel %vm2320_vm9, %v2298_v48, %v1983_v36  ;;  %v2190_v43 = vsel %vm2172_vm5, %v2153_v7, %v1446_v41  ;;  %v5199_v48 = vld [vmem:[#allocation42_spill] sm:$0xff]  ;;  %v5200_v41 = vld [vmem:[#allocation64_spill] sm:$0xff] }
 0x27b   : > { %1467 = vrot.lane.b32.xlu1 %v857_v62, %s3289_s23  ;;  %1864 = vrot.lane.b32.xlu0 %v931_v22, %s3292_s17  ;;  %v2080_v36 = vsel %vm673_vm0, %v736_v42, %v5199_v48  ;;  %v899_v7 = vld [vmem:[#allocation2 + $0x124] sm:$0xff] }
 0x27c   : > { %3204 = vmatprep.mubr.msk.f32.mxu0 %vm2366_vm10, %v2335_v21  ;;  %v2117_v17 = vsel %vm2098_vm3, %v2080_v36, %v5200_v41  ;;  %v5201_v21 = vld [vmem:[#allocation86_spill] sm:$0xff] }
 0x27d   : > { %v1588_v24 = vpop.permute.xlu1 %1587  ;;  %v1985_v44 = vpop.permute.xlu0 %1984  ;;  %v2154_v62 = vsel %vm2135_vm4, %v2117_v17, %v5201_v21  ;;  %v863_v17 = vld [vmem:[#allocation2 + $0x123] sm:$0xff]  ;;  %v937_v21 = vld [vmem:[#allocation2 + $0x12d] sm:$0xff] }
 0x27e   : > { %v2336_v5 = vsel %vm2320_vm9, %v2299_v45, %v1985_v44  ;;  %v2226_v11 = vsel %vm2209_vm6, %v2189_v33, %v1588_v24  ;;  %v898_v24 = vld [vmem:[#allocation2 + $0x11c] sm:$0xff] }
 0x27f   : > { %2006 = vrot.lane.b32.xlu1 %v966_v15, %s3293_s18  ;;  %1469 = vrot.lane.b32.xlu0 %v858_v56, %s3289_s23  ;;  %v934_v44 = vld [vmem:[#allocation2 + $0x115] sm:$0xff] }
 0x280   : > { %3205 = vmatmul.mubr.msk.f32.gmra.mxu0 %vm2366_vm10, %v2336_v5  ;;  %v5202_v5 = vld [vmem:[#allocation43_spill] sm:$0xff] }
 0x281   : > { %v1590_v53 = vpop.permute.xlu1 %1589  ;;  %v1699_v27 = vpop.permute.xlu0 %1698  ;;  %v2081_v15 = vsel %vm673_vm0, %v737_v38, %v5202_v5 }
 0x282   : > { %v2263_v1 = vsel %vm2246_vm7, %v2226_v11, %v1699_v27  ;;  %v2227_v32 = vsel %vm2209_vm6, %v2190_v43, %v1590_v53  ;;  %v5203_v53 = vld [vmem:[#allocation65_spill] sm:$0xff] }
 0x283   : > { %1611 = vrot.lane.b32.xlu1 %v893_v16, %s3290_s11  ;;  %2008 = vrot.lane.b32.xlu0 %v967_v54, %s3293_s18  ;;  %v2118_v27 = vsel %vm2098_vm3, %v2081_v15, %v5203_v53  ;;  %v972_v53 = vld [vmem:[#allocation2 + $0x126] sm:$0xff] }
 0x285   : > { %v1701_v57 = vpop.permute.xlu1 %1700  ;;  %v1843_v50 = vpop.permute.xlu0 %1842 }
 0x286   : > { %v2300_v55 = vsel %vm2283_vm8, %v2263_v1, %v1843_v50  ;;  %v2264_v4 = vsel %vm2246_vm7, %v2227_v32, %v1701_v57  ;;  %v5204_v57 = vld [vmem:[#allocation87_spill] sm:$0xff] }
 0x287   : > { %1613 = vrot.lane.b32.xlu1 %v894_v18, %s3290_s11  ;;  %1722 = vrot.lane.b32.xlu0 %v895_v37, %s3291_s14  ;;  %v2155_v50 = vsel %vm2135_vm4, %v2118_v27, %v5204_v57  ;;  %v864_v27 = vld [vmem:[#allocation2 + $0x12b] sm:$0x3f] }
 0x288   : > { %v5212_v57 = vld [vmem:[#allocation4_spill] sm:$0xff] }
 0x289   : > { %v1448_v8 = vpop.permute.xlu1 %1447  ;;  %v1845_v2 = vpop.permute.xlu0 %1844 }
 0x28a   : > { %v2301_v46 = vsel %vm2283_vm8, %v2264_v4, %v1845_v2  ;;  %v2191_v45 = vsel %vm2172_vm5, %v2154_v62, %v1448_v8  ;;  %v739_v4 = vld [vmem:[#allocation2 + $0xa8] sm:$0xff] }
 0x28b   : > { %1724 = vrot.lane.b32.xlu1 %v896_v34, %s3291_s14  ;;  %1866 = vrot.lane.b32.xlu0 %v932_v47, %s3292_s17  ;;  %v970_v47 = vld [vmem:[#allocation2 + $0x116] sm:$0xff] }
 0x28d   : > { %v1987_v59 = vpop.permute.xlu1 %1986  ;;  %v1450_v16 = vpop.permute.xlu0 %1449 }
 0x28e   : > { %v2337_v25 = vsel %vm2320_vm9, %v2300_v55, %v1987_v59  ;;  %v2192_v6 = vsel %vm2172_vm5, %v2155_v50, %v1450_v16  ;;  %v5205_v55 = vld [vmem:[#allocation44_spill] sm:$0xff]  ;;  %v5206_v16 = vld [vmem:[#allocation66_spill] sm:$0xff] }
 0x28f   : > { %1471 = vrot.lane.b32.xlu1 %v859_v28, %s3289_s23  ;;  %1868 = vrot.lane.b32.xlu0 %v933_v31, %s3292_s17  ;;  %v2082_v59 = vsel %vm673_vm0, %v738_v49, %v5205_v55  ;;  %v938_v49 = vld [vmem:[#allocation2 + $0x135] sm:$0xff] }
 0x290   : > { %3207 = vmatprep.mubr.msk.f32.mxu0 %vm2366_vm10, %v2337_v25  ;;  %v2119_v43 = vsel %vm2098_vm3, %v2082_v59, %v5206_v16  ;;  %v5207_v25 = vld [vmem:[#allocation88_spill] sm:$0xff] }
 0x291   : > { %v1592_v30 = vpop.permute.xlu1 %1591  ;;  %v1989_v58 = vpop.permute.xlu0 %1988  ;;  %v2156_v28 = vsel %vm2135_vm4, %v2119_v43, %v5207_v25  ;;  %v741_v43 = vld [vmem:[#allocation2 + $0xb8] sm:$0xff] }
 0x292   : > { %v2338_v18 = vsel %vm2320_vm9, %v2301_v46, %v1989_v58  ;;  %v2228_v56 = vsel %vm2209_vm6, %v2191_v45, %v1592_v30  ;;  %v901_v30 = vld [vmem:[#allocation2 + $0x12c] sm:$0xff]  ;;  %v5211_v45 = vld [vmem:[#allocation6_spill] sm:$0xff] }
 0x293   : > { %2010 = vrot.lane.b32.xlu1 %v968_v19, %s3293_s18  ;;  %1473 = vrot.lane.b32.xlu0 %v860_v3, %s3289_s23  ;;  %v936_v58 = vld [vmem:[#allocation2 + $0x125] sm:$0xff] }
 0x294   : > { %3208 = vmatmul.mubr.msk.f32.gmra.mxu0 %vm2366_vm10, %v2338_v18  ;;  %v5208_v18 = vld [vmem:[#allocation45_spill] sm:$0xff] }
 0x295   : > { %v1594_v13 = vpop.permute.xlu1 %1593  ;;  %v1703_v51 = vpop.permute.xlu0 %1702  ;;  %v2083_v19 = vsel %vm673_vm0, %v739_v4, %v5208_v18 }
 0x296   : > { %v2265_v54 = vsel %vm2246_vm7, %v2228_v56, %v1703_v51  ;;  %v2229_v52 = vsel %vm2209_vm6, %v2192_v6, %v1594_v13  ;;  %v5209_v13 = vld [vmem:[#allocation67_spill] sm:$0xff] }
 0x297   : > { %1615 = vrot.lane.b32.xlu1 %v895_v37, %s3290_s11  ;;  %2012 = vrot.lane.b32.xlu0 %v969_v63, %s3293_s18  ;;  %v2120_v51 = vsel %vm2098_vm3, %v2083_v19, %v5209_v13  ;;  %v939_v19 = vld [vmem:[#allocation2 + $0x13d] sm:$0x3f]  ;;  %v5218_v13 = vld [vmem:[#allocation91_spill] sm:$0xff] }
 0x299   : > { %v1705_v10 = vpop.permute.xlu1 %1704  ;;  %v1847_v60 = vpop.permute.xlu0 %1846 }
 0x29a   : > { %v2302_v0 = vsel %vm2283_vm8, %v2265_v54, %v1847_v60  ;;  %v2266_v8 = vsel %vm2246_vm7, %v2229_v52, %v1705_v10  ;;  %v5210_v10 = vld [vmem:[#allocation89_spill] sm:$0xff] }
 0x29b   : > { %1617 = vrot.lane.b32.xlu1 %v896_v34, %s3290_s11  ;;  %1726 = vrot.lane.b32.xlu0 %v897_v29, %s3291_s14  ;;  %v2157_v60 = vsel %vm2135_vm4, %v2120_v51, %v5210_v10 }
 0x29d   : > { %v1452_v22 = vpop.permute.xlu1 %1451  ;;  %v1849_v20 = vpop.permute.xlu0 %1848 }
 0x29e   : > { %v2303_v2 = vsel %vm2283_vm8, %v2266_v8, %v1849_v20  ;;  %v2193_v46 = vsel %vm2172_vm5, %v2156_v28, %v1452_v22  ;;  %v5216_v28 = vld [vmem:[#allocation47_spill] sm:$0xff] }
 0x29f   : > { %1728 = vrot.lane.b32.xlu1 %v898_v24, %s3291_s14  ;;  %1870 = vrot.lane.b32.xlu0 %v934_v44, %s3292_s17 }
 0x2a1   : > { %v1991_v37 = vpop.permute.xlu1 %1990  ;;  %v1454_v39 = vpop.permute.xlu0 %1453 }
 0x2a2   : > { %v2339_v14 = vsel %vm2320_vm9, %v2302_v0, %v1991_v37  ;;  %v2194_v36 = vsel %vm2172_vm5, %v2157_v60, %v1454_v39 }
 0x2a3   : > { %1475 = vrot.lane.b32.xlu1 %v861_v35, %s3289_s23  ;;  %1872 = vrot.lane.b32.xlu0 %v935_v23, %s3292_s17 }
 0x2a4   : > { %3210 = vmatprep.mubr.msk.f32.mxu1 %vm2366_vm10, %v2339_v14  ;;  %v973_v14 = vld [vmem:[#allocation2 + $0x12e] sm:$0xff] }
 0x2a5   : > { %v1596_v12 = vpop.permute.xlu1 %1595  ;;  %v1993_v33 = vpop.permute.xlu0 %1992 }
 0x2a6   : > { %v2340_v34 = vsel %vm2320_vm9, %v2303_v2, %v1993_v33  ;;  %v2230_v3 = vsel %vm2209_vm6, %v2193_v46, %v1596_v12  ;;  %v902_v12 = vld [vmem:[#allocation2 + $0x134] sm:$0xff] }
 0x2a7   : > { %2014 = vrot.lane.b32.xlu1 %v970_v47, %s3293_s18  ;;  %1477 = vrot.lane.b32.xlu0 %v862_v26, %s3289_s23  ;;  %v740_v47 = vld [vmem:[#allocation2 + $0xb0] sm:$0xff]  ;;  %v5217_v46 = vld [vmem:[#allocation69_spill] sm:$0xff] }
 0x2a8   : > { %3211 = vmatmul.mubr.msk.f32.vlgmr.msra.gmra.mxu1 %vm2366_vm10, %v2340_v34  ;;  %v900_v26 = vld [vmem:[#allocation2 + $0x12c] sm:$0x3f] }
 0x2a9   : > { %v1598_v9 = vpop.permute.xlu1 %1597  ;;  %v1707_v11 = vpop.permute.xlu0 %1706 }
 0x2aa   : > { %v2267_v63 = vsel %vm2246_vm7, %v2230_v3, %v1707_v11  ;;  %v2231_v62 = vsel %vm2209_vm6, %v2194_v36, %v1598_v9  ;;  %v5213_v9 = vld [vmem:[#allocation46_spill] sm:$0xff]  ;;  %v974_v3 = vld [vmem:[#allocation2 + $0x136] sm:$0xff] }
 0x2ab   : > { %1619 = vrot.lane.b32.xlu1 %v897_v29, %s3290_s11  ;;  %2016 = vrot.lane.b32.xlu0 %v971_v61, %s3293_s18  ;;  %v2084_v11 = vsel %vm673_vm0, %v740_v47, %v5213_v9  ;;  %v5214_v61 = vld [vmem:[#allocation68_spill] sm:$0xff] }
 0x2ad   : > { %v1709_v40 = vpop.permute.xlu1 %1708  ;;  %v1851_v1 = vpop.permute.xlu0 %1850 }
 0x2ae   : > { %v2304_v42 = vsel %vm2283_vm8, %v2267_v63, %v1851_v1  ;;  %v2268_v22 = vsel %vm2246_vm7, %v2231_v62, %v1709_v40  ;;  %v2121_v40 = vsel %vm2098_vm3, %v2084_v11, %v5214_v61  ;;  %v903_v1 = vld [vmem:[#allocation2 + $0x13c] sm:$0x3f] }
 0x2af   : > { %1621 = vrot.lane.b32.xlu1 %v898_v24, %s3290_s11  ;;  %1730 = vrot.lane.b32.xlu0 %v899_v7, %s3291_s14  ;;  %v5219_v63 = vld [vmem:[#allocation5_spill] sm:$0xff] }
 0x2b0   : > { %v5224_v11 = vld [vmem:[#allocation49_spill] sm:$0xff] }
 0x2b1   : > { %v4643_v31 = vpop.permute.xlu1 %1455  ;;  %v1853_v32 = vpop.permute.xlu0 %1852 }
 0x2b2   : > { %v2305_v38 = vsel %vm2283_vm8, %v2268_v22, %v1853_v32  ;;  %v2085_v32 = vsel %vm673_vm0, %v741_v43, %v5216_v28 }
 0x2b3   : > { %1732 = vrot.lane.b32.xlu1 %v901_v30, %s3291_s14  ;;  %1874 = vrot.lane.b32.xlu0 %v936_v58, %s3292_s17  ;;  %v2122_v30 = vsel %vm2098_vm3, %v2085_v32, %v5217_v46 }
 0x2b5   : > { %v1995_v29 = vpop.permute.xlu1 %1994  ;;  %v4657_v48 = vpop.permute.xlu0 %1457 }
 0x2b6   : > { %v2341_v41 = vsel %vm2320_vm9, %v2304_v42, %v1995_v29 }
 0x2b7   : > { %1479 = vrot.lane.b32.xlu1 %v863_v17, %s3289_s23  ;;  %1876 = vrot.lane.b32.xlu0 %v937_v21, %s3292_s17  ;;  %v5220_v21 = vld [vmem:[#allocation3_spill] sm:$0xff] }
 0x2b8   : > { %v3185_v20 = vpop.f32.mrf.mxu0  ;;  %3213 = vmatprep.mubr.msk.f32.mxu1 %vm2366_vm10, %v2341_v41 }
 0x2b9   : > { %2721 = vst.msk [vmem:[%s4666_s24 + $0x8] sm:$0xff] %vm673_vm0, %v3185_v20  ;;  %v2757_v24 = vmul.f32 %v3185_v20, %v5211_v45  ;;  %v1600_v44 = vpop.permute.xlu1 %1599  ;;  %v1997_v5 = vpop.permute.xlu0 %1996 }
 0x2ba   : > { %v2541_v15 = vpop.f32.mrf.mxu0  ;;  %v2342_v56 = vsel %vm2320_vm9, %v2305_v38, %v1997_v5 }
 0x2bb   : > { %v2870_v54 = vmul.f32 %v3185_v20, %v2757_v24  ;;  %2720 = vst.msk [vmem:[%s4666_s24] sm:$0xff] %vm673_vm0, %v2541_v15  ;;  %v2756_v50 = vmul.f32 %v2541_v15, %v5212_v57  ;;  %2018 = vrot.lane.b32.xlu1 %v972_v53, %s3293_s18  ;;  %1481 = vrot.lane.b32.xlu0 %v864_v27, %s3289_s23  ;;  %v2793_v0 = vsel %vm673_vm0, %v2757_v24, 0.0  ;;  %v975_v20 = vld [vmem:[#allocation2 + $0x13e] sm:$0x3f] }
 0x2bc   : > { %3214 = vmatmul.mubr.msk.f32.gmra.mxu1 %vm2366_vm10, %v2342_v56 }
 0x2bd   : > { %v2792_v37 = vsel %vm673_vm0, %v2756_v50, 0.0  ;;  %v2869_v39 = vmul.f32 %v2756_v50, %v2541_v15  ;;  %v1602_v6 = vpop.permute.xlu1 %1601  ;;  %v1711_v35 = vpop.permute.xlu0 %1710  ;;  %v2906_v52 = vsel %vm673_vm0, %v2870_v54, 0.0 }
 0x2be   : > { %v2794_v23 = vadd.f32 %v2793_v0, %v2792_v37 }
 0x2bf   : > { %v2905_v8 = vsel %vm673_vm0, %v2869_v39, 0.0  ;;  %1623 = vrot.lane.b32.xlu1 %v899_v7, %s3290_s11  ;;  %2020 = vrot.lane.b32.xlu0 %v973_v14, %s3293_s18  ;;  %v5215_v7 = vld [vmem:[#allocation90_spill] sm:$0xff]  ;;  %v5221_v14 = vld [vmem:[#allocation48_spill] sm:$0xff] }
 0x2c0   : > { %v2907_v2 = vadd.f32 %v2906_v52, %v2905_v8  ;;  %v2158_v55 = vsel %vm2135_vm4, %v2121_v40, %v5215_v7  ;;  %v5222_v8 = vld [vmem:[#allocation70_spill] sm:$0xff] }
 0x2c1   : > { %v1713_v33 = vpop.permute.xlu1 %1712  ;;  %v1855_v34 = vpop.permute.xlu0 %1854  ;;  %v2195_v25 = vsel %vm2172_vm5, %v2158_v55, %v4643_v31  ;;  %v2159_v31 = vsel %vm2135_vm4, %v2122_v30, %v5218_v13 }
 0x2c2   : > { %v2232_v4 = vsel %vm2209_vm6, %v2195_v25, %v1600_v44  ;;  %v2196_v29 = vsel %vm2172_vm5, %v2159_v31, %v4657_v48 }
 0x2c3   : > { %1625 = vrot.lane.b32.xlu1 %v900_v26, %s3290_s11  ;;  %1734 = vrot.lane.b32.xlu0 %v902_v12, %s3291_s14  ;;  %v2269_v58 = vsel %vm2246_vm7, %v2232_v4, %v1711_v35  ;;  %v2233_v17 = vsel %vm2209_vm6, %v2196_v29, %v1602_v6  ;;  %v743_v26 = vld [vmem:[#allocation2 + $0xc8] sm:$0xff] }
 0x2c4   : > { %v2306_v51 = vsel %vm2283_vm8, %v2269_v58, %v1855_v34  ;;  %v2270_v22 = vsel %vm2246_vm7, %v2233_v17, %v1713_v33  ;;  %v5223_v33 = vld [vmem:[#allocation92_spill] sm:$0xff]  ;;  %v2087_v61 = vsel %vm673_vm0, %v743_v26, %v5224_v11 }
 0x2c5   : > { %v1460_v59 = vpop.permute.xlu1 %1459  ;;  %v1857_v16 = vpop.permute.xlu0 %1856 }
 0x2c6   : > { %v2307_v48 = vsel %vm2283_vm8, %v2270_v22, %v1857_v16  ;;  %v5226_v16 = vld [vmem:[#allocation93_spill] sm:$0xff] }
 0x2c7   : > { %1736 = vrot.lane.b32.xlu1 %v903_v1, %s3291_s14  ;;  %1878 = vrot.lane.b32.xlu0 %v938_v49, %s3292_s17  ;;  %v5225_v1 = vld [vmem:[#allocation71_spill] sm:$0xff] }
 0x2c8   : > { %v3188_v18 = vpop.f32.mrf.mxu0  ;;  %v2124_v49 = vsel %vm2098_vm3, %v2087_v61, %v5225_v1 }
 0x2c9   : > { %2723 = vst.msk [vmem:[%s4666_s24 + $0x18] sm:$0xff] %vm673_vm0, %v3188_v18  ;;  %v2759_v10 = vmul.f32 %v3188_v18, %v5219_v63  ;;  %v1999_v60 = vpop.permute.xlu1 %1998  ;;  %v1462_v42 = vpop.permute.xlu0 %1461  ;;  %v2161_v43 = vsel %vm2135_vm4, %v2124_v49, %v5226_v16  ;;  %v5236_v49 = vld [vmem:[#allocation10_spill] sm:$0xff] }
 0x2ca   : > { %v2343_v36 = vsel %vm2320_vm9, %v2306_v51, %v1999_v60  ;;  %v2551_v41 = vpop.f32.mrf.mxu0  ;;  %v2198_v46 = vsel %vm2172_vm5, %v2161_v43, %v1462_v42 }
 0x2cb   : > { %2722 = vst.msk [vmem:[%s4666_s24 + $0x10] sm:$0xff] %vm673_vm0, %v2551_v41  ;;  %v2758_v62 = vmul.f32 %v2551_v41, %v5220_v21  ;;  %1880 = vrot.lane.b32.xlu1 %v939_v19, %s3292_s17  ;;  %2022 = vrot.lane.b32.xlu0 %v974_v3, %s3293_s18  ;;  %v2872_v38 = vmul.f32 %v3188_v18, %v2759_v10  ;;  %v2797_v53 = vsel %vm673_vm0, %v2759_v10, 0.0  ;;  %v5228_v19 = vld [vmem:[#allocation8_spill] sm:$0xff] }
 0x2cc   : > { %3216 = vmatprep.mubr.msk.f32.mxu1 %vm2366_vm10, %v2343_v36 }
 0x2cd   : > { %v2795_v45 = vsel %vm673_vm0, %v2758_v62, 0.0  ;;  %v2871_v24 = vmul.f32 %v2758_v62, %v2551_v41  ;;  %v1604_v44 = vpop.permute.xlu1 %1603  ;;  %v2001_v5 = vpop.permute.xlu0 %2000  ;;  %v2910_v50 = vsel %vm673_vm0, %v2872_v38, 0.0 }
 0x2ce   : > { %v2796_v15 = vadd.f32 %v2795_v45, %v2794_v23  ;;  %v2344_v56 = vsel %vm2320_vm9, %v2307_v48, %v2001_v5  ;;  %v742_v23 = vld [vmem:[#allocation2 + $0xc0] sm:$0xff] }
 0x2cf   : > { %v2908_v27 = vsel %vm673_vm0, %v2871_v24, 0.0  ;;  %2024 = vrot.lane.b32.xlu1 %v975_v20, %s3293_s18  ;;  %3217 = vmatmul.mubr.msk.f32.gmra.mxu1 %vm2366_vm10, %v2344_v56  ;;  %v2086_v52 = vsel %vm673_vm0, %v742_v23, %v5221_v14  ;;  %v5229_v5 = vld [vmem:[#allocation50_spill] sm:$0xff]  ;;  %v5230_v56 = vld [vmem:[#allocation72_spill] sm:$0xff]  ;;  %v5233_v23 = vld [vmem:[#allocation73_spill] sm:$0xff] }
 0x2d0   : > { %v2909_v54 = vadd.f32 %v2908_v27, %v2907_v2  ;;  %v2798_v57 = vadd.f32 %v2797_v53, %v2796_v15  ;;  %v2123_v12 = vsel %vm2098_vm3, %v2086_v52, %v5222_v8  ;;  %v5231_v27 = vld [vmem:[#allocation94_spill] sm:$0xff] }
 0x2d1   : > { %v1606_v0 = vpop.permute.xlu1 %1605  ;;  %v1715_v37 = vpop.permute.xlu0 %1714  ;;  %v2160_v34 = vsel %vm2135_vm4, %v2123_v12, %v5223_v33  ;;  %v5234_v12 = vld [vmem:[#allocation95_spill] sm:$0xff] }
 0x2d2   : > { %v2911_v39 = vadd.f32 %v2910_v50, %v2909_v54  ;;  %v2197_v9 = vsel %vm2172_vm5, %v2160_v34, %v1460_v59  ;;  %v5227_v59 = vld [vmem:[#allocation7_spill] sm:$0xff]  ;;  %v2235_v18 = vsel %vm2209_vm6, %v2198_v46, %v1606_v0  ;;  %v745_v0 = vld [vmem:[#allocation2 + $0xd8] sm:$0xff] }
 0x2d3   : > { %v2234_v40 = vsel %vm2209_vm6, %v2197_v9, %v1604_v44  ;;  %v744_v44 = vld [vmem:[#allocation2 + $0xd0] sm:$0xff] }
 0x2d4   : > { %v2271_v7 = vsel %vm2246_vm7, %v2234_v40, %v1715_v37  ;;  %v2088_v15 = vsel %vm673_vm0, %v744_v44, %v5229_v5  ;;  %v5241_v44 = vld [vmem:[#allocation75_spill] sm:$0xff] }
 0x2d5   : > { %v1717_v6 = vpop.permute.xlu1 %1716  ;;  %v1859_v35 = vpop.permute.xlu0 %1858  ;;  %v2125_v53 = vsel %vm2098_vm3, %v2088_v15, %v5230_v56 }
 0x2d6   : > { %v2308_v25 = vsel %vm2283_vm8, %v2271_v7, %v1859_v35  ;;  %v2272_v13 = vsel %vm2246_vm7, %v2235_v18, %v1717_v6  ;;  %v2162_v54 = vsel %vm2135_vm4, %v2125_v53, %v5231_v27  ;;  %v5242_v53 = vld [vmem:[#allocation97_spill] sm:$0xff] }
 0x2d9   : > { %v1464_v2 = vpop.permute.xlu1 %1463  ;;  %v1861_v47 = vpop.permute.xlu0 %1860 }
 0x2da   : > { %v2309_v31 = vsel %vm2283_vm8, %v2272_v13, %v1861_v47  ;;  %v2199_v37 = vsel %vm2172_vm5, %v2162_v54, %v1464_v2  ;;  %v5235_v2 = vld [vmem:[#allocation9_spill] sm:$0xff] }
 0x2dc   : > { %v3191_v55 = vpop.f32.mrf.mxu0 }
 0x2dd   : > { %2725 = vst.msk [vmem:[%s4666_s24 + $0x28] sm:$0xff] %vm673_vm0, %v3191_v55  ;;  %v2761_v28 = vmul.f32 %v3191_v55, %v5227_v59  ;;  %v2003_v32 = vpop.permute.xlu1 %2002  ;;  %v1466_v4 = vpop.permute.xlu0 %1465 }
 0x2de   : > { %v2345_v30 = vsel %vm2320_vm9, %v2308_v25, %v2003_v32  ;;  %v2561_v58 = vpop.f32.mrf.mxu0 }
 0x2df   : > { %2724 = vst.msk [vmem:[%s4666_s24 + $0x20] sm:$0xff] %vm673_vm0, %v2561_v58  ;;  %v2760_v3 = vmul.f32 %v2561_v58, %v5228_v19  ;;  %3219 = vmatprep.mubr.msk.f32.mxu1 %vm2366_vm10, %v2345_v30  ;;  %v2874_v51 = vmul.f32 %v3191_v55, %v2761_v28  ;;  %v2801_v41 = vsel %vm673_vm0, %v2761_v28, 0.0 }
 0x2e1   : > { %v2799_v63 = vsel %vm673_vm0, %v2760_v3, 0.0  ;;  %v2873_v10 = vmul.f32 %v2760_v3, %v2561_v58  ;;  %v1608_v60 = vpop.permute.xlu1 %1607  ;;  %v2005_v42 = vpop.permute.xlu0 %2004  ;;  %v2914_v22 = vsel %vm673_vm0, %v2874_v51, 0.0 }
 0x2e2   : > { %v2800_v29 = vadd.f32 %v2799_v63, %v2798_v57  ;;  %v2346_v36 = vsel %vm2320_vm9, %v2309_v31, %v2005_v42  ;;  %v2236_v35 = vsel %vm2209_vm6, %v2199_v37, %v1608_v60  ;;  %v746_v60 = vld [vmem:[#allocation2 + $0xe0] sm:$0xff]  ;;  %v5237_v42 = vld [vmem:[#allocation52_spill] sm:$0xff] }
 0x2e3   : > { %v2912_v17 = vsel %vm673_vm0, %v2873_v10, 0.0  ;;  %3220 = vmatmul.mubr.msk.f32.gmra.mxu1 %vm2366_vm10, %v2346_v36  ;;  %v5238_v36 = vld [vmem:[#allocation74_spill] sm:$0xff] }
 0x2e4   : > { %v2913_v21 = vadd.f32 %v2912_v17, %v2911_v39  ;;  %v2802_v62 = vadd.f32 %v2801_v41, %v2800_v29  ;;  %v5232_v39 = vld [vmem:[#allocation51_spill] sm:$0xff]  ;;  %v2090_v29 = vsel %vm673_vm0, %v746_v60, %v5237_v42  ;;  %v5239_v17 = vld [vmem:[#allocation96_spill] sm:$0xff]  ;;  %v5249_v60 = vld [vmem:[#allocation77_spill] sm:$0xff] }
 0x2e5   : > { %v1610_v20 = vpop.permute.xlu1 %1609  ;;  %v1719_v48 = vpop.permute.xlu0 %1718  ;;  %v2089_v6 = vsel %vm673_vm0, %v745_v0, %v5232_v39  ;;  %v2127_v41 = vsel %vm2098_vm3, %v2090_v29, %v5238_v36 }
 0x2e6   : > { %v2915_v38 = vadd.f32 %v2914_v22, %v2913_v21  ;;  %v2126_v14 = vsel %vm2098_vm3, %v2089_v6, %v5233_v23  ;;  %v2273_v52 = vsel %vm2246_vm7, %v2236_v35, %v1719_v48  ;;  %v2164_v21 = vsel %vm2135_vm4, %v2127_v41, %v5239_v17  ;;  %v5250_v41 = vld [vmem:[#allocation99_spill] sm:$0xff] }
 0x2e7   : > { %v2163_v33 = vsel %vm2135_vm4, %v2126_v14, %v5234_v12  ;;  %v5244_v14 = vld [vmem:[#allocation12_spill] sm:$0xff] }
 0x2e8   : > { %v2200_v11 = vsel %vm2172_vm5, %v2163_v33, %v1466_v4 }
 0x2e9   : > { %v1721_v45 = vpop.permute.xlu1 %1720  ;;  %v1863_v24 = vpop.permute.xlu0 %1862  ;;  %v2237_v1 = vsel %vm2209_vm6, %v2200_v11, %v1610_v20  ;;  %v747_v20 = vld [vmem:[#allocation2 + $0xe8] sm:$0xff] }
 0x2ea   : > { %v2310_v34 = vsel %vm2283_vm8, %v2273_v52, %v1863_v24  ;;  %v2274_v55 = vsel %vm2246_vm7, %v2237_v1, %v1721_v45 }
 0x2ed   : > { %v1468_v57 = vpop.permute.xlu1 %1467  ;;  %v1865_v50 = vpop.permute.xlu0 %1864 }
 0x2ee   : > { %v2311_v16 = vsel %vm2283_vm8, %v2274_v55, %v1865_v50  ;;  %v2201_v48 = vsel %vm2172_vm5, %v2164_v21, %v1468_v57  ;;  %v5243_v57 = vld [vmem:[#allocation11_spill] sm:$0xff] }
 0x2f0   : > { %v3194_v8 = vpop.f32.mrf.mxu0 }
 0x2f1   : > { %2727 = vst.msk [vmem:[%s4666_s24 + $0x38] sm:$0xff] %vm673_vm0, %v3194_v8  ;;  %v2763_v47 = vmul.f32 %v3194_v8, %v5235_v2  ;;  %v2007_v26 = vpop.permute.xlu1 %2006  ;;  %v1470_v9 = vpop.permute.xlu0 %1469 }
 0x2f2   : > { %v2347_v61 = vsel %vm2320_vm9, %v2310_v34, %v2007_v26  ;;  %v2571_v40 = vpop.f32.mrf.mxu0 }
 0x2f3   : > { %2726 = vst.msk [vmem:[%s4666_s24 + $0x30] sm:$0xff] %vm673_vm0, %v2571_v40  ;;  %v2762_v7 = vmul.f32 %v2571_v40, %v5236_v49  ;;  %3222 = vmatprep.mubr.msk.f32.mxu1 %vm2366_vm10, %v2347_v61  ;;  %v2876_v43 = vmul.f32 %v3194_v8, %v2763_v47  ;;  %v2805_v30 = vsel %vm673_vm0, %v2763_v47, 0.0 }
 0x2f5   : > { %v2803_v25 = vsel %vm673_vm0, %v2762_v7, 0.0  ;;  %v2875_v59 = vmul.f32 %v2762_v7, %v2571_v40  ;;  %v1612_v28 = vpop.permute.xlu1 %1611  ;;  %v2009_v32 = vpop.permute.xlu0 %2008  ;;  %v2918_v3 = vsel %vm673_vm0, %v2876_v43, 0.0 }
 0x2f6   : > { %v2804_v4 = vadd.f32 %v2803_v25, %v2802_v62  ;;  %v2348_v46 = vsel %vm2320_vm9, %v2311_v16, %v2009_v32  ;;  %v2238_v24 = vsel %vm2209_vm6, %v2201_v48, %v1612_v28  ;;  %v748_v28 = vld [vmem:[#allocation2 + $0xf0] sm:$0xff]  ;;  %v5245_v32 = vld [vmem:[#allocation54_spill] sm:$0xff] }
 0x2f7   : > { %v2916_v58 = vsel %vm673_vm0, %v2875_v59, 0.0  ;;  %3223 = vmatmul.mubr.msk.f32.gmra.mxu1 %vm2366_vm10, %v2348_v46  ;;  %v5246_v46 = vld [vmem:[#allocation76_spill] sm:$0xff] }
 0x2f8   : > { %v2917_v18 = vadd.f32 %v2916_v58, %v2915_v38  ;;  %v2806_v19 = vadd.f32 %v2805_v30, %v2804_v4  ;;  %v5240_v38 = vld [vmem:[#allocation53_spill] sm:$0xff]  ;;  %v2092_v4 = vsel %vm673_vm0, %v748_v28, %v5245_v32  ;;  %v5247_v58 = vld [vmem:[#allocation98_spill] sm:$0xff]  ;;  %v5257_v28 = vld [vmem:[#allocation79_spill] sm:$0xff] }
 0x2f9   : > { %v1614_v13 = vpop.permute.xlu1 %1613  ;;  %v1723_v31 = vpop.permute.xlu0 %1722  ;;  %v2091_v45 = vsel %vm673_vm0, %v747_v20, %v5240_v38  ;;  %v2129_v30 = vsel %vm2098_vm3, %v2092_v4, %v5246_v46 }
 0x2fa   : > { %v2919_v51 = vadd.f32 %v2918_v3, %v2917_v18  ;;  %v2128_v5 = vsel %vm2098_vm3, %v2091_v45, %v5241_v44  ;;  %v2275_v15 = vsel %vm2246_vm7, %v2238_v24, %v1723_v31  ;;  %v2166_v18 = vsel %vm2135_vm4, %v2129_v30, %v5247_v58  ;;  %v5258_v30 = vld [vmem:[#allocation101_spill] sm:$0xff] }
 0x2fb   : > { %v2165_v27 = vsel %vm2135_vm4, %v2128_v5, %v5242_v53  ;;  %v5252_v5 = vld [vmem:[#allocation14_spill] sm:$0xff] }
 0x2fc   : > { %v2202_v39 = vsel %vm2172_vm5, %v2165_v27, %v1470_v9 }
 0x2fd   : > { %v1725_v63 = vpop.permute.xlu1 %1724  ;;  %v1867_v10 = vpop.permute.xlu0 %1866  ;;  %v2239_v23 = vsel %vm2209_vm6, %v2202_v39, %v1614_v13  ;;  %v749_v13 = vld [vmem:[#allocation2 + $0xf8] sm:$0xff] }
 0x2fe   : > { %v2312_v54 = vsel %vm2283_vm8, %v2275_v15, %v1867_v10  ;;  %v2276_v8 = vsel %vm2246_vm7, %v2239_v23, %v1725_v63 }
 0x301   : > { %v1472_v62 = vpop.permute.xlu1 %1471  ;;  %v1869_v22 = vpop.permute.xlu0 %1868 }
 0x302   : > { %v2313_v12 = vsel %vm2283_vm8, %v2276_v8, %v1869_v22  ;;  %v2203_v31 = vsel %vm2172_vm5, %v2166_v18, %v1472_v62  ;;  %v5251_v62 = vld [vmem:[#allocation13_spill] sm:$0xff] }
 0x304   : > { %v3197_v56 = vpop.f32.mrf.mxu0 }
 0x305   : > { %2729 = vst.msk [vmem:[%s4666_s24 + $0x48] sm:$0xff] %vm673_vm0, %v3197_v56  ;;  %v2765_v50 = vmul.f32 %v3197_v56, %v5243_v57  ;;  %v2011_v0 = vpop.permute.xlu1 %2010  ;;  %v1474_v37 = vpop.permute.xlu0 %1473 }
 0x306   : > { %v2349_v6 = vsel %vm2320_vm9, %v2312_v54, %v2011_v0  ;;  %v2581_v35 = vpop.f32.mrf.mxu0 }
 0x307   : > { %2728 = vst.msk [vmem:[%s4666_s24 + $0x40] sm:$0xff] %vm673_vm0, %v2581_v35  ;;  %v2764_v52 = vmul.f32 %v2581_v35, %v5244_v14  ;;  %3225 = vmatprep.mubr.msk.f32.mxu1 %vm2366_vm10, %v2349_v6  ;;  %v2878_v33 = vmul.f32 %v3197_v56, %v2765_v50  ;;  %v2809_v61 = vsel %vm673_vm0, %v2765_v50, 0.0 }
 0x309   : > { %v2807_v34 = vsel %vm673_vm0, %v2764_v52, 0.0  ;;  %v2877_v2 = vmul.f32 %v2764_v52, %v2581_v35  ;;  %v1616_v47 = vpop.permute.xlu1 %1615  ;;  %v2013_v26 = vpop.permute.xlu0 %2012  ;;  %v2922_v7 = vsel %vm673_vm0, %v2878_v33, 0.0 }
 0x30a   : > { %v2808_v9 = vadd.f32 %v2807_v34, %v2806_v19  ;;  %v2350_v11 = vsel %vm2320_vm9, %v2313_v12, %v2013_v26  ;;  %v2240_v10 = vsel %vm2209_vm6, %v2203_v31, %v1616_v47  ;;  %v750_v47 = vld [vmem:[#allocation2 + $0x100] sm:$0xff]  ;;  %v5253_v26 = vld [vmem:[#allocation56_spill] sm:$0xff] }
 0x30b   : > { %v2920_v40 = vsel %vm673_vm0, %v2877_v2, 0.0  ;;  %3226 = vmatmul.mubr.msk.f32.gmra.mxu1 %vm2366_vm10, %v2350_v11  ;;  %v5254_v11 = vld [vmem:[#allocation78_spill] sm:$0xff] }
 0x30c   : > { %v2921_v1 = vadd.f32 %v2920_v40, %v2919_v51  ;;  %v2810_v49 = vadd.f32 %v2809_v61, %v2808_v9  ;;  %v5248_v51 = vld [vmem:[#allocation55_spill] sm:$0xff]  ;;  %v2094_v9 = vsel %vm673_vm0, %v750_v47, %v5253_v26  ;;  %v5255_v40 = vld [vmem:[#allocation100_spill] sm:$0xff] }
 0x30d   : > { %v1618_v55 = vpop.permute.xlu1 %1617  ;;  %v1727_v16 = vpop.permute.xlu0 %1726  ;;  %v2093_v63 = vsel %vm673_vm0, %v749_v13, %v5248_v51  ;;  %v2131_v61 = vsel %vm2098_vm3, %v2094_v9, %v5254_v11  ;;  %v5266_v26 = vld [vmem:[#allocation103_spill] sm:$0xff] }
 0x30e   : > { %v2923_v43 = vadd.f32 %v2922_v7, %v2921_v1  ;;  %v2130_v42 = vsel %vm2098_vm3, %v2093_v63, %v5249_v60  ;;  %v2277_v29 = vsel %vm2246_vm7, %v2240_v10, %v1727_v16  ;;  %v2168_v1 = vsel %vm2135_vm4, %v2131_v61, %v5255_v40 }
 0x30f   : > { %v2167_v17 = vsel %vm2135_vm4, %v2130_v42, %v5250_v41  ;;  %v5260_v42 = vld [vmem:[#allocation16_spill] sm:$0xff] }
 0x310   : > { %v2204_v38 = vsel %vm2172_vm5, %v2167_v17, %v1474_v37 }
 0x311   : > { %v1729_v25 = vpop.permute.xlu1 %1728  ;;  %v1871_v59 = vpop.permute.xlu0 %1870  ;;  %v2241_v44 = vsel %vm2209_vm6, %v2204_v38, %v1618_v55  ;;  %v751_v55 = vld [vmem:[#allocation2 + $0x108] sm:$0xff] }
 0x312   : > { %v2314_v21 = vsel %vm2283_vm8, %v2277_v29, %v1871_v59  ;;  %v2278_v56 = vsel %vm2246_vm7, %v2241_v44, %v1729_v25 }
 0x315   : > { %v1476_v19 = vpop.permute.xlu1 %1475  ;;  %v1873_v3 = vpop.permute.xlu0 %1872 }
 0x316   : > { %v2315_v53 = vsel %vm2283_vm8, %v2278_v56, %v1873_v3  ;;  %v2205_v16 = vsel %vm2172_vm5, %v2168_v1, %v1476_v19  ;;  %v5259_v19 = vld [vmem:[#allocation15_spill] sm:$0xff] }
 0x318   : > { %v3200_v36 = vpop.f32.mrf.mxu0 }
 0x319   : > { %2731 = vst.msk [vmem:[%s4666_s24 + $0x58] sm:$0xff] %vm673_vm0, %v3200_v36  ;;  %v2767_v22 = vmul.f32 %v3200_v36, %v5251_v62  ;;  %v2015_v20 = vpop.permute.xlu1 %2014  ;;  %v1478_v48 = vpop.permute.xlu0 %1477 }
 0x31a   : > { %v2351_v45 = vsel %vm2320_vm9, %v2314_v21, %v2015_v20  ;;  %v2591_v24 = vpop.f32.mrf.mxu0 }
 0x31b   : > { %2730 = vst.msk [vmem:[%s4666_s24 + $0x50] sm:$0xff] %vm673_vm0, %v2591_v24  ;;  %v2766_v15 = vmul.f32 %v2591_v24, %v5252_v5  ;;  %3228 = vmatprep.mubr.msk.f32.mxu1 %vm2366_vm10, %v2351_v45  ;;  %v2880_v27 = vmul.f32 %v3200_v36, %v2767_v22  ;;  %v2813_v6 = vsel %vm673_vm0, %v2767_v22, 0.0 }
 0x31d   : > { %v2811_v54 = vsel %vm673_vm0, %v2766_v15, 0.0  ;;  %v2879_v57 = vmul.f32 %v2766_v15, %v2591_v24  ;;  %v1620_v50 = vpop.permute.xlu1 %1619  ;;  %v2017_v0 = vpop.permute.xlu0 %2016  ;;  %v2926_v52 = vsel %vm673_vm0, %v2880_v27, 0.0  ;;  %v752_v27 = vld [vmem:[#allocation2 + $0x110] sm:$0xff] }
 0x31e   : > { %v2812_v37 = vadd.f32 %v2811_v54, %v2810_v49  ;;  %v2352_v39 = vsel %vm2320_vm9, %v2315_v53, %v2017_v0  ;;  %v2242_v59 = vsel %vm2209_vm6, %v2205_v16, %v1620_v50  ;;  %v5262_v0 = vld [vmem:[#allocation80_spill] sm:$0xff] }
 0x31f   : > { %v2924_v35 = vsel %vm673_vm0, %v2879_v57, 0.0  ;;  %3229 = vmatmul.mubr.msk.f32.gmra.mxu1 %vm2366_vm10, %v2352_v39  ;;  %v5261_v57 = vld [vmem:[#allocation58_spill] sm:$0xff] }
 0x320   : > { %v2925_v23 = vadd.f32 %v2924_v35, %v2923_v43  ;;  %v2814_v14 = vadd.f32 %v2813_v6, %v2812_v37  ;;  %v5256_v43 = vld [vmem:[#allocation57_spill] sm:$0xff]  ;;  %v2096_v50 = vsel %vm673_vm0, %v752_v27, %v5261_v57  ;;  %v5263_v39 = vld [vmem:[#allocation102_spill] sm:$0xff] }
 0x321   : > { %v1622_v8 = vpop.permute.xlu1 %1621  ;;  %v1731_v12 = vpop.permute.xlu0 %1730  ;;  %v2095_v25 = vsel %vm673_vm0, %v751_v55, %v5256_v43  ;;  %v2133_v37 = vsel %vm2098_vm3, %v2096_v50, %v5262_v0  ;;  %v5272_v57 = vld [vmem:[#allocation22_spill] sm:$0xff] }
 0x322   : > { %v2927_v33 = vadd.f32 %v2926_v52, %v2925_v23  ;;  %v2132_v32 = vsel %vm2098_vm3, %v2095_v25, %v5257_v28  ;;  %v2279_v4 = vsel %vm2246_vm7, %v2242_v59, %v1731_v12  ;;  %v2170_v6 = vsel %vm2135_vm4, %v2133_v37, %v5263_v39  ;;  %v5267_v25 = vld [vmem:[#allocation17_spill] sm:$0xff] }
 0x323   : > { %v2169_v58 = vsel %vm2135_vm4, %v2132_v32, %v5258_v30 }
 0x324   : > { %v2206_v51 = vsel %vm2172_vm5, %v2169_v58, %v1478_v48 }
 0x325   : > { %v1733_v34 = vpop.permute.xlu1 %1732  ;;  %v1875_v2 = vpop.permute.xlu0 %1874  ;;  %v2243_v60 = vsel %vm2209_vm6, %v2206_v51, %v1622_v8  ;;  %v5264_v8 = vld [vmem:[#allocation59_spill] sm:$0xff] }
 0x326   : > { %v2316_v18 = vsel %vm2283_vm8, %v2279_v4, %v1875_v2  ;;  %v2280_v36 = vsel %vm2246_vm7, %v2243_v60, %v1733_v34  ;;  %v5265_v34 = vld [vmem:[#allocation81_spill] sm:$0xff] }
 0x329   : > { %v1480_v49 = vpop.permute.xlu1 %1479  ;;  %v1877_v7 = vpop.permute.xlu0 %1876 }
 0x32a   : > { %v2317_v41 = vsel %vm2283_vm8, %v2280_v36, %v1877_v7  ;;  %v2207_v52 = vsel %vm2172_vm5, %v2170_v6, %v1480_v49 }
 0x32c   : > { %v3203_v46 = vpop.f32.mrf.mxu0 }
 0x32d   : > { %2733 = vst.msk [vmem:[%s4666_s24 + $0x68] sm:$0xff] %vm673_vm0, %v3203_v46  ;;  %v2769_v3 = vmul.f32 %v3203_v46, %v5259_v19  ;;  %v2019_v13 = vpop.permute.xlu1 %2018  ;;  %v1482_v31 = vpop.permute.xlu0 %1481 }
 0x32e   : > { %v2353_v63 = vsel %vm2320_vm9, %v2316_v18, %v2019_v13  ;;  %v2601_v10 = vpop.f32.mrf.mxu0 }
 0x32f   : > { %2732 = vst.msk [vmem:[%s4666_s24 + $0x60] sm:$0xff] %vm673_vm0, %v2601_v10  ;;  %v2768_v29 = vmul.f32 %v2601_v10, %v5260_v42  ;;  %3231 = vmatprep.mubr.msk.f32.mxu1 %vm2366_vm10, %v2353_v63  ;;  %v2882_v17 = vmul.f32 %v3203_v46, %v2769_v3  ;;  %v2817_v45 = vsel %vm673_vm0, %v2769_v3, 0.0  ;;  %v5268_v46 = vld [vmem:[#allocation18_spill] sm:$0xff] }
 0x331   : > { %v2815_v21 = vsel %vm673_vm0, %v2768_v29, 0.0  ;;  %v2881_v62 = vmul.f32 %v2768_v29, %v2601_v10  ;;  %v1624_v22 = vpop.permute.xlu1 %1623  ;;  %v2021_v20 = vpop.permute.xlu0 %2020  ;;  %v2930_v15 = vsel %vm673_vm0, %v2882_v17, 0.0  ;;  %v5269_v29 = vld [vmem:[#allocation19_spill] sm:$0xff]  ;;  %v5270_v17 = vld [vmem:[#allocation20_spill] sm:$0xff] }
 0x332   : > { %v2816_v48 = vadd.f32 %v2815_v21, %v2814_v14  ;;  %v2354_v38 = vsel %vm2320_vm9, %v2317_v41, %v2021_v20  ;;  %v753_v14 = vld [vmem:[#allocation2 + $0x118] sm:$0x3f] }
 0x333   : > { %v2928_v24 = vsel %vm673_vm0, %v2881_v62, 0.0  ;;  %3232 = vmatmul.mubr.msk.f32.gmra.mxu1 %vm2366_vm10, %v2354_v38  ;;  %v2097_v12 = vsel %vm673_vm0, %v753_v14, %v5264_v8 }
 0x334   : > { %v2929_v44 = vadd.f32 %v2928_v24, %v2927_v33  ;;  %v2818_v5 = vadd.f32 %v2817_v45, %v2816_v48  ;;  %v2244_v33 = vsel %vm2209_vm6, %v2207_v52, %v1624_v22  ;;  %v2134_v2 = vsel %vm2098_vm3, %v2097_v12, %v5265_v34  ;;  %v5273_v34 = vld [vmem:[#allocation23_spill] sm:$0xff] }
 0x335   : > { %v1626_v56 = vpop.permute.xlu1 %1625  ;;  %v1735_v53 = vpop.permute.xlu0 %1734  ;;  %v2171_v9 = vsel %vm2135_vm4, %v2134_v2, %v5266_v26  ;;  %v5274_v26 = vld [vmem:[#allocation24_spill] sm:$0xff] }
 0x336   : > { %v2931_v54 = vadd.f32 %v2930_v15, %v2929_v44  ;;  %v2281_v47 = vsel %vm2246_vm7, %v2244_v33, %v1735_v53  ;;  %v2208_v1 = vsel %vm2172_vm5, %v2171_v9, %v1482_v31  ;;  %v5271_v53 = vld [vmem:[#allocation21_spill] sm:$0xff] }
 0x337   : > { %v2245_v7 = vsel %vm2209_vm6, %v2208_v1, %v1626_v56 }
 0x339   : > { %v1737_v35 = vpop.permute.xlu1 %1736  ;;  %v1879_v23 = vpop.permute.xlu0 %1878 }
 0x33a   : > { %v2318_v11 = vsel %vm2283_vm8, %v2281_v47, %v1879_v23  ;;  %v2282_v55 = vsel %vm2246_vm7, %v2245_v7, %v1737_v35 }
 0x33d   : > { %v1881_v61 = vpop.permute.xlu1 %1880  ;;  %v2023_v40 = vpop.permute.xlu0 %2022 }
 0x33e   : > { %v2355_v49 = vsel %vm2320_vm9, %v2318_v11, %v2023_v40  ;;  %v2319_v43 = vsel %vm2283_vm8, %v2282_v55, %v1881_v61 }
 0x33f   : > { %3234 = vmatprep.mubr.msk.f32.mxu1 %vm2366_vm10, %v2355_v49 }
 0x340   : > { %v3206_v16 = vpop.f32.mrf.mxu0 }
 0x341   : > { %2735 = vst.msk [vmem:[%s4666_s24 + $0x78] sm:$0xff] %vm673_vm0, %v3206_v16  ;;  %v2771_v59 = vmul.f32 %v3206_v16, %v5267_v25  ;;  %v2025_v28 = vpop.permute.xlu1 %2024 }
 0x342   : > { %v2356_v32 = vsel %vm2320_vm9, %v2319_v43, %v2025_v28  ;;  %v2611_v4 = vpop.f32.mrf.mxu0  ;;  %v5275_v28 = vld [vmem:[#allocation25_spill] sm:$0xff] }
 0x343   : > { %2734 = vst.msk [vmem:[%s4666_s24 + $0x70] sm:$0xff] %vm673_vm0, %v2611_v4  ;;  %v2770_v30 = vmul.f32 %v2611_v4, %v5268_v46  ;;  %3235 = vmatmul.mubr.msk.f32.gmra.mxu1 %vm2366_vm10, %v2356_v32  ;;  %v2884_v58 = vmul.f32 %v3206_v16, %v2771_v59  ;;  %v2821_v13 = vsel %vm673_vm0, %v2771_v59, 0.0  ;;  %v5276_v46 = vld [vmem:[#allocation26_spill] sm:$0xff] }
 0x345   : > { %v2819_v18 = vsel %vm673_vm0, %v2770_v30, 0.0  ;;  %v2883_v19 = vmul.f32 %v2770_v30, %v2611_v4  ;;  %v2934_v10 = vsel %vm673_vm0, %v2884_v58, 0.0 }
 0x346   : > { %v2820_v3 = vadd.f32 %v2819_v18, %v2818_v5 }
 0x347   : > { %v2932_v31 = vsel %vm673_vm0, %v2883_v19, 0.0 }
 0x348   : > { %v2933_v51 = vadd.f32 %v2932_v31, %v2931_v54  ;;  %v2822_v63 = vadd.f32 %v2821_v13, %v2820_v3 }
 0x34a   : > { %v2935_v60 = vadd.f32 %v2934_v10, %v2933_v51 }
 0x354   : > { %v3209_v42 = vpop.f32.mrf.mxu0 }
 0x355   : > { %2737 = vst.msk [vmem:[%s4666_s24 + $0x88] sm:$0xff] %vm673_vm0, %v3209_v42  ;;  %v2773_v36 = vmul.f32 %v3209_v42, %v5269_v29  ;;  %v5277_v29 = vld [vmem:[#allocation27_spill] sm:$0xff] }
 0x356   : > { %v2621_v41 = vpop.f32.mrf.mxu0 }
 0x357   : > { %2736 = vst.msk [vmem:[%s4666_s24 + $0x80] sm:$0xff] %vm673_vm0, %v2621_v41  ;;  %v2772_v21 = vmul.f32 %v2621_v41, %v5270_v17  ;;  %v2886_v62 = vmul.f32 %v3209_v42, %v2773_v36  ;;  %v2825_v38 = vsel %vm673_vm0, %v2773_v36, 0.0  ;;  %v5278_v17 = vld [vmem:[#allocation28_spill] sm:$0xff] }
 0x359   : > { %v2823_v22 = vsel %vm673_vm0, %v2772_v21, 0.0  ;;  %v2885_v20 = vmul.f32 %v2772_v21, %v2621_v41  ;;  %v2938_v5 = vsel %vm673_vm0, %v2886_v62, 0.0 }
 0x35a   : > { %v2824_v48 = vadd.f32 %v2823_v22, %v2822_v63 }
 0x35b   : > { %v2936_v45 = vsel %vm673_vm0, %v2885_v20, 0.0 }
 0x35c   : > { %v2826_v24 = vadd.f32 %v2825_v38, %v2824_v48  ;;  %v2937_v44 = vadd.f32 %v2936_v45, %v2935_v60 }
 0x35e   : > { %v2939_v15 = vadd.f32 %v2938_v5, %v2937_v44 }
 0x368   : > { %v3212_v56 = vpop.f32.mrf.mxu1 }
 0x369   : > { %2739 = vst.msk [vmem:[%s4666_s24 + $0x98] sm:$0xff] %vm673_vm0, %v3212_v56  ;;  %v2775_v27 = vmul.f32 %v3212_v56, %v5271_v53  ;;  %v5279_v53 = vld [vmem:[#allocation29_spill] sm:$0xff] }
 0x36a   : > { %v2631_v54 = vpop.f32.mrf.mxu1 }
 0x36b   : > { %2738 = vst.msk [vmem:[%s4666_s24 + $0x90] sm:$0xff] %vm673_vm0, %v2631_v54  ;;  %v2774_v50 = vmul.f32 %v2631_v54, %v5272_v57  ;;  %v2888_v0 = vmul.f32 %v3212_v56, %v2775_v27  ;;  %v2829_v35 = vsel %vm673_vm0, %v2775_v27, 0.0  ;;  %v5280_v57 = vld [vmem:[#allocation30_spill] sm:$0xff] }
 0x36d   : > { %v2827_v37 = vsel %vm673_vm0, %v2774_v50, 0.0  ;;  %v2887_v39 = vmul.f32 %v2774_v50, %v2631_v54  ;;  %v2942_v8 = vsel %vm673_vm0, %v2888_v0, 0.0 }
 0x36e   : > { %v2828_v6 = vadd.f32 %v2827_v37, %v2826_v24 }
 0x36f   : > { %v2940_v23 = vsel %vm673_vm0, %v2887_v39, 0.0 }
 0x370   : > { %v2941_v14 = vadd.f32 %v2940_v23, %v2939_v15  ;;  %v2830_v52 = vadd.f32 %v2829_v35, %v2828_v6 }
 0x372   : > { %v2943_v12 = vadd.f32 %v2942_v8, %v2941_v14 }
 0x37c   : > { %v3215_v33 = vpop.f32.mrf.mxu1 }
 0x37d   : > { %2741 = vst.msk [vmem:[%s4666_s24 + $0xa8] sm:$0xff] %vm673_vm0, %v3215_v33  ;;  %v2777_v2 = vmul.f32 %v3215_v33, %v5273_v34 }
 0x37e   : > { %v2641_v47 = vpop.f32.mrf.mxu1 }
 0x37f   : > { %2740 = vst.msk [vmem:[%s4666_s24 + $0xa0] sm:$0xff] %vm673_vm0, %v2641_v47  ;;  %v2776_v9 = vmul.f32 %v2641_v47, %v5274_v26  ;;  %v2890_v11 = vmul.f32 %v3215_v33, %v2777_v2  ;;  %v2833_v49 = vsel %vm673_vm0, %v2777_v2, 0.0  ;;  %v5281_v26 = vld [vmem:[#allocation32_spill] sm:$0xff] }
 0x381   : > { %v2831_v61 = vsel %vm673_vm0, %v2776_v9, 0.0  ;;  %v2889_v40 = vmul.f32 %v2776_v9, %v2641_v47  ;;  %v2946_v43 = vsel %vm673_vm0, %v2890_v11, 0.0 }
 0x382   : > { %v2832_v1 = vadd.f32 %v2831_v61, %v2830_v52 }
 0x383   : > { %v2944_v7 = vsel %vm673_vm0, %v2889_v40, 0.0  ;;  %v5282_v40 = vld [vmem:[#allocation31_spill] sm:$0xff] }
 0x384   : > { %v2945_v55 = vadd.f32 %v2944_v7, %v2943_v12  ;;  %v2834_v16 = vadd.f32 %v2833_v49, %v2832_v1  ;;  %v5283_v7 = vld [vmem:[#allocation34_spill] sm:$0xff] }
 0x386   : > { %v2947_v25 = vadd.f32 %v2946_v43, %v2945_v55 }
 0x38f   : > { %v3218_v59 = vpop.f32.mrf.mxu1 }
 0x390   : > { %2743 = vst.msk [vmem:[%s4666_s24 + $0xb8] sm:$0xff] %vm673_vm0, %v3218_v59  ;;  %v2779_v32 = vmul.f32 %v3218_v59, %v5275_v28 }
 0x391   : > { %v2651_v4 = vpop.f32.mrf.mxu1 }
 0x392   : > { %2742 = vst.msk [vmem:[%s4666_s24 + $0xb0] sm:$0xff] %vm673_vm0, %v2651_v4  ;;  %v2778_v30 = vmul.f32 %v2651_v4, %v5276_v46  ;;  %v2892_v58 = vmul.f32 %v3218_v59, %v2779_v32  ;;  %v2837_v13 = vsel %vm673_vm0, %v2779_v32, 0.0  ;;  %v5284_v46 = vld [vmem:[#allocation33_spill] sm:$0xff] }
 0x394   : > { %v2835_v18 = vsel %vm673_vm0, %v2778_v30, 0.0  ;;  %v2891_v19 = vmul.f32 %v2778_v30, %v2651_v4  ;;  %v2950_v10 = vsel %vm673_vm0, %v2892_v58, 0.0 }
 0x395   : > { %v2836_v3 = vadd.f32 %v2835_v18, %v2834_v16  ;;  %v5285_v18 = vld [vmem:[#allocation36_spill] sm:$0xff] }
 0x396   : > { %v2948_v31 = vsel %vm673_vm0, %v2891_v19, 0.0 }
 0x397   : > { %v2949_v51 = vadd.f32 %v2948_v31, %v2947_v25  ;;  %v2838_v63 = vadd.f32 %v2837_v13, %v2836_v3 }
 0x399   : > { %v2951_v60 = vadd.f32 %v2950_v10, %v2949_v51 }
 0x3a3   : > { %v3221_v42 = vpop.f32.mrf.mxu1 }
 0x3a4   : > { %2745 = vst.msk [vmem:[%s4666_s24 + $0xc8] sm:$0xff] %vm673_vm0, %v3221_v42  ;;  %v2781_v36 = vmul.f32 %v3221_v42, %v5277_v29 }
 0x3a5   : > { %v2661_v41 = vpop.f32.mrf.mxu1 }
 0x3a6   : > { %2744 = vst.msk [vmem:[%s4666_s24 + $0xc0] sm:$0xff] %vm673_vm0, %v2661_v41  ;;  %v2780_v21 = vmul.f32 %v2661_v41, %v5278_v17  ;;  %v2894_v62 = vmul.f32 %v3221_v42, %v2781_v36  ;;  %v2841_v38 = vsel %vm673_vm0, %v2781_v36, 0.0  ;;  %v5286_v36 = vld [vmem:[#allocation35_spill] sm:$0xff] }
 0x3a8   : > { %v2839_v22 = vsel %vm673_vm0, %v2780_v21, 0.0  ;;  %v2893_v20 = vmul.f32 %v2780_v21, %v2661_v41  ;;  %v2954_v5 = vsel %vm673_vm0, %v2894_v62, 0.0 }
 0x3a9   : > { %v2840_v48 = vadd.f32 %v2839_v22, %v2838_v63 }
 0x3aa   : > { %v2952_v45 = vsel %vm673_vm0, %v2893_v20, 0.0 }
 0x3ab   : > { %v2953_v24 = vadd.f32 %v2952_v45, %v2951_v60  ;;  %v2842_v44 = vadd.f32 %v2841_v38, %v2840_v48 }
 0x3ad   : > { %v2955_v15 = vadd.f32 %v2954_v5, %v2953_v24  ;;  %v5287_v24 = vld [vmem:[#allocation37_spill] sm:$0xff] }
 0x3b7   : > { %v3224_v56 = vpop.f32.mrf.mxu1 }
 0x3b8   : > { %2747 = vst.msk [vmem:[%s4666_s24 + $0xd8] sm:$0xff] %vm673_vm0, %v3224_v56  ;;  %v2783_v27 = vmul.f32 %v3224_v56, %v5279_v53  ;;  %v5288_v53 = vld [vmem:[#allocation38_spill] sm:$0xff] }
 0x3b9   : > { %v2671_v54 = vpop.f32.mrf.mxu1 }
 0x3ba   : > { %2746 = vst.msk [vmem:[%s4666_s24 + $0xd0] sm:$0xff] %vm673_vm0, %v2671_v54  ;;  %v2782_v50 = vmul.f32 %v2671_v54, %v5280_v57  ;;  %v2896_v0 = vmul.f32 %v3224_v56, %v2783_v27  ;;  %v2845_v35 = vsel %vm673_vm0, %v2783_v27, 0.0 }
 0x3bc   : > { %v2843_v37 = vsel %vm673_vm0, %v2782_v50, 0.0  ;;  %v2895_v39 = vmul.f32 %v2782_v50, %v2671_v54  ;;  %v2958_v8 = vsel %vm673_vm0, %v2896_v0, 0.0 }
 0x3bd   : > { %v2844_v6 = vadd.f32 %v2843_v37, %v2842_v44 }
 0x3be   : > { %v2956_v23 = vsel %vm673_vm0, %v2895_v39, 0.0 }
 0x3bf   : > { %v2957_v14 = vadd.f32 %v2956_v23, %v2955_v15  ;;  %v2846_v52 = vadd.f32 %v2845_v35, %v2844_v6 }
 0x3c1   : > { %v2959_v12 = vadd.f32 %v2958_v8, %v2957_v14 }
 0x3cb   : > { %v3227_v33 = vpop.f32.mrf.mxu1 }
 0x3cc   : > { %2749 = vst.msk [vmem:[%s4666_s24 + $0xe8] sm:$0xff] %vm673_vm0, %v3227_v33  ;;  %v2785_v1 = vmul.f32 %v3227_v33, %v5282_v40 }
 0x3cd   : > { %v2681_v34 = vpop.f32.mrf.mxu1 }
 0x3ce   : > { %2748 = vst.msk [vmem:[%s4666_s24 + $0xe0] sm:$0xff] %vm673_vm0, %v2681_v34  ;;  %v2784_v9 = vmul.f32 %v2681_v34, %v5281_v26  ;;  %v2898_v59 = vmul.f32 %v3227_v33, %v2785_v1  ;;  %v2849_v4 = vsel %vm673_vm0, %v2785_v1, 0.0 }
 0x3d0   : > { %v2897_v11 = vmul.f32 %v2784_v9, %v2681_v34  ;;  %v2847_v49 = vsel %vm673_vm0, %v2784_v9, 0.0  ;;  %v2962_v13 = vsel %vm673_vm0, %v2898_v59, 0.0 }
 0x3d1   : > { %v2848_v25 = vadd.f32 %v2847_v49, %v2846_v52 }
 0x3d2   : > { %v2960_v43 = vsel %vm673_vm0, %v2897_v11, 0.0 }
 0x3d3   : > { %v2961_v32 = vadd.f32 %v2960_v43, %v2959_v12  ;;  %v2850_v3 = vadd.f32 %v2849_v4, %v2848_v25 }
 0x3d5   : > { %v2963_v63 = vadd.f32 %v2962_v13, %v2961_v32 }
 0x3df   : > { %v3230_v2 = vpop.f32.mrf.mxu1 }
 0x3e0   : > { %2751 = vst.msk [vmem:[%s4666_s24 + $0xf8] sm:$0xff] %vm673_vm0, %v3230_v2  ;;  %v2787_v30 = vmul.f32 %v3230_v2, %v5284_v46 }
 0x3e1   : > { %v2691_v47 = vpop.f32.mrf.mxu1 }
 0x3e2   : > { %2750 = vst.msk [vmem:[%s4666_s24 + $0xf0] sm:$0xff] %vm673_vm0, %v2691_v47  ;;  %v2786_v55 = vmul.f32 %v2691_v47, %v5283_v7  ;;  %v2900_v10 = vmul.f32 %v3230_v2, %v2787_v30  ;;  %v2853_v29 = vsel %vm673_vm0, %v2787_v30, 0.0 }
 0x3e4   : > { %v2899_v28 = vmul.f32 %v2786_v55, %v2691_v47  ;;  %v2851_v58 = vsel %vm673_vm0, %v2786_v55, 0.0  ;;  %v2966_v62 = vsel %vm673_vm0, %v2900_v10, 0.0 }
 0x3e5   : > { %v2852_v51 = vadd.f32 %v2851_v58, %v2850_v3 }
 0x3e6   : > { %v2964_v31 = vsel %vm673_vm0, %v2899_v28, 0.0 }
 0x3e7   : > { %v2965_v42 = vadd.f32 %v2964_v31, %v2963_v63  ;;  %v2854_v21 = vadd.f32 %v2853_v29, %v2852_v51 }
 0x3e9   : > { %v2967_v48 = vadd.f32 %v2966_v62, %v2965_v42 }
 0x3f3   : > { %v3233_v61 = vpop.f32.mrf.mxu1 }
 0x3f4   : > { %2753 = vst.msk [vmem:[%s4666_s24 + $0x108] sm:$0xff] %vm673_vm0, %v3233_v61  ;;  %v2789_v41 = vmul.f32 %v3233_v61, %v5286_v36 }
 0x3f5   : > { %v2701_v16 = vpop.f32.mrf.mxu1 }
 0x3f6   : > { %2752 = vst.msk [vmem:[%s4666_s24 + $0x100] sm:$0xff] %vm673_vm0, %v2701_v16  ;;  %v2788_v19 = vmul.f32 %v2701_v16, %v5285_v18  ;;  %v2902_v45 = vmul.f32 %v3233_v61, %v2789_v41  ;;  %v2857_v56 = vsel %vm673_vm0, %v2789_v41, 0.0 }
 0x3f8   : > { %v2901_v60 = vmul.f32 %v2788_v19, %v2701_v16  ;;  %v2855_v17 = vsel %vm673_vm0, %v2788_v19, 0.0  ;;  %v2970_v57 = vsel %vm673_vm0, %v2902_v45, 0.0 }
 0x3f9   : > { %v2856_v20 = vadd.f32 %v2855_v17, %v2854_v21 }
 0x3fa   : > { %v2968_v22 = vsel %vm673_vm0, %v2901_v60, 0.0 }
 0x3fb   : > { %v2969_v5 = vadd.f32 %v2968_v22, %v2967_v48  ;;  %v2858_v54 = vadd.f32 %v2857_v56, %v2856_v20 }
 0x3fd   : > { %v2971_v6 = vadd.f32 %v2970_v57, %v2969_v5 }
 0x403   : > { %v3236_v38 = vpop.f32.mrf.mxu1 }
 0x404   : > { %2755 = vst.msk [vmem:[%s4666_s24 + $0x118] sm:$0x3f] %vm713_vm2, %v3236_v38  ;;  %v2791_v44 = vmul.f32 %v3236_v38, %v5287_v24 }
 0x405   : > { %v2711_v15 = vpop.f32.mrf.mxu1 }
 0x406   : > { %2754 = vst.msk [vmem:[%s4666_s24 + $0x110] sm:$0xff] %vm673_vm0, %v2711_v15  ;;  %v2790_v27 = vmul.f32 %v2711_v15, %v5288_v53  ;;  %v2904_v50 = vmul.f32 %v3236_v38, %v2791_v44  ;;  %v2861_v35 = vsel %vm713_vm2, %v2791_v44, 0.0 }
 0x408   : > { %v2859_v0 = vsel %vm673_vm0, %v2790_v27, 0.0  ;;  %v2903_v37 = vmul.f32 %v2790_v27, %v2711_v15  ;;  %v2974_v8 = vsel %vm713_vm2, %v2904_v50, 0.0 }
 0x409   : > { %v2860_v39 = vadd.f32 %v2859_v0, %v2858_v54 }
 0x40a   : > { %v2972_v23 = vsel %vm673_vm0, %v2903_v37, 0.0 }
 0x40b   : > { %v2862_v14 = vadd.f32 %v2861_v35, %v2860_v39  ;;  %v2973_v52 = vadd.f32 %v2972_v23, %v2971_v6 }
 0x40d   : > { %v2863_v12 = vrot.slane %v2862_v14, 4  ;;  %v2975_v33 = vadd.f32 %v2974_v8, %v2973_v52 }
 0x40f   : > { %v2864_v34 = vadd.f32 %v2863_v12, %v2862_v14  ;;  %v2976_v2 = vrot.slane %v2975_v33, 4 }
 0x411   : > { %v2865_v47 = vrot.slane %v2864_v34, 2  ;;  %v2977_v26 = vadd.f32 %v2976_v2, %v2975_v33 }
 0x413   : > { %v2866_v9 = vadd.f32 %v2865_v47, %v2864_v34  ;;  %v2978_v11 = vrot.slane %v2977_v26, 2 }
 0x415   : > { %v2867_v61 = vrot.slane %v2866_v9, 1  ;;  %v2979_v40 = vadd.f32 %v2978_v11, %v2977_v26 }
 0x417   : > { %v2980_v1 = vrot.slane %v2979_v40, 1  ;;  %v2868_v49 = vadd.f32 %v2867_v61, %v2866_v9 }
 0x419   : > { %v2981_v7 = vadd.f32 %v2980_v1, %v2979_v40 }
 0x41b   : > { %v2983_v55 = vsel %vm2982_vm11, %v2868_v49, %v2981_v7 }
 0x41c   : > { %2985 = vst.msk [vmem:[%s262_s26] sm:$0x3] %vm2984_vm12, %v2983_v55 }
 0x41d PF: > { %s17_s21 = sadd.s32 1, %s3282_s21  }
 0x41e   : > { %p14_p4 = scmp.ge.s32.totalorder %s17_s21, 4  }
 0x420   :  { %16 = sbr.rel (!%p14_p4) target bundleno = 1 (0x1), region = 82 }

</bundles_post_ra>
